<compile_context>
chip_gen: v7x
topology: tpu7x:2x2x1
jax: 0.10.0
libtpu: 0.0.40
codegen_flags: <defaults>
</compile_context>

<pallas_src>
import functools

import jax
import jax.numpy as jnp
from jax.experimental import pallas as pl
from jax.experimental.pallas import tpu as pltpu

# ------------------------- small, module-consistent sizes -------------------------
B = 2          # batch
S = 40         # sequence length, multiple of 8
EMB = 128      # d_model (150 in the original; 128 keeps lanes dense here)
HEADS = 8      # nhead (10 in the original)
HEAD_DIM = EMB // HEADS
FFN = 256      # dim_feedforward (1000 in the original)
LAYERS = 6     # num_layers in nn.TransformerEncoder


# ------------------------------- shared math helpers -------------------------------
def _layer_norm(z, g, b, eps=1e-5):
    mu = jnp.mean(z, axis=-1, keepdims=True)
    var = jnp.mean((z - mu) ** 2, axis=-1, keepdims=True)
    return (z - mu) * jax.lax.rsqrt(var + eps) * g + b


def _gelu(z):
    # tanh-approximate GELU (EUP tanh).
    c = 0.7978845608028654  # sqrt(2/pi)
    return 0.5 * z * (1.0 + jnp.tanh(c * (z + 0.044715 * z * z * z)))


# ------------------------------------- kernel -------------------------------------
def encoder_layer_kernel(x_ref, bias_ref,
                         wqkv_ref, bqkv_ref, wo_ref, bo_ref,
                         g1_ref, be1_ref, w1_ref, b1_ref, w2_ref, b2_ref,
                         g2_ref, be2_ref,
                         o_ref, xs_ref, *, num_heads):
    """One encoder layer per grid step; residual stream carried in VMEM scratch."""
    l = pl.program_id(1)
    s_len, emb = xs_ref.shape
    hd = emb // num_heads
    scale = 1.0 / float(hd) ** 0.5

    # ---- initialise the residual stream from the input at the first layer ----
    @pl.when(l == 0)
    def _():
        xs_ref[...] = x_ref[0]                          # (S, E)

    x = xs_ref[...]                                     # (S, E) f32

    # ---- fused QKV projection: one (S,E) @ (E,3E) matmul ----
    wqkv = wqkv_ref[0].astype(jnp.float32)              # bf16 -> f32 (VALU, cheap)
    qkv = jnp.dot(x, wqkv, preferred_element_type=jnp.float32) + bqkv_ref[0]  # (S, 3E)

    # single reshape + transpose instead of 24 per-head column slices
    qkv_h = jnp.transpose(qkv.reshape(s_len, 3 * num_heads, hd), (1, 0, 2))   # (3H, S, hd)
    qh = qkv_h[:num_heads]                               # (H, S, hd)
    kh = qkv_h[num_heads:2 * num_heads]
    vh = qkv_h[2 * num_heads:]

    # ---- batched-over-heads attention ----
    s = jnp.einsum('hqd,hkd->hqk', qh, kh,
                   preferred_element_type=jnp.float32) * scale               # (H, S, S)
    s = s + bias_ref[0]                                  # (1, S) key-mask bias, broadcast
    s = s - jnp.max(s, axis=-1, keepdims=True)
    p = jnp.exp(s)
    p = p * pl.reciprocal(jnp.sum(p, axis=-1, keepdims=True), approx=True)
    ctx = jnp.einsum('hqk,hkd->hqd', p, vh,
                     preferred_element_type=jnp.float32)                     # (H, S, hd)

    # ---- output projection: single full-K (K = H*hd = E) matmul ----
    ctx_rows = jnp.transpose(ctx, (1, 0, 2)).reshape(s_len, emb)             # (S, E)
    attn = jnp.dot(ctx_rows, wo_ref[0].astype(jnp.float32),
                   preferred_element_type=jnp.float32) + bo_ref[0]

    # ---- post-LN residual blocks (norm_first=False), GELU FFN ----
    x = _layer_norm(x + attn, g1_ref[0], be1_ref[0])
    h1 = _gelu(jnp.dot(x, w1_ref[0].astype(jnp.float32),
                       preferred_element_type=jnp.float32) + b1_ref[0])
    ffn = jnp.dot(h1, w2_ref[0].astype(jnp.float32),
                  preferred_element_type=jnp.float32) + b2_ref[0]
    x = _layer_norm(x + ffn, g2_ref[0], be2_ref[0])

    xs_ref[...] = x

    # ---- write the output block only once, at the last layer ----
    @pl.when(l == pl.num_programs(1) - 1)
    def _():
        o_ref[...] = x.reshape(1, s_len, emb).astype(o_ref.dtype)


# --------------------------------- pallas wrapper ---------------------------------
def transformer_encoder(x, src_key_padding_mask, params):
    b_sz, s_len, emb = x.shape
    # hoisted mask bias: -1e9 where the key is padded (True in PyTorch semantics)
    bias = (-1e9 * src_key_padding_mask.astype(jnp.float32)).reshape(b_sz, 1, s_len)

    names = ("wqkv", "bqkv", "wo", "bo", "g1", "be1",
             "w1", "b1", "w2", "b2", "g2", "be2")
    weights = [params[n] for n in names]

    def batch_spec(shape):  # blocked per batch element, constant over the layer axis
        nd = len(shape)
        return pl.BlockSpec((1,) + tuple(shape[1:]),
                            lambda b, l, n=nd: (b,) + (0,) * (n - 1))

    def layer_spec(shape):  # blocked per layer (streamed weights), constant over batch
        nd = len(shape)
        return pl.BlockSpec((1,) + tuple(shape[1:]),
                            lambda b, l, n=nd: (l,) + (0,) * (n - 1))

    grid_spec = pltpu.PrefetchScalarGridSpec(
        num_scalar_prefetch=0,
        grid=(b_sz, LAYERS),
        in_specs=[batch_spec(x.shape), batch_spec(bias.shape)]
                 + [layer_spec(w.shape) for w in weights],
        out_specs=batch_spec((b_sz, s_len, emb)),
        scratch_shapes=[pltpu.VMEM((s_len, emb), jnp.float32)],  # residual stream
    )

    return pl.pallas_call(
        functools.partial(encoder_layer_kernel, num_heads=HEADS),
        out_shape=jax.ShapeDtypeStruct((b_sz, s_len, emb), jnp.float32),
        grid_spec=grid_spec,
        compiler_params=pltpu.CompilerParams(
            dimension_semantics=("parallel", "arbitrary")),
    )(x.astype(jnp.float32), bias, *weights)


# ---------------------------- synthetic per-layer weights ----------------------------
def init_params(key):
    ks = jax.random.split(key, 8)

    def w(k, shape, scale=0.08):
        return scale * jax.random.normal(k, shape, jnp.float32)

    return dict(
        # large weights stored as bf16 (halves weight DMA bytes); biases/LN in f32
        wqkv=w(ks[0], (LAYERS, EMB, 3 * EMB)).astype(jnp.bfloat16),  # fused q|k|v
        bqkv=w(ks[1], (LAYERS, 1, 3 * EMB)),
        wo=w(ks[2], (LAYERS, EMB, EMB)).astype(jnp.bfloat16),        # out_proj
        bo=w(ks[3], (LAYERS, 1, EMB)),
        g1=jnp.ones((LAYERS, 1, EMB), jnp.float32),
        be1=jnp.zeros((LAYERS, 1, EMB), jnp.float32),
        w1=w(ks[4], (LAYERS, EMB, FFN)).astype(jnp.bfloat16),
        b1=w(ks[5], (LAYERS, 1, FFN)),
        w2=w(ks[6], (LAYERS, FFN, EMB)).astype(jnp.bfloat16),
        b2=w(ks[7], (LAYERS, 1, EMB)),
        g2=jnp.ones((LAYERS, 1, EMB), jnp.float32),
        be2=jnp.zeros((LAYERS, 1, EMB), jnp.float32),
    )


# ----------------------------- pure-JAX reference (checks) -----------------------------
def encoder_reference(x, src_key_padding_mask, params):
    b_sz, s_len, emb = x.shape
    hd = emb // HEADS
    mask_add = -1e9 * src_key_padding_mask.astype(jnp.float32)[:, None, None, :]
    h = x.astype(jnp.float32)
    for l in range(LAYERS):
        wqkv = params["wqkv"][l].astype(jnp.float32)
        qkv = h @ wqkv + params["bqkv"][l]
        q, k, v = qkv[..., :emb], qkv[..., emb:2 * emb], qkv[..., 2 * emb:]

        def split(t):
            return t.reshape(b_sz, s_len, HEADS, hd).transpose(0, 2, 1, 3)

        qh, kh, vh = split(q), split(k), split(v)
        s = jnp.einsum('bhqd,bhkd->bhqk', qh, kh) / jnp.sqrt(jnp.float32(hd)) + mask_add
        p = jax.nn.softmax(s, axis=-1)
        ctx = jnp.einsum('bhqk,bhkd->bhqd', p, vh).transpose(0, 2, 1, 3).reshape(b_sz, s_len, emb)
        attn = ctx @ params["wo"][l].astype(jnp.float32) + params["bo"][l]
        h = _layer_norm(h + attn, params["g1"][l], params["be1"][l])
        f = (_gelu(h @ params["w1"][l].astype(jnp.float32) + params["b1"][l])
             @ params["w2"][l].astype(jnp.float32) + params["b2"][l])
        h = _layer_norm(h + f, params["g2"][l], params["be2"][l])
    return h


# ----------------------------------------- main -----------------------------------------
if __name__ == "__main__":
    key = jax.random.PRNGKey(0)
    kx, _ = jax.random.split(key)

    x = jax.random.normal(kx, (B, S, EMB), jnp.float32)
    # src_key_padding_mask: True == padded key (PyTorch semantics)
    pad = jnp.zeros((B, S), dtype=bool)
    pad = pad.at[0, S - 5:].set(True).at[1, S - 8:].set(True)

    params = init_params(jax.random.PRNGKey(42))

    out = jax.jit(transformer_encoder)(x, pad, params)
    jax.block_until_ready(out)

    with jax.default_matmul_precision("float32"):
        ref = encoder_reference(x, pad, params)

    assert out.shape == (B, S, EMB)
    assert bool(jnp.all(jnp.isfinite(out)))
    assert bool(jnp.allclose(out, ref, atol=2e-2, rtol=2e-2))

    print("KERNEL_OK")
</pallas_src>

<mosaic_0001>
module attributes {stable_mosaic.version = 11 : i64} {
  func.func @encoder_layer_kernel(%arg0: i32, %arg1: i32, %arg2: memref<1x40x128xf32, #tpu.memory_space<vmem>>, %arg3: memref<1x1x40xf32, #tpu.memory_space<vmem>>, %arg4: memref<1x128x384xbf16, #tpu.memory_space<vmem>>, %arg5: memref<1x1x384xf32, #tpu.memory_space<vmem>>, %arg6: memref<1x128x128xbf16, #tpu.memory_space<vmem>>, %arg7: memref<1x1x128xf32, #tpu.memory_space<vmem>>, %arg8: memref<1x1x128xf32, #tpu.memory_space<vmem>>, %arg9: memref<1x1x128xf32, #tpu.memory_space<vmem>>, %arg10: memref<1x128x256xbf16, #tpu.memory_space<vmem>>, %arg11: memref<1x1x256xf32, #tpu.memory_space<vmem>>, %arg12: memref<1x256x128xbf16, #tpu.memory_space<vmem>>, %arg13: memref<1x1x128xf32, #tpu.memory_space<vmem>>, %arg14: memref<1x1x128xf32, #tpu.memory_space<vmem>>, %arg15: memref<1x1x128xf32, #tpu.memory_space<vmem>>, %arg16: memref<1x40x128xf32, #tpu.memory_space<vmem>>, %arg17: memref<40x128xf32, #tpu.memory_space<vmem>>) attributes {dimension_semantics = [#tpu.dimension_semantics<parallel>, #tpu.dimension_semantics<arbitrary>], iteration_bounds = array<i64: 2, 6>, scalar_prefetch = 0 : i64, scratch_operands = 1 : i64, tpu.core_type = #tpu.core_type<tc>, window_params = [{transform_indices = @transform_0, window_bounds = array<i64: 1, 40, 128>}, {transform_indices = @transform_1, window_bounds = array<i64: 1, 1, 40>}, {transform_indices = @transform_2, window_bounds = array<i64: 1, 128, 384>}, {transform_indices = @transform_3, window_bounds = array<i64: 1, 1, 384>}, {transform_indices = @transform_4, window_bounds = array<i64: 1, 128, 128>}, {transform_indices = @transform_5, window_bounds = array<i64: 1, 1, 128>}, {transform_indices = @transform_6, window_bounds = array<i64: 1, 1, 128>}, {transform_indices = @transform_7, window_bounds = array<i64: 1, 1, 128>}, {transform_indices = @transform_8, window_bounds = array<i64: 1, 128, 256>}, {transform_indices = @transform_9, window_bounds = array<i64: 1, 1, 256>}, {transform_indices = @transform_10, window_bounds = array<i64: 1, 256, 128>}, {transform_indices = @transform_11, window_bounds = array<i64: 1, 1, 128>}, {transform_indices = @transform_12, window_bounds = array<i64: 1, 1, 128>}, {transform_indices = @transform_13, window_bounds = array<i64: 1, 1, 128>}, {transform_indices = @transform_14, window_bounds = array<i64: 1, 40, 128>}]} {
    %c0_i32 = arith.constant 0 : i32
    %0 = arith.cmpi eq, %arg1, %c0_i32 : i32
    %1 = arith.extui %0 : i1 to i32
    %c0_i32_0 = arith.constant 0 : i32
    %2 = arith.cmpi ne, %1, %c0_i32_0 : i32
    scf.if %2 {
      %c0_66 = arith.constant 0 : index
      %c0_67 = arith.constant 0 : index
      %c0_68 = arith.constant 0 : index
      %133 = vector.load %arg2[%c0_66, %c0_67, %c0_68] : memref<1x40x128xf32, #tpu.memory_space<vmem>>, vector<1x40x128xf32>
      %134 = vector.shape_cast %133 : vector<1x40x128xf32> to vector<40x128xf32>
      %c0_69 = arith.constant 0 : index
      %c0_70 = arith.constant 0 : index
      %135 = vector.load %arg17[%c0_69, %c0_70] : memref<40x128xf32, #tpu.memory_space<vmem>>, vector<40x128xf32>
      tpu.vector_store %arg17[%c0_69, %c0_70], %134 {strides = array<i32>} : memref<40x128xf32, #tpu.memory_space<vmem>>, vector<40x128xf32>,
    } else {
    }
    %c0 = arith.constant 0 : index
    %c0_1 = arith.constant 0 : index
    %3 = vector.load %arg17[%c0, %c0_1] : memref<40x128xf32, #tpu.memory_space<vmem>>, vector<40x128xf32>
    %c0_2 = arith.constant 0 : index
    %c0_3 = arith.constant 0 : index
    %c0_4 = arith.constant 0 : index
    %4 = vector.load %arg4[%c0_2, %c0_3, %c0_4] : memref<1x128x384xbf16, #tpu.memory_space<vmem>>, vector<1x128x384xbf16>
    %5 = vector.shape_cast %4 : vector<1x128x384xbf16> to vector<128x384xbf16>
    %6 = arith.extf %5 : vector<128x384xbf16> to vector<128x384xf32>
    %cst = arith.constant dense<0.000000e+00> : vector<40x384xf32>
    %7 = tpu.matmul %3, %6, %cst {dimension_numbers = #tpu.dot_dimension_numbers<[1], [0], [0], [1], [0, 0, 1, 1], [], []>} : vector<40x128xf32>, vector<128x384xf32>, vector<40x384xf32> -> vector<40x384xf32>
    %c0_5 = arith.constant 0 : index
    %c0_6 = arith.constant 0 : index
    %c0_7 = arith.constant 0 : index
    %8 = vector.load %arg5[%c0_5, %c0_6, %c0_7] : memref<1x1x384xf32, #tpu.memory_space<vmem>>, vector<1x1x384xf32>
    %9 = vector.shape_cast %8 : vector<1x1x384xf32> to vector<1x384xf32>
    %10 = vector.broadcast %9 : vector<1x384xf32> to vector<40x384xf32>
    %11 = arith.addf %7, %10 : vector<40x384xf32>
    %12 = vector.shape_cast %11 : vector<40x384xf32> to vector<40x24x16xf32>
    %13 = tpu.transpose %12, [1, 0, 2] : vector<40x24x16xf32> -> vector<24x40x16xf32>
    %14 = vector.extract_strided_slice %13 {offsets = [0, 0, 0], sizes = [8, 40, 16], strides = [1, 1, 1]} : vector<24x40x16xf32> to vector<8x40x16xf32>
    %15 = vector.extract_strided_slice %13 {offsets = [8, 0, 0], sizes = [8, 40, 16], strides = [1, 1, 1]} : vector<24x40x16xf32> to vector<8x40x16xf32>
    %16 = vector.extract_strided_slice %13 {offsets = [16, 0, 0], sizes = [8, 40, 16], strides = [1, 1, 1]} : vector<24x40x16xf32> to vector<8x40x16xf32>
    "tpu.trace_start"() <{level = 10 : i32, message = "hqd,hkd->hqk"}> : () -> ()
    %cst_8 = arith.constant dense<0.000000e+00> : vector<8x40x40xf32>
    %17 = tpu.matmul %14, %15, %cst_8 {dimension_numbers = #tpu.dot_dimension_numbers<[2], [2], [1], [1], [0, 0, 0, 1, 1, 1], [0], [0]>} : vector<8x40x16xf32>, vector<8x40x16xf32>, vector<8x40x40xf32> -> vector<8x40x40xf32>
    "tpu.trace_stop"() : () -> ()
    %cst_9 = arith.constant 2.500000e-01 : f32
    %18 = vector.broadcast %cst_9 : f32 to vector<8x40x40xf32>
    %19 = arith.mulf %17, %18 : vector<8x40x40xf32>
    %c0_10 = arith.constant 0 : index
    %c0_11 = arith.constant 0 : index
    %c0_12 = arith.constant 0 : index
    %20 = vector.load %arg3[%c0_10, %c0_11, %c0_12] : memref<1x1x40xf32, #tpu.memory_space<vmem>>, vector<1x1x40xf32>
    %21 = vector.shape_cast %20 : vector<1x1x40xf32> to vector<1x40xf32>
    %22 = vector.shape_cast %21 : vector<1x40xf32> to vector<1x1x40xf32>
    %23 = vector.broadcast %22 : vector<1x1x40xf32> to vector<8x40x40xf32>
    %24 = arith.addf %19, %23 : vector<8x40x40xf32>
    %cst_13 = arith.constant dense<0xFF800000> : vector<8x40xf32>
    %25 = vector.multi_reduction <maximumf>, %24, %cst_13 [2] : vector<8x40x40xf32> to vector<8x40xf32>
    %26 = vector.shape_cast %25 : vector<8x40xf32> to vector<8x40x1xf32>
    %27 = vector.broadcast %26 : vector<8x40x1xf32> to vector<8x40x40xf32>
    %28 = arith.subf %24, %27 : vector<8x40x40xf32>
    %29 = math.exp %28 : vector<8x40x40xf32>
    %cst_14 = arith.constant dense<0.000000e+00> : vector<8x40xf32>
    %30 = vector.multi_reduction <add>, %29, %cst_14 [2] : vector<8x40x40xf32> to vector<8x40xf32>
    %31 = vector.shape_cast %30 : vector<8x40xf32> to vector<8x40x1xf32>
    %32 = tpu.reciprocal %31 {approx = true} : vector<8x40x1xf32> -> vector<8x40x1xf32>
    %33 = vector.broadcast %32 : vector<8x40x1xf32> to vector<8x40x40xf32>
    %34 = arith.mulf %29, %33 : vector<8x40x40xf32>
    "tpu.trace_start"() <{level = 10 : i32, message = "hqk,hkd->hqd"}> : () -> ()
    %cst_15 = arith.constant dense<0.000000e+00> : vector<8x40x16xf32>
    %35 = tpu.matmul %34, %16, %cst_15 {dimension_numbers = #tpu.dot_dimension_numbers<[2], [1], [1], [2], [0, 0, 0, 1, 1, 2], [0], [0]>} : vector<8x40x40xf32>, vector<8x40x16xf32>, vector<8x40x16xf32> -> vector<8x40x16xf32>
    "tpu.trace_stop"() : () -> ()
    %36 = tpu.transpose %35, [1, 0, 2] : vector<8x40x16xf32> -> vector<40x8x16xf32>
    %37 = vector.shape_cast %36 : vector<40x8x16xf32> to vector<40x128xf32>
    %c0_16 = arith.constant 0 : index
    %c0_17 = arith.constant 0 : index
    %c0_18 = arith.constant 0 : index
    %38 = vector.load %arg6[%c0_16, %c0_17, %c0_18] : memref<1x128x128xbf16, #tpu.memory_space<vmem>>, vector<1x128x128xbf16>
    %39 = vector.shape_cast %38 : vector<1x128x128xbf16> to vector<128x128xbf16>
    %40 = arith.extf %39 : vector<128x128xbf16> to vector<128x128xf32>
    %cst_19 = arith.constant dense<0.000000e+00> : vector<40x128xf32>
    %41 = tpu.matmul %37, %40, %cst_19 {dimension_numbers = #tpu.dot_dimension_numbers<[1], [0], [0], [1], [0, 0, 1, 1], [], []>} : vector<40x128xf32>, vector<128x128xf32>, vector<40x128xf32> -> vector<40x128xf32>
    %c0_20 = arith.constant 0 : index
    %c0_21 = arith.constant 0 : index
    %c0_22 = arith.constant 0 : index
    %42 = vector.load %arg7[%c0_20, %c0_21, %c0_22] : memref<1x1x128xf32, #tpu.memory_space<vmem>>, vector<1x1x128xf32>
    %43 = vector.shape_cast %42 : vector<1x1x128xf32> to vector<1x128xf32>
    %44 = vector.broadcast %43 : vector<1x128xf32> to vector<40x128xf32>
    %45 = arith.addf %41, %44 : vector<40x128xf32>
    %46 = arith.addf %3, %45 : vector<40x128xf32>
    %c0_23 = arith.constant 0 : index
    %c0_24 = arith.constant 0 : index
    %c0_25 = arith.constant 0 : index
    %47 = vector.load %arg8[%c0_23, %c0_24, %c0_25] : memref<1x1x128xf32, #tpu.memory_space<vmem>>, vector<1x1x128xf32>
    %48 = vector.shape_cast %47 : vector<1x1x128xf32> to vector<1x128xf32>
    %c0_26 = arith.constant 0 : index
    %c0_27 = arith.constant 0 : index
    %c0_28 = arith.constant 0 : index
    %49 = vector.load %arg9[%c0_26, %c0_27, %c0_28] : memref<1x1x128xf32, #tpu.memory_space<vmem>>, vector<1x1x128xf32>
    %50 = vector.shape_cast %49 : vector<1x1x128xf32> to vector<1x128xf32>
    %cst_29 = arith.constant dense<0.000000e+00> : vector<40xf32>
    %51 = vector.multi_reduction <add>, %46, %cst_29 [1] : vector<40x128xf32> to vector<40xf32>
    %52 = vector.shape_cast %51 : vector<40xf32> to vector<40x1xf32>
    %cst_30 = arith.constant 1.280000e+02 : f32
    %53 = vector.broadcast %cst_30 : f32 to vector<40x1xf32>
    %54 = arith.divf %52, %53 : vector<40x1xf32>
    %55 = vector.broadcast %54 : vector<40x1xf32> to vector<40x128xf32>
    %56 = arith.subf %46, %55 : vector<40x128xf32>
    %57 = arith.mulf %56, %56 : vector<40x128xf32>
    %cst_31 = arith.constant dense<0.000000e+00> : vector<40xf32>
    %58 = vector.multi_reduction <add>, %57, %cst_31 [1] : vector<40x128xf32> to vector<40xf32>
    %59 = vector.shape_cast %58 : vector<40xf32> to vector<40x1xf32>
    %cst_32 = arith.constant 1.280000e+02 : f32
    %60 = vector.broadcast %cst_32 : f32 to vector<40x1xf32>
    %61 = arith.divf %59, %60 : vector<40x1xf32>
    %62 = vector.broadcast %54 : vector<40x1xf32> to vector<40x128xf32>
    %63 = arith.subf %46, %62 : vector<40x128xf32>
    %cst_33 = arith.constant 9.99999974E-6 : f32
    %64 = vector.broadcast %cst_33 : f32 to vector<40x1xf32>
    %65 = arith.addf %61, %64 : vector<40x1xf32>
    %66 = math.rsqrt %65 : vector<40x1xf32>
    %67 = vector.broadcast %66 : vector<40x1xf32> to vector<40x128xf32>
    %68 = arith.mulf %63, %67 : vector<40x128xf32>
    %69 = vector.broadcast %48 : vector<1x128xf32> to vector<40x128xf32>
    %70 = arith.mulf %68, %69 : vector<40x128xf32>
    %71 = vector.broadcast %50 : vector<1x128xf32> to vector<40x128xf32>
    %72 = arith.addf %70, %71 : vector<40x128xf32>
    %c0_34 = arith.constant 0 : index
    %c0_35 = arith.constant 0 : index
    %c0_36 = arith.constant 0 : index
    %73 = vector.load %arg10[%c0_34, %c0_35, %c0_36] : memref<1x128x256xbf16, #tpu.memory_space<vmem>>, vector<1x128x256xbf16>
    %74 = vector.shape_cast %73 : vector<1x128x256xbf16> to vector<128x256xbf16>
    %75 = arith.extf %74 : vector<128x256xbf16> to vector<128x256xf32>
    %cst_37 = arith.constant dense<0.000000e+00> : vector<40x256xf32>
    %76 = tpu.matmul %72, %75, %cst_37 {dimension_numbers = #tpu.dot_dimension_numbers<[1], [0], [0], [1], [0, 0, 1, 1], [], []>} : vector<40x128xf32>, vector<128x256xf32>, vector<40x256xf32> -> vector<40x256xf32>
    %c0_38 = arith.constant 0 : index
    %c0_39 = arith.constant 0 : index
    %c0_40 = arith.constant 0 : index
    %77 = vector.load %arg11[%c0_38, %c0_39, %c0_40] : memref<1x1x256xf32, #tpu.memory_space<vmem>>, vector<1x1x256xf32>
    %78 = vector.shape_cast %77 : vector<1x1x256xf32> to vector<1x256xf32>
    %79 = vector.broadcast %78 : vector<1x256xf32> to vector<40x256xf32>
    %80 = arith.addf %76, %79 : vector<40x256xf32>
    %cst_41 = arith.constant 5.000000e-01 : f32
    %81 = vector.broadcast %cst_41 : f32 to vector<40x256xf32>
    %82 = arith.mulf %81, %80 : vector<40x256xf32>
    %cst_42 = arith.constant 4.471500e-02 : f32
    %83 = vector.broadcast %cst_42 : f32 to vector<40x256xf32>
    %84 = arith.mulf %83, %80 : vector<40x256xf32>
    %85 = arith.mulf %84, %80 : vector<40x256xf32>
    %86 = arith.mulf %85, %80 : vector<40x256xf32>
    %87 = arith.addf %80, %86 : vector<40x256xf32>
    %cst_43 = arith.constant 0.797884583 : f32
    %88 = vector.broadcast %cst_43 : f32 to vector<40x256xf32>
    %89 = arith.mulf %88, %87 : vector<40x256xf32>
    %90 = math.tanh %89 : vector<40x256xf32>
    %cst_44 = arith.constant 1.000000e+00 : f32
    %91 = vector.broadcast %cst_44 : f32 to vector<40x256xf32>
    %92 = arith.addf %91, %90 : vector<40x256xf32>
    %93 = arith.mulf %82, %92 : vector<40x256xf32>
    %c0_45 = arith.constant 0 : index
    %c0_46 = arith.constant 0 : index
    %c0_47 = arith.constant 0 : index
    %94 = vector.load %arg12[%c0_45, %c0_46, %c0_47] : memref<1x256x128xbf16, #tpu.memory_space<vmem>>, vector<1x256x128xbf16>
    %95 = vector.shape_cast %94 : vector<1x256x128xbf16> to vector<256x128xbf16>
    %96 = arith.extf %95 : vector<256x128xbf16> to vector<256x128xf32>
    %cst_48 = arith.constant dense<0.000000e+00> : vector<40x128xf32>
    %97 = tpu.matmul %93, %96, %cst_48 {dimension_numbers = #tpu.dot_dimension_numbers<[1], [0], [0], [1], [0, 0, 1, 1], [], []>} : vector<40x256xf32>, vector<256x128xf32>, vector<40x128xf32> -> vector<40x128xf32>
    %c0_49 = arith.constant 0 : index
    %c0_50 = arith.constant 0 : index
    %c0_51 = arith.constant 0 : index
    %98 = vector.load %arg13[%c0_49, %c0_50, %c0_51] : memref<1x1x128xf32, #tpu.memory_space<vmem>>, vector<1x1x128xf32>
    %99 = vector.shape_cast %98 : vector<1x1x128xf32> to vector<1x128xf32>
    %100 = vector.broadcast %99 : vector<1x128xf32> to vector<40x128xf32>
    %101 = arith.addf %97, %100 : vector<40x128xf32>
    %102 = arith.addf %72, %101 : vector<40x128xf32>
    %c0_52 = arith.constant 0 : index
    %c0_53 = arith.constant 0 : index
    %c0_54 = arith.constant 0 : index
    %103 = vector.load %arg14[%c0_52, %c0_53, %c0_54] : memref<1x1x128xf32, #tpu.memory_space<vmem>>, vector<1x1x128xf32>
    %104 = vector.shape_cast %103 : vector<1x1x128xf32> to vector<1x128xf32>
    %c0_55 = arith.constant 0 : index
    %c0_56 = arith.constant 0 : index
    %c0_57 = arith.constant 0 : index
    %105 = vector.load %arg15[%c0_55, %c0_56, %c0_57] : memref<1x1x128xf32, #tpu.memory_space<vmem>>, vector<1x1x128xf32>
    %106 = vector.shape_cast %105 : vector<1x1x128xf32> to vector<1x128xf32>
    %cst_58 = arith.constant dense<0.000000e+00> : vector<40xf32>
    %107 = vector.multi_reduction <add>, %102, %cst_58 [1] : vector<40x128xf32> to vector<40xf32>
    %108 = vector.shape_cast %107 : vector<40xf32> to vector<40x1xf32>
    %cst_59 = arith.constant 1.280000e+02 : f32
    %109 = vector.broadcast %cst_59 : f32 to vector<40x1xf32>
    %110 = arith.divf %108, %109 : vector<40x1xf32>
    %111 = vector.broadcast %110 : vector<40x1xf32> to vector<40x128xf32>
    %112 = arith.subf %102, %111 : vector<40x128xf32>
    %113 = arith.mulf %112, %112 : vector<40x128xf32>
    %cst_60 = arith.constant dense<0.000000e+00> : vector<40xf32>
    %114 = vector.multi_reduction <add>, %113, %cst_60 [1] : vector<40x128xf32> to vector<40xf32>
    %115 = vector.shape_cast %114 : vector<40xf32> to vector<40x1xf32>
    %cst_61 = arith.constant 1.280000e+02 : f32
    %116 = vector.broadcast %cst_61 : f32 to vector<40x1xf32>
    %117 = arith.divf %115, %116 : vector<40x1xf32>
    %118 = vector.broadcast %110 : vector<40x1xf32> to vector<40x128xf32>
    %119 = arith.subf %102, %118 : vector<40x128xf32>
    %cst_62 = arith.constant 9.99999974E-6 : f32
    %120 = vector.broadcast %cst_62 : f32 to vector<40x1xf32>
    %121 = arith.addf %117, %120 : vector<40x1xf32>
    %122 = math.rsqrt %121 : vector<40x1xf32>
    %123 = vector.broadcast %122 : vector<40x1xf32> to vector<40x128xf32>
    %124 = arith.mulf %119, %123 : vector<40x128xf32>
    %125 = vector.broadcast %104 : vector<1x128xf32> to vector<40x128xf32>
    %126 = arith.mulf %124, %125 : vector<40x128xf32>
    %127 = vector.broadcast %106 : vector<1x128xf32> to vector<40x128xf32>
    %128 = arith.addf %126, %127 : vector<40x128xf32>
    %c0_63 = arith.constant 0 : index
    %c0_64 = arith.constant 0 : index
    %129 = vector.load %arg17[%c0_63, %c0_64] : memref<40x128xf32, #tpu.memory_space<vmem>>, vector<40x128xf32>
    tpu.vector_store %arg17[%c0_63, %c0_64], %128 {strides = array<i32>} : memref<40x128xf32, #tpu.memory_space<vmem>>, vector<40x128xf32>,
    %c5_i32 = arith.constant 5 : i32
    %130 = arith.cmpi eq, %arg1, %c5_i32 : i32
    %131 = arith.extui %130 : i1 to i32
    %c0_i32_65 = arith.constant 0 : i32
    %132 = arith.cmpi ne, %131, %c0_i32_65 : i32
    scf.if %132 {
      %133 = vector.shape_cast %128 : vector<40x128xf32> to vector<1x40x128xf32>
      %c0_66 = arith.constant 0 : index
      %c0_67 = arith.constant 0 : index
      %c0_68 = arith.constant 0 : index
      %134 = vector.load %arg16[%c0_66, %c0_67, %c0_68] : memref<1x40x128xf32, #tpu.memory_space<vmem>>, vector<1x40x128xf32>
      tpu.vector_store %arg16[%c0_66, %c0_67, %c0_68], %133 {strides = array<i32>} : memref<1x40x128xf32, #tpu.memory_space<vmem>>, vector<1x40x128xf32>,
    } else {
    }
    return
  }
  func.func @transform_0(%arg0: i32, %arg1: i32) -> (i32, i32, i32) {
    %c0_i32 = arith.constant 0 : i32
    %c0_i32_0 = arith.constant 0 : i32
    %c0_i32_1 = arith.constant 0 : i32
    return %arg0, %c0_i32, %c0_i32_0 : i32, i32, i32
  }
  func.func @transform_1(%arg0: i32, %arg1: i32) -> (i32, i32, i32) {
    %c0_i32 = arith.constant 0 : i32
    %c0_i32_0 = arith.constant 0 : i32
    %c0_i32_1 = arith.constant 0 : i32
    return %arg0, %c0_i32, %c0_i32_0 : i32, i32, i32
  }
  func.func @transform_2(%arg0: i32, %arg1: i32) -> (i32, i32, i32) {
    %c0_i32 = arith.constant 0 : i32
    %c0_i32_0 = arith.constant 0 : i32
    %c0_i32_1 = arith.constant 0 : i32
    return %arg1, %c0_i32, %c0_i32_0 : i32, i32, i32
  }
  func.func @transform_3(%arg0: i32, %arg1: i32) -> (i32, i32, i32) {
    %c0_i32 = arith.constant 0 : i32
    %c0_i32_0 = arith.constant 0 : i32
    %c0_i32_1 = arith.constant 0 : i32
    return %arg1, %c0_i32, %c0_i32_0 : i32, i32, i32
  }
  func.func @transform_4(%arg0: i32, %arg1: i32) -> (i32, i32, i32) {
    %c0_i32 = arith.constant 0 : i32
    %c0_i32_0 = arith.constant 0 : i32
    %c0_i32_1 = arith.constant 0 : i32
    return %arg1, %c0_i32, %c0_i32_0 : i32, i32, i32
  }
  func.func @transform_5(%arg0: i32, %arg1: i32) -> (i32, i32, i32) {
    %c0_i32 = arith.constant 0 : i32
    %c0_i32_0 = arith.constant 0 : i32
    %c0_i32_1 = arith.constant 0 : i32
    return %arg1, %c0_i32, %c0_i32_0 : i32, i32, i32
  }
  func.func @transform_6(%arg0: i32, %arg1: i32) -> (i32, i32, i32) {
    %c0_i32 = arith.constant 0 : i32
    %c0_i32_0 = arith.constant 0 : i32
    %c0_i32_1 = arith.constant 0 : i32
    return %arg1, %c0_i32, %c0_i32_0 : i32, i32, i32
  }
  func.func @transform_7(%arg0: i32, %arg1: i32) -> (i32, i32, i32) {
    %c0_i32 = arith.constant 0 : i32
    %c0_i32_0 = arith.constant 0 : i32
    %c0_i32_1 = arith.constant 0 : i32
    return %arg1, %c0_i32, %c0_i32_0 : i32, i32, i32
  }
  func.func @transform_8(%arg0: i32, %arg1: i32) -> (i32, i32, i32) {
    %c0_i32 = arith.constant 0 : i32
    %c0_i32_0 = arith.constant 0 : i32
    %c0_i32_1 = arith.constant 0 : i32
    return %arg1, %c0_i32, %c0_i32_0 : i32, i32, i32
  }
  func.func @transform_9(%arg0: i32, %arg1: i32) -> (i32, i32, i32) {
    %c0_i32 = arith.constant 0 : i32
    %c0_i32_0 = arith.constant 0 : i32
    %c0_i32_1 = arith.constant 0 : i32
    return %arg1, %c0_i32, %c0_i32_0 : i32, i32, i32
  }
  func.func @transform_10(%arg0: i32, %arg1: i32) -> (i32, i32, i32) {
    %c0_i32 = arith.constant 0 : i32
    %c0_i32_0 = arith.constant 0 : i32
    %c0_i32_1 = arith.constant 0 : i32
    return %arg1, %c0_i32, %c0_i32_0 : i32, i32, i32
  }
  func.func @transform_11(%arg0: i32, %arg1: i32) -> (i32, i32, i32) {
    %c0_i32 = arith.constant 0 : i32
    %c0_i32_0 = arith.constant 0 : i32
    %c0_i32_1 = arith.constant 0 : i32
    return %arg1, %c0_i32, %c0_i32_0 : i32, i32, i32
  }
  func.func @transform_12(%arg0: i32, %arg1: i32) -> (i32, i32, i32) {
    %c0_i32 = arith.constant 0 : i32
    %c0_i32_0 = arith.constant 0 : i32
    %c0_i32_1 = arith.constant 0 : i32
    return %arg1, %c0_i32, %c0_i32_0 : i32, i32, i32
  }
  func.func @transform_13(%arg0: i32, %arg1: i32) -> (i32, i32, i32) {
    %c0_i32 = arith.constant 0 : i32
    %c0_i32_0 = arith.constant 0 : i32
    %c0_i32_1 = arith.constant 0 : i32
    return %arg1, %c0_i32, %c0_i32_0 : i32, i32, i32
  }
  func.func @transform_14(%arg0: i32, %arg1: i32) -> (i32, i32, i32) {
    %c0_i32 = arith.constant 0 : i32
    %c0_i32_0 = arith.constant 0 : i32
    %c0_i32_1 = arith.constant 0 : i32
    return %arg0, %c0_i32, %c0_i32_0 : i32, i32, i32
  }
}

</mosaic_0001>

<bundles_post_ra>
// kernel: transformer_encoder.1
= control target key start
LH: loop header
LB: loop body
LE: loop exit
PB: predicated region body
PF: predicated region fallthrough
CT: control target
= control target key end

     0   :  { %s17070_s0 = inlined_call_operand.hbm [shape: f32[2,40,128], index: 0, kind: input, shape index: {}]   ;;  %s17071_s1 = inlined_call_operand.vmem [shape: f32[2,1,40], index: 1, kind: input, shape index: {}]   ;;  %s17072_s2 = inlined_call_operand.hbm [shape: bf16[6,128,384], index: 2, kind: input, shape index: {}]   ;;  %s17073_s3 = inlined_call_operand.vmem [shape: f32[6,1,384], index: 3, kind: input, shape index: {}]   ;;  %s17074_s4 = inlined_call_operand.hbm [shape: bf16[6,128,128], index: 4, kind: input, shape index: {}]   ;;  %s17075_s5 = inlined_call_operand.hbm [shape: f32[6,1,128], index: 5, kind: input, shape index: {}]   ;;  %s17076_s6 = inlined_call_operand.vmem [shape: f32[6,1,128], index: 6, kind: input, shape index: {}]   ;;  %s17077_s7 = inlined_call_operand.hbm [shape: f32[6,1,128], index: 7, kind: input, shape index: {}]   ;;  %s17078_s8 = inlined_call_operand.hbm [shape: bf16[6,128,256], index: 8, kind: input, shape index: {}]   ;;  %s17079_s9 = inlined_call_operand.vmem [shape: f32[6,1,256], index: 9, kind: input, shape index: {}]   ;;  %s17080_s10 = inlined_call_operand.hbm [shape: bf16[6,256,128], index: 10, kind: input, shape index: {}]   ;;  %s17081_s11 = inlined_call_operand.hbm [shape: f32[6,1,128], index: 11, kind: input, shape index: {}]   ;;  %s17082_s12 = inlined_call_operand.hbm [shape: f32[6,1,128], index: 12, kind: input, shape index: {}]   ;;  %s17083_s13 = inlined_call_operand.hbm [shape: f32[6,1,128], index: 13, kind: input, shape index: {}]   ;;  %s17084_s14 = inlined_call_operand.hbm [shape: f32[2,40,128], index: 14, kind: output, shape index: {}]  }
   0x1   :  { %17178 = sst [smem:[#allocation69_spill]] %s17070_s0 }
   0x2   :  { %17179 = sst [smem:[#allocation70_spill]] %s17071_s1 }
   0x3   :  { %17180 = sst [smem:[#allocation71_spill]] %s17072_s2 }
   0x4   :  { %17181 = sst [smem:[#allocation72_spill]] %s17073_s3 }
   0x5   :  { %17182 = sst [smem:[#allocation73_spill]] %s17074_s4 }
   0x6   :  { %17183 = sst [smem:[#allocation74_spill]] %s17075_s5 }
   0x7   :  { %17184 = sst [smem:[#allocation75_spill]] %s17076_s6 }
   0x8   :  { %17185 = sst [smem:[#allocation76_spill]] %s17077_s7 }
   0x9   :  { %17186 = sst [smem:[#allocation77_spill]] %s17078_s8 }
   0xa   :  { %17187 = sst [smem:[#allocation78_spill]] %s17079_s9 }
   0xb   :  { %17188 = sst [smem:[#allocation79_spill]] %s17080_s10 }
   0xc   :  { %17189 = sst [smem:[#allocation80_spill]] %s17081_s11 }
   0xd   :  { %17190 = sst [smem:[#allocation81_spill]] %s17082_s12 }
   0xe   :  { %17191 = sst [smem:[#allocation82_spill]] %s17083_s13 }
   0xf   :  { %17192 = sst [smem:[#allocation83_spill]] %s17084_s14 }
  0x10   :  { %19 = vsyncpa [#allocation4], 0 }
  0x11   :  { %21 = vsyncpa [#allocation4 + $0x1], 0 }
  0x12   :  { %22 = vsyncpa [#allocation7], 0 }
  0x13   :  { %24 = vsyncpa [#allocation7 + $0x1], 0 }
  0x14   :  { %25 = vsyncpa [#allocation10], 0 }
  0x15   :  { %27 = vsyncpa [#allocation10 + $0x1], 0 }
  0x16   :  { %28 = vsyncpa [#allocation13], 0 }
  0x17   :  { %30 = vsyncpa [#allocation13 + $0x1], 0 }
  0x18   :  { %31 = vsyncpa [#allocation16], 0 }
  0x19   :  { %33 = vsyncpa [#allocation16 + $0x1], 0 }
  0x1a   :  { %34 = vsyncpa [#allocation19], 0 }
  0x1b   :  { %36 = vsyncpa [#allocation19 + $0x1], 0 }
  0x1c   :  { %37 = vsyncpa [#allocation5], 0 }
  0x1d   :  { %39 = vsyncpa [#allocation5 + $0x1], 0  ;;  %s13030_s29 = smov 0   ;;  %s13032_s30 = smov 0  }
  0x1e   :  { %s13034_s15 = smov 0   ;;  %s13036_s16 = smov 0  }
  0x1f   :  { %s13038_s17 = smov 0   ;;  %s13040_s18 = smov 0  }
  0x20   :  { %s13042_s19 = smov 0   ;;  %s13044_s20 = smov 0  }
  0x21   :  { %s13046_s21 = smov 0   ;;  %s13048_s22 = smov 0  }
  0x22   :  { %s13050_s23 = smov 0  }
  0x23 LB: > { %17193 = sst [smem:[#allocation28_spill]] %s12890_s15  ;;  %p17090_p0 = scmp.eq.s32.totalorder %s12922_s23, 0  ;;  %s12922_s23 = sphi %s13050_s23, %s45_s23   ;;  %s12918_s22 = sphi %s13048_s22, %s17434_s22   ;;  %s12914_s21 = sphi %s13046_s21, %s17433_s21   ;;  %s12910_s20 = sphi %s13044_s20, %s17432_s20   ;;  %s12906_s19 = sphi %s13042_s19, %s17431_s19   ;;  %s12902_s18 = sphi %s13040_s18, %s17430_s18   ;;  %s12898_s17 = sphi %s13038_s17, %s17429_s17   ;;  %s12894_s16 = sphi %s13036_s16, %s17428_s16   ;;  %s12890_s15 = sphi %s13034_s15, %s17427_s15   ;;  %s12886_s30 = sphi %s13032_s30, %s17436_s30   ;;  %s12882_s29 = sphi %s13030_s29, %s17435_s29  }
  0x24   : > { %17194 = sst [smem:[#allocation29_spill]] %s12894_s16  ;;  %p123_p1 = scmp.ne.s32.totalorder %s12890_s15, %s12886_s30 }
  0x25   : > { %17195 = sst [smem:[#allocation30_spill]] %s12898_s17  ;;  %p17089_p2 = scmp.lt.s32.totalorder %s12922_s23, 12 }
  0x26   : > { %17196 = sst [smem:[#allocation31_spill]] %s12902_s18  ;;  %p125_p3 = por %p123_p1, %p17090_p0 }
  0x27   : > { %17197 = sst [smem:[#allocation32_spill]] %s12906_s19  ;;  %s13092_s24 = sand.u32 1, %s12922_s23  }
  0x28   : > { %17198 = sst [smem:[#allocation33_spill]] %s12910_s20  ;;  %s13095_s25 = sand.u32 1, %s12890_s15  }
  0x29   : > { %17199 = sst [smem:[#allocation34_spill]] %s12914_s21  ;;  %s11976_s26 = smul.u32 192, %s13095_s25 }
  0x2a   : > { %17200 = sst [smem:[#allocation35_spill]] %s12918_s22  ;;  %p13100_p4 = pnand %p17089_p2, %p125_p3 }
  0x2b   : > { %s11977_s28 = smul.u32 3072, %s12914_s21  ;;  %s17202_s2 = sld [smem:[#allocation71_spill]] }
  0x2c   : > { %s17201_s27 = scalar_select %p13100_p4, 1, 0 }
  0x2d   : > { %s496_s6 = scalar_lea.vmem [#allocation6], %s11976_s26  ;;  %p13117_p6 = pneg %p13100_p4 }
  0x2e   : > { %s503_s1 = sshll.u32 %s496_s6, 4  ;;  %s13110_s1 = int_to_ptr.vmem [resolvable:$true] %s503_s1 }
  0x31   : > { %s13108_s3 = scalar_lea.hbm %s17202_s2, %s11977_s28  ;;  %s12485_s28 = scalar_lea.hbm %s17202_s2, 18432 }
  0x32   : > { %s12480_s20 = scalar_lea.hbm %s13108_s3, 3072  ;;  %p12486_p9 = scmp.lt.u32.totalorder %s13108_s3, %s17202_s2 }
  0x33   : > { %p12481_p5 = scmp.ne.s32.totalorder %s13108_s3, %s12480_s20  ;;  %p12487_p10 = scmp.lt.u32.totalorder %s12485_s28, %s12480_s20 }
  0x34   : > { %p12489_p12 = scmp.lt.u32.totalorder %s12480_s20, %s13108_s3 }
  0x35   : > { %p12483_p7 = pnand %p13117_p6, %p12481_p5  ;;  %p12488_p11 = por %p12487_p10, %p12486_p9 }
  0x37   : > { %p12484_p8 = pneg %p12483_p7  ;;  %p12490_p13 = por %p12489_p12, %p12488_p11 }
  0x39   : > { %p12491_p1 = pnand %p12490_p13, %p12484_p8 }
  0x3b   : > { %12494 = shalt.err (!%p12491_p1)
}
  0x3c   : > { %s12495_s19 = scalar_lea.vmem %s13110_s1, 3072  ;;  %s12924_s9 = smov [#allocation6]  }
  0x3d   : > { %p12496_p3 = scmp.ne.s32.totalorder %s13110_s1, %s12495_s19  ;;  %s12500_s14 = sshll.u32 %s12924_s9, 4  ;;  %s12501_s14 = int_to_ptr.vmem [resolvable:$false] %s12500_s14 }
  0x3e   : > { %s12502_s26 = scalar_lea.vmem %s12501_s14, 6144  ;;  %p12503_p2 = scmp.lt.s32.totalorder %s13110_s1, %s12501_s14 }
  0x3f   : > { %p12498_p5 = pnand %p12496_p3, %p13117_p6  ;;  %p12504_p0 = scmp.lt.s32.totalorder %s12502_s26, %s12495_s19 }
  0x41   : > { %p12499_p7 = pneg %p12498_p5  ;;  %p12505_p9 = por %p12504_p0, %p12503_p2 }
  0x43   : > { %p12506_p10 = pnand %p12505_p9, %p12499_p7 }
  0x45   : > { %12509 = shalt.err (!%p12506_p10)
}
  0x46   : > { %s12925_s20 = smov 192   ;;  %s12926_s28 = smov 12  }
  0x47   : > { %s17204_s6 = scalar_lea.sflag [#allocation7], %s13092_s24  ;;  %p10517_p8 = scmp.ge.s32.totalorder %s12922_s23, 1 }
  0x48   : > { %12010 = dma.hbm_to_vmem [thread:$0]  (!%p13100_p4), %s13108_s3, 3072, %s13110_s1, %s17204_s6, %s12925_s20, %s12925_s20, %s12926_s28  }
  0x49   : > { %p679_p11 = scmp.lt.s32.totalorder %s12922_s23, 13  ;;  %s13149_s9 = sshll.u32 %s12914_s21, 4 }
  0x4a   : > { %s17207_s5 = sld [smem:[#allocation74_spill]]  ;;  %s544_s12 = scalar_lea.vmem [#allocation9], %s13095_s25 }
  0x4b   : > { %p13144_p0 = pnand %p10517_p8, %p679_p11  ;;  %s551_s1 = sshll.u32 %s544_s12, 4  ;;  %s552_s1 = int_to_ptr.vmem [resolvable:$true] %s551_s1 }
  0x4d   : > { %s17205_s19 = scalar_select %p13144_p0, 1, 0 }
  0x4f   : > { %17206 = sst [smem:[#allocation36_spill]] %s17205_s19 }
  0x50   : > { %s13155_s2 = scalar_lea.hbm %s17207_s5, %s13149_s9  ;;  %s12515_s19 = scalar_lea.hbm %s17207_s5, 96 }
  0x51   : > { %s12510_s20 = scalar_lea.hbm %s13155_s2, 16  ;;  %p12516_p1 = scmp.lt.u32.totalorder %s13155_s2, %s17207_s5 }
  0x52   : > { %p12511_p2 = scmp.ne.s32.totalorder %s13155_s2, %s12510_s20  ;;  %p12517_p3 = scmp.lt.u32.totalorder %s12515_s19, %s12510_s20 }
  0x53   : > { %p12519_p7 = scmp.lt.u32.totalorder %s12510_s20, %s13155_s2 }
  0x54   : > { %p12513_p12 = pnand %p12511_p2, %p13117_p6  ;;  %p12518_p5 = por %p12517_p3, %p12516_p1 }
  0x56   : > { %p12514_p13 = pneg %p12513_p12  ;;  %p12520_p9 = por %p12519_p7, %p12518_p5 }
  0x58   : > { %p12521_p10 = pnand %p12520_p9, %p12514_p13 }
  0x5a   : > { %12524 = shalt.err (!%p12521_p10)
}
  0x5b   : > { %s12525_s12 = scalar_lea.vmem %s552_s1, 16  ;;  %s12927_s3 = smov [#allocation9]  }
  0x5c   : > { %p12526_p8 = scmp.ne.s32.totalorder %s552_s1, %s12525_s12  ;;  %s12530_s7 = sshll.u32 %s12927_s3, 4  ;;  %s12531_s7 = int_to_ptr.vmem [resolvable:$false] %s12530_s7 }
  0x5d   : > { %s12532_s28 = scalar_lea.vmem %s12531_s7, 32  ;;  %p12533_p12 = scmp.lt.s32.totalorder %s552_s1, %s12531_s7 }
  0x5e   : > { %p12528_p11 = pnand %p12526_p8, %p13117_p6  ;;  %p12534_p0 = scmp.lt.s32.totalorder %s12532_s28, %s12525_s12 }
  0x60   : > { %p12529_p2 = pneg %p12528_p11  ;;  %p12535_p4 = por %p12534_p0, %p12533_p12 }
  0x62   : > { %p12536_p1 = pnand %p12535_p4, %p12529_p2 }
  0x64   : > { %12539 = shalt.err (!%p12536_p1)
}
  0x65   : > { %p17208_p3 = scmp.ne.s32.totalorder %s17201_s27, 0  ;;  %s17209_s19 = scalar_lea.sflag [#allocation10], %s13092_s24 }
  0x66   : > { %s17098_s20 = sshll.u32 %s13095_s25, 7  ;;  %s10815_s3 = sshll.u32 %s12914_s21, 11 }
  0x67   : > { %12016 = dma.hbm_to_vmem [thread:$0]  (!%p17208_p3), %s13155_s2, 16, %s552_s1, %s17209_s19  }
  0x68   : > { %s17210_s8 = sld [smem:[#allocation77_spill]]  ;;  %s585_s26 = scalar_lea.vmem [#allocation12], %s17098_s20 }
  0x69   : > { %s592_s12 = sshll.u32 %s585_s26, 4  ;;  %s17211_s10 = sld [smem:[#allocation79_spill]]  ;;  %s13187_s12 = int_to_ptr.vmem [resolvable:$true] %s592_s12 }
  0x6a   : > { %s17100_s1 = scalar_lea.sflag [#allocation13], %s13092_s24 }
  0x6e   : > { %s13183_s7 = scalar_lea.hbm %s17210_s8, %s10815_s3  ;;  %s12545_s4 = scalar_lea.hbm %s17210_s8, 12288 }
  0x6f   : > { %s13192_s2 = scalar_lea.hbm %s17211_s10, %s10815_s3  ;;  %s12540_s19 = scalar_lea.hbm %s13183_s7, 2048 }
  0x70   : > { %p12541_p4 = scmp.ne.s32.totalorder %s13183_s7, %s12540_s19  ;;  %p12546_p5 = scmp.lt.u32.totalorder %s13183_s7, %s17210_s8 }
  0x71   : > { %p12547_p7 = scmp.lt.u32.totalorder %s12545_s4, %s12540_s19  ;;  %p12549_p10 = scmp.lt.u32.totalorder %s12540_s19, %s13183_s7 }
  0x72   : > { %p12543_p0 = pnand %p12541_p4, %p13117_p6 }
  0x73   : > { %p12548_p9 = por %p12547_p7, %p12546_p5 }
  0x74   : > { %p12544_p13 = pneg %p12543_p0 }
  0x75   : > { %p12550_p8 = por %p12549_p10, %p12548_p9 }
  0x77   : > { %p12551_p11 = pnand %p12550_p8, %p12544_p13 }
  0x79   : > { %12554 = shalt.err (!%p12551_p11)
}
  0x7a   : > { %s12555_s5 = scalar_lea.vmem %s13187_s12, 2048  ;;  %s12928_s3 = smov [#allocation12]  }
  0x7b   : > { %p12556_p2 = scmp.ne.s32.totalorder %s13187_s12, %s12555_s5  ;;  %s12560_s26 = sshll.u32 %s12928_s3, 4  ;;  %s12561_s26 = int_to_ptr.vmem [resolvable:$false] %s12560_s26 }
  0x7c   : > { %s12562_s0 = scalar_lea.vmem %s12561_s26, 4096  ;;  %p12563_p4 = scmp.lt.s32.totalorder %s13187_s12, %s12561_s26 }
  0x7d   : > { %p12558_p12 = pnand %p12556_p2, %p13117_p6  ;;  %p12564_p0 = scmp.lt.s32.totalorder %s12562_s0, %s12555_s5 }
  0x7f   : > { %p12559_p1 = pneg %p12558_p12  ;;  %p12565_p5 = por %p12564_p0, %p12563_p4 }
  0x81   : > { %p12566_p7 = pnand %p12565_p5, %p12559_p1 }
  0x83   : > { %12569 = shalt.err (!%p12566_p7)
}
  0x84   : > { %s17103_s4 = smov 128   ;;  %s17104_s20 = smov 8  }
  0x85   : > { %12022 = dma.hbm_to_vmem [thread:$0]  (!%p17208_p3), %s13183_s7, 2048, %s13187_s12, %s17100_s1, %s17103_s4, %s17103_s4, %s17104_s20  }
  0x86   : > { %s17212_s28 = sshll.u32 %s13095_s25, 7  ;;  %s17213_s11 = sld [smem:[#allocation80_spill]] }
  0x87   : > { %s613_s19 = scalar_lea.vmem [#allocation14], %s17212_s28  ;;  %s633_s26 = scalar_lea.vmem [#allocation15], %s13095_s25 }
  0x88   : > { %s620_s6 = sshll.u32 %s613_s19, 4  ;;  %s640_s0 = sshll.u32 %s633_s26, 4  ;;  %s13223_s6 = int_to_ptr.vmem [resolvable:$true] %s620_s6  ;;  %s641_s0 = int_to_ptr.vmem [resolvable:$true] %s640_s0 }
  0x89   : > { %s17102_s8 = scalar_lea.sflag [#allocation16], %s13092_s24 }
  0x8c   : > { %s13229_s3 = scalar_lea.hbm %s17213_s11, %s13149_s9  ;;  %s12575_s28 = scalar_lea.hbm %s17213_s11, 96 }
  0x8d   : > { %s12570_s10 = scalar_lea.hbm %s13229_s3, 16  ;;  %p12576_p8 = scmp.lt.u32.totalorder %s13229_s3, %s17213_s11 }
  0x8e   : > { %p12571_p13 = scmp.ne.s32.totalorder %s13229_s3, %s12570_s10  ;;  %p12577_p11 = scmp.lt.u32.totalorder %s12575_s28, %s12570_s10 }
  0x8f   : > { %p12579_p12 = scmp.lt.u32.totalorder %s12570_s10, %s13229_s3 }
  0x90   : > { %p12573_p9 = pnand %p12571_p13, %p13117_p6  ;;  %p12578_p2 = por %p12577_p11, %p12576_p8 }
  0x92   : > { %p12574_p10 = pneg %p12573_p9  ;;  %p12580_p1 = por %p12579_p12, %p12578_p2 }
  0x94   : > { %p12581_p4 = pnand %p12580_p1, %p12574_p10 }
  0x96   : > { %12584 = shalt.err (!%p12581_p4)
}
  0x97   : > { %s12585_s5 = scalar_lea.vmem %s641_s0, 16  ;;  %s12931_s26 = smov [#allocation15]  }
  0x98   : > { %p12586_p0 = scmp.ne.s32.totalorder %s641_s0, %s12585_s5  ;;  %s12590_s1 = sshll.u32 %s12931_s26, 4  ;;  %s12591_s1 = int_to_ptr.vmem [resolvable:$false] %s12590_s1 }
  0x99   : > { %s12592_s7 = scalar_lea.vmem %s12591_s1, 32  ;;  %p12593_p13 = scmp.lt.s32.totalorder %s641_s0, %s12591_s1 }
  0x9a   : > { %p12588_p5 = pnand %p12586_p0, %p13117_p6  ;;  %p12594_p9 = scmp.lt.s32.totalorder %s12592_s7, %s12585_s5 }
  0x9c   : > { %p12589_p7 = pneg %p12588_p5  ;;  %p12595_p3 = por %p12594_p9, %p12593_p13 }
  0x9e   : > { %p12596_p8 = pnand %p12595_p3, %p12589_p7 }
  0xa0   : > { %12599 = shalt.err (!%p12596_p8)
}
  0xa1   : > { %p17214_p11 = scmp.ne.s32.totalorder %s17201_s27, 0  ;;  %s13253_s10 = sadd.s32 4294967295, %s12922_s23  }
  0xa2   : > { %s10498_s1 = sadd.s32 4294967294, %s12922_s23   ;;  %s54_s12 = sadd.s32 1, %s12914_s21 }
  0xa3   : > { %12028 = dma.hbm_to_vmem [thread:$0]  (!%p17214_p11), %s13229_s3, 16, %s641_s0, %s17102_s8  }
  0xa4   : > { %p55_p3 = scmp.ge.s32.totalorder %s54_s12, 6  ;;  %s57_s28 = sadd.s32 1, %s12918_s22 }
  0xa5   : > { %s64_s19 = sadd.s32 1, %s12902_s18  ;;  %p71_p10 = scmp.ne.s32.totalorder %s12902_s18, %s12898_s17 }
  0xa6   : > { %s17438_s12 = smov (%p55_p3, %s54_s12), 0  ;;  %s17440_s28 = smov (!%p55_p3, %s57_s28), %s12918_s22 }
  0xa7   : > { %17215 = sst [smem:[#allocation37_spill]] %s17438_s12  ;;  %p17216_p2 = scmp.eq.s32.totalorder %s12922_s23, 0 }
  0xa8   : > { %p77_p1 = scmp.ne.s32.totalorder %s12898_s17, %s12894_s16  ;;  %p59_p4 = scmp.ge.s32.totalorder %s17440_s28, 2 }
  0xa9   : > { %p13269_p12 = por %p17216_p2, %p71_p10  ;;  %p78_p0 = scmp.eq.s32.totalorder %s13253_s10, 0 }
  0xaa   : > { %s113_s0 = ssub.s32 %s12914_s21, %s17438_s12  ;;  %s116_s14 = sadd.s32 1, %s12890_s15 }
  0xab   : > { %s17442_s28 = smov (%p59_p4, %s17440_s28), 0  ;;  %p13284_p5 = por %p78_p0, %p77_p1 }
  0xac   : > { %17218 = sst [smem:[#allocation38_spill]] %s17442_s28  ;;  %p114_p7 = scmp.eq.s32.totalorder %s113_s0, 0 }
  0xad   : > { %s17219_s5 = scalar_select %p13284_p5, 1, 0 }
  0xae   : > { %s61_s26 = ssub.s32 %s12918_s22, %s17442_s28  ;;  %p129_p13 = scmp.ne.s32.totalorder %s12886_s30, %s12882_s29 }
  0xaf   : > { %p62_p9 = scmp.eq.s32.totalorder %s61_s26, 0  ;;  %p439_p8 = scmp.eq.s32.totalorder %s13253_s10, 11 }
  0xb0   : > { %s13294_s7 = scalar_select %p114_p7, %s12890_s15, %s116_s14  }
  0xb1   : > { %s13297_s8 = scalar_select %p62_p9, %s12902_s18, %s64_s19  }
  0xb2   : > { %17220 = sst [smem:[#allocation39_spill]] %s13294_s7  ;;  %p13299_p3 = por %p129_p13, %p78_p0 }
  0xb3   : > { %17221 = sst [smem:[#allocation40_spill]] %s13297_s8  ;;  %p13306_p2 = por %p439_p8, %p71_p10 }
  0xb4   : > { %s17222_s4 = scalar_select %p13299_p3, 1, 0 }
  0xb5   : > { %s17224_s20 = scalar_select %p13306_p2, 1, 0 }
  0xb6   : > { %17223 = sst [smem:[#allocation41_spill]] %s17222_s4  ;;  %p445_p4 = scmp.eq.s32.totalorder %s10498_s1, 11 }
  0xb7   : > { %s465_s11 = sand.u32 1, %s12902_s18   ;;  %s11975_s14 = smul.u32 640, %s12918_s22 }
  0xb8   : > { %s11974_s0 = smul.u32 40, %s465_s11  ;;  %p13314_p5 = por %p445_p4, %p77_p1 }
  0xb9   : > { %p17227_p7 = scmp.lt.s32.totalorder %s12922_s23, 12  ;;  %s17229_s12 = sld [smem:[#allocation69_spill]] }
  0xba   : > { %s17225_s29 = scalar_select %p13314_p5, 1, 0 }
  0xbb   : > { %p13323_p0 = pnand %p17227_p7, %p13269_p12  ;;  %s469_s8 = scalar_lea.vmem [#allocation3], %s11974_s0 }
  0xbc   : > { %17226 = sst [smem:[#allocation42_spill]] %s17225_s29  ;;  %s476_s18 = sshll.u32 %s469_s8, 4  ;;  %s13332_s18 = int_to_ptr.vmem [resolvable:$true] %s476_s18 }
  0xbd   : > { %s13334_s3 = scalar_lea.sflag [#allocation4], %s465_s11  ;;  %p12602_p12 = pneg %p13323_p0 }
  0xbf   : > { %s13330_s1 = scalar_lea.hbm %s17229_s12, %s11975_s14  ;;  %s12605_s26 = scalar_lea.hbm %s17229_s12, 1280 }
  0xc0   : > { %s12600_s22 = scalar_lea.hbm %s13330_s1, 640  ;;  %p12606_p9 = scmp.lt.u32.totalorder %s13330_s1, %s17229_s12 }
  0xc1   : > { %p12601_p10 = scmp.ne.s32.totalorder %s13330_s1, %s12600_s22  ;;  %p12607_p8 = scmp.lt.u32.totalorder %s12605_s26, %s12600_s22 }
  0xc2   : > { %p12609_p7 = scmp.lt.u32.totalorder %s12600_s22, %s13330_s1 }
  0xc3   : > { %p12603_p1 = pnand %p12602_p12, %p12601_p10  ;;  %p12608_p4 = por %p12607_p8, %p12606_p9 }
  0xc5   : > { %p12604_p13 = pneg %p12603_p1  ;;  %p12610_p5 = por %p12609_p7, %p12608_p4 }
  0xc7   : > { %p12611_p2 = pnand %p12610_p5, %p12604_p13 }
  0xc9   : > { %12614 = shalt.err (!%p12611_p2)
}
  0xca   : > { %s12615_s8 = scalar_lea.vmem %s13332_s18, 640  ;;  %s12932_s11 = smov [#allocation3]  }
  0xcb   : > { %p12616_p10 = scmp.ne.s32.totalorder %s13332_s18, %s12615_s8  ;;  %s12620_s0 = sshll.u32 %s12932_s11, 4  ;;  %s12621_s0 = int_to_ptr.vmem [resolvable:$false] %s12620_s0 }
  0xcc   : > { %s12622_s15 = scalar_lea.vmem %s12621_s0, 1280  ;;  %p12623_p11 = scmp.lt.s32.totalorder %s13332_s18, %s12621_s0 }
  0xcd   : > { %p12618_p1 = pnand %p12616_p10, %p12602_p12  ;;  %p12624_p9 = scmp.lt.s32.totalorder %s12622_s15, %s12615_s8 }
  0xcf   : > { %p12619_p3 = pneg %p12618_p1  ;;  %p12625_p8 = por %p12624_p9, %p12623_p11 }
  0xd1   : > { %p12626_p4 = pnand %p12625_p8, %p12619_p3 }
  0xd3   : > { %12629 = shalt.err (!%p12626_p4)
}
  0xd4   : > { %s17230_s22 = smov 8   ;;  %s17231_s7 = smov 128  }
  0xd5   : > { %12007 = dma.hbm_to_vmem [thread:$0]  (!%p13323_p0), %s13330_s1, 640, %s13332_s18, %s13334_s3, %s17231_s7, %s17231_s7, %s17230_s22  }
  0xd6   : > { %s10503_s28 = sshll.u32 %s13095_s25, 6  ;;  %s10814_s14 = sshll.u32 %s12914_s21, 10 }
  0xd7   : > { %s17232_s8 = sld [smem:[#allocation73_spill]]  ;;  %s524_s19 = scalar_lea.vmem [#allocation8], %s10503_s28 }
  0xd8   : > { %s531_s15 = sshll.u32 %s524_s19, 4  ;;  %s13372_s15 = int_to_ptr.vmem [resolvable:$true] %s531_s15 }
  0xdd   : > { %s13370_s0 = scalar_lea.hbm %s17232_s8, %s10814_s14  ;;  %s12635_s3 = scalar_lea.hbm %s17232_s8, 6144 }
  0xde   : > { %s12630_s12 = scalar_lea.hbm %s13370_s0, 1024  ;;  %p12636_p2 = scmp.lt.u32.totalorder %s13370_s0, %s17232_s8 }
  0xdf   : > { %p12631_p11 = scmp.ne.s32.totalorder %s13370_s0, %s12630_s12  ;;  %p12637_p0 = scmp.lt.u32.totalorder %s12635_s3, %s12630_s12 }
  0xe0   : > { %p12639_p13 = scmp.lt.u32.totalorder %s12630_s12, %s13370_s0 }
  0xe1   : > { %p12633_p5 = pnand %p12631_p11, %p13117_p6  ;;  %p12638_p12 = por %p12637_p0, %p12636_p2 }
  0xe3   : > { %p12634_p3 = pneg %p12633_p5  ;;  %p12640_p7 = por %p12639_p13, %p12638_p12 }
  0xe5   : > { %p12641_p10 = pnand %p12640_p7, %p12634_p3 }
  0xe7   : > { %12644 = shalt.err (!%p12641_p10)
}
  0xe8   : > { %s12645_s28 = scalar_lea.vmem %s13372_s15, 1024  ;;  %s12933_s14 = smov [#allocation8]  }
  0xe9   : > { %p12646_p1 = scmp.ne.s32.totalorder %s13372_s15, %s12645_s28  ;;  %s12650_s26 = sshll.u32 %s12933_s14, 4  ;;  %s12651_s26 = int_to_ptr.vmem [resolvable:$false] %s12650_s26 }
  0xea   : > { %s12652_s11 = scalar_lea.vmem %s12651_s26, 2048  ;;  %p12653_p4 = scmp.lt.s32.totalorder %s13372_s15, %s12651_s26 }
  0xeb   : > { %p12648_p9 = pnand %p12646_p1, %p13117_p6  ;;  %p12654_p11 = scmp.lt.s32.totalorder %s12652_s11, %s12645_s28 }
  0xed   : > { %p12649_p8 = pneg %p12648_p9  ;;  %p12655_p5 = por %p12654_p11, %p12653_p4 }
  0xef   : > { %p12656_p2 = pnand %p12655_p5, %p12649_p8 }
  0xf1   : > { %12659 = shalt.err (!%p12656_p2)
}
  0xf2   : > { %s12934_s12 = smov 64   ;;  %s12935_s19 = smov 4  }
  0xf3   : > { %p17233_p3 = scmp.ne.s32.totalorder %s17201_s27, 0  ;;  %s17234_s18 = scalar_lea.sflag [#allocation7], %s13092_s24 }
  0xf4   : > { %s17235_s22 = sld [smem:[#allocation76_spill]]  ;;  %s567_s14 = scalar_lea.vmem [#allocation11], %s13095_s25 }
  0xf5   : > { %12013 = dma.hbm_to_vmem [thread:$0]  (!%p17233_p3), %s13370_s0, 1024, %s13372_s15, %s17234_s18, %s12934_s12, %s12934_s12, %s12935_s19  }
  0xf6   : > { %s574_s26 = sshll.u32 %s567_s14, 4  ;;  %s17237_s21 = sld [smem:[#allocation81_spill]]  ;;  %s575_s26 = int_to_ptr.vmem [resolvable:$true] %s574_s26 }
  0xfa   : > { %s17236_s7 = smov %s17235_s22  ;;  %s13404_s28 = scalar_lea.hbm %s17235_s22, %s13149_s9 }
  0xfb   : > { %s12660_s16 = scalar_lea.hbm %s13404_s28, 16  ;;  %s12665_s18 = scalar_lea.hbm %s17236_s7, 96 }
  0xfc   : > { %s17238_s4 = smov %s17237_s21  ;;  %s13411_s29 = scalar_lea.hbm %s17237_s21, %s13149_s9 }
  0xfd   : > { %p12661_p0 = scmp.ne.s32.totalorder %s13404_s28, %s12660_s16  ;;  %p12666_p7 = scmp.lt.u32.totalorder %s13404_s28, %s17236_s7 }
  0xfe   : > { %p12667_p10 = scmp.lt.u32.totalorder %s12665_s18, %s12660_s16  ;;  %p12669_p9 = scmp.lt.u32.totalorder %s12660_s16, %s13404_s28 }
  0xff   : > { %p12663_p12 = pnand %p12661_p0, %p13117_p6 }
 0x100   : > { %p12668_p1 = por %p12667_p10, %p12666_p7 }
 0x101   : > { %p12664_p13 = pneg %p12663_p12 }
 0x102   : > { %p12670_p8 = por %p12669_p9, %p12668_p1 }
 0x104   : > { %p12671_p4 = pnand %p12670_p8, %p12664_p13 }
 0x106   : > { %12674 = shalt.err (!%p12671_p4)
}
 0x107   : > { %s12675_s21 = scalar_lea.vmem %s575_s26, 16  ;;  %s12936_s8 = smov [#allocation11]  }
 0x108   : > { %p12676_p11 = scmp.ne.s32.totalorder %s575_s26, %s12675_s21  ;;  %s12680_s22 = sshll.u32 %s12936_s8, 4  ;;  %s12681_s22 = int_to_ptr.vmem [resolvable:$false] %s12680_s22 }
 0x109   : > { %s12682_s14 = scalar_lea.vmem %s12681_s22, 32  ;;  %p12683_p0 = scmp.lt.s32.totalorder %s575_s26, %s12681_s22 }
 0x10a   : > { %p12678_p5 = pnand %p12676_p11, %p13117_p6  ;;  %p12684_p12 = scmp.lt.s32.totalorder %s12682_s14, %s12675_s21 }
 0x10c   : > { %p12679_p2 = pneg %p12678_p5  ;;  %p12685_p3 = por %p12684_p12, %p12683_p0 }
 0x10e   : > { %p12686_p7 = pnand %p12685_p3, %p12679_p2 }
 0x110   : > { %12689 = shalt.err (!%p12686_p7)
}
 0x111   : > { %p17239_p10 = scmp.ne.s32.totalorder %s17201_s27, 0  ;;  %s17240_s16 = scalar_lea.sflag [#allocation10], %s13092_s24 }
 0x112   : > { %s12690_s11 = scalar_lea.hbm %s13192_s2, 2048  ;;  %s17241_s18 = sld [smem:[#allocation79_spill]] }
 0x113   : > { %12019 = dma.hbm_to_vmem [thread:$0]  (!%p17239_p10), %s13404_s28, 16, %s575_s26, %s17240_s16  }
 0x114   : > { %p12691_p13 = scmp.ne.s32.totalorder %s13192_s2, %s12690_s11  ;;  %p12699_p11 = scmp.lt.u32.totalorder %s12690_s11, %s13192_s2 }
 0x116   : > { %p12693_p1 = pnand %p12691_p13, %p13117_p6 }
 0x118   : > { %p12694_p9 = pneg %p12693_p1  ;;  %s12695_s1 = scalar_lea.hbm %s17241_s18, 12288 }
 0x119   : > { %p12696_p3 = scmp.lt.u32.totalorder %s13192_s2, %s17241_s18  ;;  %p12697_p8 = scmp.lt.u32.totalorder %s12695_s1, %s12690_s11 }
 0x11b   : > { %p12698_p4 = por %p12697_p8, %p12696_p3 }
 0x11d   : > { %p12700_p5 = por %p12699_p11, %p12698_p4 }
 0x11f   : > { %p12701_p2 = pnand %p12700_p5, %p12694_p9 }
 0x121   : > { %12704 = shalt.err (!%p12701_p2)
}
 0x122   : > { %s12705_s28 = scalar_lea.vmem %s13223_s6, 2048  ;;  %s12937_s26 = smov [#allocation14]  }
 0x123   : > { %p12706_p0 = scmp.ne.s32.totalorder %s13223_s6, %s12705_s28  ;;  %s12710_s8 = sshll.u32 %s12937_s26, 4  ;;  %s12711_s8 = int_to_ptr.vmem [resolvable:$false] %s12710_s8 }
 0x124   : > { %s12712_s22 = scalar_lea.vmem %s12711_s8, 4096  ;;  %p12713_p13 = scmp.lt.s32.totalorder %s13223_s6, %s12711_s8 }
 0x125   : > { %p12708_p12 = pnand %p12706_p0, %p13117_p6  ;;  %p12714_p1 = scmp.lt.s32.totalorder %s12712_s22, %s12705_s28 }
 0x127   : > { %p12709_p7 = pneg %p12708_p12  ;;  %p12715_p3 = por %p12714_p1, %p12713_p13 }
 0x129   : > { %p12716_p8 = pnand %p12715_p3, %p12709_p7 }
 0x12b   : > { %12719 = shalt.err (!%p12716_p8)
}
 0x12c   : > { %s17242_s14 = scalar_lea.sflag [#allocation13], %s13092_s24  ;;  %s650_s16 = scalar_lea.vmem [#allocation17], %s13095_s25 }
 0x12d   : > { %12025 = dma.hbm_to_vmem [thread:$0]  (!%p17239_p10), %s13192_s2, 2048, %s13223_s6, %s17242_s14, %s12934_s12, %s12934_s12, %s12935_s19  }
 0x12e   : > { %s657_s11 = sshll.u32 %s650_s16, 4  ;;  %s12720_s0 = scalar_lea.hbm %s13411_s29, 16  ;;  %s658_s11 = int_to_ptr.vmem [resolvable:$true] %s657_s11 }
 0x12f   : > { %p12721_p9 = scmp.ne.s32.totalorder %s13411_s29, %s12720_s0  ;;  %s12725_s1 = scalar_lea.hbm %s17238_s4, 96 }
 0x130   : > { %p12726_p5 = scmp.lt.u32.totalorder %s13411_s29, %s17238_s4  ;;  %p12727_p2 = scmp.lt.u32.totalorder %s12725_s1, %s12720_s0 }
 0x131   : > { %p12723_p4 = pnand %p12721_p9, %p13117_p6  ;;  %p12729_p12 = scmp.lt.u32.totalorder %s12720_s0, %s13411_s29 }
 0x132   : > { %p12728_p0 = por %p12727_p2, %p12726_p5 }
 0x133   : > { %p12724_p11 = pneg %p12723_p4 }
 0x134   : > { %p12730_p7 = por %p12729_p12, %p12728_p0 }
 0x136   : > { %p12731_p13 = pnand %p12730_p7, %p12724_p11 }
 0x138   : > { %12734 = shalt.err (!%p12731_p13)
}
 0x139   : > { %s12735_s2 = scalar_lea.vmem %s658_s11, 16  ;;  %s12938_s6 = smov [#allocation17]  }
 0x13a   : > { %p12736_p1 = scmp.ne.s32.totalorder %s658_s11, %s12735_s2  ;;  %s12740_s12 = sshll.u32 %s12938_s6, 4  ;;  %s12741_s12 = int_to_ptr.vmem [resolvable:$false] %s12740_s12 }
 0x13b   : > { %s12742_s19 = scalar_lea.vmem %s12741_s12, 32  ;;  %p12743_p9 = scmp.lt.s32.totalorder %s658_s11, %s12741_s12 }
 0x13c   : > { %p12738_p3 = pnand %p12736_p1, %p13117_p6  ;;  %p12744_p4 = scmp.lt.s32.totalorder %s12742_s19, %s12735_s2 }
 0x13e   : > { %p12739_p8 = pneg %p12738_p3  ;;  %p12745_p10 = por %p12744_p4, %p12743_p9 }
 0x140   : > { %p12746_p2 = pnand %p12745_p10, %p12739_p8 }
 0x142   : > { %12749 = shalt.err (!%p12746_p2)
}
 0x143   : > { %p17243_p5 = scmp.ne.s32.totalorder %s17201_s27, 0  ;;  %s17244_s28 = scalar_lea.sflag [#allocation16], %s13092_s24 }
 0x144   : > { %s17245_s22 = sld [smem:[#allocation82_spill]]  ;;  %s667_s0 = scalar_lea.vmem [#allocation18], %s13095_s25 }
 0x145   : > { %12031 = dma.hbm_to_vmem [thread:$0]  (!%p17243_p5), %s13411_s29, 16, %s658_s11, %s17244_s28  }
 0x146   : > { %s674_s15 = sshll.u32 %s667_s0, 4  ;;  %s665_s18 = scalar_lea.sflag [#allocation19], %s13095_s25  ;;  %s675_s15 = int_to_ptr.vmem [resolvable:$true] %s674_s15 }
 0x14a   : > { %s17246_s14 = smov %s17245_s22  ;;  %s13482_s16 = scalar_lea.hbm %s17245_s22, %s13149_s9 }
 0x14b   : > { %s12750_s24 = scalar_lea.hbm %s13482_s16, 16  ;;  %s12755_s11 = scalar_lea.hbm %s17246_s14, 96 }
 0x14c   : > { %p12751_p10 = scmp.ne.s32.totalorder %s13482_s16, %s12750_s24  ;;  %p12756_p12 = scmp.lt.u32.totalorder %s13482_s16, %s17246_s14 }
 0x14d   : > { %p12757_p7 = scmp.lt.u32.totalorder %s12755_s11, %s12750_s24  ;;  %p12759_p1 = scmp.lt.u32.totalorder %s12750_s24, %s13482_s16 }
 0x14e   : > { %p12753_p11 = pnand %p12751_p10, %p13117_p6 }
 0x14f   : > { %p12758_p13 = por %p12757_p7, %p12756_p12 }
 0x150   : > { %p12754_p0 = pneg %p12753_p11 }
 0x151   : > { %p12760_p3 = por %p12759_p1, %p12758_p13 }
 0x153   : > { %p12761_p8 = pnand %p12760_p3, %p12754_p0 }
 0x155   : > { %12764 = shalt.err (!%p12761_p8)
}
 0x156   : > { %s12765_s25 = scalar_lea.vmem %s675_s15, 16  ;;  %s12939_s21 = smov [#allocation18]  }
 0x157   : > { %p12766_p9 = scmp.ne.s32.totalorder %s675_s15, %s12765_s25  ;;  %s12770_s2 = sshll.u32 %s12939_s21, 4  ;;  %s12771_s2 = int_to_ptr.vmem [resolvable:$false] %s12770_s2 }
 0x158   : > { %s12772_s6 = scalar_lea.vmem %s12771_s2, 32  ;;  %p12773_p10 = scmp.lt.s32.totalorder %s675_s15, %s12771_s2 }
 0x159   : > { %p12768_p4 = pnand %p12766_p9, %p13117_p6  ;;  %p12774_p11 = scmp.lt.s32.totalorder %s12772_s6, %s12765_s25 }
 0x15b   : > { %p12769_p2 = pneg %p12768_p4  ;;  %p12775_p5 = por %p12774_p11, %p12773_p10 }
 0x15d   : > { %p12776_p7 = pnand %p12775_p5, %p12769_p2 }
 0x15f   : > { %12779 = shalt.err (!%p12776_p7)
}
 0x160   : > { %p17247_p12 = scmp.ne.s32.totalorder %s17201_s27, 0  ;;  %s17248_s12 = sld [smem:[#allocation36_spill]] }
 0x162   : > { %12034 = dma.hbm_to_vmem [thread:$0]  (!%p17247_p12), %s13482_s16, 16, %s675_s15, %s665_s18  }
 0x166   : > { %p17249_p0 = scmp.ne.s32.totalorder %s17248_s12, 0 }
 0x168   : > { %683 = sbr.rel (%p17249_p0) target bundleno = 3298 (0xce2), region = 76 }
 0x16f   : > { %s13506_s13 = sand.u32 1, %s12898_s17   ;;  %p17250_p6 = scmp.ne.s32.totalorder %s17219_s5, 0 }
 0x170   : > { %s17121_s19 = smul.u32 40, %s13506_s13  ;;  %s686_s28 = scalar_lea.sflag [#allocation4], %s13506_s13 }
 0x172   : > { %s13512_s26 = scalar_lea.vmem [#allocation3], %s17121_s19 }
 0x173   : > { %12853 = dma.done.wait (%p17250_p6), %s686_s28, 640  }
 0x174   : > { %12855 = vsyncadd (%p17250_p6), %s686_s28, 4294966656  ;;  %s17251_s27 = sld [smem:[#allocation41_spill]]  ;;  %s694_s8 = sand.u32 1, %s13253_s10  }
 0x175   : > { %s13520_s22 = sand.u32 1, %s12886_s30   ;;  %s695_s0 = scalar_lea.sflag [#allocation7], %s694_s8 }
 0x176   : > { %s11979_s16 = smul.u32 192, %s13520_s22 }
 0x178   : > { %s13523_s15 = scalar_lea.vmem [#allocation6], %s11979_s16 }
 0x17a   : > { %p17252_p5 = scmp.ne.s32.totalorder %s17251_s27, 0 }
 0x17c   : > { %12857 = dma.done.wait (%p17252_p5), %s695_s0, 4096  }
 0x17d   : > { %12859 = vsyncadd (%p17252_p5), %s695_s0, 4294963200  ;;  %s10518_s5 = sshll.u32 %s13520_s22, 6  ;;  %s713_s24 = scalar_lea.sflag [#allocation10], %s694_s8 }
 0x17e   : > { %s13530_s18 = scalar_lea.vmem [#allocation8], %s10518_s5 }
 0x17f   : > { %12861 = dma.done.wait (%p17252_p5), %s713_s24, 32  }
 0x180   : > { %12863 = vsyncadd (%p17252_p5), %s713_s24, 4294967264  ;;  %s10519_s1 = sshll.u32 %s13520_s22, 7  ;;  %s729_s11 = scalar_lea.sflag [#allocation13], %s694_s8 }
 0x181   : > { %s13539_s3 = scalar_lea.vmem [#allocation12], %s10519_s1 }
 0x182   : > { %12865 = dma.done.wait (%p17252_p5), %s729_s11, 4096  }
 0x183   : > { %12867 = vsyncadd (%p17252_p5), %s729_s11, 4294963200  ;;  %s13545_s9 = scalar_lea.vmem [#allocation14], %s10519_s1  ;;  %s747_s25 = scalar_lea.sflag [#allocation16], %s694_s8 }
 0x184   : > { %12869 = dma.done.wait (%p17252_p5), %s747_s25, 32  }
 0x185   : > { %12871 = vsyncadd (%p17252_p5), %s747_s25, 4294967264  ;;  %s763_s6 = scalar_lea.sflag [#allocation19], %s13520_s22 }
 0x186   : > { %12873 = dma.done.wait (%p17252_p5), %s763_s6, 16  }
 0x187   : > { %12875 = vsyncadd (%p17252_p5), %s763_s6, 4294967280  ;;  %s17253_s28 = sld [smem:[#allocation33_spill]]  ;;  %s17254_s8 = sld [smem:[#allocation32_spill]] }
 0x188   : > { %s17255_s24 = sld [smem:[#allocation70_spill]]  ;;  %s17256_s6 = sld [smem:[#allocation75_spill]] }
 0x189   : > { %s17257_s10 = sld [smem:[#allocation72_spill]]  ;;  %s17258_s14 = sld [smem:[#allocation78_spill]] }
 0x18a   : > { %s17259_s0 = smul.u32 40, %s13506_s13 }
 0x18c   : > { %s13589_s5 = scalar_lea.vmem [#allocation20], %s17259_s0 }
 0x18d   : > { %p864_p13 = scmp.lt.s32.totalorder %s17253_s28, 1  ;;  %p867_p1 = scmp.lt.s32.totalorder %s17254_s8, 5 }
 0x18e   : > { %p10522_p3 = scmp.ne.s32.totalorder %s17254_s8, 0 }
 0x18f   : > { %s17444_s28 = smov (!%p864_p13, %s17253_s28), 1  ;;  %v882_v0 = vld [vmem:[%s13512_s26] sm:$0xff] (!%p10522_p3)  ;;  %v883_v1 = vld [vmem:[%s13512_s26 + $0x8] sm:$0xff] (!%p10522_p3)  ;;  %v884_v2 = vld [vmem:[%s13512_s26 + $0x10] sm:$0xff] (!%p10522_p3) }
 0x190   : > { %s13565_s16 = scalar_select %p867_p1, %s17254_s8, 5 }
 0x191   : > { %s866_s27 = scalar_lea.vmem %s17255_s24, %s17444_s28  ;;  %881 = sbr.rel (%p10522_p3) target bundleno = 408 (0x198), region = 120  ;;  %887 = vst [vmem:[#allocation2] sm:$0xff] (!%p10522_p3), %v882_v0  ;;  %888 = vst [vmem:[#allocation2 + $0x8] sm:$0xff] (!%p10522_p3), %v883_v1  ;;  %v885_v3 = vld [vmem:[%s13512_s26 + $0x18] sm:$0xff] (!%p10522_p3)  ;;  %v886_v4 = vld [vmem:[%s13512_s26 + $0x20] sm:$0xff] (!%p10522_p3) }
 0x192   : > { %s11980_s1 = smul.u32 3, %s13565_s16  ;;  %s873_s12 = scalar_lea.vmem %s17256_s6, %s13565_s16  ;;  %889 = vst [vmem:[#allocation2 + $0x10] sm:$0xff] (!%p10522_p3), %v884_v2  ;;  %890 = vst [vmem:[#allocation2 + $0x18] sm:$0xff] (!%p10522_p3), %v885_v3 }
 0x193   : > { %s10521_s2 = sshll.u32 %s13565_s16, 1  ;;  %891 = vst [vmem:[#allocation2 + $0x20] sm:$0xff] (!%p10522_p3), %v886_v4 }
 0x194   : > { %s13580_s19 = scalar_lea.vmem %s17257_s10, %s11980_s1  ;;  %s13585_s17 = scalar_lea.vmem %s17258_s14, %s10521_s2 }
 0x198 PF: > { %v12219_v5 = vld [vmem:[%s13523_s15 + $0x4] ss:$12 sps:$4 sm:$0xff]   ;;  %v12221_v6 = vld [vmem:[%s13523_s15] ss:$12 sps:$4 sm:$0xff]   ;;  %v17130_v7 = vmov 0.0   ;;  %v17128_v8 = vmov 0.0|0.0   ;;  %v979_v36 = vlaneseq }
 0x199   : > { %1058 = vmatprep.mubr.f32.mxu0 %v17130_v7  ;;  %11710 = vmatprep.subr.bf16.mxu1 %v17128_v8  ;;  %v12222_v9 = vld [vmem:[%s13523_s15 + $0x1c] ss:$12 sps:$4 sm:$0xff]   ;;  %vm12942_vm0 = vmmov 0   ;;  %v12224_v10 = vld [vmem:[%s13523_s15 + $0x18] ss:$12 sps:$4 sm:$0xff]   ;;  %v893_v30 = vld [vmem:[#allocation2 + $0x8] sm:$0xff] }
 0x19a   : > { %11679 = vmatprep.subr.bf16.mxu0 %v12219_v5  ;;  %11216 = vmatprep.mubr.msk.f32.mxu1 %vm12942_vm0, %v17130_v7  ;;  %v12225_v11 = vld [vmem:[%s13523_s15 + $0x34] ss:$12 sps:$4 sm:$0xff]   ;;  %v12227_v12 = vld [vmem:[%s13523_s15 + $0x30] ss:$12 sps:$4 sm:$0xff]   ;;  %v12228_v13 = vld [vmem:[%s13523_s15 + $0x4c] ss:$12 sps:$4 sm:$0xff]  }
 0x19b   : > { %11681 = vmatpush1.bf16.msra.mxu0 %v12221_v6  ;;  %v12230_v14 = vld [vmem:[%s13523_s15 + $0x48] ss:$12 sps:$4 sm:$0xff]   ;;  %v12231_v15 = vld [vmem:[%s13523_s15 + $0x64] ss:$12 sps:$4 sm:$0xff]   ;;  %v12233_v17 = vld [vmem:[%s13523_s15 + $0x60] ss:$12 sps:$4 sm:$0xff]  }
 0x19c   : > { %11683 = vmatprep.subr.bf16.mxu0 %v12222_v9  ;;  %v12243_v16 = vld [vmem:[%s13523_s15 + $0x8] ss:$12 sps:$4 sm:$0xff]   ;;  %v12244_v18 = vld [vmem:[%s13523_s15 + $0x20] ss:$12 sps:$4 sm:$0xff]   ;;  %v12236_v20 = vld [vmem:[%s13523_s15 + $0x78] ss:$12 sps:$4 sm:$0xff]  }
 0x19d   : > { %11712 = vmatpush3.bf16.msra.mxu1 %v12243_v16  ;;  %v12234_v19 = vld [vmem:[%s13523_s15 + $0x7c] ss:$12 sps:$4 sm:$0xff]   ;;  %v12245_v21 = vld [vmem:[%s13523_s15 + $0x38] ss:$12 sps:$4 sm:$0xff]   ;;  %v12237_v22 = vld [vmem:[%s13523_s15 + $0x94] ss:$12 sps:$4 sm:$0xff]  }
 0x19e   : > { %11713 = vmatprep.subr.bf16.mxu1 %v17128_v8  ;;  %v12239_v23 = vld [vmem:[%s13523_s15 + $0x90] ss:$12 sps:$4 sm:$0xff]   ;;  %v12240_v25 = vld [vmem:[%s13523_s15 + $0xac] ss:$12 sps:$4 sm:$0xff]   ;;  %v12242_v26 = vld [vmem:[%s13523_s15 + $0xa8] ss:$12 sps:$4 sm:$0xff]  }
 0x19f   : > { %11685 = vmatpush1.bf16.msra.mxu0 %v12224_v10  ;;  %v12246_v24 = vld [vmem:[%s13523_s15 + $0x50] ss:$12 sps:$4 sm:$0xff]   ;;  %v12247_v27 = vld [vmem:[%s13523_s15 + $0x68] ss:$12 sps:$4 sm:$0xff]   ;;  %v12248_v29 = vld [vmem:[%s13523_s15 + $0x80] ss:$12 sps:$4 sm:$0xff]  }
 0x1a0   : > { %11687 = vmatprep.subr.bf16.mxu0 %v12225_v11  ;;  %v892_v28 = vld [vmem:[#allocation2] sm:$0xff]  ;;  %v12249_v31 = vld [vmem:[%s13523_s15 + $0x98] ss:$12 sps:$4 sm:$0xff]   ;;  %v12250_v33 = vld [vmem:[%s13523_s15 + $0xb0] ss:$12 sps:$4 sm:$0xff]   ;;  %v13650_v37 = vshrl.u32 %v979_v36, 7 }
 0x1a1   : > { %11715 = vmatpush3.bf16.msra.mxu1 %v12244_v18  ;;  %v894_v32 = vld [vmem:[#allocation2 + $0x10] sm:$0xff]  ;;  %v895_v34 = vld [vmem:[#allocation2 + $0x18] sm:$0xff]  ;;  %v896_v35 = vld [vmem:[#allocation2 + $0x20] sm:$0xff]  ;;  %s12943_s4 = smov 96   ;;  %s12944_s7 = smov 112   ;;  %vm5589_vm1 = vcmask 130048  }
 0x1a2   : > { %11716 = vmatprep.subr.bf16.mxu1 %v17128_v8  ;;  %17260 = vst [vmem:[#allocation43_spill] sm:$0xff] %v13650_v37  ;;  %v17127_v38 = vsub.s32 0, %v13650_v37  ;;  %v13654_v39 = vld [vmem:[%s13580_s19] sm:$0x7]  ;;  %v17126_v41 = vsub.s32 1, %v13650_v37  ;;  %s12945_s14 = smov 80   ;;  %vm14031_vm2 = vmpackc.low %vm5589_vm1, %vm5589_vm1 }
 0x1a3   : > { %11689 = vmatpush1.bf16.msra.mxu0 %v12227_v12  ;;  %s12946_s19 = smov 64   ;;  %s12947_s26 = smov 48   ;;  %v12950_v63 = vmov 1983009808   ;;  %v12951_v3 = vmov 1934713408  }
 0x1a4   : > { %11691 = vmatprep.subr.bf16.mxu0 %v12228_v13  ;;  %v982_v40 = vrot.slane %v13654_v39, %v17127_v38  ;;  %v986_v44 = vrot.slane %v13654_v39, %v17126_v41  ;;  %s12948_s15 = smov 32   ;;  %s12949_s10 = smov 16   ;;  %v1512_v0 = vunpack.c.l.s4 %v12950_v63  ;;  %v1576_v4 = vunpack.c.l.s4 %v12951_v3 }
 0x1a5   : > { %11718 = vmatpush3.bf16.msra.mxu1 %v12245_v21  ;;  %v989_v16 = vsub.s32 2, %v13650_v37  ;;  %vm6637_vm3 = vcmask 326656   ;;  %vm9423_vm4 = vcmask 261120   ;;  %vm9429_vm5 = vcmask 392192   ;;  %s17412_s24 = scalar_lea.vmem [#allocation11], %s13520_s22 }
 0x1a6   : > { %11719 = vmatprep.subr.bf16.mxu1 %v17128_v8  ;;  %v1513_v5 = vunpack.c.0.s8 %v1512_v0  ;;  %v1577_v10 = vunpack.c.0.s8 %v1576_v4  ;;  %vm9435_vm6 = vcmask 523264   ;;  %vm9441_vm7 = vcmask 654336  }
 0x1a7   : > { %11693 = vmatpush1.bf16.msra.mxu0 %v12230_v14  ;;  %vm9447_vm8 = vcmask 785408   ;;  %vm9453_vm9 = vcmask 916480  }
 0x1a8   : > { %11695 = vmatprep.subr.bf16.mxu0 %v12231_v15  ;;  %v13806_v11 = vsub.s32 %v1513_v5, %v13650_v37 }
 0x1a9   : > { %11721 = vmatpush3.bf16.msra.mxu1 %v12246_v24 }
 0x1aa   : > { %11722 = vmatprep.subr.bf16.mxu1 %v17128_v8  ;;  %17261 = vst [vmem:[#allocation44_spill] sm:$0xff] %v13806_v11 }
 0x1ab   : > { %11697 = vmatpush1.bf16.msra.mxu0 %v12233_v17 }
 0x1ac   : > { %11699 = vmatprep.subr.bf16.mxu0 %v12234_v19  ;;  %v13812_v19 = vsub.s32 %v1577_v10, %v13650_v37 }
 0x1ad   : > { %11724 = vmatpush3.bf16.msra.mxu1 %v12247_v27 }
 0x1ae   : > { %11725 = vmatprep.subr.bf16.mxu1 %v17128_v8  ;;  %17262 = vst [vmem:[#allocation45_spill] sm:$0xff] %v13812_v19 }
 0x1af   : > { %11701 = vmatpush1.bf16.msra.mxu0 %v12236_v20 }
 0x1b0   : > { %11703 = vmatprep.subr.bf16.mxu0 %v12237_v22 }
 0x1b1   : > { %11727 = vmatpush3.bf16.msra.mxu1 %v12248_v29 }
 0x1b2   : > { %11728 = vmatprep.subr.bf16.mxu1 %v17128_v8 }
 0x1b3   : > { %11705 = vmatpush1.bf16.msra.mxu0 %v12239_v23 }
 0x1b4   : > { %11707 = vmatprep.subr.bf16.mxu0 %v12240_v25 }
 0x1b5   : > { %11730 = vmatpush3.bf16.msra.mxu1 %v12249_v31 }
 0x1b6   : > { %11731 = vmatprep.subr.bf16.mxu1 %v17128_v8 }
 0x1b7   : > { %11709 = vmatpush1.bf16.msra.mxu0 %v12242_v26  ;;  %v13823_v26 = vrot.slane %v13654_v39, %v989_v16 }
 0x1b8   : > { %11750 = vmatprep.subr.bf16.mxu0 %v17128_v8 }
 0x1b9   : > { %11733 = vmatpush3.bf16.msra.mxu1 %v12250_v33  ;;  %17263 = vst [vmem:[#allocation46_spill] sm:$0xff] %v13823_v26 }
 0x1ba   : > { %1059 = vmatmul.mubr.f32.vlgmr.msra.gmra.mrb[0].mxu0 %v892_v28  ;;  %11734 = vmatprep.subr.bf16.mxu1 %v17128_v8 }
 0x1bb   : > { %1064 = vmatprep.mubr.f32.mxu0 %v17130_v7 }
 0x1bc   : > { %11217 = vmatmul.mubr.f32.vlgmr.msra.gmra.mrb[0].mxu1 %v892_v28 }
 0x1bd   : > { %11219 = vmatprep.mubr.msk.f32.mxu1 %vm12942_vm0, %v17130_v7 }
 0x1be   : > { %1065 = vmatmul.mubr.f32.gmra.mrb[2].mxu0 %v893_v30 }
 0x1bf   : > { %1070 = vmatprep.mubr.f32.mxu0 %v17130_v7 }
 0x1c0   : > { %11220 = vmatmul.mubr.f32.gmra.mrb[2].mxu1 %v893_v30 }
 0x1c1   : > { %11222 = vmatprep.mubr.msk.f32.mxu1 %vm12942_vm0, %v17130_v7 }
 0x1c2   : > { %1071 = vmatmul.mubr.f32.gmra.mrb[4].mxu0 %v894_v32 }
 0x1c3   : > { %1076 = vmatprep.mubr.f32.mxu0 %v17130_v7 }
 0x1c4   : > { %11223 = vmatmul.mubr.f32.gmra.mrb[4].mxu1 %v894_v32 }
 0x1c5   : > { %11225 = vmatprep.mubr.msk.f32.mxu1 %vm12942_vm0, %v17130_v7 }
 0x1c6   : > { %1077 = vmatmul.mubr.f32.gmra.mrb[6].mxu0 %v895_v34 }
 0x1c7   : > { %1082 = vmatprep.mubr.f32.mxu0 %v17130_v7 }
 0x1c8   : > { %11226 = vmatmul.mubr.f32.gmra.mrb[6].mxu1 %v895_v34 }
 0x1c9   : > { %11228 = vmatprep.mubr.msk.f32.mxu1 %vm12942_vm0, %v17130_v7 }
 0x1ca   : > { %1083 = vmatmul.mubr.f32.gmra.mrb[8].mxu0 %v896_v35 }
 0x1cb   : > { %11291 = vmatprep.mubr.msk.f32.mxu0 %vm12942_vm0, %v17130_v7 }
 0x1cc   : > { %11229 = vmatmul.mubr.f32.gmra.mrb[8].mxu1 %v896_v35 }
 0x1cd   : > { %11241 = vmatprep.mubr.msk.f32.mxu1 %vm12942_vm0, %v17130_v7 }
 0x28d   : > { %v1060_v42 = vpop.f32.mrb[0].mxu0 }
 0x28e   : > { %v13660_v43 = vadd.f32 %v1060_v42, %v982_v40  ;;  %v1062_v45 = vpop.f32.mrb[1].mxu0 }
 0x28f   : > { %v13669_v47 = vadd.f32 %v1062_v45, %v986_v44  ;;  %v13795_v1 = vpop.f32.mrb[0].mxu1 }
 0x290   : > { %1199 = vrot.lane.b32.xlu0 %v13660_v43, %s12943_s4  ;;  %1184 = vrot.lane.b32.xlu1 %v13660_v43, %s12944_s7  ;;  %v11218_v2 = vpop.f32.mrb[1].mxu1 }
 0x291   : > { %v1066_v46 = vpop.f32.mrb[2].mxu0 }
 0x292   : > { %v1068_v48 = vpop.f32.mrb[3].mxu0  ;;  %v13675_v51 = vadd.f32 %v1066_v46, %v982_v40 }
 0x293   : > { %v13685_v55 = vadd.f32 %v1068_v48, %v986_v44 }
 0x294   : > { %1294 = vrot.lane.b32.xlu0 %v13669_v47, %s12944_s7  ;;  %1214 = vrot.lane.b32.xlu1 %v13660_v43, %s12945_s14 }
 0x295   : > { %v1072_v49 = vpop.f32.mrb[4].mxu0 }
 0x296   : > { %v1074_v50 = vpop.f32.mrb[5].mxu0  ;;  %v13691_v57 = vadd.f32 %v1072_v49, %v982_v40 }
 0x297   : > { %v13701_v58 = vadd.f32 %v1074_v50, %v986_v44 }
 0x298   : > { %1324 = vrot.lane.b32.xlu0 %v13669_v47, %s12945_s14  ;;  %1309 = vrot.lane.b32.xlu1 %v13669_v47, %s12943_s4 }
 0x299   : > { %v1078_v52 = vpop.f32.mrb[6].mxu0 }
 0x29a   : > { %v1080_v53 = vpop.f32.mrb[7].mxu0  ;;  %v13703_v59 = vadd.f32 %v1078_v52, %v982_v40 }
 0x29b   : > { %v13713_v60 = vadd.f32 %v1080_v53, %v986_v44  ;;  %v13839_v53 = vpop.f32.mrb[2].mxu1 }
 0x29c   : > { %1186 = vrot.lane.b32.xlu0 %v13675_v51, %s12944_s7  ;;  %1201 = vrot.lane.b32.xlu1 %v13675_v51, %s12943_s4  ;;  %17264 = vst [vmem:[#allocation47_spill] sm:$0xff] %v13839_v53  ;;  %v11221_v2 = vpop.f32.mrb[3].mxu1 }
 0x29d   : > { %v1084_v54 = vpop.f32.mrb[8].mxu0 }
 0x29e   : > { %v1086_v56 = vpop.f32.mrb[9].mxu0  ;;  %v13723_v61 = vadd.f32 %v1084_v54, %v982_v40 }
 0x29f   : > { %v13733_v62 = vadd.f32 %v1086_v56, %v986_v44 }
 0x2a0   : > { %1216 = vrot.lane.b32.xlu0 %v13675_v51, %s12945_s14  ;;  %1311 = vrot.lane.b32.xlu1 %v13685_v55, %s12943_s4 }
 0x2a4   : > { %1296 = vrot.lane.b32.xlu0 %v13685_v55, %s12944_s7  ;;  %1326 = vrot.lane.b32.xlu1 %v13685_v55, %s12945_s14 }
 0x2a8   : > { %1203 = vrot.lane.b32.xlu0 %v13691_v57, %s12943_s4  ;;  %1188 = vrot.lane.b32.xlu1 %v13691_v57, %s12944_s7 }
 0x2ac   : > { %1298 = vrot.lane.b32.xlu0 %v13701_v58, %s12944_s7  ;;  %1218 = vrot.lane.b32.xlu1 %v13691_v57, %s12945_s14 }
 0x2b0   : > { %1313 = vrot.lane.b32.xlu0 %v13701_v58, %s12943_s4  ;;  %1205 = vrot.lane.b32.xlu1 %v13703_v59, %s12943_s4 }
 0x2b4   : > { %1328 = vrot.lane.b32.xlu0 %v13701_v58, %s12945_s14  ;;  %1300 = vrot.lane.b32.xlu1 %v13713_v60, %s12944_s7 }
 0x2b8   : > { %1190 = vrot.lane.b32.xlu0 %v13703_v59, %s12944_s7  ;;  %1315 = vrot.lane.b32.xlu1 %v13713_v60, %s12943_s4 }
 0x2bc   : > { %1220 = vrot.lane.b32.xlu0 %v13703_v59, %s12945_s14  ;;  %1330 = vrot.lane.b32.xlu1 %v13713_v60, %s12945_s14 }
 0x2c0   : > { %1207 = vrot.lane.b32.xlu0 %v13723_v61, %s12943_s4  ;;  %1192 = vrot.lane.b32.xlu1 %v13723_v61, %s12944_s7 }
 0x2c4   : > { %1302 = vrot.lane.b32.xlu0 %v13733_v62, %s12944_s7  ;;  %1222 = vrot.lane.b32.xlu1 %v13723_v61, %s12945_s14 }
 0x2c8   : > { %1332 = vrot.lane.b32.xlu0 %v13733_v62, %s12945_s14  ;;  %1317 = vrot.lane.b32.xlu1 %v13733_v62, %s12943_s4 }
 0x2cc   : > { %1339 = vrot.lane.b32.xlu0 %v13669_v47, %s12946_s19  ;;  %1341 = vrot.lane.b32.xlu1 %v13685_v55, %s12946_s19 }
 0x2d0   : > { %1354 = vrot.lane.b32.xlu0 %v13669_v47, %s12947_s26  ;;  %1356 = vrot.lane.b32.xlu1 %v13685_v55, %s12947_s26 }
 0x2d4   : > { %1369 = vrot.lane.b32.xlu0 %v13669_v47, %s12948_s15  ;;  %1371 = vrot.lane.b32.xlu1 %v13685_v55, %s12948_s15 }
 0x2d8   : > { %1384 = vrot.lane.b32.xlu0 %v13669_v47, %s12949_s10  ;;  %1386 = vrot.lane.b32.xlu1 %v13685_v55, %s12949_s10 }
 0x2dc   : > { %1343 = vrot.lane.b32.xlu0 %v13701_v58, %s12946_s19  ;;  %1345 = vrot.lane.b32.xlu1 %v13713_v60, %s12946_s19 }
 0x2e0   : > { %1358 = vrot.lane.b32.xlu0 %v13701_v58, %s12947_s26  ;;  %1360 = vrot.lane.b32.xlu1 %v13713_v60, %s12947_s26 }
 0x2e4   : > { %1373 = vrot.lane.b32.xlu0 %v13701_v58, %s12948_s15  ;;  %1375 = vrot.lane.b32.xlu1 %v13713_v60, %s12948_s15 }
 0x2e8   : > { %1388 = vrot.lane.b32.xlu0 %v13701_v58, %s12949_s10  ;;  %1390 = vrot.lane.b32.xlu1 %v13713_v60, %s12949_s10 }
 0x2ec   : > { %1229 = vrot.lane.b32.xlu0 %v13660_v43, %s12946_s19  ;;  %1244 = vrot.lane.b32.xlu1 %v13660_v43, %s12947_s26 }
 0x2f0   : > { %1259 = vrot.lane.b32.xlu0 %v13660_v43, %s12948_s15  ;;  %1274 = vrot.lane.b32.xlu1 %v13660_v43, %s12949_s10 }
 0x2f4   : > { %1231 = vrot.lane.b32.xlu0 %v13675_v51, %s12946_s19  ;;  %1246 = vrot.lane.b32.xlu1 %v13675_v51, %s12947_s26 }
 0x2f8   : > { %1261 = vrot.lane.b32.xlu0 %v13675_v51, %s12948_s15  ;;  %1276 = vrot.lane.b32.xlu1 %v13675_v51, %s12949_s10 }
 0x2fc   : > { %1233 = vrot.lane.b32.xlu0 %v13691_v57, %s12946_s19  ;;  %1248 = vrot.lane.b32.xlu1 %v13691_v57, %s12947_s26 }
 0x300   : > { %1347 = vrot.lane.b32.xlu0 %v13733_v62, %s12946_s19  ;;  %1362 = vrot.lane.b32.xlu1 %v13733_v62, %s12947_s26 }
 0x302   : > { %v1200_v6 = vpop.permute.xlu0 %1199  ;;  %v1185_v9 = vpop.permute.xlu1 %1184 }
 0x303   : > { %v1509_v12 = vcombine.low %v13660_v43, %v1200_v6  ;;  %v1510_v13 = vcombine.high %v13660_v43, %v1200_v6 }
 0x304   : > { %1377 = vrot.lane.b32.xlu0 %v13733_v62, %s12948_s15  ;;  %1392 = vrot.lane.b32.xlu1 %v13733_v62, %s12949_s10 }
 0x305   : > { %v1517_v20 = vrot.slane %v1509_v12, %v13806_v11  ;;  %v1524_v21 = vrot.slane %v1510_v13, %v13806_v11 }
 0x306   : > { %v1295_v14 = vpop.permute.xlu0 %1294  ;;  %v1215_v15 = vpop.permute.xlu1 %1214 }
 0x307   : > { %v1525_v17 = vcombine.low %v1185_v9, %v1215_v15  ;;  %v1526_v18 = vcombine.high %v1185_v9, %v1215_v15  ;;  %v13849_v9 = vpop.f32.mrb[4].mxu1 }
 0x308   : > { %1263 = vrot.lane.b32.xlu0 %v13691_v57, %s12948_s15  ;;  %1278 = vrot.lane.b32.xlu1 %v13691_v57, %s12949_s10  ;;  %17265 = vst [vmem:[#allocation48_spill] sm:$0xff] %v13849_v9 }
 0x309   : > { %v1533_v22 = vrot.slane %v1525_v17, %v13806_v11  ;;  %v1540_v23 = vrot.slane %v1526_v18, %v13806_v11 }
 0x30a   : > { %v1325_v24 = vpop.permute.xlu0 %1324  ;;  %v1310_v25 = vpop.permute.xlu1 %1309 }
 0x30b   : > { %v1573_v27 = vcombine.low %v1517_v20, %v1533_v22  ;;  %v1574_v28 = vcombine.high %v1517_v20, %v1533_v22  ;;  %v1589_v29 = vcombine.low %v1524_v21, %v1540_v23  ;;  %v1590_v30 = vcombine.high %v1524_v21, %v1540_v23  ;;  %v11224_v22 = vpop.f32.mrb[5].mxu1 }
 0x30c   : > { %v1661_v31 = vcombine.low %v1295_v14, %v1325_v24  ;;  %v1662_v32 = vcombine.high %v1295_v14, %v1325_v24  ;;  %v1645_v33 = vcombine.low %v13669_v47, %v1310_v25  ;;  %v1646_v34 = vcombine.high %v13669_v47, %v1310_v25  ;;  %1235 = vrot.lane.b32.xlu0 %v13703_v59, %s12946_s19 }
 0x30d   : > { %v1581_v35 = vrot.slane %v1573_v27, %v13812_v19  ;;  %v1588_v36 = vrot.slane %v1574_v28, %v13812_v19  ;;  %v1597_v39 = vrot.slane %v1589_v29, %v13812_v19  ;;  %v1604_v40 = vrot.slane %v1590_v30, %v13812_v19  ;;  %1250 = vrot.lane.b32.xlu1 %v13703_v59, %s12947_s26  ;;  %v13857_v28 = vpop.f32.mrb[6].mxu1 }
 0x30e   : > { %v1669_v42 = vrot.slane %v1661_v31, %v13806_v11  ;;  %v1676_v43 = vrot.slane %v1662_v32, %v13806_v11  ;;  %v1653_v44 = vrot.slane %v1645_v33, %v13806_v11  ;;  %v1660_v45 = vrot.slane %v1646_v34, %v13806_v11  ;;  %v1187_v46 = vpop.permute.xlu0 %1186  ;;  %v1202_v47 = vpop.permute.xlu1 %1201  ;;  %17266 = vst [vmem:[#allocation49_spill] sm:$0xff] %v13857_v28 }
 0x30f   : > { %v10523_v48 = vcombine.low %v1581_v35, %v1588_v36  ;;  %v10525_v49 = vcombine.high %v1581_v35, %v1588_v36  ;;  %v10527_v50 = vcombine.low %v1597_v39, %v1604_v40  ;;  %v10529_v52 = vcombine.high %v1597_v39, %v1604_v40  ;;  %v11227_v30 = vpop.f32.mrb[7].mxu1 }
 0x310   : > { %v1709_v54 = vcombine.low %v1653_v44, %v1669_v42  ;;  %v1710_v56 = vcombine.high %v1653_v44, %v1669_v42  ;;  %v1725_v63 = vcombine.low %v1660_v45, %v1676_v43  ;;  %v1726_v0 = vcombine.high %v1660_v45, %v1676_v43  ;;  %1265 = vrot.lane.b32.xlu0 %v13703_v59, %s12948_s15 }
 0x311   : > { %v3557_v3 = vrot.slane %v10523_v48, %v13806_v11  ;;  %v3573_v4 = vrot.slane %v10525_v49, %v13806_v11  ;;  %v3589_v5 = vrot.slane %v10527_v50, %v13806_v11  ;;  %v3605_v6 = vrot.slane %v10529_v52, %v13806_v11  ;;  %1280 = vrot.lane.b32.xlu1 %v13703_v59, %s12949_s10 }
 0x312   : > { %v1717_v10 = vrot.slane %v1709_v54, %v13812_v19  ;;  %v1724_v12 = vrot.slane %v1710_v56, %v13812_v19  ;;  %v1733_v13 = vrot.slane %v1725_v63, %v13812_v19  ;;  %v1740_v14 = vrot.slane %v1726_v0, %v13812_v19  ;;  %v1217_v15 = vpop.permute.xlu0 %1216  ;;  %v1312_v16 = vpop.permute.xlu1 %1311 }
 0x313   : > { %v3613_v17 = vcombine.low %v3557_v3, %v3573_v4  ;;  %v3614_v18 = vcombine.high %v3557_v3, %v3573_v4  ;;  %v3645_v20 = vcombine.low %v3589_v5, %v3605_v6  ;;  %v3646_v21 = vcombine.high %v3589_v5, %v3605_v6 }
 0x314   : > { %v10563_v23 = vcombine.low %v1717_v10, %v1724_v12  ;;  %v10565_v24 = vcombine.high %v1717_v10, %v1724_v12  ;;  %v10567_v25 = vcombine.low %v1733_v13, %v1740_v14  ;;  %v10569_v27 = vcombine.high %v1733_v13, %v1740_v14  ;;  %1237 = vrot.lane.b32.xlu0 %v13723_v61, %s12946_s19 }
 0x315   : > { %1252 = vrot.lane.b32.xlu1 %v13723_v61, %s12947_s26  ;;  %v13863_v29 = vadd.f32 %v13795_v1, %v13823_v26  ;;  %v13866_v31 = vrot.slane %v3613_v17, %v13812_v19  ;;  %v13869_v32 = vrot.slane %v3614_v18, %v13812_v19  ;;  %v13872_v33 = vrot.slane %v3645_v20, %v13812_v19 }
 0x316   : > { %v13875_v34 = vrot.slane %v3646_v21, %v13812_v19  ;;  %v1297_v35 = vpop.permute.xlu0 %1296  ;;  %v1327_v36 = vpop.permute.xlu1 %1326  ;;  %v1917_v39 = vcombine.low %v13675_v51, %v1202_v47  ;;  %v1918_v1 = vcombine.high %v13675_v51, %v1202_v47  ;;  %v1933_v40 = vcombine.low %v1187_v46, %v1217_v15 }
 0x317   : > { %17267 = vst [vmem:[#allocation50_spill] sm:$0xff] %v13863_v29  ;;  %17268 = vst [vmem:[#allocation51_spill] sm:$0xff] %v13869_v32  ;;  %v1934_v42 = vcombine.high %v1187_v46, %v1217_v15  ;;  %v13880_v43 = vrot.slane %v10563_v23, %v13806_v11  ;;  %v13883_v44 = vrot.slane %v10565_v24, %v13806_v11 }
 0x318   : > { %17269 = vst [vmem:[#allocation52_spill] sm:$0xff] %v13875_v34  ;;  %v13886_v45 = vrot.slane %v10567_v25, %v13806_v11  ;;  %v13889_v48 = vrot.slane %v10569_v27, %v13806_v11  ;;  %1267 = vrot.lane.b32.xlu0 %v13723_v61, %s12948_s15  ;;  %v1925_v49 = vrot.slane %v1917_v39, %v13806_v11 }
 0x319   : > { %v1932_v51 = vrot.slane %v1918_v1, %v13806_v11  ;;  %v1941_v46 = vrot.slane %v1933_v40, %v13806_v11  ;;  %v1948_v47 = vrot.slane %v1934_v42, %v13806_v11  ;;  %1282 = vrot.lane.b32.xlu1 %v13723_v61, %s12949_s10  ;;  %v2053_v50 = vcombine.low %v13685_v55, %v1312_v16 }
 0x31a   : > { %v2054_v52 = vcombine.high %v13685_v55, %v1312_v16  ;;  %v2069_v54 = vcombine.low %v1297_v35, %v1327_v36  ;;  %v2070_v56 = vcombine.high %v1297_v35, %v1327_v36  ;;  %v1204_v63 = vpop.permute.xlu0 %1203  ;;  %v1189_v0 = vpop.permute.xlu1 %1188  ;;  %v4293_v14 = vcombine.low %v13880_v43, %v13883_v44 }
 0x31b   : > { %v1981_v2 = vcombine.low %v1925_v49, %v1941_v46  ;;  %v1982_v3 = vcombine.high %v1925_v49, %v1941_v46  ;;  %v1997_v4 = vcombine.low %v1932_v51, %v1948_v47  ;;  %v1998_v5 = vcombine.high %v1932_v51, %v1948_v47 }
 0x31c   : > { %v2061_v6 = vrot.slane %v2053_v50, %v13806_v11  ;;  %v2068_v10 = vrot.slane %v2054_v52, %v13806_v11  ;;  %v2077_v12 = vrot.slane %v2069_v54, %v13806_v11  ;;  %v2084_v13 = vrot.slane %v2070_v56, %v13806_v11 }
 0x31d   : > { %v4294_v55 = vcombine.high %v13880_v43, %v13883_v44  ;;  %v4325_v15 = vcombine.low %v13886_v45, %v13889_v48  ;;  %v4326_v16 = vcombine.high %v13886_v45, %v13889_v48  ;;  %1404 = vrot.lane.b32.xlu1 %v13863_v29, %s12944_s7  ;;  %v13918_v24 = vrot.slane %v1981_v2, %v13812_v19 }
 0x31e   : > { %v2117_v17 = vcombine.low %v2061_v6, %v2077_v12  ;;  %v2118_v18 = vcombine.high %v2061_v6, %v2077_v12  ;;  %v2133_v20 = vcombine.low %v2068_v10, %v2084_v13  ;;  %v2134_v21 = vcombine.high %v2068_v10, %v2084_v13  ;;  %v13915_v22 = vpop.permute.xlu0 %1298  ;;  %v1219_v23 = vpop.permute.xlu1 %1218 }
 0x31f   : > { %v13921_v25 = vrot.slane %v1982_v3, %v13812_v19  ;;  %v13924_v27 = vrot.slane %v1997_v4, %v13812_v19  ;;  %v13927_v30 = vrot.slane %v1998_v5, %v13812_v19  ;;  %v2325_v40 = vcombine.low %v13691_v57, %v1204_v63 }
 0x320   : > { %v2125_v35 = vrot.slane %v2117_v17, %v13812_v19  ;;  %v2132_v36 = vrot.slane %v2118_v18, %v13812_v19  ;;  %v2141_v39 = vrot.slane %v2133_v20, %v13812_v19  ;;  %v2148_v1 = vrot.slane %v2134_v21, %v13812_v19 }
 0x321   : > { %v2326_v42 = vcombine.high %v13691_v57, %v1204_v63  ;;  %v2341_v49 = vcombine.low %v1189_v0, %v1219_v23  ;;  %v2342_v51 = vcombine.high %v1189_v0, %v1219_v23  ;;  %1419 = vrot.lane.b32.xlu1 %v13863_v29, %s12943_s4  ;;  %v2333_v2 = vrot.slane %v2325_v40, %v13806_v11 }
 0x322   : > { %v10571_v46 = vcombine.low %v2125_v35, %v2132_v36  ;;  %v10573_v47 = vcombine.high %v2125_v35, %v2132_v36  ;;  %v10575_v50 = vcombine.low %v2141_v39, %v2148_v1  ;;  %v10577_v52 = vcombine.high %v2141_v39, %v2148_v1  ;;  %v1314_v54 = vpop.permute.xlu0 %1313  ;;  %v1206_v56 = vpop.permute.xlu1 %1205 }
 0x323   : > { %v2340_v3 = vrot.slane %v2326_v42, %v13806_v11  ;;  %v2349_v4 = vrot.slane %v2341_v49, %v13806_v11  ;;  %v2356_v5 = vrot.slane %v2342_v51, %v13806_v11  ;;  %v13961_v49 = vpop.f32.mrb[8].mxu1  ;;  %v2461_v51 = vcombine.low %v13701_v58, %v1314_v54 }
 0x324   : > { %v4373_v57 = vrot.slane %v10571_v46, %v13806_v11  ;;  %v4389_v63 = vrot.slane %v10573_v47, %v13806_v11  ;;  %v4405_v0 = vrot.slane %v10575_v50, %v13806_v11  ;;  %v4421_v6 = vrot.slane %v10577_v52, %v13806_v11  ;;  %17270 = vst [vmem:[#allocation53_spill] sm:$0xff] %v13961_v49  ;;  %v11230_v52 = vpop.f32.mrb[9].mxu1 }
 0x325   : > { %v2389_v10 = vcombine.low %v2333_v2, %v2349_v4  ;;  %v2390_v12 = vcombine.high %v2333_v2, %v2349_v4  ;;  %v2405_v13 = vcombine.low %v2340_v3, %v2356_v5  ;;  %v2406_v17 = vcombine.high %v2340_v3, %v2356_v5 }
 0x326   : > { %v1329_v35 = vpop.permute.xlu0 %1328  ;;  %v13953_v36 = vpop.permute.xlu1 %1300  ;;  %v4429_v39 = vcombine.low %v4373_v57, %v4389_v63  ;;  %v4461_v1 = vcombine.low %v4405_v0, %v4421_v6  ;;  %v2462_v46 = vcombine.high %v13701_v58, %v1314_v54  ;;  %v2733_v47 = vcombine.low %v13703_v59, %v1206_v56 }
 0x327   : > { %v13956_v40 = vrot.slane %v2389_v10, %v13812_v19  ;;  %v13959_v42 = vrot.slane %v2390_v12, %v13812_v19  ;;  %v2734_v50 = vcombine.high %v13703_v59, %v1206_v56  ;;  %v4430_v2 = vcombine.high %v4373_v57, %v4389_v63 }
 0x328   : > { %v4462_v3 = vcombine.high %v4405_v0, %v4421_v6  ;;  %v13968_v4 = vrot.slane %v2405_v13, %v13812_v19  ;;  %v13971_v5 = vrot.slane %v2406_v17, %v13812_v19  ;;  %v2469_v58 = vrot.slane %v2461_v51, %v13806_v11 }
 0x329   : > { %v2476_v54 = vrot.slane %v2462_v46, %v13806_v11  ;;  %v13982_v57 = vrot.slane %v2733_v47, %v13806_v11  ;;  %v13985_v63 = vrot.slane %v2734_v50, %v13806_v11  ;;  %v2477_v0 = vcombine.low %v13915_v22, %v1329_v35 }
 0x32a   : > { %v1191_v59 = vpop.permute.xlu0 %1190  ;;  %v13979_v56 = vpop.permute.xlu1 %1315  ;;  %v2478_v6 = vcombine.high %v13915_v22, %v1329_v35  ;;  %v13993_v13 = vrot.slane %v4293_v14, %v13812_v19  ;;  %v13999_v17 = vrot.slane %v4325_v15, %v13812_v19  ;;  %v14002_v51 = vrot.slane %v4429_v39, %v13812_v19 }
 0x32b   : > { %v14005_v46 = vrot.slane %v4461_v1, %v13812_v19  ;;  %v2485_v22 = vrot.slane %v2477_v0, %v13806_v11  ;;  %v2869_v14 = vcombine.low %v13713_v60, %v13979_v56  ;;  %v2870_v47 = vcombine.high %v13713_v60, %v13979_v56 }
 0x32c   : > { %v2492_v35 = vrot.slane %v2478_v6, %v13806_v11  ;;  %v4357_v15 = vcombine.low %v13993_v13, %v13999_v17  ;;  %v14021_v1 = vrot.slane %v4294_v55, %v13812_v19  ;;  %v14027_v50 = vrot.slane %v4326_v16, %v13812_v19 }
 0x32d   : > { %v4493_v39 = vcombine.low %v14002_v51, %v14005_v46  ;;  %v2525_v56 = vcombine.low %v2469_v58, %v2485_v22  ;;  %v2526_v0 = vcombine.high %v2469_v58, %v2485_v22  ;;  %v14038_v45 = vrot.slane %v4430_v2, %v13812_v19 }
 0x32e   : > { %17271 = vst [vmem:[#allocation54_spill] sm:$0xff] %v14021_v1  ;;  %v1221_v52 = vpop.permute.xlu0 %1220  ;;  %v1331_v60 = vpop.permute.xlu1 %1330  ;;  %v2541_v6 = vcombine.low %v2476_v54, %v2492_v35  ;;  %v2542_v41 = vcombine.high %v2476_v54, %v2492_v35  ;;  %v4359_v44 = vcombine.low %v14021_v1, %v14027_v50  ;;  %v14041_v48 = vrot.slane %v4462_v3, %v13812_v19 }
 0x32f   : > { %v11735_v43 = vpack.c.bf16 %v4493_v39, %v4357_v15  ;;  %v2533_v55 = vrot.slane %v2525_v56, %v13812_v19  ;;  %v2540_v16 = vrot.slane %v2526_v0, %v13812_v19  ;;  %v2749_v35 = vcombine.low %v1191_v59, %v1221_v52 }
 0x330   : > { %v2549_v58 = vrot.slane %v2541_v6, %v13812_v19  ;;  %v2556_v54 = vrot.slane %v2542_v41, %v13812_v19  ;;  %v4495_v22 = vcombine.low %v14038_v45, %v14041_v48  ;;  %v2750_v2 = vcombine.high %v1191_v59, %v1221_v52 }
 0x331   : > { %11737 = vmatpush3.bf16.xpose.msk.msra.mxu1 %vm14031_vm2, %v11735_v43  ;;  %v2885_v15 = vcombine.low %v13953_v36, %v1331_v60  ;;  %v10579_v12 = vcombine.low %v2533_v55, %v2540_v16  ;;  %v10581_v56 = vcombine.high %v2533_v55, %v2540_v16  ;;  %v2757_v41 = vrot.slane %v2749_v35, %v13806_v11 }
 0x332   : > { %v1208_v3 = vpop.permute.xlu0 %1207  ;;  %v1193_v39 = vpop.permute.xlu1 %1192  ;;  %v10583_v10 = vcombine.low %v2549_v58, %v2556_v54  ;;  %v10585_v0 = vcombine.high %v2549_v58, %v2556_v54  ;;  %11738 = vmatprep.subr.bf16.mxu1 %v17128_v8  ;;  %v11751_v6 = vpack.c.bf16 %v4495_v22, %v4359_v44  ;;  %v2764_v43 = vrot.slane %v2750_v2, %v13806_v11 }
 0x333   : > { %v2886_v23 = vcombine.high %v13953_v36, %v1331_v60  ;;  %v14057_v21 = vrot.slane %v10579_v12, %v13806_v11  ;;  %v14060_v59 = vrot.slane %v10581_v56, %v13806_v11  ;;  %v2797_v44 = vcombine.low %v13982_v57, %v2757_v41 }
 0x334   : > { %v14063_v52 = vrot.slane %v10583_v10, %v13806_v11  ;;  %v14066_v55 = vrot.slane %v10585_v0, %v13806_v11  ;;  %11753 = vmatpush3.bf16.xpose.msk.msra.mxu0 %vm14031_vm2, %v11751_v6  ;;  %v2798_v16 = vcombine.high %v13982_v57, %v2757_v41  ;;  %v2813_v36 = vcombine.low %v13985_v63, %v2764_v43 }
 0x335   : > { %v2814_v12 = vcombine.high %v13985_v63, %v2764_v43  ;;  %v2877_v22 = vrot.slane %v2869_v14, %v13806_v11  ;;  %v2884_v35 = vrot.slane %v2870_v47, %v13806_v11  ;;  %11754 = vmatprep.subr.bf16.mxu0 %v17128_v8  ;;  %v4565_v57 = vcombine.low %v14057_v21, %v14060_v59 }
 0x336   : > { %v14074_v60 = vpop.permute.xlu0 %1302  ;;  %v1223_v58 = vpop.permute.xlu1 %1222  ;;  %v4597_v2 = vcombine.low %v14063_v52, %v14066_v55  ;;  %v2893_v0 = vrot.slane %v2885_v15, %v13806_v11  ;;  %v2900_v14 = vrot.slane %v2886_v23, %v13806_v11  ;;  %v3141_v47 = vcombine.low %v13723_v61, %v1208_v3 }
 0x337   : > { %v3142_v6 = vcombine.high %v13723_v61, %v1208_v3  ;;  %v14096_v41 = vrot.slane %v2797_v44, %v13812_v19  ;;  %v14099_v43 = vrot.slane %v2798_v16, %v13812_v19  ;;  %v14102_v54 = vrot.slane %v2813_v36, %v13812_v19 }
 0x338   : > { %v14105_v10 = vrot.slane %v2814_v12, %v13812_v19  ;;  %v2933_v18 = vcombine.low %v2877_v22, %v2893_v0  ;;  %v2934_v23 = vcombine.high %v2877_v22, %v2893_v0  ;;  %v2949_v8 = vcombine.low %v2884_v35, %v2900_v14 }
 0x339   : > { %v2950_v7 = vcombine.high %v2884_v35, %v2900_v14  ;;  %v3149_v61 = vrot.slane %v3141_v47, %v13806_v11  ;;  %v3156_v3 = vrot.slane %v3142_v6, %v13806_v11  ;;  %v3157_v44 = vcombine.low %v1193_v39, %v1223_v58 }
 0x33a   : > { %v1333_v20 = vpop.permute.xlu0 %1332  ;;  %v1318_v15 = vpop.permute.xlu1 %1317  ;;  %v3158_v56 = vcombine.high %v1193_v39, %v1223_v58  ;;  %v2941_v16 = vrot.slane %v2933_v18, %v13812_v19  ;;  %v2948_v36 = vrot.slane %v2934_v23, %v13812_v19  ;;  %v2957_v63 = vrot.slane %v2949_v8, %v13812_v19 }
 0x33b   : > { %v2964_v12 = vrot.slane %v2950_v7, %v13812_v19  ;;  %v3165_v37 = vrot.slane %v3157_v44, %v13806_v11  ;;  %v3293_v35 = vcombine.low %v14074_v60, %v1333_v20  ;;  %v3294_v0 = vcombine.high %v14074_v60, %v1333_v20 }
 0x33c   : > { %v3172_v22 = vrot.slane %v3158_v56, %v13806_v11  ;;  %v10587_v39 = vcombine.low %v2941_v16, %v2948_v36  ;;  %v10589_v18 = vcombine.high %v2941_v16, %v2948_v36  ;;  %v3277_v60 = vcombine.low %v13733_v62, %v1318_v15 }
 0x33d   : > { %v10591_v58 = vcombine.low %v2957_v63, %v2964_v12  ;;  %v10593_v6 = vcombine.high %v2957_v63, %v2964_v12  ;;  %v3205_v23 = vcombine.low %v3149_v61, %v3165_v37  ;;  %v3206_v8 = vcombine.high %v3149_v61, %v3165_v37 }
 0x33e   : > { %v14117_v14 = vpop.permute.xlu0 %1339  ;;  %v14119_v47 = vpop.permute.xlu1 %1341  ;;  %v3221_v49 = vcombine.low %v3156_v3, %v3172_v22  ;;  %v3222_v7 = vcombine.high %v3156_v3, %v3172_v22  ;;  %v4645_v44 = vrot.slane %v10587_v39, %v13806_v11  ;;  %v4661_v56 = vrot.slane %v10589_v18, %v13806_v11 }
 0x33f   : > { %v4677_v28 = vrot.slane %v10591_v58, %v13806_v11  ;;  %v4693_v20 = vrot.slane %v10593_v6, %v13806_v11  ;;  %v14138_v22 = vrot.slane %v3205_v23, %v13812_v19  ;;  %v14141_v39 = vrot.slane %v3206_v8, %v13812_v19 }
 0x340   : > { %v4701_v36 = vcombine.low %v4645_v44, %v4661_v56  ;;  %v4702_v18 = vcombine.high %v4645_v44, %v4661_v56  ;;  %v14144_v6 = vrot.slane %v3221_v49, %v13812_v19  ;;  %v14147_v63 = vrot.slane %v3222_v7, %v13812_v19 }
 0x341   : > { %v4733_v12 = vcombine.low %v4677_v28, %v4693_v20  ;;  %v4734_v58 = vcombine.high %v4677_v28, %v4693_v20  ;;  %v3301_v37 = vrot.slane %v3293_v35, %v13806_v11  ;;  %v3308_v16 = vrot.slane %v3294_v0, %v13806_v11 }
 0x342   : > { %v14133_v61 = vpop.permute.xlu0 %1354  ;;  %v14135_v3 = vpop.permute.xlu1 %1356  ;;  %v3278_v23 = vcombine.high %v13733_v62, %v1318_v15  ;;  %v14154_v29 = vrot.slane %v4565_v57, %v13812_v19  ;;  %v14157_v8 = vrot.slane %v4597_v2, %v13812_v19  ;;  %v14160_v28 = vrot.slane %v4701_v36, %v13812_v19 }
 0x343   : > { %v14163_v49 = vrot.slane %v4733_v12, %v13812_v19  ;;  %v3285_v0 = vrot.slane %v3277_v60, %v13806_v11  ;;  %v17274_v62 = vcombine.high %v14057_v21, %v14060_v59  ;;  %v17276_v2 = vcombine.high %v14063_v52, %v14066_v55 }
 0x344   : > { %v3292_v44 = vrot.slane %v3278_v23, %v13806_v11  ;;  %v4629_v56 = vcombine.low %v14154_v29, %v14157_v8  ;;  %v14184_v60 = vrot.slane %v4702_v18, %v13812_v19  ;;  %v14187_v36 = vrot.slane %v4734_v58, %v13812_v19 }
 0x345   : > { %v14171_v57 = vrot.slane %v17274_v62, %v13812_v19  ;;  %v14177_v15 = vrot.slane %v17276_v2, %v13812_v19  ;;  %v4765_v20 = vcombine.low %v14160_v28, %v14163_v49  ;;  %v3341_v21 = vcombine.low %v3285_v0, %v3301_v37 }
 0x346   : > { %v1370_v7 = vpop.permute.xlu0 %1369  ;;  %v1372_v35 = vpop.permute.xlu1 %1371  ;;  %17278 = vst [vmem:[#allocation57_spill] sm:$0xff] %v14184_v60  ;;  %17279 = vst [vmem:[#allocation58_spill] sm:$0xff] %v14187_v36  ;;  %v3342_v59 = vcombine.high %v3285_v0, %v3301_v37  ;;  %v3357_v12 = vcombine.low %v3292_v44, %v3308_v16  ;;  %v3358_v23 = vcombine.high %v3292_v44, %v3308_v16 }
 0x347   : > { %17275 = vst [vmem:[#allocation55_spill] sm:$0xff] %v14171_v57  ;;  %17277 = vst [vmem:[#allocation56_spill] sm:$0xff] %v14177_v15  ;;  %v11739_v62 = vpack.c.bf16 %v4765_v20, %v4629_v56  ;;  %v4631_v52 = vcombine.low %v14171_v57, %v14177_v15  ;;  %v4767_v55 = vcombine.low %v14184_v60, %v14187_v36 }
 0x348   : > { %v1677_v2 = vcombine.low %v14117_v14, %v1370_v7  ;;  %v3349_v18 = vrot.slane %v3341_v21, %v13812_v19  ;;  %v3356_v58 = vrot.slane %v3342_v59, %v13812_v19  ;;  %v3365_v26 = vrot.slane %v3357_v12, %v13812_v19 }
 0x349   : > { %v3372_v37 = vrot.slane %v3358_v23, %v13812_v19  ;;  %11741 = vmatpush3.bf16.xpose.msk.msra.mxu1 %vm14031_vm2, %v11739_v62  ;;  %v11755_v0 = vpack.c.bf16 %v4767_v55, %v4631_v52  ;;  %v1678_v44 = vcombine.high %v14117_v14, %v1370_v7  ;;  %v2085_v56 = vcombine.low %v14119_v47, %v1372_v35 }
 0x34a   : > { %v1385_v9 = vpop.permute.xlu0 %1384  ;;  %v1387_v53 = vpop.permute.xlu1 %1386  ;;  %v10595_v20 = vcombine.low %v3349_v18, %v3356_v58  ;;  %v10597_v60 = vcombine.high %v3349_v18, %v3356_v58  ;;  %v17280_v59 = vmov 0.0   ;;  %v1685_v12 = vrot.slane %v1677_v2, %v13806_v11 }
 0x34b   : > { %v10599_v21 = vcombine.low %v3365_v26, %v3372_v37  ;;  %v10601_v36 = vcombine.high %v3365_v26, %v3372_v37  ;;  %11239 = vmatprep.subr.mxu1 %v17280_v59  ;;  %11757 = vmatpush3.bf16.xpose.msk.msra.mxu0 %vm14031_vm2, %v11755_v0  ;;  %v1692_v23 = vrot.slane %v1678_v44, %v13806_v11 }
 0x34c   : > { %v2086_v62 = vcombine.high %v14119_v47, %v1372_v35  ;;  %v1693_v52 = vcombine.low %v14133_v61, %v1385_v9  ;;  %v4781_v55 = vrot.slane %v10595_v20, %v13806_v11  ;;  %v4797_v26 = vrot.slane %v10597_v60, %v13806_v11  ;;  %11289 = vmatprep.subr.mxu0 %v17280_v59 }
 0x34d   : > { %v4813_v18 = vrot.slane %v10599_v21, %v13806_v11  ;;  %v4829_v58 = vrot.slane %v10601_v36, %v13806_v11  ;;  %v2093_v2 = vrot.slane %v2085_v56, %v13806_v11  ;;  %v1694_v47 = vcombine.high %v14133_v61, %v1385_v9 }
 0x34e   : > { %v14211_v14 = vpop.permute.xlu0 %1343  ;;  %v14213_v7 = vpop.permute.xlu1 %1345  ;;  %v1701_v35 = vrot.slane %v1693_v52, %v13806_v11  ;;  %v2101_v37 = vcombine.low %v14135_v3, %v1387_v53  ;;  %v4837_v0 = vcombine.low %v4781_v55, %v4797_v26  ;;  %v4838_v44 = vcombine.high %v4781_v55, %v4797_v26 }
 0x34f   : > { %v4869_v16 = vcombine.low %v4813_v18, %v4829_v58  ;;  %v2100_v20 = vrot.slane %v2086_v62, %v13806_v11  ;;  %v1708_v60 = vrot.slane %v1694_v47, %v13806_v11  ;;  %v2102_v36 = vcombine.high %v14135_v3, %v1387_v53 }
 0x350   : > { %v1741_v21 = vcombine.low %v1685_v12, %v1701_v35  ;;  %v1742_v57 = vcombine.high %v1685_v12, %v1701_v35  ;;  %v4870_v9 = vcombine.high %v4813_v18, %v4829_v58  ;;  %v2109_v61 = vrot.slane %v2101_v37, %v13806_v11 }
 0x351   : > { %v14233_v52 = vrot.slane %v4837_v0, %v13812_v19  ;;  %v14236_v55 = vrot.slane %v4869_v16, %v13812_v19  ;;  %v1757_v12 = vcombine.low %v1692_v23, %v1708_v60  ;;  %v1758_v47 = vcombine.high %v1692_v23, %v1708_v60 }
 0x352   : > { %v14227_v15 = vpop.permute.xlu0 %1358  ;;  %v14229_v56 = vpop.permute.xlu1 %1360  ;;  %v1749_v62 = vrot.slane %v1741_v21, %v13812_v19  ;;  %v1756_v26 = vrot.slane %v1742_v57, %v13812_v19  ;;  %v2116_v53 = vrot.slane %v2102_v36, %v13806_v11  ;;  %v2149_v3 = vcombine.low %v2093_v2, %v2109_v61 }
 0x353   : > { %v2150_v35 = vcombine.high %v2093_v2, %v2109_v61  ;;  %v4901_v18 = vcombine.low %v14233_v52, %v14236_v55  ;;  %v1765_v58 = vrot.slane %v1757_v12, %v13812_v19  ;;  %v1772_v37 = vrot.slane %v1758_v47, %v13812_v19 }
 0x354   : > { %v10564_v0 = vcombine.low %v1749_v62, %v1756_v26  ;;  %v10566_v16 = vcombine.high %v1749_v62, %v1756_v26  ;;  %v2157_v21 = vrot.slane %v2149_v3, %v13812_v19  ;;  %v2165_v23 = vcombine.low %v2100_v20, %v2116_v53 }
 0x355   : > { %v2164_v57 = vrot.slane %v2150_v35, %v13812_v19  ;;  %v2166_v60 = vcombine.high %v2100_v20, %v2116_v53  ;;  %11240 = vmatpush3.xpose.msk.msra.mxu1 %vm5589_vm1, %v4901_v18  ;;  %v10568_v61 = vcombine.low %v1765_v58, %v1772_v37  ;;  %v10570_v12 = vcombine.high %v1765_v58, %v1772_v37 }
 0x356   : > { %v14245_v1 = vpop.permute.xlu0 %1373  ;;  %v14251_v2 = vrot.slane %v10564_v0, %v13806_v11  ;;  %v14254_v36 = vrot.slane %v10566_v16, %v13806_v11  ;;  %v17282_v47 = vmov 0.0|0.0   ;;  %v14257_v62 = vpop.permute.xlu1 %1375  ;;  %v2173_v26 = vrot.slane %v2165_v23, %v13812_v19 }
 0x357   : > { %11742 = vmatprep.subr.bf16.mxu1 %v17282_v47  ;;  %v2180_v3 = vrot.slane %v2166_v60, %v13812_v19  ;;  %v10572_v35 = vcombine.low %v2157_v21, %v2164_v57  ;;  %v10574_v20 = vcombine.high %v2157_v21, %v2164_v57  ;;  %v14264_v18 = vrot.slane %v10568_v61, %v13806_v11 }
 0x358   : > { %17281 = vst [vmem:[#allocation59_spill] sm:$0xff] %v14254_v36  ;;  %v14267_v0 = vrot.slane %v10570_v12, %v13806_v11  ;;  %v14270_v58 = vrot.slane %v4838_v44, %v13812_v19  ;;  %v14283_v12 = vrot.slane %v4870_v9, %v13812_v19  ;;  %v3677_v44 = vcombine.low %v13866_v31, %v13872_v33 }
 0x359   : > { %17283 = vst [vmem:[#allocation60_spill] sm:$0xff] %v14264_v18  ;;  %v10576_v57 = vcombine.low %v2173_v26, %v2180_v3  ;;  %v10578_v23 = vcombine.high %v2173_v26, %v2180_v3  ;;  %v14292_v26 = vrot.slane %v10572_v35, %v13806_v11  ;;  %v14295_v3 = vrot.slane %v10574_v20, %v13806_v11 }
 0x35a   : > { %17284 = vst [vmem:[#allocation61_spill] sm:$0xff] %v14267_v0  ;;  %v14272_v37 = vpop.permute.xlu0 %1388  ;;  %v4903_v9 = vcombine.low %v14270_v58, %v14283_v12  ;;  %11242 = vmatmul.mubr.msk.f32.vlgmr.msra.gmra.mrb[10].mxu1 %vm5589_vm1, %v3677_v44  ;;  %v4358_v53 = vcombine.high %v13993_v13, %v13999_v17  ;;  %v4494_v21 = vcombine.high %v14002_v51, %v14005_v46  ;;  %v14307_v16 = vpop.permute.xlu1 %1390 }
 0x35b   : > { %17285 = vst [vmem:[#allocation62_spill] sm:$0xff] %v14292_v26  ;;  %17286 = vst [vmem:[#allocation63_spill] sm:$0xff] %v14295_v3  ;;  %v14298_v61 = vrot.slane %v10576_v57, %v13806_v11  ;;  %v14310_v35 = vrot.slane %v10578_v23, %v13806_v11  ;;  %v3679_v20 = vcombine.low %v13869_v32, %v13875_v34  ;;  %11244 = vmatprep.mubr.msk.f32.mxu1 %vm12942_vm0, %v17280_v59 }
 0x35c   : > { %v17289_v57 = vcombine.low %v13918_v24, %v13921_v25  ;;  %v17290_v13 = vcombine.high %v13918_v24, %v13921_v25  ;;  %11290 = vmatpush3.xpose.msk.msra.mxu0 %vm5589_vm1, %v4903_v9  ;;  %v11743_v51 = vpack.c.bf16 %v4494_v21, %v4358_v53  ;;  %v17291_v46 = vcombine.low %v13924_v27, %v13927_v30 }
 0x35d   : > { %17287 = vst [vmem:[#allocation64_spill] sm:$0xff] %v14298_v61  ;;  %17288 = vst [vmem:[#allocation65_spill] sm:$0xff] %v14310_v35  ;;  %v17292_v60 = vcombine.high %v13924_v27, %v13927_v30  ;;  %v2494_v53 = vcombine.high %v14211_v14, %v14245_v1  ;;  %v2901_v21 = vcombine.low %v14213_v7, %v14257_v62  ;;  %11766 = vmatprep.subr.bf16.mxu0 %v17282_v47 }
 0x35e   : > { %v3693_v44 = vrot.slane %v17289_v57, %v13806_v11  ;;  %v3709_v17 = vrot.slane %v17290_v13, %v13806_v11  ;;  %v3725_v23 = vrot.slane %v17291_v46, %v13806_v11  ;;  %v2493_v57 = vcombine.low %v14211_v14, %v14245_v1  ;;  %v14335_v34 = vpop.permute.xlu0 %1229  ;;  %11745 = vmatpush3.bf16.xpose.msk.msra.mxu1 %vm14031_vm2, %v11743_v51 }
 0x35f   : > { %v3741_v32 = vrot.slane %v17292_v60, %v13806_v11  ;;  %11292 = vmatmul.mubr.msk.f32.vlgmr.msra.gmra.mrb[10].mxu0 %vm5589_vm1, %v3679_v20  ;;  %v2508_v14 = vrot.slane %v2494_v53, %v13806_v11  ;;  %v2902_v13 = vcombine.high %v14213_v7, %v14257_v62  ;;  %v14366_v20 = vrot.slane %v2901_v21, %v13806_v11 }
 0x360   : > { %v3749_v24 = vcombine.low %v3693_v44, %v3709_v17  ;;  %v3750_v25 = vcombine.high %v3693_v44, %v3709_v17  ;;  %v2501_v60 = vrot.slane %v2493_v57, %v13806_v11  ;;  %11294 = vmatprep.mubr.msk.f32.mxu0 %vm12942_vm0, %v17280_v59  ;;  %v17293_v51 = vcombine.low %v13956_v40, %v13959_v42 }
 0x361   : > { %v3781_v27 = vcombine.low %v3725_v23, %v3741_v32  ;;  %v3782_v30 = vcombine.high %v3725_v23, %v3741_v32  ;;  %v14372_v23 = vpop.permute.xlu1 %1244  ;;  %v17294_v7 = vcombine.high %v13956_v40, %v13959_v42  ;;  %v17295_v57 = vcombine.low %v13968_v4, %v13971_v5  ;;  %11746 = vmatprep.subr.bf16.mxu1 %v17282_v47 }
 0x362   : > { %v14349_v44 = vrot.slane %v3749_v24, %v13812_v19  ;;  %v14352_v1 = vrot.slane %v3750_v25, %v13812_v19  ;;  %v3829_v46 = vrot.slane %v17293_v51, %v13806_v11  ;;  %v17296_v25 = vcombine.high %v13968_v4, %v13971_v5  ;;  %v14397_v51 = vpop.permute.xlu0 %1259 }
 0x363   : > { %v14360_v32 = vrot.slane %v3781_v27, %v13812_v19  ;;  %v14363_v17 = vrot.slane %v3782_v30, %v13812_v19  ;;  %v3845_v62 = vrot.slane %v17294_v7, %v13806_v11  ;;  %v3861_v24 = vrot.slane %v17295_v57, %v13806_v11 }
 0x364   : > { %v3877_v53 = vrot.slane %v17296_v25, %v13806_v11  ;;  %v4630_v21 = vcombine.high %v14154_v29, %v14157_v8  ;;  %v4766_v42 = vcombine.high %v14160_v28, %v14163_v49  ;;  %v2509_v30 = vcombine.low %v14227_v15, %v14272_v37 }
 0x365   : > { %v3813_v27 = vcombine.low %v14349_v44, %v14360_v32  ;;  %v3815_v40 = vcombine.low %v14352_v1, %v14363_v17  ;;  %v3885_v4 = vcombine.low %v3829_v46, %v3845_v62  ;;  %v3886_v7 = vcombine.high %v3829_v46, %v3845_v62 }
 0x366   : > { %v3917_v5 = vcombine.low %v3861_v24, %v3877_v53  ;;  %v3918_v57 = vcombine.high %v3861_v24, %v3877_v53  ;;  %v11747_v29 = vpack.c.bf16 %v4766_v42, %v4630_v21  ;;  %v2510_v8 = vcombine.high %v14227_v15, %v14272_v37  ;;  %v14423_v53 = vpop.permute.xlu1 %1274 }
 0x367   : > { %11245 = vmatmul.mubr.msk.f32.gmra.mrb[12].mxu1 %vm5589_vm1, %v3813_v27  ;;  %11295 = vmatmul.mubr.msk.f32.gmra.mrb[12].mxu0 %vm5589_vm1, %v3815_v40  ;;  %v2517_v25 = vrot.slane %v2509_v30, %v13806_v11  ;;  %v14409_v28 = vrot.slane %v3885_v4, %v13812_v19  ;;  %v14415_v46 = vrot.slane %v3886_v7, %v13812_v19 }
 0x368   : > { %11247 = vmatprep.mubr.msk.f32.mxu1 %vm12942_vm0, %v17280_v59  ;;  %11297 = vmatprep.mubr.msk.f32.mxu0 %vm12942_vm0, %v17280_v59  ;;  %v14412_v49 = vrot.slane %v3917_v5, %v13812_v19  ;;  %v14418_v62 = vrot.slane %v3918_v57, %v13812_v19  ;;  %v2524_v15 = vrot.slane %v2510_v8, %v13806_v11 }
 0x369   : > { %11749 = vmatpush3.bf16.xpose.msk.msra.mxu1 %vm14031_vm2, %v11747_v29  ;;  %v2557_v37 = vcombine.low %v2501_v60, %v2517_v25  ;;  %v2558_v24 = vcombine.high %v2501_v60, %v2517_v25  ;;  %v2916_v21 = vrot.slane %v2902_v13, %v13806_v11  ;;  %v2917_v40 = vcombine.low %v14229_v56, %v14307_v16  ;;  %v14437_v13 = vpop.permute.xlu0 %1231 }
 0x36a   : > { %v3949_v27 = vcombine.low %v14409_v28, %v14412_v49  ;;  %v2918_v42 = vcombine.high %v14229_v56, %v14307_v16  ;;  %11264 = vmatprep.subr.mxu1 %v17280_v59  ;;  %v3951_v30 = vcombine.low %v14415_v46, %v14418_v62  ;;  %v2573_v5 = vcombine.low %v2508_v14, %v2524_v15 }
 0x36b   : > { %v2565_v60 = vrot.slane %v2557_v37, %v13812_v19  ;;  %v2572_v4 = vrot.slane %v2558_v24, %v13812_v19  ;;  %v2574_v7 = vcombine.high %v2508_v14, %v2524_v15  ;;  %v2925_v57 = vrot.slane %v2917_v40, %v13806_v11 }
 0x36c   : > { %11248 = vmatmul.mubr.msk.f32.gmra.mrb[14].mxu1 %vm5589_vm1, %v3949_v27  ;;  %v2932_v29 = vrot.slane %v2918_v42, %v13806_v11  ;;  %v17297_v56 = vcombine.low %v14096_v41, %v14099_v43  ;;  %11298 = vmatmul.mubr.msk.f32.gmra.mrb[14].mxu0 %vm5589_vm1, %v3951_v30  ;;  %v2581_v8 = vrot.slane %v2573_v5, %v13812_v19  ;;  %v14465_v5 = vpop.permute.xlu1 %1246 }
 0x36d   : > { %v10580_v25 = vcombine.low %v2565_v60, %v2572_v4  ;;  %v10582_v37 = vcombine.high %v2565_v60, %v2572_v4  ;;  %11250 = vmatprep.mubr.msk.f32.mxu1 %vm12942_vm0, %v17280_v59  ;;  %v2588_v14 = vrot.slane %v2574_v7, %v13812_v19  ;;  %v2965_v15 = vcombine.low %v14366_v20, %v2925_v57 }
 0x36e   : > { %v3965_v16 = vrot.slane %v17297_v56, %v13806_v11  ;;  %v2966_v24 = vcombine.high %v14366_v20, %v2925_v57  ;;  %v2981_v27 = vcombine.low %v2916_v21, %v2932_v29  ;;  %11300 = vmatprep.mubr.msk.f32.mxu0 %vm12942_vm0, %v17280_v59  ;;  %v2982_v30 = vcombine.high %v2916_v21, %v2932_v29  ;;  %v14477_v29 = vpop.permute.xlu0 %1261 }
 0x36f   : > { %v14456_v40 = vrot.slane %v10580_v25, %v13806_v11  ;;  %v14459_v42 = vrot.slane %v10582_v37, %v13806_v11  ;;  %v17298_v60 = vcombine.high %v14096_v41, %v14099_v43  ;;  %v10584_v7 = vcombine.low %v2581_v8, %v2588_v14 }
 0x370   : > { %v10586_v20 = vcombine.high %v2581_v8, %v2588_v14  ;;  %v2973_v57 = vrot.slane %v2965_v15, %v13812_v19  ;;  %v2980_v56 = vrot.slane %v2966_v24, %v13812_v19  ;;  %v2989_v37 = vrot.slane %v2981_v27, %v13812_v19 }
 0x371   : > { %v3981_v4 = vrot.slane %v17298_v60, %v13806_v11  ;;  %v2996_v21 = vrot.slane %v2982_v30, %v13812_v19  ;;  %v17299_v41 = vcombine.low %v14102_v54, %v14105_v10  ;;  %v14480_v8 = vrot.slane %v10584_v7, %v13806_v11 }
 0x372   : > { %v14483_v14 = vrot.slane %v10586_v20, %v13806_v11  ;;  %v10588_v15 = vcombine.low %v2973_v57, %v2980_v56  ;;  %v10590_v24 = vcombine.high %v2973_v57, %v2980_v56  ;;  %v17300_v27 = vcombine.high %v14102_v54, %v14105_v10 }
 0x373   : > { %v3997_v43 = vrot.slane %v17299_v41, %v13806_v11  ;;  %v10592_v60 = vcombine.low %v2989_v37, %v2996_v21  ;;  %v10594_v25 = vcombine.high %v2989_v37, %v2996_v21  ;;  %v4021_v9 = vcombine.low %v3965_v16, %v3981_v4  ;;  %v14504_v21 = vpop.permute.xlu1 %1276 }
 0x374   : > { %v4013_v30 = vrot.slane %v17300_v27, %v13806_v11  ;;  %v4477_v41 = vcombine.low %v14298_v61, %v14310_v35  ;;  %v14507_v27 = vrot.slane %v10588_v15, %v13806_v11  ;;  %v14510_v7 = vrot.slane %v10590_v24, %v13806_v11  ;;  %v14527_v61 = vpop.permute.xlu0 %1233 }
 0x375   : > { %v14502_v54 = vrot.slane %v4021_v9, %v13812_v19  ;;  %v4022_v20 = vcombine.high %v3965_v16, %v3981_v4  ;;  %v14513_v35 = vrot.slane %v10592_v60, %v13806_v11  ;;  %v14516_v56 = vrot.slane %v10594_v25, %v13806_v11 }
 0x376   : > { %v4053_v37 = vcombine.low %v3997_v43, %v4013_v30  ;;  %v4054_v57 = vcombine.high %v3997_v43, %v4013_v30  ;;  %v17301_v10 = vcombine.low %v14251_v2, %v14254_v36  ;;  %v17302_v25 = vcombine.low %v14264_v18, %v14267_v0 }
 0x377   : > { %v14530_v16 = vrot.slane %v4022_v20, %v13812_v19  ;;  %v17303_v24 = vcombine.low %v14292_v26, %v14295_v3  ;;  %v14550_v20 = vrot.slane %v4477_v41, %v13812_v19  ;;  %v17306_v41 = vcombine.low %v14144_v6, %v14147_v63  ;;  %v14577_v36 = vpop.permute.xlu1 %1248 }
 0x378   : > { %v14519_v9 = vrot.slane %v4053_v37, %v13812_v19  ;;  %v14525_v15 = vrot.slane %v17301_v10, %v13812_v19  ;;  %v14533_v4 = vrot.slane %v4054_v57, %v13812_v19  ;;  %v14539_v43 = vrot.slane %v17302_v25, %v13812_v19 }
 0x379   : > { %v14545_v60 = vrot.slane %v17303_v24, %v13812_v19  ;;  %v17304_v57 = vcombine.low %v14138_v22, %v14141_v39  ;;  %v17305_v37 = vcombine.high %v14138_v22, %v14141_v39  ;;  %v4133_v26 = vrot.slane %v17306_v41, %v13806_v11 }
 0x37a   : > { %v4085_v30 = vcombine.low %v14502_v54, %v14519_v9  ;;  %v4087_v24 = vcombine.low %v14530_v16, %v14533_v4  ;;  %v4361_v3 = vcombine.low %v14525_v15, %v14539_v43  ;;  %v4902_v18 = vcombine.high %v14233_v52, %v14236_v55  ;;  %v14593_v55 = vpop.permute.xlu0 %1347 }
 0x37b   : > { %v4101_v10 = vrot.slane %v17304_v57, %v13806_v11  ;;  %v4117_v25 = vrot.slane %v17305_v37, %v13806_v11  ;;  %v17307_v57 = vcombine.high %v14144_v6, %v14147_v63  ;;  %v4497_v22 = vcombine.low %v14545_v60, %v14550_v20 }
 0x37c   : > { %11251 = vmatmul.mubr.msk.f32.gmra.mrb[16].mxu1 %vm5589_vm1, %v4085_v30  ;;  %11301 = vmatmul.mubr.msk.f32.gmra.mrb[16].mxu0 %vm5589_vm1, %v4087_v24  ;;  %v1541_v6 = vcombine.low %v14335_v34, %v14397_v51  ;;  %v1557_v24 = vcombine.low %v14372_v23, %v14423_v53 }
 0x37d   : > { %v4149_v0 = vrot.slane %v17307_v57, %v13806_v11  ;;  %v4157_v39 = vcombine.low %v4101_v10, %v4117_v25  ;;  %v4158_v37 = vcombine.high %v4101_v10, %v4117_v25  ;;  %11253 = vmatprep.mubr.msk.f32.mxu1 %vm12942_vm0, %v17280_v59  ;;  %11303 = vmatprep.mubr.msk.f32.mxu0 %vm12942_vm0, %v17280_v59 }
 0x37e   : > { %v11767_v30 = vpack.c.bf16 %v4497_v22, %v4361_v3  ;;  %11265 = vmatpush3.xpose.msk.msra.mxu1 %vm5589_vm1, %v4902_v18  ;;  %v1542_v3 = vcombine.high %v14335_v34, %v14397_v51  ;;  %v1549_v18 = vrot.slane %v1541_v6, %v13806_v11  ;;  %v1558_v57 = vcombine.high %v14372_v23, %v14423_v53  ;;  %v17308_v53 = vld [vmem:[#allocation54_spill] sm:$0xff] }
 0x37f   : > { %v4189_v41 = vcombine.low %v4133_v26, %v4149_v0  ;;  %v4190_v63 = vcombine.high %v4133_v26, %v4149_v0  ;;  %v14587_v10 = vrot.slane %v4157_v39, %v13812_v19  ;;  %v14590_v52 = vrot.slane %v4158_v37, %v13812_v19  ;;  %11758 = vmatprep.subr.bf16.mxu1 %v17282_v47  ;;  %v17321_v0 = vld [vmem:[#allocation57_spill] sm:$0xff] }
 0x380   : > { %11769 = vmatpush3.bf16.xpose.msk.msra.mxu0 %vm14031_vm2, %v11767_v30  ;;  %v3678_v22 = vcombine.high %v13866_v31, %v13872_v33  ;;  %v1556_v51 = vrot.slane %v1542_v3, %v13806_v11  ;;  %v4496_v37 = vcombine.high %v14038_v45, %v14041_v48  ;;  %v1572_v23 = vrot.slane %v1558_v57, %v13806_v11  ;;  %v17309_v33 = vld [vmem:[#allocation46_spill] sm:$0xff]  ;;  %v14631_v30 = vpop.permute.xlu1 %1362 }
 0x381   : > { %v14598_v26 = vrot.slane %v4189_v41, %v13812_v19  ;;  %v14601_v25 = vrot.slane %v4190_v63, %v13812_v19  ;;  %11770 = vmatprep.subr.bf16.mxu0 %v17282_v47  ;;  %v1565_v41 = vrot.slane %v1557_v24, %v13806_v11  ;;  %v4360_v31 = vcombine.high %v17308_v53, %v14027_v50  ;;  %v17310_v63 = vld [vmem:[#allocation47_spill] sm:$0xff] }
 0x382   : > { %v14629_v6 = vadd.f32 %v17310_v63, %v17309_v33  ;;  %v3814_v45 = vcombine.high %v14349_v44, %v14360_v32  ;;  %v1949_v48 = vcombine.low %v14437_v13, %v14477_v29  ;;  %v1950_v3 = vcombine.high %v14437_v13, %v14477_v29  ;;  %v14643_v63 = vpop.permute.xlu0 %1377 }
 0x383   : > { %v4221_v39 = vcombine.low %v14587_v10, %v14598_v26  ;;  %v4223_v34 = vcombine.low %v14590_v52, %v14601_v25  ;;  %v1605_v50 = vcombine.low %v1549_v18, %v1565_v41  ;;  %v1606_v24 = vcombine.high %v1549_v18, %v1565_v41 }
 0x384   : > { %17311 = vst [vmem:[#allocation54_spill] sm:$0xff] %v14629_v6  ;;  %v1621_v57 = vcombine.low %v1556_v51, %v1572_v23  ;;  %v1622_v53 = vcombine.high %v1556_v51, %v1572_v23  ;;  %1406 = vrot.lane.b32.xlu0 %v14629_v6, %s12944_s7  ;;  %1421 = vrot.lane.b32.xlu1 %v14629_v6, %s12943_s4  ;;  %v17312_v23 = vld [vmem:[#allocation48_spill] sm:$0xff] }
 0x385   : > { %11254 = vmatmul.mubr.msk.f32.gmra.mrb[18].mxu1 %vm5589_vm1, %v4221_v39  ;;  %11304 = vmatmul.mubr.msk.f32.gmra.mrb[18].mxu0 %vm5589_vm1, %v4223_v34  ;;  %v11759_v39 = vpack.c.bf16 %v4496_v37, %v4360_v31  ;;  %v1957_v44 = vrot.slane %v1949_v48, %v13806_v11  ;;  %v1965_v32 = vcombine.low %v14465_v5, %v14504_v21 }
 0x386   : > { %11266 = vmatprep.mubr.msk.f32.mxu1 %vm12942_vm0, %v17280_v59  ;;  %v1613_v13 = vrot.slane %v1605_v50, %v13812_v19  ;;  %v1620_v29 = vrot.slane %v1606_v24, %v13812_v19  ;;  %v1629_v18 = vrot.slane %v1621_v57, %v13812_v19  ;;  %v1636_v34 = vrot.slane %v1622_v53, %v13812_v19  ;;  %v14669_v53 = vpop.permute.xlu1 %1392 }
 0x387   : > { %11341 = vmatprep.mubr.msk.f32.mxu0 %vm12942_vm0, %v17280_v59  ;;  %v1964_v51 = vrot.slane %v1950_v3, %v13806_v11  ;;  %v1966_v37 = vcombine.high %v14465_v5, %v14504_v21  ;;  %v1973_v41 = vrot.slane %v1965_v32, %v13806_v11  ;;  %v14665_v31 = vadd.f32 %v17312_v23, %v17309_v33 }
 0x388   : > { %v10524_v48 = vcombine.low %v1613_v13, %v1620_v29  ;;  %v10526_v50 = vcombine.high %v1613_v13, %v1620_v29  ;;  %v10528_v24 = vcombine.low %v1629_v18, %v1636_v34  ;;  %v10530_v57 = vcombine.high %v1629_v18, %v1636_v34  ;;  %v17317_v29 = vld [vmem:[#allocation50_spill] sm:$0xff]  ;;  %v14689_v18 = vpop.permute.xlu0 %1263  ;;  %1436 = vrot.lane.b32.xlu1 %v14629_v6, %s12945_s14 }
 0x389   : > { %11267 = vmatmul.mubr.msk.f32.vlgmr.msra.gmra.mrb[20].mxu1 %vm5589_vm1, %v3678_v22  ;;  %v1980_v5 = vrot.slane %v1966_v37, %v13806_v11  ;;  %v2013_v21 = vcombine.low %v1957_v44, %v1973_v41  ;;  %v2014_v22 = vcombine.high %v1957_v44, %v1973_v41  ;;  %1434 = vrot.lane.b32.xlu0 %v17317_v29, %s12945_s14 }
 0x38a   : > { %11761 = vmatpush3.bf16.xpose.msk.msra.mxu1 %vm14031_vm2, %v11759_v39  ;;  %11269 = vmatprep.mubr.msk.f32.mxu1 %vm12942_vm0, %v17280_v59  ;;  %v14676_v3 = vrot.slane %v10524_v48, %v13806_v11  ;;  %v14679_v32 = vrot.slane %v10526_v50, %v13806_v11  ;;  %v14682_v13 = vrot.slane %v10528_v24, %v13806_v11  ;;  %v17320_v24 = vld [vmem:[#allocation58_spill] sm:$0xff] }
 0x38b   : > { %11762 = vmatprep.subr.bf16.mxu1 %v17282_v47  ;;  %v14685_v39 = vrot.slane %v10530_v57, %v13806_v11  ;;  %v14693_v44 = vrot.slane %v2013_v21, %v13812_v19  ;;  %v14696_v34 = vrot.slane %v2014_v22, %v13812_v19  ;;  %v2029_v37 = vcombine.low %v1964_v51, %v1980_v5 }
 0x38c   : > { %17313 = vst [vmem:[#allocation46_spill] sm:$0xff] %v14676_v3  ;;  %17314 = vst [vmem:[#allocation47_spill] sm:$0xff] %v14679_v32  ;;  %v2030_v41 = vcombine.high %v1964_v51, %v1980_v5  ;;  %v4749_v48 = vcombine.low %v14513_v35, %v14516_v56  ;;  %v3629_v50 = vcombine.low %v14676_v3, %v14679_v32 }
 0x38d   : > { %17315 = vst [vmem:[#allocation48_spill] sm:$0xff] %v14682_v13  ;;  %17316 = vst [vmem:[#allocation66_spill] sm:$0xff] %v14685_v39  ;;  %11270 = vmatmul.mubr.msk.f32.gmra.mrb[22].mxu1 %vm5589_vm1, %v3814_v45  ;;  %v3661_v45 = vcombine.low %v14682_v13, %v14685_v39  ;;  %v14711_v51 = vrot.slane %v2029_v37, %v13812_v19  ;;  %v3950_v5 = vcombine.high %v14409_v28, %v14412_v49  ;;  %v17322_v37 = vld [vmem:[#allocation49_spill] sm:$0xff] }
 0x38e   : > { %11272 = vmatprep.mubr.msk.f32.mxu1 %vm12942_vm0, %v17280_v59  ;;  %v14714_v57 = vrot.slane %v2030_v41, %v13812_v19  ;;  %v14721_v21 = vrot.slane %v3629_v50, %v13812_v19  ;;  %1408 = vrot.lane.b32.xlu0 %v14665_v31, %s12944_s7  ;;  %v14732_v41 = vpop.permute.xlu1 %1278  ;;  %v17318_v50 = vld [vmem:[#allocation56_spill] sm:$0xff]  ;;  %v4768_v13 = vcombine.high %v17321_v0, %v17320_v24 }
 0x38f   : > { %v14724_v22 = vrot.slane %v3661_v45, %v13812_v19  ;;  %v17319_v45 = vld [vmem:[#allocation55_spill] sm:$0xff]  ;;  %v14745_v39 = vadd.f32 %v17322_v37, %v17309_v33  ;;  %v17323_v28 = vcombine.low %v14456_v40, %v14459_v42  ;;  %v17325_v0 = vcombine.low %v14507_v27, %v14510_v7  ;;  %v14767_v37 = vpop.permute.xlu0 %1235 }
 0x390   : > { %v4632_v23 = vcombine.high %v17319_v45, %v17318_v50  ;;  %v14770_v3 = vrot.slane %v4749_v48, %v13812_v19  ;;  %v4222_v32 = vcombine.high %v14587_v10, %v14598_v26  ;;  %v3325_v10 = vcombine.low %v14631_v30, %v14669_v53  ;;  %v17327_v48 = vld [vmem:[#allocation51_spill] sm:$0xff] }
 0x391   : > { %11273 = vmatmul.mubr.msk.f32.gmra.mrb[24].mxu1 %vm5589_vm1, %v3950_v5  ;;  %v14753_v49 = vrot.slane %v17323_v28, %v13812_v19  ;;  %v17324_v5 = vcombine.low %v14480_v8, %v14483_v14  ;;  %v14765_v24 = vrot.slane %v17325_v0, %v13812_v19  ;;  %v4086_v28 = vcombine.high %v14502_v54, %v14519_v9 }
 0x392   : > { %11275 = vmatprep.mubr.msk.f32.mxu1 %vm12942_vm0, %v17280_v59  ;;  %v11763_v45 = vpack.c.bf16 %v4768_v13, %v4632_v23  ;;  %1410 = vrot.lane.b32.xlu1 %v14745_v39, %s12944_s7  ;;  %v4904_v13 = vcombine.high %v14270_v58, %v14283_v12  ;;  %v3309_v23 = vcombine.low %v14593_v55, %v14643_v63  ;;  %v17326_v12 = vld [vmem:[#allocation52_spill] sm:$0xff]  ;;  %v14803_v6 = vpop.permute.xlu1 %1250 }
 0x393   : > { %v14759_v50 = vrot.slane %v17324_v5, %v13812_v19  ;;  %1423 = vrot.lane.b32.xlu0 %v14665_v31, %s12943_s4  ;;  %v4769_v54 = vcombine.low %v14765_v24, %v14770_v3  ;;  %v3310_v9 = vcombine.high %v14593_v55, %v14643_v63  ;;  %v3326_v26 = vcombine.high %v14631_v30, %v14669_v53 }
 0x394   : > { %11765 = vmatpush3.bf16.xpose.msk.msra.mxu1 %vm14031_vm2, %v11763_v45  ;;  %v3317_v58 = vrot.slane %v3309_v23, %v13806_v11  ;;  %v3680_v0 = vcombine.high %v17327_v48, %v17326_v12  ;;  %v4362_v45 = vcombine.high %v14525_v15, %v14539_v43  ;;  %v3333_v63 = vrot.slane %v3325_v10, %v13806_v11 }
 0x395   : > { %v4633_v5 = vcombine.low %v14753_v49, %v14759_v50  ;;  %11276 = vmatmul.mubr.msk.f32.gmra.mrb[26].mxu1 %vm5589_vm1, %v4086_v28  ;;  %11314 = vmatprep.subr.mxu1 %v17280_v59  ;;  %v3324_v30 = vrot.slane %v3310_v9, %v13806_v11  ;;  %v3340_v53 = vrot.slane %v3326_v26, %v13806_v11 }
 0x396   : > { %11278 = vmatprep.mubr.msk.f32.mxu1 %vm12942_vm0, %v17280_v59  ;;  %1425 = vrot.lane.b32.xlu1 %v14745_v39, %s12943_s4  ;;  %v4498_v15 = vcombine.high %v14545_v60, %v14550_v20  ;;  %v2357_v43 = vcombine.low %v14527_v61, %v14689_v18  ;;  %v2358_v28 = vcombine.high %v14527_v61, %v14689_v18 }
 0x397   : > { %v11771_v55 = vpack.c.bf16 %v4769_v54, %v4633_v5  ;;  %1438 = vrot.lane.b32.xlu0 %v14665_v31, %s12945_s14  ;;  %v14820_v5 = vpop.permute.xlu0 %1265  ;;  %v3373_v23 = vcombine.low %v3317_v58, %v3333_v63  ;;  %v3374_v54 = vcombine.high %v3317_v58, %v3333_v63  ;;  %v3389_v9 = vcombine.low %v3324_v30, %v3340_v53  ;;  %v1281_v63 = vpop.permute.xlu1 %1280 }
 0x398   : > { %v3390_v10 = vcombine.high %v3324_v30, %v3340_v53  ;;  %v11775_v26 = vpack.c.bf16 %v4498_v15, %v4362_v45  ;;  %v2365_v60 = vrot.slane %v2357_v43, %v13806_v11  ;;  %v2372_v20 = vrot.slane %v2358_v28, %v13806_v11 }
 0x399   : > { %11773 = vmatpush3.bf16.xpose.msk.msra.mxu0 %vm14031_vm2, %v11771_v55  ;;  %11279 = vmatmul.mubr.msk.f32.gmra.mrb[28].mxu1 %vm5589_vm1, %v4222_v32  ;;  %v2373_v12 = vcombine.low %v14577_v36, %v14732_v41  ;;  %v3381_v61 = vrot.slane %v3373_v23, %v13812_v19  ;;  %v3388_v18 = vrot.slane %v3374_v54, %v13812_v19 }
 0x39a   : > { %v3397_v48 = vrot.slane %v3389_v9, %v13812_v19  ;;  %v3404_v58 = vrot.slane %v3390_v10, %v13812_v19  ;;  %11316 = vmatprep.mubr.msk.f32.mxu1 %vm12942_vm0, %v17280_v59  ;;  %1440 = vrot.lane.b32.xlu1 %v14745_v39, %s12945_s14  ;;  %v2374_v32 = vcombine.high %v14577_v36, %v14732_v41 }
 0x39b   : > { %v2381_v45 = vrot.slane %v2373_v12, %v13806_v11  ;;  %v3816_v55 = vcombine.high %v14352_v1, %v14363_v17  ;;  %v3952_v30 = vcombine.high %v14415_v46, %v14418_v62  ;;  %v10596_v53 = vcombine.low %v3381_v61, %v3388_v18  ;;  %v14849_v1 = vpop.permute.xlu0 %1237  ;;  %11339 = vmatprep.subr.mxu0 %v17280_v59  ;;  %v17337_v12 = vld [vmem:[#allocation64_spill] sm:$0xff] }
 0x39c   : > { %11315 = vmatpush3.xpose.msk.msra.mxu1 %vm5589_vm1, %v4904_v13  ;;  %v10598_v15 = vcombine.high %v3381_v61, %v3388_v18  ;;  %v10600_v43 = vcombine.low %v3397_v48, %v3404_v58  ;;  %v10602_v28 = vcombine.high %v3397_v48, %v3404_v58  ;;  %v2388_v23 = vrot.slane %v2374_v32, %v13806_v11  ;;  %v1253_v32 = vpop.permute.xlu1 %1252 }
 0x39d   : > { %11774 = vmatprep.subr.bf16.mxu1 %v17282_v47  ;;  %v2421_v36 = vcombine.low %v2365_v60, %v2381_v45  ;;  %v2422_v41 = vcombine.high %v2365_v60, %v2381_v45  ;;  %v4634_v54 = vcombine.high %v14753_v49, %v14759_v50  ;;  %v14852_v17 = vrot.slane %v10596_v53, %v13806_v11  ;;  %v17328_v45 = vld [vmem:[#allocation53_spill] sm:$0xff] }
 0x39e   : > { %v14855_v46 = vrot.slane %v10598_v15, %v13806_v11  ;;  %v14858_v62 = vrot.slane %v10600_v43, %v13806_v11  ;;  %v14861_v13 = vrot.slane %v10602_v28, %v13806_v11  ;;  %v2437_v9 = vcombine.low %v2372_v20, %v2388_v23 }
 0x39f   : > { %11317 = vmatmul.mubr.msk.f32.vlgmr.msra.gmra.mrb[30].mxu1 %vm5589_vm1, %v3680_v0  ;;  %v14866_v49 = vrot.slane %v2421_v36, %v13812_v19  ;;  %v14869_v50 = vrot.slane %v2422_v41, %v13812_v19  ;;  %v2438_v10 = vcombine.high %v2372_v20, %v2388_v23  ;;  %v14898_v53 = vadd.f32 %v17328_v45, %v17309_v33  ;;  %v1268_v33 = vpop.permute.xlu0 %1267 }
 0x3a0   : > { %v4853_v60 = vcombine.low %v14852_v17, %v14855_v46  ;;  %v4885_v61 = vcombine.low %v14858_v62, %v14861_v13  ;;  %11777 = vmatpush3.bf16.xpose.msk.msra.mxu1 %vm14031_vm2, %v11775_v26  ;;  %v14882_v18 = vrot.slane %v2437_v9, %v13812_v19  ;;  %11319 = vmatprep.mubr.msk.f32.mxu1 %vm12942_vm0, %v17280_v59 }
 0x3a1   : > { %v14885_v20 = vrot.slane %v2438_v10, %v13812_v19  ;;  %v10540_v48 = vcombine.low %v14866_v49, %v14869_v50  ;;  %v10542_v58 = vcombine.high %v14866_v49, %v14869_v50  ;;  %11778 = vmatprep.subr.bf16.mxu1 %v17282_v47  ;;  %v4770_v26 = vcombine.high %v14765_v24, %v14770_v3 }
 0x3a2   : > { %v2765_v15 = vcombine.low %v14767_v37, %v14820_v5  ;;  %v2766_v43 = vcombine.high %v14767_v37, %v14820_v5  ;;  %v2781_v3 = vcombine.low %v14803_v6, %v1281_v63  ;;  %v2782_v24 = vcombine.high %v14803_v6, %v1281_v63  ;;  %1412 = vrot.lane.b32.xlu0 %v14898_v53, %s12944_s7 }
 0x3a3   : > { %v10544_v28 = vcombine.low %v14882_v18, %v14885_v20  ;;  %v10546_v23 = vcombine.high %v14882_v18, %v14885_v20  ;;  %11320 = vmatmul.mubr.msk.f32.gmra.mrb[32].mxu1 %vm5589_vm1, %v3816_v55  ;;  %v11779_v36 = vpack.c.bf16 %v4770_v26, %v4634_v54  ;;  %v4088_v5 = vcombine.high %v14530_v16, %v14533_v4 }
 0x3a4   : > { %11322 = vmatprep.mubr.msk.f32.mxu1 %vm12942_vm0, %v17280_v59  ;;  %v2773_v41 = vrot.slane %v2765_v15, %v13806_v11  ;;  %v2780_v37 = vrot.slane %v2766_v43, %v13806_v11  ;;  %v2789_v9 = vrot.slane %v2781_v3, %v13806_v11  ;;  %v2796_v55 = vrot.slane %v2782_v24, %v13806_v11  ;;  %v1283_v43 = vpop.permute.xlu1 %1282 }
 0x3a5   : > { %v4224_v6 = vcombine.high %v14590_v52, %v14601_v25  ;;  %1427 = vrot.lane.b32.xlu1 %v14898_v53, %s12943_s4  ;;  %v4861_v63 = vrot.slane %v4853_v60, %v13812_v19  ;;  %v4893_v54 = vrot.slane %v4885_v61, %v13812_v19  ;;  %v3173_v10 = vcombine.low %v14849_v1, %v1268_v33 }
 0x3a6   : > { %v3174_v16 = vcombine.high %v14849_v1, %v1268_v33  ;;  %v2829_v4 = vcombine.low %v2773_v41, %v2789_v9  ;;  %v2830_v26 = vcombine.high %v2773_v41, %v2789_v9  ;;  %v2845_v45 = vcombine.low %v2780_v37, %v2796_v55  ;;  %1442 = vrot.lane.b32.xlu0 %v14898_v53, %s12945_s14 }
 0x3a7   : > { %11323 = vmatmul.mubr.msk.f32.gmra.mrb[34].mxu1 %vm5589_vm1, %v3952_v30  ;;  %v2846_v15 = vcombine.high %v2780_v37, %v2796_v55  ;;  %v4905_v52 = vcombine.low %v4861_v63, %v4893_v54  ;;  %v4906_v25 = vcombine.high %v4861_v63, %v4893_v54  ;;  %v3181_v60 = vrot.slane %v3173_v10, %v13806_v11 }
 0x3a8   : > { %11781 = vmatpush3.bf16.xpose.msk.msra.mxu1 %vm14031_vm2, %v11779_v36  ;;  %11325 = vmatprep.mubr.msk.f32.mxu1 %vm12942_vm0, %v17280_v59  ;;  %v14936_v61 = vrot.slane %v2829_v4, %v13812_v19  ;;  %v14939_v30 = vrot.slane %v2830_v26, %v13812_v19  ;;  %v14942_v1 = vrot.slane %v2845_v45, %v13812_v19  ;;  %v17331_v26 = vld [vmem:[#allocation60_spill] sm:$0xff]  ;;  %v17332_v45 = vld [vmem:[#allocation61_spill] sm:$0xff] }
 0x3a9   : > { %v14945_v3 = vrot.slane %v2846_v15, %v13812_v19  ;;  %11364 = vmatprep.subr.mxu1 %v17280_v59  ;;  %11340 = vmatpush3.xpose.msk.msra.mxu0 %vm5589_vm1, %v4905_v52  ;;  %v3188_v24 = vrot.slane %v3174_v16, %v13806_v11  ;;  %v3189_v33 = vcombine.low %v1253_v32, %v1283_v43  ;;  %v17329_v16 = vld [vmem:[#allocation59_spill] sm:$0xff]  ;;  %v17334_v52 = vld [vmem:[#allocation62_spill] sm:$0xff] }
 0x3aa   : > { %v3190_v36 = vcombine.high %v1253_v32, %v1283_v43  ;;  %v3681_v54 = vcombine.low %v14721_v21, %v14724_v22  ;;  %v3682_v10 = vcombine.high %v14721_v21, %v14724_v22  ;;  %11782 = vmatprep.subr.bf16.mxu0 %v17282_v47  ;;  %v17330_v4 = vcombine.high %v14251_v2, %v17329_v16  ;;  %v17338_v21 = vld [vmem:[#allocation65_spill] sm:$0xff] }
 0x3ab   : > { %11326 = vmatmul.mubr.msk.f32.gmra.mrb[36].mxu1 %vm5589_vm1, %v4088_v5  ;;  %v3197_v63 = vrot.slane %v3189_v33, %v13806_v11  ;;  %v17333_v15 = vcombine.high %v17331_v26, %v17332_v45  ;;  %v17335_v33 = vld [vmem:[#allocation63_spill] sm:$0xff]  ;;  %v17339_v22 = vcombine.high %v17337_v12, %v17338_v21  ;;  %v17344_v50 = vcombine.high %v14456_v40, %v14459_v42 }
 0x3ac   : > { %11328 = vmatprep.mubr.msk.f32.mxu1 %vm12942_vm0, %v17280_v59  ;;  %v3204_v32 = vrot.slane %v3190_v36, %v13806_v11  ;;  %v4324_v5 = vrot.slane %v17330_v4, %v13812_v19  ;;  %v17336_v36 = vcombine.high %v17334_v52, %v17335_v33  ;;  %11342 = vmatmul.mubr.msk.f32.vlgmr.msra.gmra.mrb[20].mxu0 %vm5589_vm1, %v3681_v54 }
 0x3ad   : > { %v4356_v43 = vrot.slane %v17333_v15, %v13812_v19  ;;  %v4492_v55 = vrot.slane %v17339_v22, %v13812_v19  ;;  %v3237_v9 = vcombine.low %v3181_v60, %v3197_v63  ;;  %v3238_v37 = vcombine.high %v3181_v60, %v3197_v63  ;;  %11344 = vmatprep.mubr.msk.f32.mxu0 %vm12942_vm0, %v17280_v59 }
 0x3ae   : > { %v4460_v0 = vrot.slane %v17336_v36, %v13812_v19  ;;  %v3253_v41 = vcombine.low %v3188_v24, %v3204_v32  ;;  %v3254_v2 = vcombine.high %v3188_v24, %v3204_v32  ;;  %v17341_v32 = vcombine.high %v14693_v44, %v14696_v34  ;;  %1449 = vrot.lane.b32.xlu0 %v17317_v29, %s12946_s19 }
 0x3af   : > { %11329 = vmatmul.mubr.msk.f32.gmra.mrb[38].mxu1 %vm5589_vm1, %v4224_v6  ;;  %v4363_v16 = vcombine.low %v4324_v5, %v4356_v43  ;;  %v4364_v26 = vcombine.high %v4324_v5, %v4356_v43  ;;  %v14990_v15 = vrot.slane %v3237_v9, %v13812_v19  ;;  %v14993_v12 = vrot.slane %v3238_v37, %v13812_v19 }
 0x3b0   : > { %v4499_v4 = vcombine.low %v4460_v0, %v4492_v55  ;;  %v4500_v45 = vcombine.high %v4460_v0, %v4492_v55  ;;  %11365 = vmatpush3.xpose.msk.msra.mxu1 %vm5589_vm1, %v4906_v25  ;;  %v14996_v60 = vrot.slane %v3253_v41, %v13812_v19  ;;  %v14999_v24 = vrot.slane %v3254_v2, %v13812_v19 }
 0x3b1   : > { %11366 = vmatprep.mubr.msk.f32.mxu1 %vm12942_vm0, %v17280_v59  ;;  %11790 = vmatprep.subr.bf16.mxu1 %v17282_v47  ;;  %v17340_v25 = vcombine.low %v14693_v44, %v14696_v34  ;;  %v10556_v41 = vcombine.low %v14990_v15, %v14993_v12  ;;  %v10558_v37 = vcombine.high %v14990_v15, %v14993_v12 }
 0x3b2   : > { %v11783_v0 = vpack.c.bf16 %v4499_v4, %v4363_v16  ;;  %v11791_v6 = vpack.c.bf16 %v4500_v45, %v4364_v26  ;;  %v10560_v55 = vcombine.low %v14996_v60, %v14999_v24  ;;  %v10562_v63 = vcombine.high %v14996_v60, %v14999_v24 }
 0x3b3   : > { %v15008_v9 = vrot.slane %v17340_v25, %v13806_v11  ;;  %11367 = vmatmul.mubr.msk.f32.vlgmr.msra.gmra.mrb[40].mxu1 %vm5589_vm1, %v3682_v10  ;;  %v15027_v54 = vrot.slane %v17341_v32, %v13806_v11  ;;  %v17342_v5 = vcombine.low %v14711_v51, %v14714_v57  ;;  %v17343_v52 = vcombine.high %v14711_v51, %v14714_v57 }
 0x3b4   : > { %11785 = vmatpush3.bf16.xpose.msk.msra.mxu0 %vm14031_vm2, %v11783_v0  ;;  %11793 = vmatpush3.bf16.xpose.msk.msra.mxu1 %vm14031_vm2, %v11791_v6  ;;  %v15049_v44 = vrot.slane %v10540_v48, %v13806_v11  ;;  %v15055_v34 = vrot.slane %v10542_v58, %v13806_v11  ;;  %v15061_v51 = vrot.slane %v10544_v28, %v13806_v11 }
 0x3b5   : > { %v15033_v43 = vrot.slane %v17342_v5, %v13806_v11  ;;  %v15039_v10 = vrot.slane %v17343_v52, %v13806_v11  ;;  %11369 = vmatprep.mubr.msk.f32.mxu1 %vm12942_vm0, %v17280_v59  ;;  %v3765_v57 = vcombine.low %v15008_v9, %v15027_v54  ;;  %v15071_v48 = vrot.slane %v10546_v23, %v13806_v11 }
 0x3b6   : > { %11786 = vmatprep.subr.bf16.mxu0 %v17282_v47  ;;  %11794 = vmatprep.subr.bf16.mxu1 %v17282_v47  ;;  %v3901_v49 = vcombine.low %v15049_v44, %v15055_v34  ;;  %v4596_v58 = vrot.slane %v17344_v50, %v13812_v19  ;;  %v17345_v28 = vcombine.high %v14480_v8, %v14483_v14  ;;  %v17348_v14 = vld [vmem:[#allocation54_spill] sm:$0xff] }
 0x3b7   : > { %v3797_v33 = vcombine.low %v15033_v43, %v15039_v10  ;;  %v17346_v18 = vcombine.high %v14507_v27, %v14510_v7  ;;  %v3773_v23 = vrot.slane %v3765_v57, %v13812_v19  ;;  %v3933_v40 = vcombine.low %v15061_v51, %v15071_v48  ;;  %1451 = vrot.lane.b32.xlu1 %v17348_v14, %s12946_s19 }
 0x3b8   : > { %v4628_v36 = vrot.slane %v17345_v28, %v13812_v19  ;;  %v17347_v42 = vcombine.high %v14513_v35, %v14516_v56  ;;  %v3909_v7 = vrot.slane %v3901_v49, %v13812_v19  ;;  %v17349_v2 = vcombine.low %v14936_v61, %v14939_v30  ;;  %1466 = vrot.lane.b32.xlu0 %v17348_v14, %s12947_s26  ;;  %v17355_v28 = vld [vmem:[#allocation47_spill] sm:$0xff] }
 0x3b9   : > { %v4732_v20 = vrot.slane %v17346_v18, %v13812_v19  ;;  %v3805_v21 = vrot.slane %v3797_v33, %v13812_v19  ;;  %v3941_v45 = vrot.slane %v3933_v40, %v13812_v19  ;;  %v17350_v56 = vcombine.high %v14936_v61, %v14939_v30 }
 0x3ba   : > { %v4764_v8 = vrot.slane %v17347_v42, %v13812_v19  ;;  %v4635_v27 = vcombine.low %v4596_v58, %v4628_v36  ;;  %v4636_v22 = vcombine.high %v4596_v58, %v4628_v36  ;;  %v15106_v16 = vrot.slane %v17349_v2, %v13806_v11  ;;  %v17356_v36 = vld [vmem:[#allocation46_spill] sm:$0xff] }
 0x3bb   : > { %v3817_v4 = vcombine.low %v3773_v23, %v3805_v21  ;;  %v3818_v26 = vcombine.high %v3773_v23, %v3805_v21  ;;  %v15113_v12 = vrot.slane %v17350_v56, %v13806_v11  ;;  %v17351_v60 = vcombine.low %v14942_v1, %v14945_v3  ;;  %1464 = vrot.lane.b32.xlu1 %v17317_v29, %s12947_s26 }
 0x3bc   : > { %v4771_v15 = vcombine.low %v4732_v20, %v4764_v8  ;;  %v4772_v35 = vcombine.high %v4732_v20, %v4764_v8  ;;  %v17352_v0 = vcombine.high %v14942_v1, %v14945_v3  ;;  %v3953_v61 = vcombine.low %v3909_v7, %v3941_v45  ;;  %1481 = vrot.lane.b32.xlu0 %v17348_v14, %s12948_s15 }
 0x3bd   : > { %v15119_v24 = vrot.slane %v17351_v60, %v13806_v11  ;;  %11345 = vmatmul.mubr.msk.f32.gmra.mrb[22].mxu0 %vm5589_vm1, %v3817_v4  ;;  %11370 = vmatmul.mubr.msk.f32.gmra.mrb[42].mxu1 %vm5589_vm1, %v3818_v26  ;;  %v3954_v30 = vcombine.high %v3909_v7, %v3941_v45  ;;  %v4037_v1 = vcombine.low %v15106_v16, %v15113_v12 }
 0x3be   : > { %v15125_v6 = vrot.slane %v17352_v0, %v13806_v11  ;;  %v11787_v25 = vpack.c.bf16 %v4771_v15, %v4635_v27  ;;  %11347 = vmatprep.mubr.msk.f32.mxu0 %vm12942_vm0, %v17280_v59  ;;  %11372 = vmatprep.mubr.msk.f32.mxu1 %vm12942_vm0, %v17280_v59  ;;  %v11795_v32 = vpack.c.bf16 %v4772_v35, %v4636_v22 }
 0x3bf   : > { %v15142_v5 = vrot.slane %v10556_v41, %v13806_v11  ;;  %v15145_v52 = vrot.slane %v10558_v37, %v13806_v11  ;;  %v15148_v57 = vrot.slane %v10560_v55, %v13806_v11  ;;  %v15151_v33 = vrot.slane %v10562_v63, %v13806_v11  ;;  %1479 = vrot.lane.b32.xlu1 %v17317_v29, %s12948_s15 }
 0x3c0   : > { %v4069_v3 = vcombine.low %v15119_v24, %v15125_v6  ;;  %11789 = vmatpush3.bf16.xpose.msk.msra.mxu0 %vm14031_vm2, %v11787_v25  ;;  %11797 = vmatpush3.bf16.xpose.msk.msra.mxu1 %vm14031_vm2, %v11795_v32  ;;  %v4045_v49 = vrot.slane %v4037_v1, %v13812_v19  ;;  %v17353_v41 = vcombine.high %v14852_v17, %v14855_v46  ;;  %v17357_v17 = vld [vmem:[#allocation66_spill] sm:$0xff]  ;;  %v17358_v46 = vld [vmem:[#allocation48_spill] sm:$0xff] }
 0x3c1   : > { %11389 = vmatprep.subr.mxu0 %v17280_v59  ;;  %11348 = vmatmul.mubr.msk.f32.gmra.mrb[24].mxu0 %vm5589_vm1, %v3953_v61  ;;  %v4173_v55 = vcombine.low %v15142_v5, %v15145_v52  ;;  %v4205_v38 = vcombine.low %v15148_v57, %v15151_v33  ;;  %v17354_v63 = vcombine.high %v14858_v62, %v14861_v13 }
 0x3c2   : > { %v4077_v50 = vrot.slane %v4069_v3, %v13812_v19  ;;  %v4868_v37 = vrot.slane %v17353_v41, %v13812_v19  ;;  %11373 = vmatmul.mubr.msk.f32.gmra.mrb[44].mxu1 %vm5589_vm1, %v3954_v30  ;;  %v3630_v18 = vcombine.high %v17356_v36, %v17355_v28  ;;  %v3662_v20 = vcombine.high %v17358_v46, %v17357_v17  ;;  %v1405_v3 = vpop.permute.xlu1 %1404 }
 0x3c3   : > { %v4900_v58 = vrot.slane %v17354_v63, %v13812_v19  ;;  %11350 = vmatprep.mubr.msk.f32.mxu0 %vm12942_vm0, %v17280_v59  ;;  %11375 = vmatprep.mubr.msk.f32.mxu1 %vm12942_vm0, %v17280_v59  ;;  %v4181_v40 = vrot.slane %v4173_v55, %v13812_v19  ;;  %v4213_v62 = vrot.slane %v4205_v38, %v13812_v19 }
 0x3c4   : > { %v4089_v23 = vcombine.low %v4045_v49, %v4077_v50  ;;  %v4090_v21 = vcombine.high %v4045_v49, %v4077_v50  ;;  %11414 = vmatprep.subr.mxu1 %v17280_v59  ;;  %v3644_v7 = vrot.slane %v3630_v18, %v13812_v19  ;;  %v3676_v27 = vrot.slane %v3662_v20, %v13812_v19 }
 0x3c5   : > { %v4225_v13 = vcombine.low %v4181_v40, %v4213_v62  ;;  %v4226_v42 = vcombine.high %v4181_v40, %v4213_v62  ;;  %v4907_v8 = vcombine.low %v4868_v37, %v4900_v58  ;;  %v4908_v22 = vcombine.high %v4868_v37, %v4900_v58  ;;  %1496 = vrot.lane.b32.xlu0 %v17348_v14, %s12949_s10 }
 0x3c6   : > { %11351 = vmatmul.mubr.msk.f32.gmra.mrb[26].mxu0 %vm5589_vm1, %v4089_v23  ;;  %11376 = vmatmul.mubr.msk.f32.gmra.mrb[46].mxu1 %vm5589_vm1, %v4090_v21  ;;  %v3766_v2 = vcombine.high %v15008_v9, %v15027_v54  ;;  %v3798_v4 = vcombine.high %v15033_v43, %v15039_v10  ;;  %v3683_v26 = vcombine.low %v3644_v7, %v3676_v27 }
 0x3c7   : > { %11353 = vmatprep.mubr.msk.f32.mxu0 %vm12942_vm0, %v17280_v59  ;;  %11378 = vmatprep.mubr.msk.f32.mxu1 %vm12942_vm0, %v17280_v59  ;;  %v3902_v45 = vcombine.high %v15049_v44, %v15055_v34  ;;  %v3934_v9 = vcombine.high %v15061_v51, %v15071_v48  ;;  %v3684_v54 = vcombine.high %v3644_v7, %v3676_v27 }
 0x3c8   : > { %11390 = vmatpush3.xpose.msk.msra.mxu0 %vm5589_vm1, %v4907_v8  ;;  %11415 = vmatpush3.xpose.msk.msra.mxu1 %vm5589_vm1, %v4908_v22  ;;  %v3780_v43 = vrot.slane %v3766_v2, %v13812_v19  ;;  %v3812_v10 = vrot.slane %v3798_v4, %v13812_v19  ;;  %v4038_v51 = vcombine.high %v15106_v16, %v15113_v12 }
 0x3c9   : > { %11798 = vmatprep.subr.bf16.mxu0 %v17282_v47  ;;  %v3916_v44 = vrot.slane %v3902_v45, %v13812_v19  ;;  %v3948_v34 = vrot.slane %v3934_v9, %v13812_v19  ;;  %v4070_v35 = vcombine.high %v15119_v24, %v15125_v6  ;;  %1494 = vrot.lane.b32.xlu1 %v17317_v29, %s12949_s10 }
 0x3ca   : > { %11354 = vmatmul.mubr.msk.f32.gmra.mrb[28].mxu0 %vm5589_vm1, %v4225_v13  ;;  %11379 = vmatmul.mubr.msk.f32.gmra.mrb[48].mxu1 %vm5589_vm1, %v4226_v42  ;;  %v3819_v48 = vcombine.low %v3780_v43, %v3812_v10  ;;  %v3820_v15 = vcombine.high %v3780_v43, %v3812_v10  ;;  %v4174_v56 = vcombine.high %v15142_v5, %v15145_v52  ;;  %v1420_v5 = vpop.permute.xlu1 %1419 }
 0x3cb   : > { %11391 = vmatprep.mubr.msk.f32.mxu0 %vm12942_vm0, %v17280_v59  ;;  %11416 = vmatprep.mubr.msk.f32.mxu1 %vm12942_vm0, %v17280_v59  ;;  %v3955_v16 = vcombine.low %v3916_v44, %v3948_v34  ;;  %v4206_v12 = vcombine.high %v15148_v57, %v15151_v33  ;;  %v3956_v60 = vcombine.high %v3916_v44, %v3948_v34 }
 0x3cc   : > { %11804 = vmatprep.subr.bf16.mxu1 %v17282_v47  ;;  %v4052_v24 = vrot.slane %v4038_v51, %v13812_v19  ;;  %v4084_v0 = vrot.slane %v4070_v35, %v13812_v19  ;;  %1453 = vrot.lane.b32.xlu0 %v14665_v31, %s12946_s19  ;;  %v4188_v6 = vrot.slane %v4174_v56, %v13812_v19 }
 0x3cd   : > { %1455 = vrot.lane.b32.xlu1 %v14745_v39, %s12946_s19  ;;  %v4220_v25 = vrot.slane %v4206_v12, %v13812_v19  ;;  %v1781_v57 = vcombine.low %v17317_v29, %v1420_v5  ;;  %v1782_v33 = vcombine.high %v17317_v29, %v1420_v5 }
 0x3ce   : > { %11392 = vmatmul.mubr.msk.f32.vlgmr.msra.gmra.mrb[30].mxu0 %vm5589_vm1, %v3683_v26  ;;  %11417 = vmatmul.mubr.msk.f32.vlgmr.msra.gmra.mrb[50].mxu1 %vm5589_vm1, %v3684_v54  ;;  %v4091_v61 = vcombine.low %v4052_v24, %v4084_v0  ;;  %v4092_v30 = vcombine.high %v4052_v24, %v4084_v0 }
 0x3cf   : > { %11394 = vmatprep.mubr.msk.f32.mxu0 %vm12942_vm0, %v17280_v59  ;;  %11419 = vmatprep.mubr.msk.f32.mxu1 %vm12942_vm0, %v17280_v59  ;;  %v4227_v32 = vcombine.low %v4188_v6, %v4220_v25  ;;  %v4228_v1 = vcombine.high %v4188_v6, %v4220_v25  ;;  %v1789_v55 = vrot.slane %v1781_v57, %v13806_v11 }
 0x3d0   : > { %1470 = vrot.lane.b32.xlu0 %v14745_v39, %s12947_s26  ;;  %v1796_v38 = vrot.slane %v1782_v33, %v13806_v11 }
 0x3d1   : > { %1468 = vrot.lane.b32.xlu1 %v14665_v31, %s12947_s26 }
 0x3d2   : > { %11395 = vmatmul.mubr.msk.f32.gmra.mrb[32].mxu0 %vm5589_vm1, %v3819_v48  ;;  %11420 = vmatmul.mubr.msk.f32.gmra.mrb[52].mxu1 %vm5589_vm1, %v3820_v15 }
 0x3d3   : > { %11397 = vmatprep.mubr.msk.f32.mxu0 %vm12942_vm0, %v17280_v59  ;;  %11422 = vmatprep.mubr.msk.f32.mxu1 %vm12942_vm0, %v17280_v59 }
 0x3d4   : > { %1485 = vrot.lane.b32.xlu0 %v14745_v39, %s12948_s15 }
 0x3d5   : > { %1483 = vrot.lane.b32.xlu1 %v14665_v31, %s12948_s15 }
 0x3d6   : > { %11398 = vmatmul.mubr.msk.f32.gmra.mrb[34].mxu0 %vm5589_vm1, %v3955_v16  ;;  %11423 = vmatmul.mubr.msk.f32.gmra.mrb[54].mxu1 %vm5589_vm1, %v3956_v60 }
 0x3d7   : > { %11400 = vmatprep.mubr.msk.f32.mxu0 %vm12942_vm0, %v17280_v59  ;;  %11425 = vmatprep.mubr.msk.f32.mxu1 %vm12942_vm0, %v17280_v59 }
 0x3d8   : > { %1500 = vrot.lane.b32.xlu0 %v14745_v39, %s12949_s10 }
 0x3d9   : > { %1498 = vrot.lane.b32.xlu1 %v14665_v31, %s12949_s10 }
 0x3da   : > { %11401 = vmatmul.mubr.msk.f32.gmra.mrb[36].mxu0 %vm5589_vm1, %v4091_v61  ;;  %11426 = vmatmul.mubr.msk.f32.gmra.mrb[56].mxu1 %vm5589_vm1, %v4092_v30 }
 0x3db   : > { %11403 = vmatprep.mubr.msk.f32.mxu0 %vm12942_vm0, %v17280_v59  ;;  %11428 = vmatprep.mubr.msk.f32.mxu1 %vm12942_vm0, %v17280_v59 }
 0x3dc   : > { %1457 = vrot.lane.b32.xlu0 %v14898_v53, %s12946_s19 }
 0x3dd   : > { %1472 = vrot.lane.b32.xlu1 %v14898_v53, %s12947_s26 }
 0x3de   : > { %11404 = vmatmul.mubr.msk.f32.gmra.mrb[38].mxu0 %vm5589_vm1, %v4227_v32  ;;  %11429 = vmatmul.mubr.msk.f32.gmra.mrb[58].mxu1 %vm5589_vm1, %v4228_v1 }
 0x3df   : > { %11441 = vmatprep.mubr.msk.f32.mxu0 %vm12942_vm0, %v17280_v59  ;;  %11466 = vmatprep.mubr.msk.f32.mxu1 %vm12942_vm0, %v17280_v59 }
 0x3f6   : > { %v1407_v52 = vpop.permute.xlu0 %1406  ;;  %v1422_v49 = vpop.permute.xlu1 %1421 }
 0x3f7   : > { %v2189_v50 = vcombine.low %v17348_v14, %v1422_v49  ;;  %v2190_v41 = vcombine.high %v17348_v14, %v1422_v49 }
 0x3f9   : > { %v2197_v17 = vrot.slane %v2189_v50, %v13806_v11  ;;  %v2204_v29 = vrot.slane %v2190_v41, %v13806_v11 }
 0x3fa   : > { %v1437_v18 = vpop.permute.xlu1 %1436 }
 0x3fb   : > { %v1435_v37 = vpop.permute.xlu0 %1434  ;;  %v2205_v46 = vcombine.low %v1407_v52, %v1437_v18  ;;  %v2206_v20 = vcombine.high %v1407_v52, %v1437_v18 }
 0x3fc   : > { %v1797_v63 = vcombine.low %v1405_v3, %v1435_v37  ;;  %v1798_v58 = vcombine.high %v1405_v3, %v1435_v37 }
 0x3fd   : > { %v2213_v13 = vrot.slane %v2205_v46, %v13806_v11  ;;  %v2220_v42 = vrot.slane %v2206_v20, %v13806_v11 }
 0x3fe   : > { %v1805_v28 = vrot.slane %v1797_v63, %v13806_v11  ;;  %v1812_v36 = vrot.slane %v1798_v58, %v13806_v11 }
 0x3ff   : > { %v2253_v2 = vcombine.low %v2197_v17, %v2213_v13  ;;  %v2254_v4 = vcombine.high %v2197_v17, %v2213_v13  ;;  %v2269_v26 = vcombine.low %v2204_v29, %v2220_v42  ;;  %v2270_v45 = vcombine.high %v2204_v29, %v2220_v42 }
 0x400   : > { %v1409_v23 = vpop.permute.xlu0 %1408  ;;  %v1845_v14 = vcombine.low %v1789_v55, %v1805_v28  ;;  %v1846_v21 = vcombine.high %v1789_v55, %v1805_v28  ;;  %v1861_v40 = vcombine.low %v1796_v38, %v1812_v36  ;;  %v1862_v62 = vcombine.high %v1796_v38, %v1812_v36 }
 0x401   : > { %v2261_v51 = vrot.slane %v2253_v2, %v13812_v19  ;;  %v2268_v48 = vrot.slane %v2254_v4, %v13812_v19  ;;  %v2277_v15 = vrot.slane %v2269_v26, %v13812_v19  ;;  %v2284_v35 = vrot.slane %v2270_v45, %v13812_v19 }
 0x402   : > { %v1853_v8 = vrot.slane %v1845_v14, %v13812_v19  ;;  %v1860_v7 = vrot.slane %v1846_v21, %v13812_v19  ;;  %v1869_v27 = vrot.slane %v1861_v40, %v13812_v19  ;;  %v1876_v22 = vrot.slane %v1862_v62, %v13812_v19 }
 0x403   : > { %v10611_v24 = vcombine.low %v2261_v51, %v2268_v48  ;;  %v10613_v0 = vcombine.high %v2261_v51, %v2268_v48  ;;  %v10615_v6 = vcombine.low %v2277_v15, %v2284_v35  ;;  %v10617_v61 = vcombine.high %v2277_v15, %v2284_v35 }
 0x404   : > { %v1411_v9 = vpop.permute.xlu1 %1410  ;;  %v10603_v43 = vcombine.low %v1853_v8, %v1860_v7  ;;  %v10605_v10 = vcombine.high %v1853_v8, %v1860_v7  ;;  %v10607_v44 = vcombine.low %v1869_v27, %v1876_v22  ;;  %v10609_v34 = vcombine.high %v1869_v27, %v1876_v22 }
 0x405   : > { %v1424_v54 = vpop.permute.xlu0 %1423  ;;  %v15322_v52 = vrot.slane %v10611_v24, %v13806_v11  ;;  %v15325_v57 = vrot.slane %v10613_v0, %v13806_v11  ;;  %v15328_v33 = vrot.slane %v10615_v6, %v13806_v11  ;;  %v15331_v49 = vrot.slane %v10617_v61, %v13806_v11 }
 0x406   : > { %v15306_v16 = vrot.slane %v10603_v43, %v13806_v11  ;;  %v15309_v56 = vrot.slane %v10605_v10, %v13806_v11  ;;  %v15312_v12 = vrot.slane %v10607_v44, %v13806_v11  ;;  %v15315_v60 = vrot.slane %v10609_v34, %v13806_v11 }
 0x407   : > { %v2597_v25 = vcombine.low %v14665_v31, %v1424_v54  ;;  %v2598_v32 = vcombine.high %v14665_v31, %v1424_v54  ;;  %v5109_v18 = vcombine.low %v15322_v52, %v15325_v57  ;;  %v5141_v17 = vcombine.low %v15328_v33, %v15331_v49 }
 0x408   : > { %v1426_v30 = vpop.permute.xlu1 %1425  ;;  %v4973_v63 = vcombine.low %v15306_v16, %v15309_v56  ;;  %v5005_v58 = vcombine.low %v15312_v12, %v15315_v60 }
 0x409   : > { %v3005_v1 = vcombine.low %v14745_v39, %v1426_v30  ;;  %v3006_v3 = vcombine.high %v14745_v39, %v1426_v30  ;;  %v1439_v5 = vpop.permute.xlu0 %1438  ;;  %v2605_v50 = vrot.slane %v2597_v25, %v13806_v11  ;;  %v2612_v31 = vrot.slane %v2598_v32, %v13806_v11 }
 0x40a   : > { %v2613_v37 = vcombine.low %v1409_v23, %v1439_v5  ;;  %v2614_v55 = vcombine.high %v1409_v23, %v1439_v5  ;;  %v4981_v20 = vrot.slane %v4973_v63, %v13812_v19  ;;  %v5013_v23 = vrot.slane %v5005_v58, %v13812_v19 }
 0x40b   : > { %v3013_v41 = vrot.slane %v3005_v1, %v13806_v11  ;;  %v3020_v39 = vrot.slane %v3006_v3, %v13806_v11  ;;  %v5117_v40 = vrot.slane %v5109_v18, %v13812_v19  ;;  %v5149_v62 = vrot.slane %v5141_v17, %v13812_v19 }
 0x40c   : > { %v1441_v38 = vpop.permute.xlu1 %1440  ;;  %v2621_v29 = vrot.slane %v2613_v37, %v13806_v11  ;;  %v2628_v46 = vrot.slane %v2614_v55, %v13806_v11  ;;  %v5037_v37 = vcombine.low %v4981_v20, %v5013_v23 }
 0x40d   : > { %v3021_v28 = vcombine.low %v1411_v9, %v1441_v38  ;;  %v3022_v36 = vcombine.high %v1411_v9, %v1441_v38  ;;  %v5173_v55 = vcombine.low %v5117_v40, %v5149_v62  ;;  %v5038_v38 = vcombine.high %v4981_v20, %v5013_v23 }
 0x40e   : > { %v2661_v13 = vcombine.low %v2605_v50, %v2621_v29  ;;  %v2662_v42 = vcombine.high %v2605_v50, %v2621_v29  ;;  %v2677_v8 = vcombine.low %v2612_v31, %v2628_v46  ;;  %v2678_v7 = vcombine.high %v2612_v31, %v2628_v46 }
 0x40f   : > { %v3029_v14 = vrot.slane %v3021_v28, %v13806_v11  ;;  %v3036_v21 = vrot.slane %v3022_v36, %v13806_v11  ;;  %v5174_v63 = vcombine.high %v5117_v40, %v5149_v62  ;;  %v11799_v17 = vpack.c.bf16 %v5173_v55, %v5037_v37 }
 0x410   : > { %v2669_v26 = vrot.slane %v2661_v13, %v13812_v19  ;;  %v2676_v45 = vrot.slane %v2662_v42, %v13812_v19  ;;  %v2685_v9 = vrot.slane %v2677_v8, %v13812_v19  ;;  %v2692_v54 = vrot.slane %v2678_v7, %v13812_v19 }
 0x411   : > { %v3069_v27 = vcombine.low %v3013_v41, %v3029_v14  ;;  %v3070_v22 = vcombine.high %v3013_v41, %v3029_v14  ;;  %v3085_v2 = vcombine.low %v3020_v39, %v3036_v21  ;;  %v3086_v4 = vcombine.high %v3020_v39, %v3036_v21  ;;  %11800 = vmatpush3.bf16.msra.mxu0 %v11799_v17 }
 0x412   : > { %v10619_v51 = vcombine.low %v2669_v26, %v2676_v45  ;;  %v10621_v48 = vcombine.high %v2669_v26, %v2676_v45  ;;  %v10623_v15 = vcombine.low %v2685_v9, %v2692_v54  ;;  %v10625_v35 = vcombine.high %v2685_v9, %v2692_v54  ;;  %11801 = vmatprep.subr.bf16.mxu0 %v17282_v47 }
 0x413   : > { %v3077_v43 = vrot.slane %v3069_v27, %v13812_v19  ;;  %v3084_v10 = vrot.slane %v3070_v22, %v13812_v19  ;;  %v3093_v44 = vrot.slane %v3085_v2, %v13812_v19  ;;  %v3100_v34 = vrot.slane %v3086_v4, %v13812_v19 }
 0x414   : > { %v15362_v30 = vrot.slane %v10619_v51, %v13806_v11  ;;  %v15365_v25 = vrot.slane %v10621_v48, %v13806_v11  ;;  %v15368_v32 = vrot.slane %v10623_v15, %v13806_v11  ;;  %v15371_v1 = vrot.slane %v10625_v35, %v13806_v11  ;;  %v1413_v3 = vpop.permute.xlu0 %1412 }
 0x415   : > { %v10627_v24 = vcombine.low %v3077_v43, %v3084_v10  ;;  %v10629_v0 = vcombine.high %v3077_v43, %v3084_v10  ;;  %v10631_v6 = vcombine.low %v3093_v44, %v3100_v34  ;;  %v10633_v61 = vcombine.high %v3093_v44, %v3100_v34 }
 0x416   : > { %v5245_v36 = vcombine.low %v15362_v30, %v15365_v25  ;;  %v5277_v18 = vcombine.low %v15368_v32, %v15371_v1  ;;  %v11805_v29 = vpack.c.bf16 %v5174_v63, %v5038_v38  ;;  %v4974_v26 = vcombine.high %v15306_v16, %v15309_v56 }
 0x417   : > { %v1428_v5 = vpop.permute.xlu1 %1427  ;;  %v15374_v50 = vrot.slane %v10627_v24, %v13806_v11  ;;  %v15377_v31 = vrot.slane %v10629_v0, %v13806_v11  ;;  %v15380_v41 = vrot.slane %v10631_v6, %v13806_v11  ;;  %v15383_v39 = vrot.slane %v10633_v61, %v13806_v11 }
 0x418   : > { %v3413_v58 = vcombine.low %v14898_v53, %v1428_v5  ;;  %v3414_v28 = vcombine.high %v14898_v53, %v1428_v5  ;;  %v1443_v20 = vpop.permute.xlu0 %1442  ;;  %v5253_v40 = vrot.slane %v5245_v36, %v13812_v19  ;;  %v5285_v62 = vrot.slane %v5277_v18, %v13812_v19  ;;  %11806 = vmatpush3.bf16.msra.mxu1 %v11805_v29 }
 0x419   : > { %v5381_v46 = vcombine.low %v15374_v50, %v15377_v31  ;;  %v5413_v14 = vcombine.low %v15380_v41, %v15383_v39  ;;  %v3429_v13 = vcombine.low %v1413_v3, %v1443_v20  ;;  %v3430_v42 = vcombine.high %v1413_v3, %v1443_v20  ;;  %11807 = vmatprep.subr.bf16.mxu1 %v17282_v47 }
 0x41a   : > { %v3421_v23 = vrot.slane %v3413_v58, %v13806_v11  ;;  %v3428_v21 = vrot.slane %v3414_v28, %v13806_v11  ;;  %v5309_v7 = vcombine.low %v5253_v40, %v5285_v62  ;;  %v5310_v22 = vcombine.high %v5253_v40, %v5285_v62 }
 0x41b   : > { %v5389_v8 = vrot.slane %v5381_v46, %v13812_v19  ;;  %v5421_v27 = vrot.slane %v5413_v14, %v13812_v19  ;;  %v3437_v2 = vrot.slane %v3429_v13, %v13806_v11  ;;  %v3444_v4 = vrot.slane %v3430_v42, %v13806_v11 }
 0x41c   : > { %v5006_v45 = vcombine.high %v15312_v12, %v15315_v60  ;;  %v5110_v43 = vcombine.high %v15322_v52, %v15325_v57  ;;  %v5142_v10 = vcombine.high %v15328_v33, %v15331_v49  ;;  %v4988_v24 = vrot.slane %v4974_v26, %v13812_v19 }
 0x41d   : > { %v5445_v9 = vcombine.low %v5389_v8, %v5421_v27  ;;  %v5446_v54 = vcombine.high %v5389_v8, %v5421_v27  ;;  %v3477_v44 = vcombine.low %v3421_v23, %v3437_v2  ;;  %v3478_v34 = vcombine.high %v3421_v23, %v3437_v2 }
 0x41e   : > { %v3493_v51 = vcombine.low %v3428_v21, %v3444_v4  ;;  %v3494_v48 = vcombine.high %v3428_v21, %v3444_v4  ;;  %v5020_v16 = vrot.slane %v5006_v45, %v13812_v19  ;;  %v5124_v33 = vrot.slane %v5110_v43, %v13812_v19  ;;  %v15468_v43 = vld [vmem:[%s866_s27] ss:$0 sm:$0xff] }
 0x41f   : > { %v11802_v15 = vpack.c.bf16 %v5445_v9, %v5309_v7  ;;  %v11808_v35 = vpack.c.bf16 %v5446_v54, %v5310_v22  ;;  %v3485_v56 = vrot.slane %v3477_v44, %v13812_v19  ;;  %v3492_v12 = vrot.slane %v3478_v34, %v13812_v19 }
 0x420   : > { %v3501_v60 = vrot.slane %v3493_v51, %v13812_v19  ;;  %v3508_v52 = vrot.slane %v3494_v48, %v13812_v19  ;;  %v5039_v57 = vcombine.low %v4988_v24, %v5020_v16  ;;  %v5156_v49 = vrot.slane %v5142_v10, %v13812_v19  ;;  %v15455_v4 = vpop.permute.xlu0 %1449 }
 0x421   : > { %11803 = vmatpush3.bf16.msra.mxu0 %v11802_v15  ;;  %11809 = vmatpush3.bf16.msra.mxu1 %v11808_v35  ;;  %v10635_v0 = vcombine.low %v3485_v56, %v3492_v12  ;;  %v10637_v6 = vcombine.high %v3485_v56, %v3492_v12  ;;  %v5246_v37 = vcombine.high %v15362_v30, %v15365_v25 }
 0x422   : > { %v10639_v61 = vcombine.low %v3501_v60, %v3508_v52  ;;  %v10641_v3 = vcombine.high %v3501_v60, %v3508_v52  ;;  %11439 = vmatprep.subr.mxu0 %v17280_v59  ;;  %11464 = vmatprep.subr.mxu1 %v17280_v59  ;;  %v5175_v5 = vcombine.low %v5124_v33, %v5156_v49 }
 0x423   : > { %v5278_v55 = vcombine.high %v15368_v32, %v15371_v1  ;;  %v5382_v38 = vcombine.high %v15374_v50, %v15377_v31  ;;  %v5461_v63 = vrot.slane %v10635_v0, %v13806_v11  ;;  %v5477_v58 = vrot.slane %v10637_v6, %v13806_v11 }
 0x424   : > { %v5493_v28 = vrot.slane %v10639_v61, %v13806_v11  ;;  %v5509_v36 = vrot.slane %v10641_v3, %v13806_v11  ;;  %v15433_v18 = vpack.c.bf16 %v5175_v5, %v5039_v57  ;;  %v5260_v17 = vrot.slane %v5246_v37, %v13812_v19 }
 0x425   : > { %v5292_v30 = vrot.slane %v5278_v55, %v13812_v19  ;;  %v5396_v25 = vrot.slane %v5382_v38, %v13812_v19  ;;  %v5517_v32 = vcombine.low %v5461_v63, %v5477_v58  ;;  %v5414_v50 = vcombine.high %v15380_v41, %v15383_v39 }
 0x426   : > { %v5549_v1 = vcombine.low %v5493_v28, %v5509_v36  ;;  %v5518_v31 = vcombine.high %v5461_v63, %v5477_v58  ;;  %v5550_v46 = vcombine.high %v5493_v28, %v5509_v36  ;;  %v5040_v14 = vcombine.high %v4988_v24, %v5020_v16 }
 0x427   : > { %v5311_v29 = vcombine.low %v5260_v17, %v5292_v30  ;;  %v5176_v20 = vcombine.high %v5124_v33, %v5156_v49  ;;  %v5525_v23 = vrot.slane %v5517_v32, %v13812_v19  ;;  %v5428_v40 = vrot.slane %v5414_v50, %v13812_v19 }
 0x428   : > { %v5557_v21 = vrot.slane %v5549_v1, %v13812_v19  ;;  %v15444_v62 = vrot.slane %v5518_v31, %v13812_v19  ;;  %v15447_v13 = vrot.slane %v5550_v46, %v13812_v19  ;;  %v5312_v41 = vcombine.high %v5260_v17, %v5292_v30 }
 0x429   : > { %v15449_v42 = vpack.c.bf16 %v5176_v20, %v5040_v14  ;;  %v5447_v7 = vcombine.low %v5396_v25, %v5428_v40  ;;  %v5448_v27 = vcombine.high %v5396_v25, %v5428_v40  ;;  %v1452_v26 = vpop.permute.xlu1 %1451 }
 0x42a   : > { %v5581_v39 = vcombine.low %v5525_v23, %v5557_v21  ;;  %v5582_v8 = vcombine.high %v5525_v23, %v5557_v21  ;;  %v1467_v51 = vpop.permute.xlu0 %1466 }
 0x42b   : > { %17359 = vst [vmem:[#allocation50_spill] sm:$0xff] %v15449_v42  ;;  %v15457_v45 = vpack.c.bf16 %v5447_v7, %v5311_v29  ;;  %v15459_v9 = vpack.c.bf16 %v5448_v27, %v5312_v41 }
 0x42c   : > { %11440 = vmatpush3.msra.mxu0 %v5581_v39  ;;  %11465 = vmatpush3.msra.mxu1 %v5582_v8 }
 0x42d   : > { %17360 = vst [vmem:[#allocation56_spill] sm:$0xff] %v15459_v9  ;;  %11810 = vmatprep.subr.bf16.mxu0 %v17282_v47  ;;  %11816 = vmatprep.subr.bf16.mxu1 %v17282_v47  ;;  %v5686_v54 = vpop.f32.mrb[10].mxu1  ;;  %v1465_v48 = vpop.permute.xlu1 %1464 }
 0x42e   : > { %v6550_v10 = vmul.f32 0.25, %v5686_v54  ;;  %v11243_v44 = vpop.f32.mrb[11].mxu1  ;;  %v1482_v12 = vpop.permute.xlu0 %1481 }
 0x42f   : > { %v2221_v49 = vcombine.low %v1452_v26, %v1482_v12  ;;  %v2222_v5 = vcombine.high %v1452_v26, %v1482_v12 }
 0x430   : > { %v15471_v34 = vadd.f32 %v15468_v43, %v6550_v10 }
 0x431   : > { %v1480_v60 = vpop.permute.xlu1 %1479  ;;  %v2229_v28 = vrot.slane %v2221_v49, %v13806_v11  ;;  %v2236_v50 = vrot.slane %v2222_v5, %v13806_v11 }
 0x432   : > { %v5926_v15 = vpop.f32.mrb[10].mxu0  ;;  %v6638_v35 = vsel %vm6637_vm3, %v15471_v34, -inf  ;;  %v1813_v37 = vcombine.low %v15455_v4, %v1480_v60  ;;  %v1814_v39 = vcombine.high %v15455_v4, %v1480_v60 }
 0x433   : > { %v6560_v24 = vmul.f32 0.25, %v5926_v15  ;;  %v11293_v16 = vpop.f32.mrb[11].mxu0  ;;  %6639 = vmax.xlane.f32.xlu0 %v6638_v35 }
 0x434   : > { %v1821_v31 = vrot.slane %v1813_v37, %v13806_v11  ;;  %v1828_v4 = vrot.slane %v1814_v39, %v13806_v11 }
 0x435   : > { %v15476_v56 = vadd.f32 %v15468_v43, %v6560_v24 }
 0x437   : > { %v6668_v33 = vsel %vm6637_vm3, %v15476_v56, -inf  ;;  %v1497_v63 = vpop.permute.xlu0 %1496 }
 0x438   : > { %6669 = vmax.xlane.f32.xlu1 %v6668_v33  ;;  %v2237_v36 = vcombine.low %v1467_v51, %v1497_v63  ;;  %v2238_v17 = vcombine.high %v1467_v51, %v1497_v63 }
 0x43a   : > { %v5691_v52 = vpop.f32.mrb[12].mxu1  ;;  %v5931_v57 = vpop.f32.mrb[12].mxu0  ;;  %v2245_v20 = vrot.slane %v2237_v36, %v13806_v11  ;;  %v2252_v23 = vrot.slane %v2238_v17, %v13806_v11 }
 0x43b   : > { %v6551_v0 = vmul.f32 0.25, %v5691_v52  ;;  %v6561_v6 = vmul.f32 0.25, %v5931_v57  ;;  %v11246_v61 = vpop.f32.mrb[13].mxu1  ;;  %v11296_v3 = vpop.f32.mrb[13].mxu0 }
 0x43c   : > { %v1495_v58 = vpop.permute.xlu1 %1494  ;;  %v2285_v26 = vcombine.low %v2229_v28, %v2245_v20  ;;  %v2286_v54 = vcombine.high %v2229_v28, %v2245_v20  ;;  %v2301_v51 = vcombine.low %v2236_v50, %v2252_v23  ;;  %v2302_v35 = vcombine.high %v2236_v50, %v2252_v23 }
 0x43d   : > { %v15482_v55 = vadd.f32 %v15468_v43, %v6551_v0  ;;  %v15485_v38 = vadd.f32 %v15468_v43, %v6561_v6  ;;  %v1829_v30 = vcombine.low %v1465_v48, %v1495_v58  ;;  %v1830_v8 = vcombine.high %v1465_v48, %v1495_v58 }
 0x43e   : > { %v1454_v7 = vpop.permute.xlu0 %1453  ;;  %v2293_v48 = vrot.slane %v2285_v26, %v13812_v19  ;;  %v2300_v12 = vrot.slane %v2286_v54, %v13812_v19  ;;  %v15511_v33 = vrot.slane %v2301_v51, %v13812_v19  ;;  %v15516_v0 = vrot.slane %v2302_v35, %v13812_v19 }
 0x43f   : > { %v5696_v25 = vpop.f32.mrb[14].mxu1  ;;  %v6671_v32 = vsel %vm6637_vm3, %v15485_v38, -inf  ;;  %v6641_v1 = vsel %vm6637_vm3, %v15482_v55, -inf  ;;  %v5936_v46 = vpop.f32.mrb[14].mxu0  ;;  %v1837_v21 = vrot.slane %v1829_v30, %v13806_v11  ;;  %v1844_v60 = vrot.slane %v1830_v8, %v13806_v11 }
 0x440   : > { %v6552_v29 = vmul.f32 0.25, %v5696_v25  ;;  %v11249_v14 = vpop.f32.mrb[15].mxu1  ;;  %6672 = vmax.xlane.f32.xlu1 %v6671_v32  ;;  %6642 = vmax.xlane.f32.xlu0 %v6641_v1  ;;  %v6562_v40 = vmul.f32 0.25, %v5936_v46  ;;  %v11299_v41 = vpop.f32.mrb[15].mxu0  ;;  %v10612_v3 = vcombine.low %v2293_v48, %v2300_v12  ;;  %v10614_v5 = vcombine.high %v2293_v48, %v2300_v12 }
 0x441   : > { %v1456_v10 = vpop.permute.xlu1 %1455  ;;  %v1877_v24 = vcombine.low %v1821_v31, %v1837_v21  ;;  %v1878_v16 = vcombine.high %v1821_v31, %v1837_v21  ;;  %v1893_v37 = vcombine.low %v1828_v4, %v1844_v60  ;;  %v1894_v17 = vcombine.high %v1828_v4, %v1844_v60 }
 0x442   : > { %v15499_v27 = vadd.f32 %v15468_v43, %v6552_v29  ;;  %v15502_v44 = vadd.f32 %v15468_v43, %v6562_v40  ;;  %v1471_v52 = vpop.permute.xlu0 %1470  ;;  %v10616_v25 = vcombine.low %v15511_v33, %v15516_v0  ;;  %v10618_v32 = vcombine.high %v15511_v33, %v15516_v0 }
 0x443   : > { %v1885_v6 = vrot.slane %v1877_v24, %v13812_v19  ;;  %v1892_v61 = vrot.slane %v1878_v16, %v13812_v19  ;;  %v15525_v31 = vrot.slane %v10612_v3, %v13806_v11  ;;  %v15528_v29 = vrot.slane %v10614_v5, %v13806_v11 }
 0x444   : > { %v6644_v15 = vsel %vm6637_vm3, %v15499_v27, -inf  ;;  %v6674_v49 = vsel %vm6637_vm3, %v15502_v44, -inf  ;;  %v1901_v46 = vrot.slane %v1893_v37, %v13812_v19 }
 0x445   : > { %6645 = vmax.xlane.f32.xlu1 %v6644_v15  ;;  %v1469_v57 = vpop.permute.xlu1 %1468  ;;  %v10604_v1 = vcombine.low %v1885_v6, %v1892_v61  ;;  %v10606_v50 = vcombine.high %v1885_v6, %v1892_v61 }
 0x446   : > { %v1486_v63 = vpop.permute.xlu0 %1485 }
 0x447   : > { %v3037_v58 = vcombine.low %v1456_v10, %v1486_v63  ;;  %v3038_v28 = vcombine.high %v1456_v10, %v1486_v63 }
 0x449   : > { %6675 = vmax.xlane.f32.xlu1 %v6674_v49  ;;  %v1484_v36 = vpop.permute.xlu1 %1483  ;;  %v3045_v21 = vrot.slane %v3037_v58, %v13806_v11  ;;  %v3052_v40 = vrot.slane %v3038_v28, %v13806_v11  ;;  %v15549_v28 = vrot.slane %v10616_v25, %v13806_v11 }
 0x44a   : > { %v2629_v30 = vcombine.low %v1454_v7, %v1484_v36  ;;  %v2630_v14 = vcombine.high %v1454_v7, %v1484_v36  ;;  %v1501_v20 = vpop.permute.xlu0 %1500  ;;  %v1908_v7 = vrot.slane %v1894_v17, %v13812_v19  ;;  %v15552_v36 = vrot.slane %v10604_v1, %v13806_v11 }
 0x44b   : > { %v3053_v41 = vcombine.low %v1471_v52, %v1501_v20  ;;  %v3054_v39 = vcombine.high %v1471_v52, %v1501_v20 }
 0x44c   : > { %v2637_v51 = vrot.slane %v2629_v30, %v13806_v11  ;;  %v2644_v60 = vrot.slane %v2630_v14, %v13806_v11  ;;  %v10608_v17 = vcombine.low %v1901_v46, %v1908_v7  ;;  %v10610_v30 = vcombine.high %v1901_v46, %v1908_v7 }
 0x44d   : > { %v1499_v8 = vpop.permute.xlu1 %1498  ;;  %v3061_v4 = vrot.slane %v3053_v41, %v13806_v11  ;;  %v3068_v48 = vrot.slane %v3054_v39, %v13806_v11 }
 0x44e   : > { %v2645_v15 = vcombine.low %v1469_v57, %v1499_v8  ;;  %v2646_v35 = vcombine.high %v1469_v57, %v1499_v8 }
 0x44f   : > { %v5701_v23 = vpop.f32.mrb[16].mxu1  ;;  %v5941_v54 = vpop.f32.mrb[16].mxu0  ;;  %v3101_v57 = vcombine.low %v3045_v21, %v3061_v4  ;;  %v3102_v61 = vcombine.high %v3045_v21, %v3061_v4  ;;  %v3117_v3 = vcombine.low %v3052_v40, %v3068_v48  ;;  %v3118_v37 = vcombine.high %v3052_v40, %v3068_v48 }
 0x450   : > { %v6553_v26 = vmul.f32 0.25, %v5701_v23  ;;  %v11252_v10 = vpop.f32.mrb[17].mxu1  ;;  %v6563_v24 = vmul.f32 0.25, %v5941_v54  ;;  %v11302_v16 = vpop.f32.mrb[17].mxu0  ;;  %v2653_v52 = vrot.slane %v2645_v15, %v13806_v11  ;;  %v2660_v49 = vrot.slane %v2646_v35, %v13806_v11 }
 0x451   : > { %v4940_v23 = vrot.slane %v10606_v50, %v13806_v11  ;;  %v15558_v25 = vrot.slane %v3101_v57, %v13812_v19  ;;  %v15561_v1 = vrot.slane %v3102_v61, %v13812_v19  ;;  %v15566_v50 = vrot.slane %v3117_v3, %v13812_v19 }
 0x452   : > { %v15538_v12 = vadd.f32 %v15468_v43, %v6553_v26  ;;  %v15544_v6 = vadd.f32 %v15468_v43, %v6563_v24  ;;  %v2693_v63 = vcombine.low %v2637_v51, %v2653_v52  ;;  %v2694_v58 = vcombine.high %v2637_v51, %v2653_v52 }
 0x453   : > { %v2709_v40 = vcombine.low %v2644_v60, %v2660_v49  ;;  %v15569_v10 = vrot.slane %v3118_v37, %v13812_v19  ;;  %v2710_v51 = vcombine.high %v2644_v60, %v2660_v49  ;;  %v4956_v24 = vrot.slane %v10608_v17, %v13806_v11 }
 0x454   : > { %v6647_v5 = vsel %vm6637_vm3, %v15538_v12, -inf  ;;  %v2701_v21 = vrot.slane %v2693_v63, %v13812_v19  ;;  %v2708_v41 = vrot.slane %v2694_v58, %v13812_v19  ;;  %v6677_v46 = vsel %vm6637_vm3, %v15544_v6, -inf }
 0x455   : > { %6648 = vmax.xlane.f32.xlu1 %v6647_v5  ;;  %v4972_v16 = vrot.slane %v10610_v30, %v13806_v11  ;;  %v5108_v4 = vrot.slane %v10618_v32, %v13806_v11  ;;  %v2717_v48 = vrot.slane %v2709_v40, %v13812_v19  ;;  %v2724_v60 = vrot.slane %v2710_v51, %v13812_v19 }
 0x456   : > { %v10620_v52 = vcombine.low %v2701_v21, %v2708_v41  ;;  %v10628_v61 = vcombine.low %v15558_v25, %v15561_v1  ;;  %v10630_v3 = vcombine.high %v15558_v25, %v15561_v1  ;;  %v10632_v33 = vcombine.low %v15566_v50, %v15569_v10 }
 0x457   : > { %v10634_v0 = vcombine.high %v15566_v50, %v15569_v10  ;;  %v4989_v32 = vcombine.low %v15552_v36, %v4940_v23  ;;  %v10622_v63 = vcombine.high %v2701_v21, %v2708_v41  ;;  %v5021_v58 = vcombine.low %v4956_v24, %v4972_v16 }
 0x458   : > { %v5706_v14 = vpop.f32.mrb[18].mxu1  ;;  %v5946_v20 = vpop.f32.mrb[18].mxu0  ;;  %v5125_v17 = vcombine.low %v15525_v31, %v15528_v29  ;;  %v4990_v1 = vcombine.high %v15552_v36, %v4940_v23  ;;  %v5126_v50 = vcombine.high %v15525_v31, %v15528_v29  ;;  %v10626_v51 = vcombine.high %v2717_v48, %v2724_v60 }
 0x459   : > { %v6554_v39 = vmul.f32 0.25, %v5706_v14  ;;  %v6564_v8 = vmul.f32 0.25, %v5946_v20  ;;  %v11255_v26 = vpop.f32.mrb[19].mxu1  ;;  %v11305_v54 = vpop.f32.mrb[19].mxu0  ;;  %6678 = vmax.xlane.f32.xlu1 %v6677_v46  ;;  %v15601_v14 = vrot.slane %v10620_v52, %v13806_v11  ;;  %v10624_v20 = vcombine.low %v2717_v48, %v2724_v60 }
 0x45a   : > { %v15604_v40 = vrot.slane %v4989_v32, %v13812_v19  ;;  %v15611_v21 = vrot.slane %v5021_v58, %v13812_v19  ;;  %v15614_v41 = vrot.slane %v5125_v17, %v13812_v19  ;;  %v5022_v46 = vcombine.high %v4956_v24, %v4972_v16 }
 0x45b   : > { %v15572_v15 = vadd.f32 %v15468_v43, %v6554_v39  ;;  %v15575_v35 = vadd.f32 %v15468_v43, %v6564_v8  ;;  %v5157_v39 = vcombine.low %v15549_v28, %v5108_v4  ;;  %v5158_v52 = vcombine.high %v15549_v28, %v5108_v4 }
 0x45c   : > { %v5806_v7 = vpop.f32.mrb[20].mxu1  ;;  %17362 = vst [vmem:[#allocation55_spill] sm:$0xff] %v15604_v40  ;;  %17363 = vst [vmem:[#allocation58_spill] sm:$0xff] %v15611_v21  ;;  %v5004_v23 = vrot.slane %v4990_v1, %v13812_v19  ;;  %v5036_v31 = vrot.slane %v5022_v46, %v13812_v19  ;;  %v5140_v48 = vrot.slane %v5126_v50, %v13812_v19 }
 0x45d   : > { %v6555_v49 = vmul.f32 0.25, %v5806_v7  ;;  %v11268_v57 = vpop.f32.mrb[21].mxu1  ;;  %v6650_v5 = vsel %vm6637_vm3, %v15572_v15, -inf  ;;  %v6680_v37 = vsel %vm6637_vm3, %v15575_v35, -inf  ;;  %17364 = vst [vmem:[#allocation57_spill] sm:$0xff] %v15614_v41  ;;  %v15617_v25 = vrot.slane %v5157_v39, %v13812_v19 }
 0x45e   : > { %6651 = vmax.xlane.f32.xlu1 %v6650_v5  ;;  %v5042_v7 = vcombine.high %v15604_v40, %v15611_v21  ;;  %v15629_v57 = vrot.slane %v10622_v63, %v13806_v11  ;;  %v5172_v28 = vrot.slane %v5158_v52, %v13812_v19  ;;  %v5043_v5 = vcombine.low %v5004_v23, %v5036_v31 }
 0x45f   : > { %v15608_v8 = vadd.f32 %v15468_v43, %v6555_v49  ;;  %17365 = vst [vmem:[#allocation49_spill] sm:$0xff] %v15617_v25  ;;  %v5178_v36 = vcombine.high %v15614_v41, %v15617_v25  ;;  %v5044_v32 = vcombine.high %v5004_v23, %v5036_v31  ;;  %v15647_v63 = vrot.slane %v10628_v61, %v13806_v11 }
 0x460   : > { %v5811_v30 = vpop.f32.mrb[22].mxu1  ;;  %v15650_v58 = vrot.slane %v10624_v20, %v13806_v11  ;;  %v15653_v17 = vrot.slane %v10626_v51, %v13806_v11  ;;  %v5179_v39 = vcombine.low %v5140_v48, %v5172_v28  ;;  %v15663_v61 = vrot.slane %v10632_v33, %v13806_v11 }
 0x461   : > { %v6556_v26 = vmul.f32 0.25, %v5811_v30  ;;  %v11271_v54 = vpop.f32.mrb[23].mxu1  ;;  %v6653_v4 = vsel %vm6637_vm3, %v15608_v8, -inf  ;;  %v15641_v60 = vpack.c.bf16 %v5178_v36, %v5042_v7  ;;  %17367 = vst [vmem:[#allocation51_spill] sm:$0xff] %v15647_v63  ;;  %v15656_v30 = vrot.slane %v10630_v3, %v13806_v11 }
 0x462   : > { %6681 = vmax.xlane.f32.xlu1 %v6680_v37  ;;  %17368 = vst [vmem:[#allocation53_spill] sm:$0xff] %v15650_v58  ;;  %v5262_v54 = vcombine.high %v15601_v14, %v15629_v57  ;;  %17370 = vst [vmem:[#allocation60_spill] sm:$0xff] %v15663_v61  ;;  %v15666_v20 = vrot.slane %v10634_v0, %v13806_v11  ;;  %v15668_v3 = vpack.c.bf16 %v5179_v39, %v5043_v5 }
 0x463   : > { %v15623_v10 = vadd.f32 %v15468_v43, %v6556_v26  ;;  %17366 = vst [vmem:[#allocation52_spill] sm:$0xff] %v15641_v60  ;;  %17369 = vst [vmem:[#allocation59_spill] sm:$0xff] %v15656_v30  ;;  %v5180_v26 = vcombine.high %v5140_v48, %v5172_v28  ;;  %v5398_v33 = vcombine.high %v15647_v63, %v15656_v30 }
 0x464   : > { %v5816_v49 = vpop.f32.mrb[24].mxu1  ;;  %17371 = vst [vmem:[#allocation61_spill] sm:$0xff] %v15666_v20  ;;  %17372 = vst [vmem:[#allocation62_spill] sm:$0xff] %v15668_v3  ;;  %v5276_v52 = vrot.slane %v5262_v54, %v13812_v19  ;;  %v5430_v31 = vcombine.high %v15663_v61, %v15666_v20 }
 0x465   : > { %v6557_v29 = vmul.f32 0.25, %v5816_v49  ;;  %v11274_v24 = vpop.f32.mrb[25].mxu1  ;;  %v6656_v16 = vsel %vm6637_vm3, %v15623_v10, -inf  ;;  %v15670_v7 = vpack.c.bf16 %v5180_v26, %v5044_v32  ;;  %v5294_v49 = vcombine.high %v15650_v58, %v15653_v17 }
 0x466   : > { %6657 = vmax.xlane.f32.xlu0 %v6656_v16  ;;  %6654 = vmax.xlane.f32.xlu1 %v6653_v4  ;;  %v5412_v28 = vrot.slane %v5398_v33, %v13812_v19  ;;  %v5444_v4 = vrot.slane %v5430_v31, %v13812_v19 }
 0x467   : > { %v15644_v37 = vadd.f32 %v15468_v43, %v6557_v29  ;;  %17373 = vst [vmem:[#allocation63_spill] sm:$0xff] %v15670_v7  ;;  %v5308_v23 = vrot.slane %v5294_v49, %v13812_v19 }
 0x468   : > { %v5821_v1 = vpop.f32.mrb[26].mxu1  ;;  %v5451_v39 = vcombine.low %v5412_v28, %v5444_v4  ;;  %v5452_v26 = vcombine.high %v5412_v28, %v5444_v4 }
 0x469   : > { %v6659_v46 = vsel %vm6637_vm3, %v15644_v37, -inf  ;;  %v6558_v50 = vmul.f32 0.25, %v5821_v1  ;;  %v11277_v51 = vpop.f32.mrb[27].mxu1  ;;  %v5315_v48 = vcombine.low %v5276_v52, %v5308_v23  ;;  %v5316_v5 = vcombine.high %v5276_v52, %v5308_v23 }
 0x46a   : > { %6660 = vmax.xlane.f32.xlu0 %v6659_v46 }
 0x46b   : > { %v15676_v36 = vadd.f32 %v15468_v43, %v6558_v50  ;;  %v15692_v46 = vpack.c.bf16 %v5451_v39, %v5315_v48  ;;  %v15694_v50 = vpack.c.bf16 %v5452_v26, %v5316_v5 }
 0x46c   : > { %v5826_v0 = vpop.f32.mrb[28].mxu1 }
 0x46d   : > { %v6559_v29 = vmul.f32 0.25, %v5826_v0  ;;  %v11280_v24 = vpop.f32.mrb[29].mxu1  ;;  %v6662_v16 = vsel %vm6637_vm3, %v15676_v36, -inf  ;;  %17374 = vst [vmem:[#allocation64_spill] sm:$0xff] %v15692_v46  ;;  %17375 = vst [vmem:[#allocation65_spill] sm:$0xff] %v15694_v50 }
 0x46e   : > { %6663 = vmax.xlane.f32.xlu0 %v6662_v16 }
 0x46f   : > { %v15688_v32 = vadd.f32 %v15468_v43, %v6559_v29 }
 0x471   : > { %v6665_v54 = vsel %vm6637_vm3, %v15688_v32, -inf }
 0x472   : > { %v6046_v1 = vpop.f32.mrb[30].mxu1  ;;  %6666 = vmax.xlane.f32.xlu0 %v6665_v54 }
 0x473   : > { %v6565_v51 = vmul.f32 0.25, %v6046_v1  ;;  %v11318_v49 = vpop.f32.mrb[31].mxu1 }
 0x475   : > { %v15697_v33 = vadd.f32 %v15468_v43, %v6565_v51 }
 0x476   : > { %v6051_v52 = vpop.f32.mrb[32].mxu1 }
 0x477   : > { %v6566_v0 = vmul.f32 0.25, %v6051_v52  ;;  %v11321_v23 = vpop.f32.mrb[33].mxu1  ;;  %v6683_v31 = vsel %vm6637_vm3, %v15697_v33, -inf }
 0x478   : > { %6684 = vmax.xlane.f32.xlu0 %v6683_v31 }
 0x479   : > { %v15702_v29 = vadd.f32 %v15468_v43, %v6566_v0 }
 0x47a   : > { %v6056_v24 = vpop.f32.mrb[34].mxu1 }
 0x47b   : > { %v6567_v16 = vmul.f32 0.25, %v6056_v24  ;;  %v11324_v48 = vpop.f32.mrb[35].mxu1  ;;  %v6686_v28 = vsel %vm6637_vm3, %v15702_v29, -inf }
 0x47c   : > { %6687 = vmax.xlane.f32.xlu0 %v6686_v28 }
 0x47d   : > { %v15707_v4 = vadd.f32 %v15468_v43, %v6567_v16 }
 0x47e   : > { %v6061_v5 = vpop.f32.mrb[36].mxu1 }
 0x47f   : > { %v6568_v39 = vmul.f32 0.25, %v6061_v5  ;;  %v11327_v26 = vpop.f32.mrb[37].mxu1  ;;  %v6689_v54 = vsel %vm6637_vm3, %v15707_v4, -inf  ;;  %v6166_v51 = vpop.f32.mrb[20].mxu0 }
 0x480   : > { %6690 = vmax.xlane.f32.xlu0 %v6689_v54  ;;  %v6570_v52 = vmul.f32 0.25, %v6166_v51  ;;  %v11343_v0 = vpop.f32.mrb[21].mxu0 }
 0x481   : > { %v15712_v1 = vadd.f32 %v15468_v43, %v6568_v39 }
 0x482   : > { %v6066_v49 = vpop.f32.mrb[38].mxu1  ;;  %v15717_v16 = vadd.f32 %v15468_v43, %v6570_v52 }
 0x483   : > { %v6569_v23 = vmul.f32 0.25, %v6066_v49  ;;  %v11330_v31 = vpop.f32.mrb[39].mxu1  ;;  %v6692_v24 = vsel %vm6637_vm3, %v15712_v1, -inf }
 0x484   : > { %6693 = vmax.xlane.f32.xlu0 %v6692_v24  ;;  %v6698_v5 = vsel %vm6637_vm3, %v15717_v16, -inf }
 0x485   : > { %v15720_v48 = vadd.f32 %v15468_v43, %v6569_v23  ;;  %6699 = vmax.xlane.f32.xlu1 %v6698_v5 }
 0x486   : > { %v6286_v28 = vpop.f32.mrb[40].mxu1 }
 0x487   : > { %v6575_v39 = vmul.f32 0.25, %v6286_v28  ;;  %v11368_v26 = vpop.f32.mrb[41].mxu1  ;;  %v6695_v54 = vsel %vm6637_vm3, %v15720_v48, -inf }
 0x488   : > { %6696 = vmax.xlane.f32.xlu0 %v6695_v54 }
 0x489   : > { %v15727_v51 = vadd.f32 %v15468_v43, %v6575_v39 }
 0x48b   : > { %v6713_v49 = vsel %vm6637_vm3, %v15727_v51, -inf }
 0x48c   : > { %6714 = vmax.xlane.f32.xlu0 %v6713_v49 }
 0x490   : > { %v6171_v52 = vpop.f32.mrb[22].mxu0  ;;  %v6291_v0 = vpop.f32.mrb[42].mxu1 }
 0x491   : > { %v6571_v23 = vmul.f32 0.25, %v6171_v52  ;;  %v6576_v31 = vmul.f32 0.25, %v6291_v0  ;;  %v11346_v24 = vpop.f32.mrb[23].mxu0  ;;  %v11371_v2 = vpop.f32.mrb[43].mxu1 }
 0x493   : > { %v15732_v28 = vadd.f32 %v15468_v43, %v6571_v23  ;;  %v15735_v26 = vadd.f32 %v15468_v43, %v6576_v31 }
 0x494   : > { %v6176_v5 = vpop.f32.mrb[24].mxu0 }
 0x495   : > { %v6296_v54 = vpop.f32.mrb[44].mxu1  ;;  %v6572_v39 = vmul.f32 0.25, %v6176_v5  ;;  %v11349_v50 = vpop.f32.mrb[25].mxu0  ;;  %v6716_v49 = vsel %vm6637_vm3, %v15735_v26, -inf  ;;  %v6701_v52 = vsel %vm6637_vm3, %v15732_v28, -inf }
 0x496   : > { %v6577_v22 = vmul.f32 0.25, %v6296_v54  ;;  %v11374_v46 = vpop.f32.mrb[45].mxu1  ;;  %6717 = vmax.xlane.f32.xlu0 %v6716_v49  ;;  %6702 = vmax.xlane.f32.xlu1 %v6701_v52 }
 0x497   : > { %v15742_v2 = vadd.f32 %v15468_v43, %v6572_v39 }
 0x498   : > { %v15745_v0 = vadd.f32 %v15468_v43, %v6577_v22 }
 0x499   : > { %v6181_v23 = vpop.f32.mrb[26].mxu0  ;;  %v6301_v31 = vpop.f32.mrb[46].mxu1  ;;  %v6704_v7 = vsel %vm6637_vm3, %v15742_v2, -inf }
 0x49a   : > { %v6573_v24 = vmul.f32 0.25, %v6181_v23  ;;  %v6578_v5 = vmul.f32 0.25, %v6301_v31  ;;  %v11352_v50 = vpop.f32.mrb[27].mxu0  ;;  %v11377_v46 = vpop.f32.mrb[47].mxu1  ;;  %v6719_v54 = vsel %vm6637_vm3, %v15745_v0, -inf  ;;  %6705 = vmax.xlane.f32.xlu1 %v6704_v7 }
 0x49b   : > { %6720 = vmax.xlane.f32.xlu0 %v6719_v54 }
 0x49c   : > { %v15752_v39 = vadd.f32 %v15468_v43, %v6573_v24  ;;  %v15755_v22 = vadd.f32 %v15468_v43, %v6578_v5 }
 0x49d   : > { %v6186_v49 = vpop.f32.mrb[28].mxu0  ;;  %v6306_v52 = vpop.f32.mrb[48].mxu1 }
 0x49e   : > { %v6574_v23 = vmul.f32 0.25, %v6186_v49  ;;  %v6579_v31 = vmul.f32 0.25, %v6306_v52  ;;  %v6722_v50 = vsel %vm6637_vm3, %v15755_v22, -inf  ;;  %v6707_v46 = vsel %vm6637_vm3, %v15752_v39, -inf  ;;  %v11355_v3 = vpop.f32.mrb[29].mxu0  ;;  %v11380_v11 = vpop.f32.mrb[49].mxu1 }
 0x49f   : > { %6723 = vmax.xlane.f32.xlu0 %v6722_v50  ;;  %6708 = vmax.xlane.f32.xlu1 %v6707_v46 }
 0x4a0   : > { %v15762_v7 = vadd.f32 %v15468_v43, %v6574_v23  ;;  %v15765_v24 = vadd.f32 %v15468_v43, %v6579_v31 }
 0x4a1   : > { %v6406_v5 = vpop.f32.mrb[30].mxu0  ;;  %v6526_v54 = vpop.f32.mrb[50].mxu1 }
 0x4a2   : > { %v6580_v49 = vmul.f32 0.25, %v6406_v5  ;;  %v6585_v52 = vmul.f32 0.25, %v6526_v54  ;;  %v11393_v60 = vpop.f32.mrb[31].mxu0  ;;  %v11418_v9 = vpop.f32.mrb[51].mxu1  ;;  %v6725_v42 = vsel %vm6637_vm3, %v15765_v24, -inf  ;;  %v6710_v11 = vsel %vm6637_vm3, %v15762_v7, -inf }
 0x4a3   : > { %6726 = vmax.xlane.f32.xlu0 %v6725_v42  ;;  %6711 = vmax.xlane.f32.xlu1 %v6710_v11 }
 0x4a4   : > { %v15772_v3 = vadd.f32 %v15468_v43, %v6580_v49  ;;  %v15775_v23 = vadd.f32 %v15468_v43, %v6585_v52 }
 0x4a5   : > { %v6411_v31 = vpop.f32.mrb[32].mxu0  ;;  %v6531_v50 = vpop.f32.mrb[52].mxu1 }
 0x4a6   : > { %v6581_v46 = vmul.f32 0.25, %v6411_v31  ;;  %v6586_v5 = vmul.f32 0.25, %v6531_v50  ;;  %v11396_v60 = vpop.f32.mrb[33].mxu0  ;;  %v11421_v9 = vpop.f32.mrb[53].mxu1  ;;  %v6743_v54 = vsel %vm6637_vm3, %v15775_v23, -inf  ;;  %v6728_v19 = vsel %vm6637_vm3, %v15772_v3, -inf }
 0x4a7   : > { %6744 = vmax.xlane.f32.xlu0 %v6743_v54  ;;  %6729 = vmax.xlane.f32.xlu1 %v6728_v19 }
 0x4a8   : > { %v15782_v42 = vadd.f32 %v15468_v43, %v6581_v46  ;;  %v15785_v49 = vadd.f32 %v15468_v43, %v6586_v5 }
 0x4a9   : > { %v6416_v52 = vpop.f32.mrb[34].mxu0  ;;  %v6536_v11 = vpop.f32.mrb[54].mxu1 }
 0x4aa   : > { %v6582_v31 = vmul.f32 0.25, %v6416_v52  ;;  %v6587_v50 = vmul.f32 0.25, %v6536_v11  ;;  %v11399_v60 = vpop.f32.mrb[35].mxu0  ;;  %v11424_v9 = vpop.f32.mrb[55].mxu1  ;;  %v6746_v41 = vsel %vm6637_vm3, %v15785_v49, -inf  ;;  %v6731_v25 = vsel %vm6637_vm3, %v15782_v42, -inf }
 0x4ab   : > { %6747 = vmax.xlane.f32.xlu0 %v6746_v41  ;;  %6732 = vmax.xlane.f32.xlu1 %v6731_v25 }
 0x4ac   : > { %v15792_v19 = vadd.f32 %v15468_v43, %v6582_v31  ;;  %v15795_v46 = vadd.f32 %v15468_v43, %v6587_v50 }
 0x4ad   : > { %v6421_v5 = vpop.f32.mrb[36].mxu0  ;;  %v6541_v54 = vpop.f32.mrb[56].mxu1 }
 0x4ae   : > { %v6583_v52 = vmul.f32 0.25, %v6421_v5  ;;  %v6588_v11 = vmul.f32 0.25, %v6541_v54  ;;  %v11402_v60 = vpop.f32.mrb[37].mxu0  ;;  %v11427_v9 = vpop.f32.mrb[57].mxu1  ;;  %v6749_v40 = vsel %vm6637_vm3, %v15795_v46, -inf  ;;  %v6734_v21 = vsel %vm6637_vm3, %v15792_v19, -inf }
 0x4af   : > { %6750 = vmax.xlane.f32.xlu0 %v6749_v40  ;;  %6735 = vmax.xlane.f32.xlu1 %v6734_v21 }
 0x4b0   : > { %v15802_v41 = vadd.f32 %v15468_v43, %v6583_v52  ;;  %v15805_v25 = vadd.f32 %v15468_v43, %v6588_v11 }
 0x4b1   : > { %v6426_v31 = vpop.f32.mrb[38].mxu0  ;;  %v6546_v50 = vpop.f32.mrb[58].mxu1 }
 0x4b2   : > { %v6584_v5 = vmul.f32 0.25, %v6426_v31  ;;  %v6589_v54 = vmul.f32 0.25, %v6546_v50  ;;  %v11405_v60 = vpop.f32.mrb[39].mxu0  ;;  %v11430_v9 = vpop.f32.mrb[59].mxu1  ;;  %v6752_v61 = vsel %vm6637_vm3, %v15805_v25, -inf  ;;  %v6737_v20 = vsel %vm6637_vm3, %v15802_v41, -inf }
 0x4b3   : > { %6753 = vmax.xlane.f32.xlu0 %v6752_v61  ;;  %6738 = vmax.xlane.f32.xlu1 %v6737_v20  ;;  %v15821_v31 = vpop.permute.xlu0 %1457  ;;  %v15823_v60 = vpop.permute.xlu1 %1472 }
 0x4b4   : > { %v15812_v40 = vadd.f32 %v15468_v43, %v6584_v5  ;;  %v15815_v21 = vadd.f32 %v15468_v43, %v6589_v54  ;;  %17376 = vst [vmem:[#allocation54_spill] sm:$0xff] %v15821_v31  ;;  %17377 = vst [vmem:[#allocation47_spill] sm:$0xff] %v15823_v60 }
 0x4b6   : > { %v6755_v52 = vsel %vm6637_vm3, %v15815_v21, -inf  ;;  %v6740_v11 = vsel %vm6637_vm3, %v15812_v40, -inf }
 0x4b7   : > { %6756 = vmax.xlane.f32.xlu0 %v6755_v52  ;;  %6741 = vmax.xlane.f32.xlu1 %v6740_v11 }
 0x4c0   : > { %v6640_v50 = vpop.xlane.xlu0 %6639 }
 0x4c1   : > { %v6758_v61 = vsub.f32 %v15471_v34, %v6640_v50 }
 0x4c3   : > { %v6798_v20 = vmul.f32 1.442695, %v6758_v61 }
 0x4c5   : > { %12275 = vpow2.f32 %v6798_v20  ;;  %v6670_v5 = vpop.xlane.xlu1 %6669 }
 0x4c6   : > { %v6768_v43 = vsub.f32 %v15476_v56, %v6670_v5 }
 0x4c8   : > { %v6818_v54 = vmul.f32 1.442695, %v6768_v43 }
 0x4ca   : > { %12277 = vpow2.f32 %v6818_v54 }
 0x4cd   : > { %v6643_v9 = vpop.xlane.xlu0 %6642  ;;  %v6673_v63 = vpop.xlane.xlu1 %6672 }
 0x4ce   : > { %v6759_v30 = vsub.f32 %v15482_v55, %v6643_v9  ;;  %v6769_v52 = vsub.f32 %v15485_v38, %v6673_v63 }
 0x4cf   : > { %v15829_v58 = vpop.eup %12275 }
 0x4d0   : > { %v6800_v11 = vmul.f32 1.442695, %v6759_v30  ;;  %v6820_v31 = vmul.f32 1.442695, %v6769_v52  ;;  %v6878_v50 = vsel %vm6637_vm3, %v15829_v58, 0.0 }
 0x4d1   : > { %6879 = vadd.xlane.f32.xlu0 %v6878_v50 }
 0x4d2   : > { %12279 = vpow2.f32 %v6800_v11  ;;  %v6646_v60 = vpop.xlane.xlu1 %6645 }
 0x4d3   : > { %v6760_v34 = vsub.f32 %v15499_v27, %v6646_v60  ;;  %12281 = vpow2.f32 %v6820_v31 }
 0x4d4   : > { %v15834_v20 = vpop.eup %12277 }
 0x4d5   : > { %v6802_v56 = vmul.f32 1.442695, %v6760_v34  ;;  %v6908_v38 = vsel %vm6637_vm3, %v15834_v20, 0.0 }
 0x4d6   : > { %v6676_v61 = vpop.xlane.xlu1 %6675  ;;  %6909 = vadd.xlane.f32.xlu0 %v6908_v38 }
 0x4d7   : > { %12283 = vpow2.f32 %v6802_v56  ;;  %v6770_v55 = vsub.f32 %v15502_v44, %v6676_v61 }
 0x4d9   : > { %v6822_v63 = vmul.f32 1.442695, %v6770_v55 }
 0x4db   : > { %12285 = vpow2.f32 %v6822_v63 }
 0x4dc   : > { %v15839_v30 = vpop.eup %12279 }
 0x4dd   : > { %v6881_v27 = vsel %vm6637_vm3, %v15839_v30, 0.0  ;;  %v15843_v31 = vpop.eup %12281 }
 0x4de   : > { %6882 = vadd.xlane.f32.xlu0 %v6881_v27  ;;  %v6911_v44 = vsel %vm6637_vm3, %v15843_v31, 0.0 }
 0x4e1   : > { %v15845_v60 = vpop.eup %12283 }
 0x4e2   : > { %v6649_v5 = vpop.xlane.xlu1 %6648  ;;  %v6884_v54 = vsel %vm6637_vm3, %v15845_v60, 0.0  ;;  %6912 = vadd.xlane.f32.xlu0 %v6911_v44 }
 0x4e3   : > { %v6761_v43 = vsub.f32 %v15538_v12, %v6649_v5  ;;  %6885 = vadd.xlane.f32.xlu1 %v6884_v54 }
 0x4e5   : > { %v6804_v9 = vmul.f32 1.442695, %v6761_v43  ;;  %v15852_v52 = vpop.eup %12285 }
 0x4e6   : > { %17378 = vst [vmem:[#allocation46_spill] sm:$0xff] %v15852_v52  ;;  %v6679_v11 = vpop.xlane.xlu1 %6678  ;;  %v6914_v50 = vsel %vm6637_vm3, %v15852_v52, 0.0 }
 0x4e7   : > { %12287 = vpow2.f32 %v6804_v9  ;;  %v6771_v34 = vsub.f32 %v15544_v6, %v6679_v11  ;;  %6915 = vadd.xlane.f32.xlu0 %v6914_v50 }
 0x4e9   : > { %v6824_v56 = vmul.f32 1.442695, %v6771_v34 }
 0x4eb   : > { %v6652_v61 = vpop.xlane.xlu1 %6651  ;;  %12289 = vpow2.f32 %v6824_v56 }
 0x4ec   : > { %v6762_v12 = vsub.f32 %v15572_v15, %v6652_v61 }
 0x4ee   : > { %v6806_v55 = vmul.f32 1.442695, %v6762_v12 }
 0x4ef   : > { %v6682_v38 = vpop.xlane.xlu1 %6681 }
 0x4f0   : > { %12291 = vpow2.f32 %v6806_v55  ;;  %v6772_v63 = vsub.f32 %v15575_v35, %v6682_v38 }
 0x4f1   : > { %v15859_v27 = vpop.eup %12287 }
 0x4f2   : > { %v6826_v44 = vmul.f32 1.442695, %v6772_v63  ;;  %v6887_v6 = vsel %vm6637_vm3, %v15859_v27, 0.0 }
 0x4f3   : > { %v6658_v5 = vpop.xlane.xlu0 %6657  ;;  %v6655_v43 = vpop.xlane.xlu1 %6654  ;;  %6888 = vadd.xlane.f32.xlu0 %v6887_v6 }
 0x4f4   : > { %12293 = vpow2.f32 %v6826_v44  ;;  %v6763_v54 = vsub.f32 %v15608_v8, %v6655_v43 }
 0x4f5   : > { %v15864_v9 = vpop.eup %12289 }
 0x4f6   : > { %17379 = vst [vmem:[#allocation66_spill] sm:$0xff] %v15864_v9  ;;  %v6808_v11 = vmul.f32 1.442695, %v6763_v54  ;;  %v6917_v35 = vsel %vm6637_vm3, %v15864_v9, 0.0 }
 0x4f7   : > { %v6661_v15 = vpop.xlane.xlu0 %6660  ;;  %6918 = vadd.xlane.f32.xlu0 %v6917_v35 }
 0x4f8   : > { %v6765_v34 = vsub.f32 %v15644_v37, %v6661_v15  ;;  %12295 = vpow2.f32 %v6808_v11  ;;  %v6764_v11 = vsub.f32 %v15623_v10, %v6658_v5 }
 0x4fa   : > { %v6812_v50 = vmul.f32 1.442695, %v6765_v34  ;;  %v15869_v56 = vpop.eup %12291 }
 0x4fb   : > { %v6664_v61 = vpop.xlane.xlu0 %6663  ;;  %v6890_v8 = vsel %vm6637_vm3, %v15869_v56, 0.0 }
 0x4fc   : > { %12297 = vpow2.f32 %v6812_v50  ;;  %6891 = vadd.xlane.f32.xlu0 %v6890_v8  ;;  %v6810_v8 = vmul.f32 1.442695, %v6764_v11 }
 0x4fe   : > { %v15873_v12 = vpop.eup %12293 }
 0x4ff   : > { %17380 = vst [vmem:[#allocation48_spill] sm:$0xff] %v15873_v12  ;;  %v6667_v55 = vpop.xlane.xlu0 %6666  ;;  %v6920_v37 = vsel %vm6637_vm3, %v15873_v12, 0.0 }
 0x500   : > { %6921 = vadd.xlane.f32.xlu0 %v6920_v37 }
 0x502   : > { %v15877_v38 = vpop.eup %12295 }
 0x503   : > { %v6893_v63 = vsel %vm6637_vm3, %v15877_v38, 0.0 }
 0x504   : > { %6894 = vadd.xlane.f32.xlu1 %v6893_v63 }
 0x505   : > { %v6685_v43 = vpop.xlane.xlu0 %6684 }
 0x506   : > { %v15881_v44 = vpop.eup %12297 }
 0x507   : > { %17381 = vst [vmem:[#allocation67_spill] sm:$0xff] %v15881_v44  ;;  %v6899_v6 = vsel %vm6637_vm3, %v15881_v44, 0.0 }
 0x508   : > { %6900 = vadd.xlane.f32.xlu0 %v6899_v6  ;;  %v6766_v6 = vsub.f32 %v15676_v36, %v6664_v61 }
 0x509   : > { %v6688_v54 = vpop.xlane.xlu0 %6687 }
 0x50d   : > { %v6691_v15 = vpop.xlane.xlu0 %6690 }
 0x511   : > { %v15886_v34 = vpop.xlane.xlu0 %6693 }
 0x512   : > { %v6700_v35 = vpop.xlane.xlu1 %6699 }
 0x513   : > { %v6778_v50 = vsub.f32 %v15717_v16, %v6700_v35  ;;  %v6814_v35 = vmul.f32 1.442695, %v6766_v6 }
 0x515   : > { %v6838_v37 = vmul.f32 1.442695, %v6778_v50  ;;  %v15889_v12 = vpop.xlane.xlu0 %6696  ;;  %v6767_v50 = vsub.f32 %v15688_v32, %v6667_v55 }
 0x517   : > { %12299 = vpow2.f32 %v6838_v37  ;;  %v6816_v61 = vmul.f32 1.442695, %v6767_v50 }
 0x518   : > { %12301 = vpow2.f32 %v6810_v8 }
 0x519   : > { %v6715_v63 = vpop.xlane.xlu0 %6714 }
 0x51a   : > { %v6783_v36 = vsub.f32 %v15727_v51, %v6715_v63 }
 0x51e   : > { %1502 = vrot.lane.b32.xlu0 %v14898_v53, %s12949_s10 }
 0x521   : > { %v15895_v5 = vpop.eup %12299 }
 0x522   : > { %17382 = vst [vmem:[#allocation68_spill] sm:$0xff] %v15895_v5  ;;  %v6938_v16 = vsel %vm6637_vm3, %v15895_v5, 0.0  ;;  %v15899_v11 = vpop.eup %12301  ;;  %v6848_v5 = vmul.f32 1.442695, %v6783_v36 }
 0x523   : > { %v6703_v44 = vpop.xlane.xlu1 %6702  ;;  %v6718_v8 = vpop.xlane.xlu0 %6717  ;;  %6939 = vadd.xlane.f32.xlu1 %v6938_v16  ;;  %v6774_v16 = vsub.f32 %v15702_v29, %v6688_v54 }
 0x524   : > { %v6779_v10 = vsub.f32 %v15732_v28, %v6703_v44  ;;  %v6896_v28 = vsel %vm6637_vm3, %v15899_v11, 0.0  ;;  %v6773_v44 = vsub.f32 %v15697_v33, %v6685_v43  ;;  %v6784_v6 = vsub.f32 %v15735_v26, %v6718_v8 }
 0x525   : > { %v6775_v33 = vsub.f32 %v15707_v4, %v6691_v15 }
 0x526   : > { %v6840_v9 = vmul.f32 1.442695, %v6779_v10  ;;  %v6828_v55 = vmul.f32 1.442695, %v6773_v44  ;;  %v6850_v51 = vmul.f32 1.442695, %v6784_v6  ;;  %v6777_v44 = vsub.f32 %v15720_v48, %v15889_v12 }
 0x527   : > { %v15902_v37 = vpop.xlane.xlu1 %6705  ;;  %6897 = vadd.xlane.f32.xlu1 %v6896_v28  ;;  %v6832_v54 = vmul.f32 1.442695, %v6775_v33 }
 0x528   : > { %12303 = vpow2.f32 %v6840_v9  ;;  %v6721_v32 = vpop.xlane.xlu0 %6720  ;;  %v6836_v48 = vmul.f32 1.442695, %v6777_v44 }
 0x529   : > { %12305 = vpow2.f32 %v6814_v35  ;;  %v6785_v9 = vsub.f32 %v15745_v0, %v6721_v32  ;;  %v6830_v35 = vmul.f32 1.442695, %v6774_v16  ;;  %v6776_v0 = vsub.f32 %v15712_v1, %v15886_v34 }
 0x52a   : > { %12307 = vpow2.f32 %v6816_v61 }
 0x52b   : > { %12309 = vpow2.f32 %v6848_v5  ;;  %v6852_v50 = vmul.f32 1.442695, %v6785_v9  ;;  %v6834_v61 = vmul.f32 1.442695, %v6776_v0 }
 0x52c   : > { %v6709_v10 = vpop.xlane.xlu1 %6708  ;;  %12311 = vpow2.f32 %v6828_v55 }
 0x52d   : > { %12313 = vpow2.f32 %v6850_v51  ;;  %v6781_v26 = vsub.f32 %v15752_v39, %v6709_v10  ;;  %v15935_v10 = vpop.xlane.xlu0 %6723 }
 0x52e   : > { %12315 = vpow2.f32 %v6830_v35 }
 0x52f   : > { %12317 = vpow2.f32 %v6852_v50  ;;  %v6844_v36 = vmul.f32 1.442695, %v6781_v26 }
 0x530   : > { %v6712_v52 = vpop.xlane.xlu1 %6711  ;;  %12319 = vpow2.f32 %v6832_v54 }
 0x531   : > { %v6782_v4 = vsub.f32 %v15762_v7, %v6712_v52  ;;  %12321 = vpow2.f32 %v6844_v36  ;;  %v15950_v33 = vpop.xlane.xlu0 %6726 }
 0x532   : > { %v15911_v63 = vpop.eup %12303  ;;  %12323 = vpow2.f32 %v6834_v61 }
 0x533   : > { %v6941_v8 = vsel %vm6637_vm3, %v15911_v63, 0.0  ;;  %v15917_v29 = vpop.eup %12305  ;;  %v6846_v1 = vmul.f32 1.442695, %v6782_v4 }
 0x534   : > { %v6730_v43 = vpop.xlane.xlu1 %6729  ;;  %6942 = vadd.xlane.f32.xlu1 %v6941_v8  ;;  %v6902_v15 = vsel %vm6637_vm3, %v15917_v29, 0.0  ;;  %v15924_v39 = vpop.eup %12307 }
 0x535   : > { %v15926_v28 = vpop.eup %12309  ;;  %v6788_v34 = vsub.f32 %v15772_v3, %v6730_v43  ;;  %v6905_v7 = vsel %vm6637_vm3, %v15924_v39, 0.0  ;;  %12325 = vpow2.f32 %v6846_v1 }
 0x536   : > { %v15933_v52 = vpop.eup %12311  ;;  %v6953_v32 = vsel %vm6637_vm3, %v15926_v28, 0.0  ;;  %12327 = vpow2.f32 %v6836_v48 }
 0x537   : > { %v15939_v55 = vpop.eup %12313  ;;  %v6858_v12 = vmul.f32 1.442695, %v6788_v34  ;;  %v6923_v16 = vsel %vm6637_vm3, %v15933_v52, 0.0 }
 0x538   : > { %v6733_v5 = vpop.xlane.xlu1 %6732  ;;  %6903 = vadd.xlane.f32.xlu1 %v6902_v15  ;;  %v15944_v51 = vpop.eup %12315  ;;  %v6956_v9 = vsel %vm6637_vm3, %v15939_v55, 0.0 }
 0x539   : > { %v6789_v3 = vsub.f32 %v15782_v42, %v6733_v5  ;;  %v15948_v35 = vpop.eup %12317  ;;  %12329 = vpow2.f32 %v6858_v12  ;;  %v6926_v26 = vsel %vm6637_vm3, %v15944_v51, 0.0  ;;  %v15966_v15 = vpop.xlane.xlu0 %6744 }
 0x53a   : > { %v15955_v8 = vpop.eup %12319  ;;  %v6959_v54 = vsel %vm6637_vm3, %v15948_v35, 0.0 }
 0x53b   : > { %v6860_v50 = vmul.f32 1.442695, %v6789_v3  ;;  %v15959_v0 = vpop.eup %12321  ;;  %v6929_v4 = vsel %vm6637_vm3, %v15955_v8, 0.0 }
 0x53c   : > { %v6736_v6 = vpop.xlane.xlu1 %6735  ;;  %6906 = vadd.xlane.f32.xlu1 %v6905_v7  ;;  %v6947_v44 = vsel %vm6637_vm3, %v15959_v0, 0.0 }
 0x53d   : > { %6954 = vadd.xlane.f32.xlu0 %v6953_v32  ;;  %v6790_v42 = vsub.f32 %v15792_v19, %v6736_v6  ;;  %12331 = vpow2.f32 %v6860_v50  ;;  %v15964_v19 = vpop.eup %12323  ;;  %v15981_v12 = vpop.xlane.xlu0 %6747 }
 0x53f   : > { %v6862_v5 = vmul.f32 1.442695, %v6790_v42  ;;  %v15970_v1 = vpop.eup %12325 }
 0x540   : > { %6924 = vadd.xlane.f32.xlu1 %v6923_v16  ;;  %v6739_v43 = vpop.xlane.xlu1 %6738  ;;  %v15975_v6 = vpop.eup %12327  ;;  %v6950_v32 = vsel %vm6637_vm3, %v15970_v1, 0.0 }
 0x541   : > { %6957 = vadd.xlane.f32.xlu0 %v6956_v9  ;;  %v6791_v36 = vsub.f32 %v15802_v41, %v6739_v43  ;;  %12333 = vpow2.f32 %v6862_v5  ;;  %v6932_v41 = vsel %vm6637_vm3, %v15964_v19, 0.0  ;;  %v6935_v16 = vsel %vm6637_vm3, %v15975_v6, 0.0  ;;  %v15989_v43 = vpop.xlane.xlu0 %6750 }
 0x543   : > { %v6864_v34 = vmul.f32 1.442695, %v6791_v36  ;;  %v15979_v48 = vpop.eup %12329 }
 0x544   : > { %6927 = vadd.xlane.f32.xlu1 %v6926_v26  ;;  %v6742_v61 = vpop.xlane.xlu1 %6741 }
 0x545   : > { %6960 = vadd.xlane.f32.xlu0 %v6959_v54  ;;  %v6792_v7 = vsub.f32 %v15812_v40, %v6742_v61  ;;  %12335 = vpow2.f32 %v6864_v34  ;;  %v6968_v40 = vsel %vm6637_vm3, %v15979_v48, 0.0  ;;  %v15999_v5 = vpop.xlane.xlu0 %6753 }
 0x547   : > { %v6866_v3 = vmul.f32 1.442695, %v6792_v7  ;;  %v15987_v9 = vpop.eup %12331 }
 0x548   : > { %6930 = vadd.xlane.f32.xlu1 %v6929_v4  ;;  %v6971_v50 = vsel %vm6637_vm3, %v15987_v9, 0.0 }
 0x549   : > { %6948 = vadd.xlane.f32.xlu0 %v6947_v44  ;;  %12337 = vpow2.f32 %v6866_v3  ;;  %v16005_v61 = vpop.xlane.xlu0 %6756  ;;  %v6780_v3 = vsub.f32 %v15742_v2, %v15902_v37 }
 0x54b   : > { %v15993_v42 = vpop.eup %12333 }
 0x54c   : > { %6933 = vadd.xlane.f32.xlu1 %v6932_v41  ;;  %v6974_v26 = vsel %vm6637_vm3, %v15993_v42, 0.0 }
 0x54d   : > { %6951 = vadd.xlane.f32.xlu0 %v6950_v32 }
 0x54f   : > { %v15997_v54 = vpop.eup %12335 }
 0x550   : > { %6936 = vadd.xlane.f32.xlu1 %v6935_v16  ;;  %v6977_v36 = vsel %vm6637_vm3, %v15997_v54, 0.0 }
 0x551   : > { %6969 = vadd.xlane.f32.xlu0 %v6968_v40  ;;  %v6842_v40 = vmul.f32 1.442695, %v6780_v3  ;;  %v6796_v3 = vsub.f32 %v15805_v25, %v15999_v5 }
 0x553   : > { %v16003_v4 = vpop.eup %12337 }
 0x554   : > { %v6980_v44 = vsel %vm6637_vm3, %v16003_v4, 0.0 }
 0x555   : > { %6972 = vadd.xlane.f32.xlu0 %v6971_v50  ;;  %v6786_v50 = vsub.f32 %v15755_v22, %v15935_v10 }
 0x557   : > { %v6854_v2 = vmul.f32 1.442695, %v6786_v50  ;;  %v6874_v50 = vmul.f32 1.442695, %v6796_v3  ;;  %v17392_v3 = vld [vmem:[#allocation57_spill] sm:$0xff] }
 0x559   : > { %6975 = vadd.xlane.f32.xlu0 %v6974_v26 }
 0x55d   : > { %6978 = vadd.xlane.f32.xlu0 %v6977_v36  ;;  %v17383_v36 = vcombine.low %v15444_v62, %v15447_v13 }
 0x55e   : > { %v6880_v34 = vpop.xlane.xlu0 %6879 }
 0x55f   : > { %12339 = vrcp.f32 %v6880_v34 }
 0x561   : > { %1487 = vrot.lane.b32.xlu1 %v14898_v53, %s12948_s15  ;;  %6981 = vadd.xlane.f32.xlu0 %v6980_v44 }
 0x563   : > { %v6910_v7 = vpop.xlane.xlu0 %6909 }
 0x569   : > { %v12340_v32 = vpop.eup %12339 }
 0x56a   : > { %v7038_v16 = vmul.f32 %v12340_v32, %v15829_v58  ;;  %v6787_v58 = vsub.f32 %v15765_v24, %v15950_v33 }
 0x56b   : > { %v6883_v41 = vpop.xlane.xlu0 %6882 }
 0x56c   : > { %12341 = vrcp.f32 %v6883_v41  ;;  %11442 = vmatmul.mubr.msk.f32.vlgmr.msra.gmra.mrb[40].mxu0 %vm6637_vm3, %v7038_v16  ;;  %v6856_v10 = vmul.f32 1.442695, %v6787_v58  ;;  %v6797_v16 = vsub.f32 %v15815_v21, %v16005_v61 }
 0x56d   : > { %11812 = vmatpush3.bf16.msra.mxu0 %v15433_v18  ;;  %11444 = vmatprep.mubr.msk.f32.mxu0 %vm12942_vm0, %v17280_v59  ;;  %v6793_v18 = vsub.f32 %v15775_v23, %v15966_v15  ;;  %v6794_v23 = vsub.f32 %v15785_v49, %v15981_v12  ;;  %v6795_v15 = vsub.f32 %v15795_v46, %v15989_v43 }
 0x56e   : > { %11813 = vmatprep.subr.bf16.mxu0 %v17282_v47  ;;  %v6876_v25 = vmul.f32 1.442695, %v6797_v16  ;;  %v17393_v16 = vld [vmem:[#allocation45_spill] sm:$0xff] }
 0x56f   : > { %v6913_v53 = vpop.xlane.xlu0 %6912  ;;  %v6868_v24 = vmul.f32 1.442695, %v6793_v18  ;;  %v6870_v41 = vmul.f32 1.442695, %v6794_v23  ;;  %v17388_v23 = vld [vmem:[#allocation60_spill] sm:$0xff] }
 0x570   : > { %v6886_v26 = vpop.xlane.xlu1 %6885 }
 0x571   : > { %12343 = vrcp.f32 %v6886_v26  ;;  %11815 = vmatpush3.bf16.msra.mxu0 %v15457_v45 }
 0x572   : > { %12345 = vpow2.f32 %v6842_v40  ;;  %11489 = vmatprep.subr.mxu0 %v17280_v59 }
 0x573   : > { %12347 = vpow2.f32 %v6854_v2 }
 0x574   : > { %v6916_v44 = vpop.xlane.xlu0 %6915  ;;  %12349 = vpow2.f32 %v6856_v10 }
 0x575   : > { %11490 = vmatpush3.msra.mxu0 %v17383_v36  ;;  %12351 = vpow2.f32 %v6868_v24  ;;  %v17385_v36 = vld [vmem:[#allocation59_spill] sm:$0xff]  ;;  %v17387_v24 = vld [vmem:[#allocation61_spill] sm:$0xff] }
 0x576   : > { %v12342_v22 = vpop.eup %12341  ;;  %11822 = vmatprep.subr.bf16.mxu0 %v17282_v47 }
 0x577   : > { %v7039_v37 = vmul.f32 %v12342_v22, %v15839_v30 }
 0x579   : > { %11445 = vmatmul.mubr.msk.f32.gmra.mrb[42].mxu0 %vm6637_vm3, %v7039_v37  ;;  %v17384_v37 = vld [vmem:[#allocation53_spill] sm:$0xff] }
 0x57a   : > { %11447 = vmatprep.mubr.msk.f32.mxu0 %vm12942_vm0, %v17280_v59  ;;  %v5293_v10 = vcombine.low %v17384_v37, %v15653_v17 }
 0x57b   : > { %v12344_v45 = vpop.eup %12343 }
 0x57c   : > { %v7040_v30 = vmul.f32 %v12344_v45, %v15845_v60  ;;  %v16038_v33 = vpop.eup %12345  ;;  %v6872_v60 = vmul.f32 1.442695, %v6795_v15 }
 0x57d   : > { %v6944_v32 = vsel %vm6637_vm3, %v16038_v33, 0.0  ;;  %v16047_v49 = vpop.eup %12347 }
 0x57e   : > { %11448 = vmatmul.mubr.msk.f32.gmra.mrb[44].mxu0 %vm6637_vm3, %v7040_v30  ;;  %v6962_v46 = vsel %vm6637_vm3, %v16047_v49, 0.0  ;;  %v16053_v43 = vpop.eup %12349  ;;  %v5429_v30 = vcombine.low %v17388_v23, %v17387_v24  ;;  %v17394_v24 = vld [vmem:[#allocation50_spill] sm:$0xff] }
 0x57f   : > { %11450 = vmatprep.mubr.msk.f32.mxu0 %vm12942_vm0, %v17280_v59  ;;  %v16057_v26 = vpop.eup %12351  ;;  %v6965_v2 = vsel %vm6637_vm3, %v16053_v43, 0.0 }
 0x580   : > { %v6889_v34 = vpop.xlane.xlu0 %6888  ;;  %v6983_v22 = vsel %vm6637_vm3, %v16057_v26, 0.0 }
 0x581   : > { %12353 = vrcp.f32 %v6889_v34 }
 0x582   : > { %12355 = vpow2.f32 %v6870_v41  ;;  %v17390_v41 = vld [vmem:[#allocation55_spill] sm:$0xff] }
 0x583   : > { %12357 = vpow2.f32 %v6872_v60  ;;  %v17391_v60 = vld [vmem:[#allocation49_spill] sm:$0xff] }
 0x584   : > { %v6919_v12 = vpop.xlane.xlu0 %6918 }
 0x585   : > { %6945 = vadd.xlane.f32.xlu1 %v6944_v32 }
 0x589   : > { %6963 = vadd.xlane.f32.xlu1 %v6962_v46  ;;  %v6892_v40 = vpop.xlane.xlu0 %6891  ;;  %v5177_v46 = vcombine.low %v17392_v3, %v17391_v60 }
 0x58a   : > { %12359 = vrcp.f32 %v6892_v40 }
 0x58b   : > { %v12354_v58 = vpop.eup %12353  ;;  %12361 = vrcp.f32 %v6910_v7  ;;  %v5261_v7 = vcombine.low %v15601_v14, %v15629_v57  ;;  %v17389_v57 = vld [vmem:[#allocation58_spill] sm:$0xff] }
 0x58c   : > { %v7041_v5 = vmul.f32 %v12354_v58, %v15859_v27  ;;  %12363 = vpow2.f32 %v6874_v50  ;;  %v16065_v21 = vpop.eup %12355  ;;  %v5041_v32 = vcombine.low %v17390_v41, %v17389_v57  ;;  %v16099_v50 = vrot.slane %v5429_v30, %v17393_v16  ;;  %v17399_v41 = vld [vmem:[#allocation48_spill] sm:$0xff] }
 0x58d   : > { %6966 = vadd.xlane.f32.xlu1 %v6965_v2  ;;  %12365 = vrcp.f32 %v6913_v53  ;;  %v16071_v27 = vpop.eup %12357  ;;  %v6986_v18 = vsel %vm6637_vm3, %v16065_v21, 0.0  ;;  %v17386_v53 = vld [vmem:[#allocation51_spill] sm:$0xff]  ;;  %v16087_v17 = vrot.slane %v5261_v7, %v17393_v16  ;;  %v17398_v57 = vcombine.high %v15444_v62, %v15447_v13 }
 0x58e   : > { %11451 = vmatmul.mubr.msk.f32.gmra.mrb[46].mxu0 %vm6637_vm3, %v7041_v5  ;;  %12367 = vpow2.f32 %v6876_v25  ;;  %v5397_v45 = vcombine.low %v17386_v53, %v17385_v36  ;;  %v6989_v40 = vsel %vm6637_vm3, %v16071_v27, 0.0  ;;  %v6922_v25 = vpop.xlane.xlu0 %6921 }
 0x58f   : > { %11453 = vmatprep.mubr.msk.f32.mxu0 %vm12942_vm0, %v17280_v59 }
 0x591   : > { %6984 = vadd.xlane.f32.xlu1 %v6983_v22  ;;  %v6895_v61 = vpop.xlane.xlu1 %6894  ;;  %v11823_v22 = vpack.c.bf16 %v5177_v46, %v5041_v32 }
 0x592   : > { %12369 = vrcp.f32 %v6895_v61 }
 0x593   : > { %12371 = vrcp.f32 %v6916_v44  ;;  %v16093_v44 = vrot.slane %v5293_v10, %v17393_v16 }
 0x594   : > { %v12360_v15 = vpop.eup %12359  ;;  %12373 = vrcp.f32 %v6919_v12 }
 0x595   : > { %6987 = vadd.xlane.f32.xlu1 %v6986_v18  ;;  %v7042_v34 = vmul.f32 %v12360_v15, %v15869_v56  ;;  %v12362_v14 = vpop.eup %12361  ;;  %v16096_v56 = vrot.slane %v5397_v45, %v17393_v16  ;;  %v5313_v18 = vcombine.low %v16087_v17, %v16093_v44  ;;  %12375 = vrcp.f32 %v6922_v25  ;;  %v17397_v15 = vld [vmem:[#allocation66_spill] sm:$0xff]  ;;  %v6901_v3 = vpop.xlane.xlu0 %6900 }
 0x596   : > { %v16101_v2 = vpop.eup %12363  ;;  %v7048_v58 = vmul.f32 %v12362_v14, %v15834_v20 }
 0x597   : > { %11454 = vmatmul.mubr.msk.f32.gmra.mrb[48].mxu0 %vm6637_vm3, %v7042_v34  ;;  %v12366_v5 = vpop.eup %12365  ;;  %v6992_v7 = vsel %vm6637_vm3, %v16101_v2, 0.0  ;;  %v5449_v12 = vcombine.low %v16096_v56, %v16099_v50 }
 0x598   : > { %11491 = vmatprep.mubr.msk.f32.mxu0 %vm12942_vm0, %v17280_v59  ;;  %v16106_v61 = vpop.eup %12367  ;;  %v7049_v10 = vmul.f32 %v12366_v5, %v15843_v31  ;;  %v17396_v31 = vld [vmem:[#allocation56_spill] sm:$0xff]  ;;  %v17400_v5 = vld [vmem:[#allocation67_spill] sm:$0xff] }
 0x599   : > { %6990 = vadd.xlane.f32.xlu1 %v6989_v40  ;;  %v6995_v53 = vsel %vm6637_vm3, %v16106_v61, 0.0  ;;  %v11826_v45 = vpack.c.bf16 %v5449_v12, %v5313_v18 }
 0x59b   : > { %11492 = vmatmul.mubr.msk.f32.vlgmr.msra.gmra.mrb[50].mxu0 %vm6637_vm3, %v7048_v58 }
 0x59c   : > { %v12370_v37 = vpop.eup %12369  ;;  %11824 = vmatpush3.bf16.msra.mxu0 %v11823_v22  ;;  %11494 = vmatprep.mubr.msk.f32.mxu0 %vm12942_vm0, %v17280_v59 }
 0x59d   : > { %6993 = vadd.xlane.f32.xlu1 %v6992_v7  ;;  %v7043_v20 = vmul.f32 %v12370_v37, %v15877_v38  ;;  %11825 = vmatprep.subr.bf16.mxu0 %v17282_v47  ;;  %v12372_v36 = vpop.eup %12371  ;;  %v17395_v38 = vld [vmem:[#allocation46_spill] sm:$0xff] }
 0x59e   : > { %v7050_v23 = vmul.f32 %v12372_v36, %v17395_v38  ;;  %v12374_v30 = vpop.eup %12373  ;;  %v5450_v38 = vcombine.high %v16096_v56, %v16099_v50 }
 0x59f   : > { %11467 = vmatmul.mubr.msk.f32.vlgmr.msra.gmra.mrb[60].mxu1 %vm6637_vm3, %v7043_v20  ;;  %11495 = vmatmul.mubr.msk.f32.gmra.mrb[52].mxu0 %vm6637_vm3, %v7049_v10  ;;  %v7051_v34 = vmul.f32 %v12374_v30, %v17397_v15  ;;  %v12376_v14 = vpop.eup %12375  ;;  %v17401_v30 = vld [vmem:[#allocation52_spill] sm:$0xff] }
 0x5a0   : > { %11818 = vmatpush3.bf16.msra.mxu1 %v17394_v24  ;;  %11827 = vmatpush3.bf16.msra.mxu0 %v11826_v45  ;;  %v7052_v32 = vmul.f32 %v12376_v14, %v17399_v41  ;;  %v5314_v24 = vcombine.high %v16087_v17, %v16093_v44  ;;  %v17402_v17 = vld [vmem:[#allocation47_spill] sm:$0xff] }
 0x5a1   : > { %6996 = vadd.xlane.f32.xlu1 %v6995_v53  ;;  %11819 = vmatprep.subr.bf16.mxu1 %v17282_v47 }
 0x5a2   : > { %11497 = vmatprep.mubr.msk.f32.mxu0 %vm12942_vm0, %v17280_v59  ;;  %11469 = vmatprep.mubr.msk.f32.mxu1 %vm12942_vm0, %v17280_v59  ;;  %v11832_v15 = vpack.c.bf16 %v5450_v38, %v5314_v24 }
 0x5a3   : > { %11498 = vmatmul.mubr.msk.f32.gmra.mrb[54].mxu0 %vm6637_vm3, %v7050_v23  ;;  %11539 = vmatprep.subr.mxu0 %v17280_v59  ;;  %v1503_v23 = vpop.permute.xlu0 %1502 }
 0x5a4   : > { %11821 = vmatpush3.bf16.msra.mxu1 %v17396_v31  ;;  %11500 = vmatprep.mubr.msk.f32.mxu0 %vm12942_vm0, %v17280_v59  ;;  %v3461_v44 = vcombine.low %v17402_v17, %v1503_v23  ;;  %v3462_v50 = vcombine.high %v17402_v17, %v1503_v23 }
 0x5a5   : > { %11514 = vmatprep.subr.mxu1 %v17280_v59 }
 0x5a7   : > { %11501 = vmatmul.mubr.msk.f32.gmra.mrb[56].mxu0 %vm6637_vm3, %v7051_v34 }
 0x5a8   : > { %11515 = vmatpush3.msra.mxu1 %v17398_v57  ;;  %11503 = vmatprep.mubr.msk.f32.mxu0 %vm12942_vm0, %v17280_v59 }
 0x5a9   : > { %11828 = vmatprep.subr.bf16.mxu1 %v17282_v47 }
 0x5ab   : > { %11504 = vmatmul.mubr.msk.f32.gmra.mrb[58].mxu0 %vm6637_vm3, %v7052_v32 }
 0x5ac   : > { %11541 = vmatprep.mubr.msk.f32.mxu0 %vm12942_vm0, %v17280_v59 }
 0x5b0   : > { %v16149_v60 = vpop.xlane.xlu1 %6939 }
 0x5b4   : > { %v6898_v46 = vpop.xlane.xlu1 %6897 }
 0x5b5   : > { %12377 = vrcp.f32 %v6898_v46 }
 0x5b6   : > { %12379 = vrcp.f32 %v6901_v3  ;;  %v17404_v3 = vld [vmem:[#allocation44_spill] sm:$0xff] }
 0x5b7   : > { %v3469_v46 = vrot.slane %v3461_v44, %v17404_v3 }
 0x5bf   : > { %v12378_v13 = vpop.eup %12377 }
 0x5c0   : > { %v7044_v40 = vmul.f32 %v12378_v13, %v15899_v11  ;;  %v12380_v58 = vpop.eup %12379 }
 0x5c1   : > { %v16151_v62 = vpop.xlane.xlu1 %6942  ;;  %v7045_v22 = vmul.f32 %v12380_v58, %v17400_v5 }
 0x5c2   : > { %11470 = vmatmul.mubr.msk.f32.gmra.mrb[62].mxu1 %vm6637_vm3, %v7044_v40  ;;  %v3476_v40 = vrot.slane %v3462_v50, %v17404_v3 }
 0x5c3   : > { %11472 = vmatprep.mubr.msk.f32.mxu1 %vm12942_vm0, %v17280_v59 }
 0x5c5   : > { %v6904_v25 = vpop.xlane.xlu1 %6903 }
 0x5c6   : > { %12381 = vrcp.f32 %v6904_v25  ;;  %11473 = vmatmul.mubr.msk.f32.gmra.mrb[64].mxu1 %vm6637_vm3, %v7045_v22 }
 0x5c7   : > { %11475 = vmatprep.mubr.msk.f32.mxu1 %vm12942_vm0, %v17280_v59 }
 0x5c9   : > { %v6907_v7 = vpop.xlane.xlu1 %6906 }
 0x5ca   : > { %12383 = vrcp.f32 %v6907_v7  ;;  %v6955_v34 = vpop.xlane.xlu0 %6954 }
 0x5cd   : > { %v6925_v18 = vpop.xlane.xlu1 %6924 }
 0x5ce   : > { %12385 = vrcp.f32 %v6925_v18 }
 0x5d0   : > { %v12382_v11 = vpop.eup %12381 }
 0x5d1   : > { %v6928_v12 = vpop.xlane.xlu1 %6927  ;;  %v7046_v37 = vmul.f32 %v12382_v11, %v15917_v29 }
 0x5d2   : > { %12387 = vrcp.f32 %v6928_v12 }
 0x5d3   : > { %11476 = vmatmul.mubr.msk.f32.gmra.mrb[66].mxu1 %vm6637_vm3, %v7046_v37 }
 0x5d4   : > { %v12384_v20 = vpop.eup %12383  ;;  %11478 = vmatprep.mubr.msk.f32.mxu1 %vm12942_vm0, %v17280_v59 }
 0x5d5   : > { %v6931_v10 = vpop.xlane.xlu1 %6930  ;;  %v7047_v36 = vmul.f32 %v12384_v20, %v15924_v39 }
 0x5d6   : > { %12389 = vrcp.f32 %v6931_v10 }
 0x5d7   : > { %11479 = vmatmul.mubr.msk.f32.gmra.mrb[68].mxu1 %vm6637_vm3, %v7047_v36 }
 0x5d8   : > { %v12386_v53 = vpop.eup %12385  ;;  %11516 = vmatprep.mubr.msk.f32.mxu1 %vm12942_vm0, %v17280_v59 }
 0x5d9   : > { %v7053_v45 = vmul.f32 %v12386_v53, %v15933_v52  ;;  %v6934_v29 = vpop.xlane.xlu1 %6933 }
 0x5da   : > { %12391 = vrcp.f32 %v6934_v29 }
 0x5db   : > { %11517 = vmatmul.mubr.msk.f32.vlgmr.msra.gmra.mrb[70].mxu1 %vm6637_vm3, %v7053_v45 }
 0x5dc   : > { %v12388_v39 = vpop.eup %12387  ;;  %11830 = vmatpush3.bf16.msra.mxu1 %v17401_v30  ;;  %11519 = vmatprep.mubr.msk.f32.mxu1 %vm12942_vm0, %v17280_v59 }
 0x5dd   : > { %v6937_v31 = vpop.xlane.xlu1 %6936  ;;  %11831 = vmatprep.subr.bf16.mxu1 %v17282_v47  ;;  %v7054_v52 = vmul.f32 %v12388_v39, %v15944_v51  ;;  %v17403_v51 = vld [vmem:[#allocation54_spill] sm:$0xff] }
 0x5de   : > { %12393 = vrcp.f32 %v6937_v31 }
 0x5df   : > { %11520 = vmatmul.mubr.msk.f32.gmra.mrb[72].mxu1 %vm6637_vm3, %v7054_v52  ;;  %12395 = vrcp.f32 %v16149_v60 }
 0x5e0   : > { %v12390_v56 = vpop.eup %12389  ;;  %11833 = vmatpush3.bf16.msra.mxu1 %v11832_v15  ;;  %11522 = vmatprep.mubr.msk.f32.mxu1 %vm12942_vm0, %v17280_v59  ;;  %12397 = vrcp.f32 %v6955_v34 }
 0x5e1   : > { %v1488_v14 = vpop.permute.xlu1 %1487  ;;  %v7055_v57 = vmul.f32 %v12390_v56, %v15955_v8  ;;  %11564 = vmatprep.subr.mxu1 %v17280_v59  ;;  %v6958_v8 = vpop.xlane.xlu0 %6957  ;;  %12399 = vrcp.f32 %v16151_v62 }
 0x5e2   : > { %v3445_v41 = vcombine.low %v17403_v51, %v1488_v14  ;;  %v3446_v32 = vcombine.high %v17403_v51, %v1488_v14  ;;  %12401 = vrcp.f32 %v6958_v8  ;;  %v17405_v14 = vld [vmem:[#allocation68_spill] sm:$0xff] }
 0x5e3   : > { %11523 = vmatmul.mubr.msk.f32.gmra.mrb[74].mxu1 %vm6637_vm3, %v7055_v57 }
 0x5e4   : > { %v12392_v13 = vpop.eup %12391  ;;  %v3453_v58 = vrot.slane %v3445_v41, %v17404_v3  ;;  %v3460_v25 = vrot.slane %v3446_v32, %v17404_v3  ;;  %11525 = vmatprep.mubr.msk.f32.mxu1 %vm12942_vm0, %v17280_v59 }
 0x5e5   : > { %v7056_v5 = vmul.f32 %v12392_v13, %v15964_v19  ;;  %v6961_v29 = vpop.xlane.xlu0 %6960  ;;  %v17407_v13 = vld [vmem:[#allocation63_spill] sm:$0xff] }
 0x5e6   : > { %v3509_v22 = vcombine.low %v3453_v58, %v3469_v46  ;;  %v3510_v7 = vcombine.high %v3453_v58, %v3469_v46  ;;  %v3525_v18 = vcombine.low %v3460_v25, %v3476_v40  ;;  %v3526_v11 = vcombine.high %v3460_v25, %v3476_v40  ;;  %v17406_v46 = vld [vmem:[#allocation62_spill] sm:$0xff] }
 0x5e7   : > { %11526 = vmatmul.mubr.msk.f32.gmra.mrb[76].mxu1 %vm6637_vm3, %v7056_v5  ;;  %12403 = vrcp.f32 %v6961_v29 }
 0x5e8   : > { %v12394_v60 = vpop.eup %12393  ;;  %v3517_v12 = vrot.slane %v3509_v22, %v17393_v16  ;;  %v3524_v37 = vrot.slane %v3510_v7, %v17393_v16  ;;  %v3533_v20 = vrot.slane %v3525_v18, %v17393_v16  ;;  %v3540_v10 = vrot.slane %v3526_v11, %v17393_v16  ;;  %11528 = vmatprep.mubr.msk.f32.mxu1 %vm12942_vm0, %v17280_v59 }
 0x5e9   : > { %v7057_v19 = vmul.f32 %v12394_v60, %v15975_v6  ;;  %v12396_v30 = vpop.eup %12395 }
 0x5ea   : > { %v10636_v36 = vcombine.low %v3517_v12, %v3524_v37  ;;  %v10638_v53 = vcombine.high %v3517_v12, %v3524_v37  ;;  %v10640_v62 = vcombine.low %v3533_v20, %v3540_v10  ;;  %v10642_v45 = vcombine.high %v3533_v20, %v3540_v10  ;;  %v12398_v52 = vpop.eup %12397 }
 0x5eb   : > { %11529 = vmatmul.mubr.msk.f32.gmra.mrb[78].mxu1 %vm6637_vm3, %v7057_v19  ;;  %v12400_v44 = vpop.eup %12399  ;;  %v7058_v57 = vmul.f32 %v12396_v30, %v17405_v14  ;;  %v7063_v51 = vmul.f32 %v12398_v52, %v15926_v28 }
 0x5ec   : > { %v5468_v24 = vrot.slane %v10636_v36, %v17404_v3  ;;  %v5484_v38 = vrot.slane %v10638_v53, %v17404_v3  ;;  %v5500_v23 = vrot.slane %v10640_v62, %v17404_v3  ;;  %v5516_v39 = vrot.slane %v10642_v45, %v17404_v3  ;;  %11566 = vmatprep.mubr.msk.f32.mxu1 %vm12942_vm0, %v17280_v59  ;;  %v12402_v50 = vpop.eup %12401 }
 0x5ed   : > { %v7059_v40 = vmul.f32 %v12400_v44, %v15911_v63  ;;  %v7064_v28 = vmul.f32 %v12402_v50, %v15939_v55  ;;  %v17408_v63 = vld [vmem:[#allocation64_spill] sm:$0xff]  ;;  %v17409_v55 = vld [vmem:[#allocation65_spill] sm:$0xff] }
 0x5ee   : > { %v5533_v6 = vcombine.low %v5468_v24, %v5484_v38  ;;  %v5565_v31 = vcombine.low %v5500_v23, %v5516_v39  ;;  %v5534_v41 = vcombine.high %v5468_v24, %v5484_v38  ;;  %v5566_v32 = vcombine.high %v5500_v23, %v5516_v39 }
 0x5f0   : > { %v5541_v15 = vrot.slane %v5533_v6, %v17393_v16  ;;  %v5573_v17 = vrot.slane %v5565_v31, %v17393_v16  ;;  %v5548_v25 = vrot.slane %v5534_v41, %v17393_v16  ;;  %v5580_v8 = vrot.slane %v5566_v32, %v17393_v16 }
 0x5f1   : > { %v12404_v58 = vpop.eup %12403 }
 0x5f2   : > { %v5585_v34 = vcombine.low %v5541_v15, %v5573_v17  ;;  %v5586_v56 = vcombine.high %v5541_v15, %v5573_v17  ;;  %v7065_v5 = vmul.f32 %v12404_v58, %v15948_v35  ;;  %v5587_v22 = vcombine.low %v5548_v25, %v5580_v8  ;;  %v6949_v35 = vpop.xlane.xlu0 %6948 }
 0x5f3   : > { %v5588_v7 = vcombine.high %v5548_v25, %v5580_v8 }
 0x5f4   : > { %11540 = vmatpush3.msra.mxu0 %v5585_v34  ;;  %11565 = vmatpush3.msra.mxu1 %v5586_v56 }
 0x5f5   : > { %11542 = vmatmul.mubr.msk.f32.vlgmr.msra.gmra.mrb[60].mxu0 %vm6637_vm3, %v7058_v57  ;;  %11567 = vmatmul.mubr.msk.f32.vlgmr.msra.gmra.mrb[80].mxu1 %vm6637_vm3, %v7063_v51 }
 0x5f6   : > { %11834 = vmatprep.subr.bf16.mxu0 %v17282_v47  ;;  %11840 = vmatprep.subr.bf16.mxu1 %v17282_v47  ;;  %v6952_v18 = vpop.xlane.xlu0 %6951 }
 0x5f7   : > { %11836 = vmatpush3.bf16.msra.mxu0 %v17406_v46  ;;  %11842 = vmatpush3.bf16.msra.mxu1 %v17407_v13 }
 0x5f8   : > { %11544 = vmatprep.mubr.msk.f32.mxu0 %vm12942_vm0, %v17280_v59  ;;  %11569 = vmatprep.mubr.msk.f32.mxu1 %vm12942_vm0, %v17280_v59 }
 0x5f9   : > { %11545 = vmatmul.mubr.msk.f32.gmra.mrb[62].mxu0 %vm6637_vm3, %v7059_v40  ;;  %11570 = vmatmul.mubr.msk.f32.gmra.mrb[82].mxu1 %vm6637_vm3, %v7064_v28 }
 0x5fa   : > { %11837 = vmatprep.subr.bf16.mxu0 %v17282_v47  ;;  %11843 = vmatprep.subr.bf16.mxu1 %v17282_v47  ;;  %v6970_v11 = vpop.xlane.xlu0 %6969 }
 0x5fb   : > { %11839 = vmatpush3.bf16.msra.mxu0 %v17408_v63  ;;  %11845 = vmatpush3.bf16.msra.mxu1 %v17409_v55 }
 0x5fc   : > { %11572 = vmatprep.mubr.msk.f32.mxu1 %vm12942_vm0, %v17280_v59  ;;  %11589 = vmatprep.subr.mxu0 %v17280_v59 }
 0x5fd   : > { %11573 = vmatmul.mubr.msk.f32.gmra.mrb[84].mxu1 %vm6637_vm3, %v7065_v5  ;;  %11614 = vmatprep.subr.mxu1 %v17280_v59 }
 0x5fe   : > { %11547 = vmatprep.mubr.msk.f32.mxu0 %vm12942_vm0, %v17280_v59  ;;  %11575 = vmatprep.mubr.msk.f32.mxu1 %vm12942_vm0, %v17280_v59  ;;  %v6973_v37 = vpop.xlane.xlu0 %6972 }
 0x5ff   : > { %11590 = vmatpush3.msra.mxu0 %v5587_v22  ;;  %11615 = vmatpush3.msra.mxu1 %v5588_v7 }
 0x600   : > { %11846 = vmatprep.subr.bf16.mxu0 %v17282_v47 }
 0x602   : > { %v6976_v19 = vpop.xlane.xlu0 %6975 }
 0x606   : > { %v6979_v39 = vpop.xlane.xlu0 %6978 }
 0x60a   : > { %v6982_v15 = vpop.xlane.xlu0 %6981 }
 0x612   : > { %v6946_v60 = vpop.xlane.xlu1 %6945 }
 0x613   : > { %12405 = vrcp.f32 %v6946_v60 }
 0x614   : > { %12407 = vrcp.f32 %v6949_v35 }
 0x616   : > { %v6964_v12 = vpop.xlane.xlu1 %6963 }
 0x617   : > { %12409 = vrcp.f32 %v6964_v12 }
 0x618   : > { %12411 = vrcp.f32 %v6952_v18 }
 0x61a   : > { %v6967_v20 = vpop.xlane.xlu1 %6966 }
 0x61b   : > { %12413 = vrcp.f32 %v6967_v20 }
 0x61c   : > { %12415 = vrcp.f32 %v6970_v11 }
 0x61d   : > { %v12406_v10 = vpop.eup %12405 }
 0x61e   : > { %v6985_v36 = vpop.xlane.xlu1 %6984  ;;  %v7060_v53 = vmul.f32 %v12406_v10, %v16038_v33  ;;  %v12408_v62 = vpop.eup %12407 }
 0x61f   : > { %12417 = vrcp.f32 %v6985_v36  ;;  %v7061_v24 = vmul.f32 %v12408_v62, %v15959_v0 }
 0x620   : > { %11548 = vmatmul.mubr.msk.f32.gmra.mrb[64].mxu0 %vm6637_vm3, %v7060_v53  ;;  %12419 = vrcp.f32 %v6973_v37 }
 0x621   : > { %v12410_v45 = vpop.eup %12409  ;;  %11550 = vmatprep.mubr.msk.f32.mxu0 %vm12942_vm0, %v17280_v59 }
 0x622   : > { %v6988_v29 = vpop.xlane.xlu1 %6987  ;;  %v7066_v38 = vmul.f32 %v12410_v45, %v16047_v49  ;;  %v12412_v23 = vpop.eup %12411 }
 0x623   : > { %12421 = vrcp.f32 %v6988_v29  ;;  %v7062_v0 = vmul.f32 %v12412_v23, %v15970_v1 }
 0x624   : > { %11551 = vmatmul.mubr.msk.f32.gmra.mrb[66].mxu0 %vm6637_vm3, %v7061_v24  ;;  %11576 = vmatmul.mubr.msk.f32.gmra.mrb[86].mxu1 %vm6637_vm3, %v7066_v38  ;;  %12423 = vrcp.f32 %v6976_v19 }
 0x625   : > { %v12414_v33 = vpop.eup %12413  ;;  %11553 = vmatprep.mubr.msk.f32.mxu0 %vm12942_vm0, %v17280_v59  ;;  %11578 = vmatprep.mubr.msk.f32.mxu1 %vm12942_vm0, %v17280_v59 }
 0x626   : > { %v6991_v30 = vpop.xlane.xlu1 %6990  ;;  %v7067_v49 = vmul.f32 %v12414_v33, %v16053_v43  ;;  %v12416_v6 = vpop.eup %12415 }
 0x627   : > { %12425 = vrcp.f32 %v6991_v30  ;;  %v7068_v52 = vmul.f32 %v12416_v6, %v15979_v48 }
 0x628   : > { %11554 = vmatmul.mubr.msk.f32.gmra.mrb[68].mxu0 %vm6637_vm3, %v7062_v0  ;;  %11579 = vmatmul.mubr.msk.f32.gmra.mrb[88].mxu1 %vm6637_vm3, %v7067_v49  ;;  %12427 = vrcp.f32 %v6979_v39 }
 0x629   : > { %v12418_v31 = vpop.eup %12417  ;;  %11591 = vmatprep.mubr.msk.f32.mxu0 %vm12942_vm0, %v17280_v59  ;;  %11616 = vmatprep.mubr.msk.f32.mxu1 %vm12942_vm0, %v17280_v59 }
 0x62a   : > { %v7073_v1 = vmul.f32 %v12418_v31, %v16057_v26  ;;  %v6994_v43 = vpop.xlane.xlu1 %6993  ;;  %v12420_v17 = vpop.eup %12419 }
 0x62b   : > { %12429 = vrcp.f32 %v6994_v43  ;;  %v7069_v48 = vmul.f32 %v12420_v17, %v15987_v9 }
 0x62c   : > { %11592 = vmatmul.mubr.msk.f32.vlgmr.msra.gmra.mrb[70].mxu0 %vm6637_vm3, %v7068_v52  ;;  %11617 = vmatmul.mubr.msk.f32.vlgmr.msra.gmra.mrb[90].mxu1 %vm6637_vm3, %v7073_v1  ;;  %12431 = vrcp.f32 %v6982_v15 }
 0x62d   : > { %v12422_v44 = vpop.eup %12421  ;;  %11594 = vmatprep.mubr.msk.f32.mxu0 %vm12942_vm0, %v17280_v59  ;;  %11619 = vmatprep.mubr.msk.f32.mxu1 %vm12942_vm0, %v17280_v59 }
 0x62e   : > { %v6997_v34 = vpop.xlane.xlu1 %6996  ;;  %v7074_v26 = vmul.f32 %v12422_v44, %v16065_v21  ;;  %v12424_v56 = vpop.eup %12423 }
 0x62f   : > { %12433 = vrcp.f32 %v6997_v34  ;;  %v7070_v14 = vmul.f32 %v12424_v56, %v15993_v42 }
 0x630   : > { %11595 = vmatmul.mubr.msk.f32.gmra.mrb[72].mxu0 %vm6637_vm3, %v7069_v48  ;;  %11620 = vmatmul.mubr.msk.f32.gmra.mrb[92].mxu1 %vm6637_vm3, %v7074_v26 }
 0x631   : > { %v12426_v50 = vpop.eup %12425  ;;  %11597 = vmatprep.mubr.msk.f32.mxu0 %vm12942_vm0, %v17280_v59  ;;  %11622 = vmatprep.mubr.msk.f32.mxu1 %vm12942_vm0, %v17280_v59 }
 0x632   : > { %v7075_v57 = vmul.f32 %v12426_v50, %v16071_v27  ;;  %v12428_v9 = vpop.eup %12427 }
 0x633   : > { %v7071_v51 = vmul.f32 %v12428_v9, %v15997_v54 }
 0x634   : > { %11598 = vmatmul.mubr.msk.f32.gmra.mrb[74].mxu0 %vm6637_vm3, %v7070_v14  ;;  %11623 = vmatmul.mubr.msk.f32.gmra.mrb[94].mxu1 %vm6637_vm3, %v7075_v57 }
 0x635   : > { %v12430_v21 = vpop.eup %12429  ;;  %11600 = vmatprep.mubr.msk.f32.mxu0 %vm12942_vm0, %v17280_v59  ;;  %11625 = vmatprep.mubr.msk.f32.mxu1 %vm12942_vm0, %v17280_v59 }
 0x636   : > { %v7076_v41 = vmul.f32 %v12430_v21, %v16101_v2  ;;  %v12432_v32 = vpop.eup %12431 }
 0x637   : > { %v7072_v27 = vmul.f32 %v12432_v32, %v16003_v4 }
 0x638   : > { %11601 = vmatmul.mubr.msk.f32.gmra.mrb[76].mxu0 %vm6637_vm3, %v7071_v51  ;;  %11626 = vmatmul.mubr.msk.f32.gmra.mrb[96].mxu1 %vm6637_vm3, %v7076_v41 }
 0x639   : > { %v12434_v42 = vpop.eup %12433  ;;  %11603 = vmatprep.mubr.msk.f32.mxu0 %vm12942_vm0, %v17280_v59  ;;  %11628 = vmatprep.mubr.msk.f32.mxu1 %vm12942_vm0, %v17280_v59 }
 0x63a   : > { %v7077_v46 = vmul.f32 %v12434_v42, %v16106_v61 }
 0x63c   : > { %11604 = vmatmul.mubr.msk.f32.gmra.mrb[78].mxu0 %vm6637_vm3, %v7072_v27  ;;  %11629 = vmatmul.mubr.msk.f32.gmra.mrb[98].mxu1 %vm6637_vm3, %v7077_v46 }
 0x63d   : > { %11663 = vmatprep.mubr.msk.f32.mxu0 %vm12942_vm0, %v17280_v59  ;;  %9797 = vmatprep.mubr.f32.mxu1 %v17280_v59 }
 0x63f   : > { %v7159_v54 = vpop.f32.mrb[40].mxu0 }
 0x640   : > { %v11443_v2 = vpop.f32.mrb[41].mxu0 }
 0x64c   : > { %v7164_v13 = vpop.f32.mrb[42].mxu0 }
 0x64d   : > { %v11446_v40 = vpop.f32.mrb[43].mxu0 }
 0x651   : > { %v7169_v28 = vpop.f32.mrb[44].mxu0 }
 0x652   : > { %v11449_v58 = vpop.f32.mrb[45].mxu0 }
 0x661   : > { %v7174_v25 = vpop.f32.mrb[46].mxu0 }
 0x662   : > { %v11452_v8 = vpop.f32.mrb[47].mxu0 }
 0x66a   : > { %v7179_v4 = vpop.f32.mrb[48].mxu0 }
 0x66b   : > { %v11455_v63 = vpop.f32.mrb[49].mxu0 }
 0x66e   : > { %v7369_v61 = vpop.f32.mrb[50].mxu0 }
 0x66f   : > { %v7918_v55 = vcombine.low %v7159_v54, %v7369_v61  ;;  %v7919_v5 = vcombine.high %v7159_v54, %v7369_v61  ;;  %v11493_v22 = vpop.f32.mrb[51].mxu0 }
 0x671   : > { %v7926_v44 = vrot.slane %v7918_v55, %v17404_v3  ;;  %v7933_v34 = vrot.slane %v7919_v5, %v17404_v3 }
 0x672   : > { %v7264_v7 = vpop.f32.mrb[60].mxu1  ;;  %v7374_v35 = vpop.f32.mrb[52].mxu0 }
 0x673   : > { %v11468_v18 = vpop.f32.mrb[61].mxu1  ;;  %v8054_v11 = vcombine.low %v7164_v13, %v7374_v35  ;;  %v8055_v60 = vcombine.high %v7164_v13, %v7374_v35  ;;  %v11496_v12 = vpop.f32.mrb[53].mxu0 }
 0x675   : > { %v8062_v56 = vrot.slane %v8054_v11, %v17404_v3  ;;  %v8069_v50 = vrot.slane %v8055_v60, %v17404_v3 }
 0x676   : > { %v7379_v37 = vpop.f32.mrb[54].mxu0 }
 0x677   : > { %v8190_v20 = vcombine.low %v7169_v28, %v7379_v37  ;;  %v8191_v10 = vcombine.high %v7169_v28, %v7379_v37  ;;  %v11499_v19 = vpop.f32.mrb[55].mxu0 }
 0x679   : > { %v16321_v14 = vrot.slane %v8190_v20, %v17404_v3  ;;  %v16324_v57 = vrot.slane %v8191_v10, %v17404_v3 }
 0x67a   : > { %v7384_v36 = vpop.f32.mrb[56].mxu0 }
 0x67b   : > { %v8326_v53 = vcombine.low %v7174_v25, %v7384_v36  ;;  %v8327_v62 = vcombine.high %v7174_v25, %v7384_v36  ;;  %v11502_v45 = vpop.f32.mrb[57].mxu0 }
 0x67d   : > { %v16327_v27 = vrot.slane %v8326_v53, %v17404_v3  ;;  %v16330_v46 = vrot.slane %v8327_v62, %v17404_v3 }
 0x67e   : > { %v7389_v29 = vpop.f32.mrb[58].mxu0 }
 0x67f   : > { %v8462_v24 = vcombine.low %v7179_v4, %v7389_v29  ;;  %v8463_v38 = vcombine.high %v7179_v4, %v7389_v29  ;;  %v11505_v23 = vpop.f32.mrb[59].mxu0 }
 0x681   : > { %v16337_v25 = vrot.slane %v8462_v24, %v17404_v3  ;;  %v16340_v8 = vrot.slane %v8463_v38, %v17404_v3 }
 0x695   : > { %v7269_v39 = vpop.f32.mrb[62].mxu1 }
 0x696   : > { %v11471_v33 = vpop.f32.mrb[63].mxu1 }
 0x699   : > { %v16308_v30 = vpop.f32.mrb[64].mxu1 }
 0x69a   : > { %v11474_v0 = vpop.f32.mrb[65].mxu1 }
 0x6a6   : > { %v16310_v49 = vpop.f32.mrb[66].mxu1 }
 0x6a7   : > { %v11477_v6 = vpop.f32.mrb[67].mxu1 }
 0x6aa   : > { %v16312_v31 = vpop.f32.mrb[68].mxu1 }
 0x6ab   : > { %v11480_v52 = vpop.f32.mrb[69].mxu1 }
 0x6ae   : > { %v7474_v15 = vpop.f32.mrb[70].mxu1 }
 0x6af   : > { %v7934_v1 = vcombine.low %v7264_v7, %v7474_v15  ;;  %v7935_v43 = vcombine.high %v7264_v7, %v7474_v15  ;;  %v11518_v17 = vpop.f32.mrb[71].mxu1 }
 0x6b1   : > { %v7942_v48 = vrot.slane %v7934_v1, %v17404_v3  ;;  %v7949_v26 = vrot.slane %v7935_v43, %v17404_v3 }
 0x6b2   : > { %v7479_v9 = vpop.f32.mrb[72].mxu1 }
 0x6b3   : > { %v7982_v21 = vcombine.low %v7926_v44, %v7942_v48  ;;  %v7983_v51 = vcombine.high %v7926_v44, %v7942_v48  ;;  %v7998_v41 = vcombine.low %v7933_v34, %v7949_v26  ;;  %v7999_v32 = vcombine.high %v7933_v34, %v7949_v26  ;;  %v11521_v42 = vpop.f32.mrb[73].mxu1 }
 0x6b4   : > { %v8070_v54 = vcombine.low %v7269_v39, %v7479_v9  ;;  %v8071_v2 = vcombine.high %v7269_v39, %v7479_v9 }
 0x6b5   : > { %v7990_v13 = vrot.slane %v7982_v21, %v17393_v16  ;;  %v7997_v40 = vrot.slane %v7983_v51, %v17393_v16  ;;  %v8006_v28 = vrot.slane %v7998_v41, %v17393_v16  ;;  %v8013_v58 = vrot.slane %v7999_v32, %v17393_v16 }
 0x6b6   : > { %v8078_v4 = vrot.slane %v8070_v54, %v17404_v3  ;;  %v8085_v63 = vrot.slane %v8071_v2, %v17404_v3  ;;  %v7484_v61 = vpop.f32.mrb[74].mxu1 }
 0x6b7   : > { %v10764_v55 = vcombine.low %v7990_v13, %v7997_v40  ;;  %v10766_v5 = vcombine.high %v7990_v13, %v7997_v40  ;;  %v10768_v22 = vcombine.low %v8006_v28, %v8013_v58  ;;  %v10770_v7 = vcombine.high %v8006_v28, %v8013_v58  ;;  %v11524_v35 = vpop.f32.mrb[75].mxu1 }
 0x6b8   : > { %v8118_v18 = vcombine.low %v8062_v56, %v8078_v4  ;;  %v8119_v11 = vcombine.high %v8062_v56, %v8078_v4  ;;  %v8134_v60 = vcombine.low %v8069_v50, %v8085_v63  ;;  %v8135_v12 = vcombine.high %v8069_v50, %v8085_v63 }
 0x6b9   : > { %v16345_v37 = vrot.slane %v10764_v55, %v17404_v3  ;;  %v16348_v20 = vrot.slane %v10766_v5, %v17404_v3  ;;  %v16351_v10 = vrot.slane %v10768_v22, %v17404_v3  ;;  %v16354_v19 = vrot.slane %v10770_v7, %v17404_v3 }
 0x6ba   : > { %v8126_v36 = vrot.slane %v8118_v18, %v17393_v16  ;;  %v8133_v53 = vrot.slane %v8119_v11, %v17393_v16  ;;  %v8142_v62 = vrot.slane %v8134_v60, %v17393_v16  ;;  %v8149_v45 = vrot.slane %v8135_v12, %v17393_v16  ;;  %v7489_v29 = vpop.f32.mrb[76].mxu1 }
 0x6bb   : > { %v8206_v24 = vcombine.low %v16308_v30, %v7484_v61  ;;  %v8207_v38 = vcombine.high %v16308_v30, %v7484_v61  ;;  %v8342_v23 = vcombine.low %v16310_v49, %v7489_v29  ;;  %v8343_v39 = vcombine.high %v16310_v49, %v7489_v29  ;;  %v11527_v33 = vpop.f32.mrb[77].mxu1 }
 0x6bc   : > { %v10772_v0 = vcombine.low %v8126_v36, %v8133_v53  ;;  %v10774_v6 = vcombine.high %v8126_v36, %v8133_v53  ;;  %v10776_v52 = vcombine.low %v8142_v62, %v8149_v45  ;;  %v10778_v15 = vcombine.high %v8142_v62, %v8149_v45 }
 0x6bd   : > { %v8214_v1 = vrot.slane %v8206_v24, %v17404_v3  ;;  %v8221_v43 = vrot.slane %v8207_v38, %v17404_v3  ;;  %v8350_v17 = vrot.slane %v8342_v23, %v17404_v3  ;;  %v8357_v44 = vrot.slane %v8343_v39, %v17404_v3 }
 0x6be   : > { %v16369_v34 = vrot.slane %v10772_v0, %v17404_v3  ;;  %v16372_v30 = vrot.slane %v10774_v6, %v17404_v3  ;;  %v16375_v49 = vrot.slane %v10776_v52, %v17404_v3  ;;  %v16378_v48 = vrot.slane %v10778_v15, %v17404_v3  ;;  %v7494_v26 = vpop.f32.mrb[78].mxu1 }
 0x6bf   : > { %v8254_v56 = vcombine.low %v16321_v14, %v8214_v1  ;;  %v8255_v50 = vcombine.high %v16321_v14, %v8214_v1  ;;  %v8270_v9 = vcombine.low %v16324_v57, %v8221_v43  ;;  %v8271_v21 = vcombine.high %v16324_v57, %v8221_v43  ;;  %v11530_v51 = vpop.f32.mrb[79].mxu1 }
 0x6c0   : > { %v8390_v41 = vcombine.low %v16327_v27, %v8350_v17  ;;  %v8391_v32 = vcombine.high %v16327_v27, %v8350_v17  ;;  %v8406_v42 = vcombine.low %v16330_v46, %v8357_v44  ;;  %v8407_v54 = vcombine.high %v16330_v46, %v8357_v44 }
 0x6c1   : > { %v8262_v2 = vrot.slane %v8254_v56, %v17393_v16  ;;  %v8269_v13 = vrot.slane %v8255_v50, %v17393_v16  ;;  %v8278_v40 = vrot.slane %v8270_v9, %v17393_v16  ;;  %v8285_v14 = vrot.slane %v8271_v21, %v17393_v16 }
 0x6c2   : > { %v8398_v28 = vrot.slane %v8390_v41, %v17393_v16  ;;  %v8405_v57 = vrot.slane %v8391_v32, %v17393_v16  ;;  %v8414_v58 = vrot.slane %v8406_v42, %v17393_v16  ;;  %v8421_v27 = vrot.slane %v8407_v54, %v17393_v16 }
 0x6c3   : > { %v10780_v4 = vcombine.low %v8262_v2, %v8269_v13  ;;  %v10782_v63 = vcombine.high %v8262_v2, %v8269_v13  ;;  %v10784_v61 = vcombine.low %v8278_v40, %v8285_v14  ;;  %v10786_v46 = vcombine.high %v8278_v40, %v8285_v14 }
 0x6c4   : > { %v10788_v55 = vcombine.low %v8398_v28, %v8405_v57  ;;  %v10790_v5 = vcombine.high %v8398_v28, %v8405_v57  ;;  %v10792_v22 = vcombine.low %v8414_v58, %v8421_v27  ;;  %v10794_v7 = vcombine.high %v8414_v58, %v8421_v27 }
 0x6c5   : > { %v16397_v35 = vrot.slane %v10780_v4, %v17404_v3  ;;  %v16400_v18 = vrot.slane %v10782_v63, %v17404_v3  ;;  %v16403_v11 = vrot.slane %v10784_v61, %v17404_v3  ;;  %v16406_v60 = vrot.slane %v10786_v46, %v17404_v3 }
 0x6c6   : > { %v16409_v12 = vrot.slane %v10788_v55, %v17404_v3  ;;  %v16412_v36 = vrot.slane %v10790_v5, %v17404_v3  ;;  %v16415_v53 = vrot.slane %v10792_v22, %v17404_v3  ;;  %v16418_v62 = vrot.slane %v10794_v7, %v17404_v3 }
 0x6c7   : > { %v8478_v45 = vcombine.low %v16312_v31, %v7494_v26  ;;  %v8479_v29 = vcombine.high %v16312_v31, %v7494_v26  ;;  %v8663_v24 = vcombine.high %v16345_v37, %v16348_v20  ;;  %v8695_v38 = vcombine.high %v16351_v10, %v16354_v19 }
 0x6c8   : > { %v8799_v23 = vcombine.high %v16369_v34, %v16372_v30  ;;  %v8831_v39 = vcombine.high %v16375_v49, %v16378_v48  ;;  %v8662_v33 = vcombine.low %v16345_v37, %v16348_v20  ;;  %v8694_v0 = vcombine.low %v16351_v10, %v16354_v19  ;;  %v16434_v6 = vpop.f32.mrb[60].mxu0  ;;  %v16436_v31 = vpop.f32.mrb[80].mxu1 }
 0x6c9   : > { %v8486_v52 = vrot.slane %v8478_v45, %v17404_v3  ;;  %v8493_v15 = vrot.slane %v8479_v29, %v17404_v3  ;;  %v8677_v1 = vrot.slane %v8663_v24, %v17393_v16  ;;  %v8709_v43 = vrot.slane %v8695_v38, %v17393_v16  ;;  %v11543_v17 = vpop.f32.mrb[61].mxu0  ;;  %v11568_v44 = vpop.f32.mrb[81].mxu1 }
 0x6ca   : > { %v8813_v26 = vrot.slane %v8799_v23, %v17393_v16  ;;  %v8845_v37 = vrot.slane %v8831_v39, %v17393_v16  ;;  %v16445_v20 = vrot.slane %v8662_v33, %v17393_v16  ;;  %v16448_v10 = vrot.slane %v8694_v0, %v17393_v16 }
 0x6cb   : > { %v8526_v19 = vcombine.low %v16337_v25, %v8486_v52  ;;  %v8527_v56 = vcombine.high %v16337_v25, %v8486_v52  ;;  %v8542_v50 = vcombine.low %v16340_v8, %v8493_v15  ;;  %v8543_v9 = vcombine.high %v16340_v8, %v8493_v15 }
 0x6cc   : > { %v8728_v21 = vcombine.low %v8677_v1, %v8709_v43  ;;  %v8864_v51 = vcombine.low %v8813_v26, %v8845_v37  ;;  %v8727_v41 = vcombine.high %v16445_v20, %v16448_v10  ;;  %v8798_v32 = vcombine.low %v16369_v34, %v16372_v30  ;;  %v16458_v42 = vpop.f32.mrb[62].mxu0  ;;  %v16460_v54 = vpop.f32.mrb[82].mxu1 }
 0x6cd   : > { %v8534_v2 = vrot.slane %v8526_v19, %v17393_v16  ;;  %v8541_v25 = vrot.slane %v8527_v56, %v17393_v16  ;;  %v8550_v13 = vrot.slane %v8542_v50, %v17393_v16  ;;  %v8557_v8 = vrot.slane %v8543_v9, %v17393_v16  ;;  %v11546_v40 = vpop.f32.mrb[63].mxu0  ;;  %v11571_v14 = vpop.f32.mrb[83].mxu1  ;;  %v10818_v50 = vld [vmem:[%s13530_s18] sm:$0xff]  }
 0x6ce   : > { %v12154_v28 = vpack.i.bf16 %v8864_v51, %v8728_v21  ;;  %v16467_v57 = vrot.slane %v8798_v32, %v17393_v16  ;;  %v8830_v34 = vcombine.low %v16375_v49, %v16378_v48  ;;  %v8729_v30 = vcombine.high %v8677_v1, %v8709_v43  ;;  %11848 = vmatpush3.bf16.msra.mxu0 %v10818_v50 }
 0x6cf   : > { %v10796_v58 = vcombine.low %v8534_v2, %v8541_v25  ;;  %v10798_v27 = vcombine.high %v8534_v2, %v8541_v25  ;;  %v10800_v4 = vcombine.low %v8550_v13, %v8557_v8  ;;  %v10802_v63 = vcombine.high %v8550_v13, %v8557_v8  ;;  %11849 = vmatprep.subr.bf16.mxu0 %v17282_v47 }
 0x6d0   : > { %12155 = vrot.lane.b32.xlu1 %v12154_v28, %s12948_s15  ;;  %v16473_v61 = vrot.slane %v8830_v34, %v17393_v16  ;;  %v8865_v46 = vcombine.high %v8813_v26, %v8845_v37  ;;  %v8935_v55 = vcombine.high %v16397_v35, %v16400_v18  ;;  %v8967_v5 = vcombine.high %v16403_v11, %v16406_v60  ;;  %v16479_v22 = vpop.f32.mrb[84].mxu1  ;;  %v10913_v34 = vld [vmem:[%s13530_s18 + $0x8] sm:$0xff]  }
 0x6d1   : > { %v9150_v49 = vrot.slane %v10796_v58, %v17404_v3  ;;  %v9166_v48 = vrot.slane %v10798_v27, %v17404_v3  ;;  %v9182_v7 = vrot.slane %v10800_v4, %v17404_v3  ;;  %v9198_v45 = vrot.slane %v10802_v63, %v17404_v3  ;;  %v11574_v29 = vpop.f32.mrb[85].mxu1 }
 0x6d2   : > { %v8863_v24 = vcombine.high %v16467_v57, %v16473_v61  ;;  %v12159_v38 = vpack.i.bf16 %v8865_v46, %v8729_v30  ;;  %v8949_v23 = vrot.slane %v8935_v55, %v17393_v16  ;;  %v8981_v39 = vrot.slane %v8967_v5, %v17393_v16  ;;  %11851 = vmatpush3.bf16.msra.mxu0 %v10913_v34  ;;  %v10914_v55 = vld [vmem:[%s13530_s18 + $0x10] sm:$0xff]   ;;  %v10915_v5 = vld [vmem:[%s13530_s18 + $0x18] sm:$0xff]  }
 0x6d3   : > { %v9071_v33 = vcombine.high %v16409_v12, %v16412_v36  ;;  %v9103_v0 = vcombine.high %v16415_v53, %v16418_v62  ;;  %v8934_v52 = vcombine.low %v16397_v35, %v16400_v18  ;;  %v8966_v15 = vcombine.low %v16403_v11, %v16406_v60  ;;  %11852 = vmatprep.subr.bf16.mxu0 %v17282_v47 }
 0x6d4   : > { %v12149_v1 = vpack.i.bf16 %v8863_v24, %v8727_v41  ;;  %12160 = vrot.lane.b32.xlu1 %v12159_v38, %s12947_s26  ;;  %v9000_v43 = vcombine.low %v8949_v23, %v8981_v39  ;;  %v9070_v17 = vcombine.low %v16409_v12, %v16412_v36  ;;  %v9102_v44 = vcombine.low %v16415_v53, %v16418_v62 }
 0x6d5   : > { %v9085_v26 = vrot.slane %v9071_v33, %v17393_v16  ;;  %v9117_v37 = vrot.slane %v9103_v0, %v17393_v16  ;;  %v16505_v35 = vrot.slane %v8934_v52, %v17393_v16  ;;  %v16508_v18 = vrot.slane %v8966_v15, %v17393_v16 }
 0x6d6   : > { %12150 = vrot.lane.b32.xlu0 %v12149_v1, %s12949_s10  ;;  %v16512_v11 = vrot.slane %v9070_v17, %v17393_v16  ;;  %v16515_v60 = vrot.slane %v9102_v44, %v17393_v16  ;;  %v9001_v12 = vcombine.high %v8949_v23, %v8981_v39  ;;  %v9206_v36 = vcombine.low %v9150_v49, %v9166_v48 }
 0x6d7   : > { %v9136_v53 = vcombine.low %v9085_v26, %v9117_v37  ;;  %v8999_v62 = vcombine.high %v16505_v35, %v16508_v18  ;;  %v9137_v19 = vcombine.high %v9085_v26, %v9117_v37  ;;  %v9238_v56 = vcombine.low %v9182_v7, %v9198_v45  ;;  %11854 = vmatpush3.bf16.msra.mxu0 %v10914_v55 }
 0x6d8   : > { %v9135_v9 = vcombine.high %v16512_v11, %v16515_v60  ;;  %v16523_v21 = vrot.slane %v9206_v36, %v17393_v16  ;;  %v9207_v51 = vcombine.high %v9150_v49, %v9166_v48  ;;  %v9239_v41 = vcombine.high %v9182_v7, %v9198_v45  ;;  %11855 = vmatprep.subr.bf16.mxu0 %v17282_v47  ;;  %v10916_v49 = vld [vmem:[%s13530_s18 + $0x20] sm:$0xff]   ;;  %v10917_v48 = vld [vmem:[%s13530_s18 + $0x28] sm:$0xff]  }
 0x6d9   : > { %v12169_v32 = vpack.i.bf16 %v9136_v53, %v9000_v43  ;;  %v12174_v2 = vpack.i.bf16 %v9137_v19, %v9001_v12  ;;  %v16526_v25 = vrot.slane %v9238_v56, %v17393_v16  ;;  %v8726_v13 = vcombine.low %v16445_v20, %v16448_v10 }
 0x6da   : > { %v12164_v8 = vpack.i.bf16 %v9135_v9, %v8999_v62  ;;  %v16532_v40 = vrot.slane %v9207_v51, %v17393_v16  ;;  %v16535_v14 = vrot.slane %v9239_v41, %v17393_v16  ;;  %v8862_v28 = vcombine.low %v16467_v57, %v16473_v61 }
 0x6db   : > { %12170 = vrot.lane.b32.xlu1 %v12169_v32, %s12948_s15  ;;  %v9271_v30 = vcombine.high %v16523_v21, %v16526_v25  ;;  %v8998_v58 = vcombine.low %v16505_v35, %v16508_v18  ;;  %v9134_v63 = vcombine.low %v16512_v11, %v16515_v60  ;;  %v9270_v46 = vcombine.low %v16523_v21, %v16526_v25 }
 0x6dc   : > { %12165 = vrot.lane.b32.xlu0 %v12164_v8, %s12949_s10  ;;  %v9272_v27 = vcombine.low %v16532_v40, %v16535_v14  ;;  %v9273_v4 = vcombine.high %v16532_v40, %v16535_v14  ;;  %11857 = vmatpush3.bf16.msra.mxu0 %v10915_v5 }
 0x6dd   : > { %11858 = vmatprep.subr.bf16.mxu0 %v17282_v47 }
 0x6df   : > { %9291 = vrot.lane.b32.xlu1 %v9271_v30, %s12949_s10 }
 0x6e0   : > { %12175 = vrot.lane.b32.xlu0 %v12174_v2, %s12947_s26  ;;  %11860 = vmatpush3.bf16.msra.mxu0 %v10916_v49 }
 0x6e1   : > { %11861 = vmatprep.subr.bf16.mxu0 %v17282_v47 }
 0x6e4   : > { %9311 = vrot.lane.b32.xlu0 %v9272_v27, %s12948_s15  ;;  %11863 = vmatpush3.bf16.msra.mxu0 %v10917_v48 }
 0x6e5   : > { %11864 = vmatprep.subr.bf16.mxu0 %v17282_v47 }
 0x6f3   : > { %v16566_v7 = vpop.f32.mrb[64].mxu0 }
 0x6f4   : > { %v11549_v45 = vpop.f32.mrb[65].mxu0 }
 0x6f7   : > { %v16568_v29 = vpop.f32.mrb[66].mxu0  ;;  %v16570_v24 = vpop.f32.mrb[86].mxu1 }
 0x6f8   : > { %v11552_v38 = vpop.f32.mrb[67].mxu0  ;;  %v11577_v23 = vpop.f32.mrb[87].mxu1 }
 0x6fb   : > { %v16572_v39 = vpop.f32.mrb[68].mxu0  ;;  %v16574_v33 = vpop.f32.mrb[88].mxu1 }
 0x6fc   : > { %v11555_v0 = vpop.f32.mrb[69].mxu0  ;;  %v11580_v52 = vpop.f32.mrb[89].mxu1 }
 0x6ff   : > { %v7789_v15 = vpop.f32.mrb[70].mxu0  ;;  %v7894_v1 = vpop.f32.mrb[90].mxu1 }
 0x700   : > { %v7950_v43 = vcombine.low %v16434_v6, %v7789_v15  ;;  %v7951_v17 = vcombine.high %v16434_v6, %v7789_v15  ;;  %v7966_v44 = vcombine.low %v16436_v31, %v7894_v1  ;;  %v7967_v26 = vcombine.high %v16436_v31, %v7894_v1  ;;  %v11593_v37 = vpop.f32.mrb[71].mxu0  ;;  %v11618_v12 = vpop.f32.mrb[91].mxu1 }
 0x702   : > { %v7958_v36 = vrot.slane %v7950_v43, %v17404_v3  ;;  %v7965_v53 = vrot.slane %v7951_v17, %v17404_v3  ;;  %v7974_v62 = vrot.slane %v7966_v44, %v17404_v3  ;;  %v7981_v19 = vrot.slane %v7967_v26, %v17404_v3 }
 0x703   : > { %v7794_v56 = vpop.f32.mrb[72].mxu0  ;;  %v7899_v50 = vpop.f32.mrb[92].mxu1 }
 0x704   : > { %v8014_v9 = vcombine.low %v7958_v36, %v7974_v62  ;;  %v8015_v51 = vcombine.high %v7958_v36, %v7974_v62  ;;  %v8030_v41 = vcombine.low %v7965_v53, %v7981_v19  ;;  %v8031_v6 = vcombine.high %v7965_v53, %v7981_v19  ;;  %v11596_v32 = vpop.f32.mrb[73].mxu0  ;;  %v11621_v2 = vpop.f32.mrb[93].mxu1 }
 0x705   : > { %v8086_v31 = vcombine.low %v16458_v42, %v7794_v56  ;;  %v8087_v8 = vcombine.high %v16458_v42, %v7794_v56  ;;  %v8102_v34 = vcombine.low %v16460_v54, %v7899_v50  ;;  %v8103_v30 = vcombine.high %v16460_v54, %v7899_v50 }
 0x706   : > { %v8022_v27 = vrot.slane %v8014_v9, %v17393_v16  ;;  %v8029_v55 = vrot.slane %v8015_v51, %v17393_v16  ;;  %v8038_v5 = vrot.slane %v8030_v41, %v17393_v16  ;;  %v8045_v49 = vrot.slane %v8031_v6, %v17393_v16 }
 0x707   : > { %v8094_v48 = vrot.slane %v8086_v31, %v17404_v3  ;;  %v8101_v45 = vrot.slane %v8087_v8, %v17404_v3  ;;  %v8110_v38 = vrot.slane %v8102_v34, %v17404_v3  ;;  %v8117_v42 = vrot.slane %v8103_v30, %v17404_v3  ;;  %v7799_v23 = vpop.f32.mrb[74].mxu0  ;;  %v7904_v0 = vpop.f32.mrb[94].mxu1 }
 0x708   : > { %v10765_v52 = vcombine.low %v8022_v27, %v8029_v55  ;;  %v10767_v54 = vcombine.high %v8022_v27, %v8029_v55  ;;  %v10769_v15 = vcombine.low %v8038_v5, %v8045_v49  ;;  %v10771_v1 = vcombine.high %v8038_v5, %v8045_v49  ;;  %v11599_v43 = vpop.f32.mrb[75].mxu0  ;;  %v11624_v17 = vpop.f32.mrb[95].mxu1 }
 0x709   : > { %v8150_v44 = vcombine.low %v8094_v48, %v8110_v38  ;;  %v8151_v26 = vcombine.high %v8094_v48, %v8110_v38  ;;  %v8166_v37 = vcombine.low %v8101_v45, %v8117_v42  ;;  %v8167_v12 = vcombine.high %v8101_v45, %v8117_v42 }
 0x70a   : > { %v16597_v36 = vrot.slane %v10765_v52, %v17404_v3  ;;  %v16600_v53 = vrot.slane %v10767_v54, %v17404_v3  ;;  %v16603_v62 = vrot.slane %v10769_v15, %v17404_v3  ;;  %v16606_v19 = vrot.slane %v10771_v1, %v17404_v3 }
 0x70b   : > { %v8158_v56 = vrot.slane %v8150_v44, %v17393_v16  ;;  %v8165_v50 = vrot.slane %v8151_v26, %v17393_v16  ;;  %v8174_v9 = vrot.slane %v8166_v37, %v17393_v16  ;;  %v8181_v51 = vrot.slane %v8167_v12, %v17393_v16  ;;  %v7804_v41 = vpop.f32.mrb[76].mxu0  ;;  %v7909_v6 = vpop.f32.mrb[96].mxu1 }
 0x70c   : > { %v8222_v32 = vcombine.low %v16566_v7, %v7799_v23  ;;  %v8223_v2 = vcombine.high %v16566_v7, %v7799_v23  ;;  %v8238_v31 = vcombine.low %v16479_v22, %v7904_v0  ;;  %v8239_v8 = vcombine.high %v16479_v22, %v7904_v0  ;;  %v11602_v34 = vpop.f32.mrb[77].mxu0  ;;  %v11627_v30 = vpop.f32.mrb[97].mxu1 }
 0x70d   : > { %v10773_v27 = vcombine.low %v8158_v56, %v8165_v50  ;;  %v10775_v55 = vcombine.high %v8158_v56, %v8165_v50  ;;  %v10777_v5 = vcombine.low %v8174_v9, %v8181_v51  ;;  %v10779_v49 = vcombine.high %v8174_v9, %v8181_v51 }
 0x70e   : > { %v8230_v48 = vrot.slane %v8222_v32, %v17404_v3  ;;  %v8237_v45 = vrot.slane %v8223_v2, %v17404_v3  ;;  %v8246_v38 = vrot.slane %v8238_v31, %v17404_v3  ;;  %v8253_v42 = vrot.slane %v8239_v8, %v17404_v3 }
 0x70f   : > { %v16621_v7 = vrot.slane %v10773_v27, %v17404_v3  ;;  %v16624_v23 = vrot.slane %v10775_v55, %v17404_v3  ;;  %v16627_v22 = vrot.slane %v10777_v5, %v17404_v3  ;;  %v16630_v0 = vrot.slane %v10779_v49, %v17404_v3  ;;  %v7809_v52 = vpop.f32.mrb[78].mxu0  ;;  %v7914_v54 = vpop.f32.mrb[98].mxu1 }
 0x710   : > { %v8286_v15 = vcombine.low %v8230_v48, %v8246_v38  ;;  %v8287_v1 = vcombine.high %v8230_v48, %v8246_v38  ;;  %v8302_v43 = vcombine.low %v8237_v45, %v8253_v42  ;;  %v8303_v17 = vcombine.high %v8237_v45, %v8253_v42  ;;  %v11605_v44 = vpop.f32.mrb[79].mxu0  ;;  %v11630_v26 = vpop.f32.mrb[99].mxu1 }
 0x711   : > { %v8358_v37 = vcombine.low %v16568_v29, %v7804_v41  ;;  %v8359_v12 = vcombine.high %v16568_v29, %v7804_v41  ;;  %v8374_v56 = vcombine.low %v16570_v24, %v7909_v6  ;;  %v8375_v50 = vcombine.high %v16570_v24, %v7909_v6 }
 0x712   : > { %v8294_v9 = vrot.slane %v8286_v15, %v17393_v16  ;;  %v8301_v51 = vrot.slane %v8287_v1, %v17393_v16  ;;  %v8310_v32 = vrot.slane %v8302_v43, %v17393_v16  ;;  %v8317_v2 = vrot.slane %v8303_v17, %v17393_v16 }
 0x713   : > { %v8366_v31 = vrot.slane %v8358_v37, %v17404_v3  ;;  %v8373_v8 = vrot.slane %v8359_v12, %v17404_v3  ;;  %v8382_v34 = vrot.slane %v8374_v56, %v17404_v3  ;;  %v8389_v29 = vrot.slane %v8375_v50, %v17404_v3 }
 0x714   : > { %v10781_v41 = vcombine.low %v8294_v9, %v8301_v51  ;;  %v10783_v30 = vcombine.high %v8294_v9, %v8301_v51  ;;  %v10785_v27 = vcombine.low %v8310_v32, %v8317_v2  ;;  %v10787_v24 = vcombine.high %v8310_v32, %v8317_v2 }
 0x715   : > { %v8422_v6 = vcombine.low %v8366_v31, %v8382_v34  ;;  %v8423_v55 = vcombine.high %v8366_v31, %v8382_v34  ;;  %v8438_v5 = vcombine.low %v8373_v8, %v8389_v29  ;;  %v8439_v49 = vcombine.high %v8373_v8, %v8389_v29 }
 0x716   : > { %v16645_v48 = vrot.slane %v10781_v41, %v17404_v3  ;;  %v16648_v45 = vrot.slane %v10783_v30, %v17404_v3  ;;  %v16651_v38 = vrot.slane %v10785_v27, %v17404_v3  ;;  %v16654_v42 = vrot.slane %v10787_v24, %v17404_v3 }
 0x717   : > { %v8430_v15 = vrot.slane %v8422_v6, %v17393_v16  ;;  %v8437_v1 = vrot.slane %v8423_v55, %v17393_v16  ;;  %v8446_v43 = vrot.slane %v8438_v5, %v17393_v16  ;;  %v8453_v17 = vrot.slane %v8439_v49, %v17393_v16 }
 0x718   : > { %v8494_v44 = vcombine.low %v16572_v39, %v7809_v52  ;;  %v8495_v26 = vcombine.high %v16572_v39, %v7809_v52  ;;  %v8510_v37 = vcombine.low %v16574_v33, %v7914_v54  ;;  %v8511_v12 = vcombine.high %v16574_v33, %v7914_v54  ;;  %v10918_v54 = vld [vmem:[%s13530_s18 + $0x30] sm:$0xff]  }
 0x719   : > { %v10789_v56 = vcombine.low %v8430_v15, %v8437_v1  ;;  %v10791_v50 = vcombine.high %v8430_v15, %v8437_v1  ;;  %v10793_v9 = vcombine.low %v8446_v43, %v8453_v17  ;;  %v10795_v51 = vcombine.high %v8446_v43, %v8453_v17  ;;  %11866 = vmatpush3.bf16.msra.mxu0 %v10918_v54 }
 0x71a   : > { %v8502_v32 = vrot.slane %v8494_v44, %v17404_v3  ;;  %v8509_v2 = vrot.slane %v8495_v26, %v17404_v3  ;;  %v8518_v31 = vrot.slane %v8510_v37, %v17404_v3  ;;  %v8525_v8 = vrot.slane %v8511_v12, %v17404_v3  ;;  %11867 = vmatprep.subr.bf16.mxu0 %v17282_v47 }
 0x71b   : > { %v16669_v34 = vrot.slane %v10789_v56, %v17404_v3  ;;  %v16672_v39 = vrot.slane %v10791_v50, %v17404_v3  ;;  %v16675_v33 = vrot.slane %v10793_v9, %v17404_v3  ;;  %v16678_v52 = vrot.slane %v10795_v51, %v17404_v3 }
 0x71c   : > { %v8558_v29 = vcombine.low %v8502_v32, %v8518_v31  ;;  %v8559_v41 = vcombine.high %v8502_v32, %v8518_v31  ;;  %v8574_v30 = vcombine.low %v8509_v2, %v8525_v8  ;;  %v8575_v27 = vcombine.high %v8509_v2, %v8525_v8  ;;  %v10919_v31 = vld [vmem:[%s13530_s18 + $0x38] sm:$0xff]   ;;  %s17410_s18 = scalar_lea.vmem [#allocation9], %s13520_s22 }
 0x71d   : > { %v8678_v24 = vcombine.low %v16597_v36, %v16600_v53  ;;  %v8710_v6 = vcombine.low %v16603_v62, %v16606_v19  ;;  %v8814_v55 = vcombine.low %v16621_v7, %v16624_v23  ;;  %v8846_v5 = vcombine.low %v16627_v22, %v16630_v0  ;;  %11869 = vmatpush3.bf16.msra.mxu0 %v10919_v31 }
 0x71e   : > { %v8566_v49 = vrot.slane %v8558_v29, %v17393_v16  ;;  %v8573_v15 = vrot.slane %v8559_v41, %v17393_v16  ;;  %v8582_v1 = vrot.slane %v8574_v30, %v17393_v16  ;;  %v8589_v43 = vrot.slane %v8575_v27, %v17393_v16 }
 0x71f   : > { %v8686_v17 = vrot.slane %v8678_v24, %v17393_v16  ;;  %v8718_v44 = vrot.slane %v8710_v6, %v17393_v16  ;;  %v8822_v26 = vrot.slane %v8814_v55, %v17393_v16  ;;  %v8854_v37 = vrot.slane %v8846_v5, %v17393_v16 }
 0x720   : > { %v10797_v12 = vcombine.low %v8566_v49, %v8573_v15  ;;  %v10799_v56 = vcombine.high %v8566_v49, %v8573_v15  ;;  %v10801_v47 = vcombine.low %v8582_v1, %v8589_v43  ;;  %v10803_v50 = vcombine.high %v8582_v1, %v8589_v43 }
 0x721   : > { %v8731_v9 = vcombine.high %v8686_v17, %v8718_v44  ;;  %v8867_v51 = vcombine.high %v8822_v26, %v8854_v37  ;;  %v8730_v32 = vcombine.low %v8686_v17, %v8718_v44  ;;  %v8866_v2 = vcombine.low %v8822_v26, %v8854_v37 }
 0x722   : > { %v9157_v8 = vrot.slane %v10797_v12, %v17404_v3  ;;  %v9173_v54 = vrot.slane %v10799_v56, %v17404_v3  ;;  %v9189_v29 = vrot.slane %v10801_v47, %v17404_v3  ;;  %v9205_v41 = vrot.slane %v10803_v50, %v17404_v3 }
 0x723   : > { %v12184_v30 = vpack.i.bf16 %v8867_v51, %v8731_v9  ;;  %v12179_v27 = vpack.i.bf16 %v8866_v2, %v8730_v32  ;;  %v8679_v24 = vcombine.high %v16597_v36, %v16600_v53  ;;  %v8711_v6 = vcombine.high %v16603_v62, %v16606_v19 }
 0x724   : > { %v8815_v55 = vcombine.high %v16621_v7, %v16624_v23  ;;  %v8847_v5 = vcombine.high %v16627_v22, %v16630_v0  ;;  %v8950_v49 = vcombine.low %v16645_v48, %v16648_v45  ;;  %v8982_v3 = vcombine.low %v16651_v38, %v16654_v42 }
 0x725   : > { %12185 = vrot.lane.b32.xlu1 %v12184_v30, %s12945_s14  ;;  %12180 = vrot.lane.b32.xlu0 %v12179_v27, %s12946_s19  ;;  %v8693_v36 = vrot.slane %v8679_v24, %v17393_v16  ;;  %v8725_v53 = vrot.slane %v8711_v6, %v17393_v16  ;;  %v9086_v62 = vcombine.low %v16669_v34, %v16672_v39 }
 0x726   : > { %v8829_v19 = vrot.slane %v8815_v55, %v17393_v16  ;;  %v8861_v7 = vrot.slane %v8847_v5, %v17393_v16  ;;  %v8958_v23 = vrot.slane %v8950_v49, %v17393_v16  ;;  %v8990_v22 = vrot.slane %v8982_v3, %v17393_v16 }
 0x727   : > { %v8733_v0 = vcombine.high %v8693_v36, %v8725_v53  ;;  %v8732_v15 = vcombine.low %v8693_v36, %v8725_v53  ;;  %v9094_v1 = vrot.slane %v9086_v62, %v17393_v16  ;;  %v9118_v43 = vcombine.low %v16675_v33, %v16678_v52 }
 0x728   : > { %v8869_v17 = vcombine.high %v8829_v19, %v8861_v7  ;;  %v8868_v44 = vcombine.low %v8829_v19, %v8861_v7  ;;  %v9003_v26 = vcombine.high %v8958_v23, %v8990_v22  ;;  %v9002_v37 = vcombine.low %v8958_v23, %v8990_v22 }
 0x729   : > { %v9126_v12 = vrot.slane %v9118_v43, %v17393_v16  ;;  %v8951_v56 = vcombine.high %v16645_v48, %v16648_v45  ;;  %v8983_v47 = vcombine.high %v16651_v38, %v16654_v42  ;;  %v9087_v50 = vcombine.high %v16669_v34, %v16672_v39 }
 0x72a   : > { %v12194_v9 = vpack.i.bf16 %v8869_v17, %v8733_v0  ;;  %v12189_v51 = vpack.i.bf16 %v8868_v44, %v8732_v15  ;;  %v9119_v32 = vcombine.high %v16675_v33, %v16678_v52  ;;  %v9222_v2 = vcombine.low %v9157_v8, %v9173_v54 }
 0x72b   : > { %v9139_v31 = vcombine.high %v9094_v1, %v9126_v12  ;;  %v9138_v30 = vcombine.low %v9094_v1, %v9126_v12  ;;  %v8965_v27 = vrot.slane %v8951_v56, %v17393_v16  ;;  %v8997_v24 = vrot.slane %v8983_v47, %v17393_v16 }
 0x72c   : > { %12195 = vrot.lane.b32.xlu1 %v12194_v9, %s12944_s7  ;;  %12190 = vrot.lane.b32.xlu0 %v12189_v51, %s12943_s4  ;;  %v9101_v48 = vrot.slane %v9087_v50, %v17393_v16  ;;  %v9133_v45 = vrot.slane %v9119_v32, %v17393_v16  ;;  %v9230_v38 = vrot.slane %v9222_v2, %v17393_v16 }
 0x72d   : > { %v12204_v42 = vpack.i.bf16 %v9139_v31, %v9003_v26  ;;  %v12199_v34 = vpack.i.bf16 %v9138_v30, %v9002_v37  ;;  %v9005_v39 = vcombine.high %v8965_v27, %v8997_v24  ;;  %v9004_v33 = vcombine.low %v8965_v27, %v8997_v24 }
 0x72e   : > { %v9141_v52 = vcombine.high %v9101_v48, %v9133_v45  ;;  %v9140_v6 = vcombine.low %v9101_v48, %v9133_v45  ;;  %v9254_v55 = vcombine.low %v9189_v29, %v9205_v41  ;;  %v9223_v5 = vcombine.high %v9157_v8, %v9173_v54 }
 0x72f   : > { %v9255_v49 = vcombine.high %v9189_v29, %v9205_v41 }
 0x730   : > { %12205 = vrot.lane.b32.xlu0 %v12204_v42, %s12945_s14  ;;  %12200 = vrot.lane.b32.xlu1 %v12199_v34, %s12946_s19  ;;  %v12214_v3 = vpack.i.bf16 %v9141_v52, %v9005_v39  ;;  %v12209_v36 = vpack.i.bf16 %v9140_v6, %v9004_v33  ;;  %v9262_v53 = vrot.slane %v9254_v55, %v17393_v16 }
 0x731   : > { %v9237_v62 = vrot.slane %v9223_v5, %v17393_v16  ;;  %v9269_v19 = vrot.slane %v9255_v49, %v17393_v16 }
 0x732   : > { %v9274_v7 = vcombine.low %v9230_v38, %v9262_v53  ;;  %v9275_v23 = vcombine.high %v9230_v38, %v9262_v53 }
 0x733   : > { %v9276_v22 = vcombine.low %v9237_v62, %v9269_v19  ;;  %v9277_v0 = vcombine.high %v9237_v62, %v9269_v19 }
 0x734   : > { %12215 = vrot.lane.b32.xlu0 %v12214_v3, %s12944_s7  ;;  %12210 = vrot.lane.b32.xlu1 %v12209_v36, %s12943_s4 }
 0x738   : > { %9331 = vrot.lane.b32.xlu1 %v9273_v4, %s12947_s26  ;;  %9351 = vrot.lane.b32.xlu0 %v9274_v7, %s12946_s19 }
 0x73c   : > { %9371 = vrot.lane.b32.xlu1 %v9275_v23, %s12945_s14  ;;  %9391 = vrot.lane.b32.xlu0 %v9276_v22, %s12943_s4 }
 0x740   : > { %9411 = vrot.lane.b32.xlu1 %v9277_v0, %s12944_s7 }
 0x742   : > { %v12156_v16 = vpop.permute.xlu1 %12155 }
 0x743   : > { %v12157_v14 = vunpack.i.l.bf16 %v12156_v16  ;;  %v12158_v12 = vunpack.i.h.bf16 %v12156_v16 }
 0x746   : > { %v12161_v29 = vpop.permute.xlu1 %12160 }
 0x747   : > { %v12162_v26 = vunpack.i.l.bf16 %v12161_v29  ;;  %v12163_v50 = vunpack.i.h.bf16 %v12161_v29 }
 0x748   : > { %v12151_v8 = vpop.permute.xlu0 %12150 }
 0x749   : > { %v12152_v43 = vunpack.i.l.bf16 %v12151_v8  ;;  %v12153_v40 = vunpack.i.h.bf16 %v12151_v8 }
 0x74b   : > { %v9418_v44 = vsel %vm5589_vm1, %v8726_v13, %v12152_v43  ;;  %v9419_v47 = vsel %vm5589_vm1, %v8862_v28, %v12153_v40 }
 0x74c   : > { %v9424_v9 = vsel %vm9423_vm4, %v9418_v44, %v12157_v14  ;;  %v9425_v32 = vsel %vm9423_vm4, %v9419_v47, %v12158_v12 }
 0x74d   : > { %v12171_v15 = vpop.permute.xlu1 %12170  ;;  %v9430_v20 = vsel %vm9429_vm5, %v9424_v9, %v12162_v26  ;;  %v9431_v57 = vsel %vm9429_vm5, %v9425_v32, %v12163_v50 }
 0x74e   : > { %v12166_v54 = vpop.permute.xlu0 %12165  ;;  %v12172_v61 = vunpack.i.l.bf16 %v12171_v15  ;;  %v12173_v52 = vunpack.i.h.bf16 %v12171_v15 }
 0x74f   : > { %v12167_v10 = vunpack.i.l.bf16 %v12166_v54  ;;  %v12168_v2 = vunpack.i.h.bf16 %v12166_v54 }
 0x751   : > { %v16761_v17 = vpop.permute.xlu1 %9291  ;;  %v9420_v42 = vsel %vm5589_vm1, %v8998_v58, %v12167_v10  ;;  %v9421_v33 = vsel %vm5589_vm1, %v9134_v63, %v12168_v2  ;;  %v12475_v2 = vld [vmem:[#allocation2] sm:$0xff] }
 0x752   : > { %v12176_v41 = vpop.permute.xlu0 %12175  ;;  %v9426_v18 = vsel %vm9423_vm4, %v9420_v42, %v12172_v61  ;;  %v9427_v62 = vsel %vm9423_vm4, %v9421_v33, %v12173_v52  ;;  %v9422_v43 = vsel %vm5589_vm1, %v9270_v46, %v16761_v17  ;;  %v12478_v52 = vld [vmem:[#allocation2 + $0x18] sm:$0xff] }
 0x753   : > { %v12177_v34 = vunpack.i.l.bf16 %v12176_v41  ;;  %v12178_v55 = vunpack.i.h.bf16 %v12176_v41 }
 0x755   : > { %v9432_v60 = vsel %vm9429_vm5, %v9426_v18, %v12177_v34  ;;  %v9433_v7 = vsel %vm9429_vm5, %v9427_v62, %v12178_v55  ;;  %v12253_v18 = vld [vmem:[%s13539_s3] ss:$8 sps:$4 sm:$0xff]  }
 0x756   : > { %v16759_v1 = vpop.permute.xlu0 %9311 }
 0x757   : > { %v9428_v14 = vsel %vm9423_vm4, %v9422_v43, %v16759_v1 }
 0x797   : > { %v12181_v4 = vpop.permute.xlu0 %12180  ;;  %v12186_v37 = vpop.permute.xlu1 %12185 }
 0x798   : > { %v12182_v56 = vunpack.i.l.bf16 %v12181_v4  ;;  %v12183_v51 = vunpack.i.h.bf16 %v12181_v4  ;;  %v12187_v13 = vunpack.i.l.bf16 %v12186_v37  ;;  %v12188_v28 = vunpack.i.h.bf16 %v12186_v37 }
 0x79a   : > { %v9436_v31 = vsel %vm9435_vm6, %v9430_v20, %v12182_v56  ;;  %v9437_v24 = vsel %vm9435_vm6, %v9431_v57, %v12183_v51  ;;  %v10804_v20 = vld [vmem:[%s17410_s18] ss:$0 sm:$0xff] }
 0x79b   : > { %v9442_v39 = vsel %vm9441_vm7, %v9436_v31, %v12187_v13  ;;  %v9443_v35 = vsel %vm9441_vm7, %v9437_v24, %v12188_v28 }
 0x79e   : > { %v12191_v30 = vpop.permute.xlu0 %12190  ;;  %v12196_v27 = vpop.permute.xlu1 %12195 }
 0x79f   : > { %v12193_v48 = vunpack.i.h.bf16 %v12191_v30  ;;  %v12192_v45 = vunpack.i.l.bf16 %v12191_v30  ;;  %v12197_v38 = vunpack.i.l.bf16 %v12196_v27  ;;  %v12198_v5 = vunpack.i.h.bf16 %v12196_v27  ;;  %v12476_v30 = vld [vmem:[#allocation2 + $0x8] sm:$0xff] }
 0x7a1   : > { %v9448_v6 = vsel %vm9447_vm8, %v9442_v39, %v12192_v45  ;;  %v9449_v11 = vsel %vm9447_vm8, %v9443_v35, %v12193_v48  ;;  %v12251_v35 = vld [vmem:[%s13539_s3 + $0x4] ss:$8 sps:$4 sm:$0xff]  }
 0x7a2   : > { %v12206_v49 = vpop.permute.xlu0 %12205  ;;  %v12201_v3 = vpop.permute.xlu1 %12200  ;;  %v9454_v36 = vsel %vm9453_vm9, %v9448_v6, %v12197_v38  ;;  %v9455_v16 = vsel %vm9453_vm9, %v9449_v11, %v12198_v5  ;;  %v12477_v38 = vld [vmem:[#allocation2 + $0x10] sm:$0xff]  ;;  %11871 = vmatprep.subr.bf16.mxu1 %v12251_v35  ;;  %v12257_v11 = vld [vmem:[%s13539_s3 + $0x24] ss:$8 sps:$4 sm:$0xff]  }
 0x7a3   : > { %v12203_v58 = vunpack.i.h.bf16 %v12201_v3  ;;  %v12202_v53 = vunpack.i.l.bf16 %v12201_v3  ;;  %11664 = vmatmul.mubr.f32.vlgmr.msra.gmra.mrb[80].mxu0 %v9454_v36  ;;  %v12207_v63 = vunpack.i.l.bf16 %v12206_v49  ;;  %v12208_v23 = vunpack.i.h.bf16 %v12206_v49  ;;  %v12479_v3 = vld [vmem:[#allocation2 + $0x20] sm:$0xff]  ;;  %11873 = vmatpush1.bf16.msra.mxu1 %v12253_v18 }
 0x7a4   : > { %11666 = vmatprep.mubr.msk.f32.mxu0 %vm12942_vm0, %v17280_v59 }
 0x7a5   : > { %v9438_v19 = vsel %vm9435_vm6, %v9432_v60, %v12202_v53  ;;  %v9439_v8 = vsel %vm9435_vm6, %v9433_v7, %v12203_v58  ;;  %v12254_v58 = vld [vmem:[%s13539_s3 + $0x14] ss:$8 sps:$4 sm:$0xff]   ;;  %v12256_v53 = vld [vmem:[%s13539_s3 + $0x10] ss:$8 sps:$4 sm:$0xff]   ;;  %v12259_v60 = vld [vmem:[%s13539_s3 + $0x20] ss:$8 sps:$4 sm:$0xff]  }
 0x7a6   : > { %v12216_v22 = vpop.permute.xlu0 %12215  ;;  %v12211_v0 = vpop.permute.xlu1 %12210  ;;  %v9444_v15 = vsel %vm9441_vm7, %v9438_v19, %v12207_v63  ;;  %v9445_v12 = vsel %vm9441_vm7, %v9439_v8, %v12208_v23  ;;  %11875 = vmatprep.subr.bf16.mxu1 %v12254_v58 }
 0x7a7   : > { %v12217_v54 = vunpack.i.l.bf16 %v12216_v22  ;;  %v12213_v29 = vunpack.i.h.bf16 %v12211_v0  ;;  %v12212_v41 = vunpack.i.l.bf16 %v12211_v0  ;;  %11667 = vmatmul.mubr.f32.gmra.mrb[82].mxu0 %v9455_v16  ;;  %v12218_v4 = vunpack.i.h.bf16 %v12216_v22  ;;  %11877 = vmatpush1.bf16.msra.mxu1 %v12256_v53 }
 0x7a8   : > { %11669 = vmatprep.mubr.msk.f32.mxu0 %vm12942_vm0, %v17280_v59  ;;  %11879 = vmatprep.subr.bf16.mxu1 %v12257_v11 }
 0x7a9   : > { %v9450_v40 = vsel %vm9447_vm8, %v9444_v15, %v12212_v41  ;;  %v9451_v21 = vsel %vm9447_vm8, %v9445_v12, %v12213_v29  ;;  %v12260_v12 = vld [vmem:[%s13539_s3 + $0x34] ss:$8 sps:$4 sm:$0xff]  }
 0x7aa   : > { %v9352_v44 = vpop.permute.xlu0 %9351  ;;  %v9332_v26 = vpop.permute.xlu1 %9331  ;;  %v9456_v37 = vsel %vm9453_vm9, %v9450_v40, %v12217_v54  ;;  %v9457_v1 = vsel %vm9453_vm9, %v9451_v21, %v12218_v4  ;;  %v12263_v21 = vld [vmem:[%s13539_s3 + $0x44] ss:$8 sps:$4 sm:$0xff]  }
 0x7ab   : > { %v9434_v56 = vsel %vm9429_vm5, %v9428_v14, %v9332_v26  ;;  %11670 = vmatmul.mubr.f32.gmra.mrb[84].mxu0 %v9456_v37  ;;  %11881 = vmatpush1.bf16.msra.mxu1 %v12259_v60 }
 0x7ac   : > { %11672 = vmatprep.mubr.msk.f32.mxu0 %vm12942_vm0, %v17280_v59  ;;  %v9440_v25 = vsel %vm9435_vm6, %v9434_v56, %v9352_v44  ;;  %v12262_v56 = vld [vmem:[%s13539_s3 + $0x30] ss:$8 sps:$4 sm:$0xff]   ;;  %11883 = vmatprep.subr.bf16.mxu1 %v12260_v12 }
 0x7ad   : > { %v17413_v12 = vld [vmem:[#allocation43_spill] sm:$0xff] }
 0x7ae   : > { %v9372_v46 = vpop.permute.xlu1 %9371  ;;  %v9392_v17 = vpop.permute.xlu0 %9391 }
 0x7af   : > { %v9446_v47 = vsel %vm9441_vm7, %v9440_v25, %v9372_v46  ;;  %11673 = vmatmul.mubr.f32.gmra.mrb[86].mxu0 %v9457_v1  ;;  %11885 = vmatpush1.bf16.msra.mxu1 %v12262_v56  ;;  %v12265_v25 = vld [vmem:[%s13539_s3 + $0x40] ss:$8 sps:$4 sm:$0xff]   ;;  %v12266_v46 = vld [vmem:[%s13539_s3 + $0x54] ss:$8 sps:$4 sm:$0xff]   ;;  %v12268_v1 = vld [vmem:[%s13539_s3 + $0x50] ss:$8 sps:$4 sm:$0xff]  }
 0x7b0   : > { %11675 = vmatprep.mubr.msk.f32.mxu0 %vm12942_vm0, %v17280_v59  ;;  %v9452_v9 = vsel %vm9447_vm8, %v9446_v47, %v9392_v17  ;;  %11887 = vmatprep.subr.bf16.mxu1 %v12263_v21  ;;  %v12269_v17 = vld [vmem:[%s13539_s3 + $0x64] ss:$8 sps:$4 sm:$0xff]   ;;  %v12271_v47 = vld [vmem:[%s13539_s3 + $0x60] ss:$8 sps:$4 sm:$0xff]   ;;  %v17414_v56 = vsub.s32 0, %v17413_v12 }
 0x7b2   : > { %v9412_v50 = vpop.permute.xlu1 %9411 }
 0x7b3   : > { %v9458_v51 = vsel %vm9453_vm9, %v9452_v9, %v9412_v50  ;;  %11889 = vmatpush1.bf16.msra.mxu1 %v12265_v25  ;;  %v12272_v50 = vld [vmem:[%s13539_s3 + $0x74] ss:$8 sps:$4 sm:$0xff]   ;;  %v12274_v9 = vld [vmem:[%s13539_s3 + $0x70] ss:$8 sps:$4 sm:$0xff]   ;;  %v17415_v25 = vsub.s32 1, %v17413_v12 }
 0x7b4   : > { %11676 = vmatmul.mubr.f32.gmra.mrb[88].mxu0 %v9458_v51  ;;  %11891 = vmatprep.subr.bf16.mxu1 %v12266_v46  ;;  %v10927_v51 = vld [vmem:[%s13545_s9 + $0x40] sm:$0xff]  }
 0x7b5   : > { %11903 = vmatprep.subr.bf16.mxu0 %v10927_v51 }
 0x7b7   : > { %11893 = vmatpush1.bf16.msra.mxu1 %v12268_v1 }
 0x7b8   : > { %11895 = vmatprep.subr.bf16.mxu1 %v12269_v17 }
 0x7bb   : > { %11897 = vmatpush1.bf16.msra.mxu1 %v12271_v47 }
 0x7bc   : > { %11899 = vmatprep.subr.bf16.mxu1 %v12272_v50 }
 0x7bf   : > { %11901 = vmatpush1.bf16.msra.mxu1 %v12274_v9 }
 0x876   : > { %v9564_v10 = vpop.f32.mrb[80].mxu0 }
 0x877   : > { %v9565_v13 = vadd.f32 %v10804_v20, %v9564_v10  ;;  %v11665_v32 = vpop.f32.mrb[81].mxu0 }
 0x879   : > { %v9588_v31 = vadd.f32 %v12475_v2, %v9565_v13 }
 0x87a   : > { %v9569_v57 = vpop.f32.mrb[82].mxu0 }
 0x87b   : > { %v9570_v61 = vadd.f32 %v10804_v20, %v9569_v57  ;;  %9595 = vadd.xlane.f32.xlu0 %v9588_v31  ;;  %v11668_v28 = vpop.f32.mrb[83].mxu0 }
 0x87d   : > { %v9589_v27 = vadd.f32 %v12476_v30, %v9570_v61 }
 0x87e   : > { %v9574_v24 = vpop.f32.mrb[84].mxu0 }
 0x87f   : > { %v9575_v48 = vadd.f32 %v10804_v20, %v9574_v24  ;;  %9597 = vadd.xlane.f32.xlu1 %v9589_v27  ;;  %v11671_v45 = vpop.f32.mrb[85].mxu0 }
 0x881   : > { %v9590_v42 = vadd.f32 %v12477_v38, %v9575_v48  ;;  %v10805_v38 = vld [vmem:[%s873_s12] ss:$0 sm:$0xff]  ;;  %s17418_s12 = scalar_lea.vmem [#allocation18], %s13520_s22 }
 0x882   : > { %v9579_v34 = vpop.f32.mrb[86].mxu0 }
 0x883   : > { %v9580_v39 = vadd.f32 %v10804_v20, %v9579_v34  ;;  %9599 = vadd.xlane.f32.xlu0 %v9590_v42  ;;  %v11674_v33 = vpop.f32.mrb[87].mxu0 }
 0x885   : > { %v9591_v6 = vadd.f32 %v12478_v52, %v9580_v39  ;;  %v10806_v39 = vld [vmem:[%s17412_s24] ss:$0 sm:$0xff] }
 0x887   : > { %9601 = vadd.xlane.f32.xlu0 %v9591_v6  ;;  %v9584_v55 = vpop.f32.mrb[88].mxu0 }
 0x888   : > { %v9585_v5 = vadd.f32 %v10804_v20, %v9584_v55  ;;  %v11677_v49 = vpop.f32.mrb[89].mxu0  ;;  %v10850_v20 = vld [vmem:[%s13545_s9] sm:$0xff]  }
 0x889   : > { %11905 = vmatpush3.bf16.msra.mxu0 %v10850_v20 }
 0x88a   : > { %v9592_v36 = vadd.f32 %v12479_v3, %v9585_v5 }
 0x88c   : > { %9603 = vadd.xlane.f32.xlu1 %v9592_v36 }
 0x908   : > { %v9596_v63 = vpop.xlane.xlu0 %9595 }
 0x909   : > { %v9606_v62 = vmul.f32 0.0078125, %v9596_v63 }
 0x90b   : > { %v16831_v19 = vsub.f32 %v9588_v31, %v9606_v62 }
 0x90c   : > { %v9598_v7 = vpop.xlane.xlu1 %9597 }
 0x90d   : > { %v9607_v23 = vmul.f32 0.0078125, %v9598_v7  ;;  %v9616_v22 = vmul.f32 %v16831_v19, %v16831_v19 }
 0x90f   : > { %v16835_v0 = vsub.f32 %v9589_v27, %v9607_v23  ;;  %9621 = vadd.xlane.f32.xlu0 %v9616_v22 }
 0x910   : > { %v9600_v16 = vpop.xlane.xlu0 %9599 }
 0x911   : > { %v9608_v8 = vmul.f32 0.0078125, %v9600_v16  ;;  %v9617_v54 = vmul.f32 %v16835_v0, %v16835_v0  ;;  %v10920_v16 = vld [vmem:[%s13545_s9 + $0x8] sm:$0xff]  }
 0x913   : > { %v16839_v29 = vsub.f32 %v9590_v42, %v9608_v8  ;;  %9623 = vadd.xlane.f32.xlu1 %v9617_v54  ;;  %v10929_v8 = vld [vmem:[%s13545_s9 + $0x50] sm:$0xff]  }
 0x914   : > { %v9602_v41 = vpop.xlane.xlu0 %9601  ;;  %v10921_v54 = vld [vmem:[%s13545_s9 + $0x10] sm:$0xff]  }
 0x915   : > { %v9609_v15 = vmul.f32 0.0078125, %v9602_v41  ;;  %v9618_v43 = vmul.f32 %v16839_v29, %v16839_v29  ;;  %v10931_v41 = vld [vmem:[%s13545_s9 + $0x60] sm:$0xff]  }
 0x917   : > { %v16843_v40 = vsub.f32 %v9591_v6, %v9609_v15  ;;  %9625 = vadd.xlane.f32.xlu0 %v9618_v43  ;;  %v10923_v15 = vld [vmem:[%s13545_s9 + $0x20] sm:$0xff]   ;;  %v10932_v43 = vld [vmem:[%s13545_s9 + $0x68] sm:$0xff]  }
 0x919   : > { %v9604_v14 = vpop.xlane.xlu1 %9603  ;;  %v9619_v4 = vmul.f32 %v16843_v40, %v16843_v40 }
 0x91a   : > { %v9610_v44 = vmul.f32 0.0078125, %v9604_v14  ;;  %v10933_v14 = vld [vmem:[%s13545_s9 + $0x70] sm:$0xff]  }
 0x91b   : > { %9627 = vadd.xlane.f32.xlu1 %v9619_v4  ;;  %v10925_v4 = vld [vmem:[%s13545_s9 + $0x30] sm:$0xff]  }
 0x91c   : > { %v16847_v26 = vsub.f32 %v9592_v36, %v9610_v44  ;;  %v10934_v44 = vld [vmem:[%s13545_s9 + $0x78] sm:$0xff]  }
 0x91e   : > { %v9620_v37 = vmul.f32 %v16847_v26, %v16847_v26 }
 0x920   : > { %9629 = vadd.xlane.f32.xlu0 %v9620_v37  ;;  %v9721_v37 = vld [vmem:[%s13585_s17] sm:$0x3]  ;;  %s17416_s17 = scalar_lea.vmem [#allocation15], %s13520_s22 }
 0x921   : > { %v9726_v21 = vrot.slane %v9721_v37, %v17414_v56  ;;  %v9730_v46 = vrot.slane %v9721_v37, %v17415_v25 }
 0x99c   : > { %v9622_v10 = vpop.xlane.xlu0 %9621 }
 0x99d   : > { %v9631_v13 = vmul.f32 0.0078125, %v9622_v10 }
 0x99f   : > { %v9636_v32 = vadd.f32 1e-05, %v9631_v13 }
 0x9a0   : > { %v9624_v2 = vpop.xlane.xlu1 %9623 }
 0x9a1   : > { %12435 = vrsqrt.f32 %v9636_v32  ;;  %v9632_v31 = vmul.f32 0.0078125, %v9624_v2 }
 0x9a3   : > { %v9637_v57 = vadd.f32 1e-05, %v9632_v31 }
 0x9a4   : > { %v9626_v61 = vpop.xlane.xlu0 %9625 }
 0x9a5   : > { %12437 = vrsqrt.f32 %v9637_v57  ;;  %v9633_v28 = vmul.f32 0.0078125, %v9626_v61 }
 0x9a7   : > { %v9638_v30 = vadd.f32 1e-05, %v9633_v28 }
 0x9a8   : > { %v9628_v27 = vpop.xlane.xlu1 %9627 }
 0x9a9   : > { %12439 = vrsqrt.f32 %v9638_v30  ;;  %v9634_v24 = vmul.f32 0.0078125, %v9628_v27 }
 0x9ab   : > { %v12436_v48 = vpop.eup %12435  ;;  %v9639_v45 = vadd.f32 1e-05, %v9634_v24 }
 0x9ac   : > { %v9646_v42 = vmul.f32 %v12436_v48, %v16831_v19 }
 0x9ad   : > { %12441 = vrsqrt.f32 %v9639_v45  ;;  %v9630_v34 = vpop.xlane.xlu0 %9629 }
 0x9ae   : > { %v9635_v33 = vmul.f32 0.0078125, %v9630_v34  ;;  %v9657_v52 = vmul.f32 %v10805_v38, %v9646_v42 }
 0x9af   : > { %v12438_v6 = vpop.eup %12437 }
 0x9b0   : > { %v9640_v55 = vadd.f32 1e-05, %v9635_v33  ;;  %v16871_v5 = vadd.f32 %v10806_v39, %v9657_v52  ;;  %v9647_v49 = vmul.f32 %v12438_v6, %v16835_v0  ;;  %v10928_v0 = vld [vmem:[%s13545_s9 + $0x48] sm:$0xff]  }
 0x9b1   : > { %11907 = vmatprep.subr.bf16.mxu0 %v10928_v0 }
 0x9b2   : > { %12443 = vrsqrt.f32 %v9640_v55  ;;  %9798 = vmatmul.mubr.f32.vlgmr.msra.gmra.mrb[100].mxu1 %v16871_v5  ;;  %v9658_v3 = vmul.f32 %v10805_v38, %v9647_v49  ;;  %11909 = vmatpush3.bf16.msra.mxu0 %v10920_v16 }
 0x9b3   : > { %v12440_v36 = vpop.eup %12439  ;;  %9803 = vmatprep.mubr.f32.mxu1 %v17280_v59  ;;  %11911 = vmatprep.subr.bf16.mxu0 %v10929_v8 }
 0x9b4   : > { %v16876_v35 = vadd.f32 %v10806_v39, %v9658_v3  ;;  %v9648_v18 = vmul.f32 %v12440_v36, %v16839_v29  ;;  %v10930_v29 = vld [vmem:[%s13545_s9 + $0x58] sm:$0xff]  }
 0x9b6   : > { %9804 = vmatmul.mubr.f32.gmra.mrb[102].mxu1 %v16876_v35  ;;  %v9659_v58 = vmul.f32 %v10805_v38, %v9648_v18  ;;  %11913 = vmatpush3.bf16.msra.mxu0 %v10921_v54 }
 0x9b7   : > { %v12442_v53 = vpop.eup %12441  ;;  %9809 = vmatprep.mubr.f32.mxu1 %v17280_v59  ;;  %11915 = vmatprep.subr.bf16.mxu0 %v10930_v29 }
 0x9b8   : > { %v16881_v11 = vadd.f32 %v10806_v39, %v9659_v58  ;;  %v9649_v60 = vmul.f32 %v12442_v53, %v16843_v40  ;;  %v10924_v40 = vld [vmem:[%s13545_s9 + $0x28] sm:$0xff]  }
 0x9ba   : > { %9810 = vmatmul.mubr.f32.gmra.mrb[104].mxu1 %v16881_v11  ;;  %v9660_v63 = vmul.f32 %v10805_v38, %v9649_v60 }
 0x9bb   : > { %9815 = vmatprep.mubr.f32.mxu1 %v17280_v59 }
 0x9bc   : > { %v12444_v62 = vpop.eup %12443  ;;  %v16886_v19 = vadd.f32 %v10806_v39, %v9660_v63 }
 0x9bd   : > { %v9650_v7 = vmul.f32 %v12444_v62, %v16847_v26  ;;  %v10926_v26 = vld [vmem:[%s13545_s9 + $0x38] sm:$0xff]  }
 0x9be   : > { %9816 = vmatmul.mubr.f32.gmra.mrb[106].mxu1 %v16886_v19 }
 0x9bf   : > { %9821 = vmatprep.mubr.f32.mxu1 %v17280_v59  ;;  %v9661_v23 = vmul.f32 %v10805_v38, %v9650_v7  ;;  %v10922_v59 = vld [vmem:[%s13545_s9 + $0x18] sm:$0xff]   ;;  %s17417_s9 = scalar_lea.vmem [#allocation17], %s13520_s22  ;;  %s17419_s22 = sld [smem:[#allocation32_spill]] }
 0x9c0   : > { %11917 = vmatpush3.bf16.msra.mxu0 %v10922_v59 }
 0x9c1   : > { %v16891_v22 = vadd.f32 %v10806_v39, %v9661_v23  ;;  %11919 = vmatprep.subr.bf16.mxu0 %v10931_v41 }
 0x9c3   : > { %9822 = vmatmul.mubr.f32.gmra.mrb[108].mxu1 %v16891_v22 }
 0x9c4   : > { %11921 = vmatpush3.bf16.msra.mxu0 %v10923_v15 }
 0x9c5   : > { %11923 = vmatprep.subr.bf16.mxu0 %v10932_v43  ;;  %p10810_p8 = scmp.ne.s32.totalorder %s17419_s22, 5 }
 0x9c8   : > { %11925 = vmatpush3.bf16.msra.mxu0 %v10924_v40 }
 0x9c9   : > { %11927 = vmatprep.subr.bf16.mxu0 %v10933_v14 }
 0x9cc   : > { %11929 = vmatpush3.bf16.msra.mxu0 %v10925_v4 }
 0x9cd   : > { %11931 = vmatprep.subr.bf16.mxu0 %v10934_v44 }
 0x9d0   : > { %11933 = vmatpush3.bf16.msra.mxu0 %v10926_v26 }
 0xa85   : > { %v9799_v1 = vpop.f32.mrb[100].mxu1 }
 0xa86   : > { %v16913_v17 = vadd.f32 %v9799_v1, %v9726_v21  ;;  %v9801_v47 = vpop.f32.mrb[101].mxu1 }
 0xa87   : > { %v16915_v50 = vadd.f32 %v9801_v47, %v9730_v46 }
 0xa88   : > { %v9838_v9 = vmul.f32 0.044715, %v16913_v17 }
 0xa89   : > { %v9839_v51 = vmul.f32 0.044715, %v16915_v50  ;;  %v9805_v20 = vpop.f32.mrb[102].mxu1 }
 0xa8a   : > { %v9848_v10 = vmul.f32 %v9838_v9, %v16913_v17  ;;  %v16920_v13 = vadd.f32 %v9805_v20, %v9726_v21  ;;  %v9807_v32 = vpop.f32.mrb[103].mxu1 }
 0xa8b   : > { %v9849_v2 = vmul.f32 %v9839_v51, %v16915_v50  ;;  %v16923_v31 = vadd.f32 %v9807_v32, %v9730_v46 }
 0xa8c   : > { %v9858_v57 = vmul.f32 %v9848_v10, %v16913_v17  ;;  %v9840_v61 = vmul.f32 0.044715, %v16920_v13 }
 0xa8d   : > { %v9841_v28 = vmul.f32 0.044715, %v16923_v31  ;;  %v9811_v30 = vpop.f32.mrb[104].mxu1  ;;  %v9859_v27 = vmul.f32 %v9849_v2, %v16915_v50 }
 0xa8e   : > { %v9868_v24 = vadd.f32 %v9858_v57, %v16913_v17  ;;  %v9850_v48 = vmul.f32 %v9840_v61, %v16920_v13  ;;  %v16931_v45 = vadd.f32 %v9811_v30, %v9726_v21  ;;  %v9813_v38 = vpop.f32.mrb[105].mxu1  ;;  %v9829_v61 = vmul.f32 0.5, %v16915_v50 }
 0xa8f   : > { %v9851_v42 = vmul.f32 %v9841_v28, %v16923_v31  ;;  %v16934_v34 = vadd.f32 %v9813_v38, %v9730_v46  ;;  %v9869_v39 = vadd.f32 %v9859_v27, %v16915_v50  ;;  %v9828_v27 = vmul.f32 0.5, %v16913_v17 }
 0xa90   : > { %v9878_v33 = vmul.f32 0.7978846, %v9868_v24  ;;  %v9842_v52 = vmul.f32 0.044715, %v16931_v45  ;;  %v9860_v6 = vmul.f32 %v9850_v48, %v16920_v13  ;;  %v9831_v50 = vmul.f32 0.5, %v16923_v31 }
 0xa91   : > { %v9843_v55 = vmul.f32 0.044715, %v16934_v34  ;;  %v9817_v49 = vpop.f32.mrb[106].mxu1  ;;  %v9879_v3 = vmul.f32 0.7978846, %v9869_v39  ;;  %v9861_v36 = vmul.f32 %v9851_v42, %v16923_v31 }
 0xa92   : > { %12445 = vtanh.f32 %v9878_v33  ;;  %v9852_v18 = vmul.f32 %v9842_v52, %v16931_v45  ;;  %v16942_v58 = vadd.f32 %v9817_v49, %v9726_v21  ;;  %v9819_v53 = vpop.f32.mrb[107].mxu1  ;;  %v9870_v60 = vadd.f32 %v9860_v6, %v16920_v13 }
 0xa93   : > { %v9853_v63 = vmul.f32 %v9843_v55, %v16934_v34  ;;  %v16946_v62 = vadd.f32 %v9819_v53, %v9730_v46  ;;  %12447 = vtanh.f32 %v9879_v3  ;;  %v9871_v7 = vadd.f32 %v9861_v36, %v16923_v31 }
 0xa94   : > { %v9844_v23 = vmul.f32 0.044715, %v16942_v58  ;;  %v9880_v0 = vmul.f32 0.7978846, %v9870_v60  ;;  %v9862_v16 = vmul.f32 %v9852_v18, %v16931_v45  ;;  %v9830_v3 = vmul.f32 0.5, %v16920_v13 }
 0xa95   : > { %v9845_v8 = vmul.f32 0.044715, %v16946_v62  ;;  %v9881_v54 = vmul.f32 0.7978846, %v9871_v7  ;;  %v9863_v29 = vmul.f32 %v9853_v63, %v16934_v34  ;;  %v9833_v63 = vmul.f32 0.5, %v16934_v34 }
 0xa96   : > { %v9854_v59 = vmul.f32 %v9844_v23, %v16942_v58  ;;  %v9823_v41 = vpop.f32.mrb[108].mxu1  ;;  %12449 = vtanh.f32 %v9880_v0  ;;  %v9872_v15 = vadd.f32 %v9862_v16, %v16931_v45  ;;  %v9832_v23 = vmul.f32 0.5, %v16931_v45 }
 0xa97   : > { %v9855_v43 = vmul.f32 %v9845_v8, %v16946_v62  ;;  %v16956_v40 = vadd.f32 %v9823_v41, %v9726_v21  ;;  %v9825_v14 = vpop.f32.mrb[109].mxu1  ;;  %12451 = vtanh.f32 %v9881_v54  ;;  %v9873_v4 = vadd.f32 %v9863_v29, %v16934_v34 }
 0xa98   : > { %v16959_v44 = vadd.f32 %v9825_v14, %v9730_v46  ;;  %v9882_v26 = vmul.f32 0.7978846, %v9872_v15  ;;  %v9864_v37 = vmul.f32 %v9854_v59, %v16942_v58  ;;  %v9835_v13 = vmul.f32 0.5, %v16946_v62 }
 0xa99   : > { %v9846_v12 = vmul.f32 0.044715, %v16956_v40  ;;  %v9883_v56 = vmul.f32 0.7978846, %v9873_v4  ;;  %v9865_v25 = vmul.f32 %v9855_v43, %v16946_v62  ;;  %v9834_v59 = vmul.f32 0.5, %v16942_v58 }
 0xa9a   : > { %v9847_v1 = vmul.f32 0.044715, %v16959_v44  ;;  %12453 = vtanh.f32 %v9882_v26  ;;  %v9874_v21 = vadd.f32 %v9864_v37, %v16942_v58  ;;  %v9837_v45 = vmul.f32 0.5, %v16959_v44  ;;  %v10807_v58 = vld [vmem:[%s17416_s17] ss:$0 sm:$0xff] }
 0xa9b   : > { %v9856_v47 = vmul.f32 %v9846_v12, %v16956_v40  ;;  %12455 = vtanh.f32 %v9883_v56  ;;  %v9875_v9 = vadd.f32 %v9865_v25, %v16946_v62  ;;  %v9836_v26 = vmul.f32 0.5, %v16956_v40 }
 0xa9c   : > { %v12446_v46 = vpop.eup %12445  ;;  %v9857_v51 = vmul.f32 %v9847_v1, %v16959_v44  ;;  %v9884_v20 = vmul.f32 0.7978846, %v9874_v21 }
 0xa9d   : > { %v12448_v10 = vpop.eup %12447  ;;  %v9898_v32 = vadd.f32 1.0, %v12446_v46  ;;  %v9885_v2 = vmul.f32 0.7978846, %v9875_v9  ;;  %v9866_v57 = vmul.f32 %v9856_v47, %v16956_v40 }
 0xa9e   : > { %v9899_v28 = vadd.f32 1.0, %v12448_v10  ;;  %12457 = vtanh.f32 %v9884_v20  ;;  %v9867_v30 = vmul.f32 %v9857_v51, %v16959_v44 }
 0xa9f   : > { %12459 = vtanh.f32 %v9885_v2  ;;  %v9876_v24 = vadd.f32 %v9866_v57, %v16956_v40  ;;  %v9908_v33 = vmul.f32 %v9898_v32, %v9828_v27 }
 0xaa0   : > { %v12450_v48 = vpop.eup %12449  ;;  %v9909_v38 = vmul.f32 %v9899_v28, %v9829_v61  ;;  %v9877_v42 = vadd.f32 %v9867_v30, %v16959_v44 }
 0xaa1   : > { %v12452_v39 = vpop.eup %12451  ;;  %v9900_v52 = vadd.f32 1.0, %v12450_v48  ;;  %v9886_v6 = vmul.f32 0.7978846, %v9876_v24 }
 0xaa2   : > { %10053 = vmatprep.mubr.f32.mxu0 %v9909_v38  ;;  %v9901_v55 = vadd.f32 1.0, %v12452_v39  ;;  %v9887_v49 = vmul.f32 0.7978846, %v9877_v42 }
 0xaa3   : > { %10054 = vmatmul.mubr.f32.vlgmr.msra.gmra.mrb[90].mxu0 %v9908_v33  ;;  %12461 = vtanh.f32 %v9886_v6  ;;  %v9910_v53 = vmul.f32 %v9900_v52, %v9830_v3 }
 0xaa4   : > { %v12454_v17 = vpop.eup %12453  ;;  %v9911_v36 = vmul.f32 %v9901_v55, %v9831_v50  ;;  %12463 = vtanh.f32 %v9887_v49 }
 0xaa5   : > { %v12456_v18 = vpop.eup %12455  ;;  %v9902_v60 = vadd.f32 1.0, %v12454_v17 }
 0xaa6   : > { %10058 = vmatprep.mubr.f32.mxu0 %v9911_v36  ;;  %v9903_v7 = vadd.f32 1.0, %v12456_v18 }
 0xaa7   : > { %10059 = vmatmul.mubr.f32.gmra.mrb[92].mxu0 %v9910_v53  ;;  %v9912_v8 = vmul.f32 %v9902_v60, %v9832_v23 }
 0xaa8   : > { %v12458_v31 = vpop.eup %12457  ;;  %v9913_v0 = vmul.f32 %v9903_v7, %v9833_v63 }
 0xaa9   : > { %v12460_v16 = vpop.eup %12459  ;;  %v9904_v54 = vadd.f32 1.0, %v12458_v31 }
 0xaaa   : > { %10063 = vmatprep.mubr.f32.mxu0 %v9913_v0  ;;  %v9905_v29 = vadd.f32 1.0, %v12460_v16 }
 0xaab   : > { %10064 = vmatmul.mubr.f32.gmra.mrb[94].mxu0 %v9912_v8  ;;  %v9914_v34 = vmul.f32 %v9904_v54, %v9834_v59 }
 0xaac   : > { %v9915_v41 = vmul.f32 %v9905_v29, %v9835_v13 }
 0xaad   : > { %v12462_v15 = vpop.eup %12461 }
 0xaae   : > { %v12464_v43 = vpop.eup %12463  ;;  %10068 = vmatprep.mubr.f32.mxu0 %v9915_v41  ;;  %v9906_v14 = vadd.f32 1.0, %v12462_v15 }
 0xaaf   : > { %10069 = vmatmul.mubr.f32.gmra.mrb[96].mxu0 %v9914_v34  ;;  %v9907_v4 = vadd.f32 1.0, %v12464_v43 }
 0xab0   : > { %v9916_v12 = vmul.f32 %v9906_v14, %v9836_v26  ;;  %v10808_v14 = vld [vmem:[%s17417_s9] ss:$0 sm:$0xff] }
 0xab1   : > { %v9917_v37 = vmul.f32 %v9907_v4, %v9837_v45  ;;  %v10809_v26 = vld [vmem:[%s17418_s12] ss:$0 sm:$0xff] }
 0xab3   : > { %10073 = vmatprep.mubr.f32.mxu0 %v9917_v37 }
 0xab4   : > { %10074 = vmatmul.mubr.f32.gmra.mrb[98].mxu0 %v9916_v12 }
 0xb76   : > { %v11169_v62 = vpop.f32.mrb[90].mxu0 }
 0xb77   : > { %v11170_v56 = vpop.f32.mrb[91].mxu0 }
 0xb78   : > { %v11171_v25 = vadd.f32 %v11170_v56, %v11169_v62 }
 0xb7a   : > { %v10056_v1 = vadd.f32 %v11171_v25, %v10807_v58  ;;  %v11172_v21 = vpop.f32.mrb[92].mxu0 }
 0xb7b   : > { %v11173_v47 = vpop.f32.mrb[93].mxu0 }
 0xb7c   : > { %v11174_v9 = vadd.f32 %v11173_v47, %v11172_v21  ;;  %v10079_v46 = vadd.f32 %v10056_v1, %v16871_v5 }
 0xb7e   : > { %v10061_v51 = vadd.f32 %v11174_v9, %v10807_v58  ;;  %v11175_v44 = vpop.f32.mrb[94].mxu0  ;;  %10086 = vadd.xlane.f32.xlu1 %v10079_v46 }
 0xb7f   : > { %v11176_v20 = vpop.f32.mrb[95].mxu0 }
 0xb80   : > { %v11177_v40 = vadd.f32 %v11176_v20, %v11175_v44  ;;  %v10080_v10 = vadd.f32 %v10061_v51, %v16876_v35 }
 0xb82   : > { %v10066_v32 = vadd.f32 %v11177_v40, %v10807_v58  ;;  %v11178_v2 = vpop.f32.mrb[96].mxu0  ;;  %10088 = vadd.xlane.f32.xlu0 %v10080_v10 }
 0xb83   : > { %v11179_v57 = vpop.f32.mrb[97].mxu0 }
 0xb84   : > { %v11180_v61 = vadd.f32 %v11179_v57, %v11178_v2  ;;  %v10081_v28 = vadd.f32 %v10066_v32, %v16881_v11 }
 0xb86   : > { %v10071_v30 = vadd.f32 %v11180_v61, %v10807_v58  ;;  %10090 = vadd.xlane.f32.xlu1 %v10081_v28 }
 0xb87   : > { %v11181_v27 = vpop.f32.mrb[98].mxu0 }
 0xb88   : > { %v11182_v24 = vpop.f32.mrb[99].mxu0  ;;  %v10082_v5 = vadd.f32 %v10071_v30, %v16886_v19 }
 0xb89   : > { %v11183_v48 = vadd.f32 %v11182_v24, %v11181_v27 }
 0xb8a   : > { %10092 = vadd.xlane.f32.xlu0 %v10082_v5 }
 0xb8b   : > { %v10076_v38 = vadd.f32 %v11183_v48, %v10807_v58 }
 0xb8d   : > { %v10083_v42 = vadd.f32 %v10076_v38, %v16891_v22 }
 0xb8f   : > { %10094 = vadd.xlane.f32.xlu1 %v10083_v42 }
 0xc0b   : > { %v10087_v35 = vpop.xlane.xlu1 %10086 }
 0xc0c   : > { %v10096_v39 = vmul.f32 0.0078125, %v10087_v35 }
 0xc0e   : > { %v10101_v33 = vsub.f32 %v10079_v46, %v10096_v39 }
 0xc0f   : > { %v10089_v52 = vpop.xlane.xlu0 %10088 }
 0xc10   : > { %v10097_v6 = vmul.f32 0.0078125, %v10089_v52  ;;  %v10106_v50 = vmul.f32 %v10101_v33, %v10101_v33 }
 0xc12   : > { %v10102_v55 = vsub.f32 %v10080_v10, %v10097_v6  ;;  %10111 = vadd.xlane.f32.xlu0 %v10106_v50 }
 0xc13   : > { %v10091_v11 = vpop.xlane.xlu1 %10090 }
 0xc14   : > { %v10098_v49 = vmul.f32 0.0078125, %v10091_v11  ;;  %v10107_v3 = vmul.f32 %v10102_v55, %v10102_v55 }
 0xc16   : > { %v10103_v17 = vsub.f32 %v10081_v28, %v10098_v49  ;;  %10113 = vadd.xlane.f32.xlu1 %v10107_v3 }
 0xc17   : > { %v10093_v19 = vpop.xlane.xlu0 %10092 }
 0xc18   : > { %v10099_v36 = vmul.f32 0.0078125, %v10093_v19  ;;  %v10108_v18 = vmul.f32 %v10103_v17, %v10103_v17 }
 0xc1a   : > { %v10104_v53 = vsub.f32 %v10082_v5, %v10099_v36  ;;  %10115 = vadd.xlane.f32.xlu0 %v10108_v18 }
 0xc1c   : > { %v10095_v22 = vpop.xlane.xlu1 %10094  ;;  %v10109_v60 = vmul.f32 %v10104_v53, %v10104_v53 }
 0xc1d   : > { %v10100_v63 = vmul.f32 0.0078125, %v10095_v22 }
 0xc1e   : > { %10117 = vadd.xlane.f32.xlu1 %v10109_v60 }
 0xc1f   : > { %v10105_v7 = vsub.f32 %v10083_v42, %v10100_v63 }
 0xc21   : > { %v10110_v23 = vmul.f32 %v10105_v7, %v10105_v7 }
 0xc23   : > { %10119 = vadd.xlane.f32.xlu0 %v10110_v23 }
 0xc9f   : > { %v10112_v31 = vpop.xlane.xlu0 %10111 }
 0xca0   : > { %v10121_v0 = vmul.f32 0.0078125, %v10112_v31 }
 0xca2   : > { %v10126_v16 = vadd.f32 1e-05, %v10121_v0 }
 0xca3   : > { %v10114_v8 = vpop.xlane.xlu1 %10113 }
 0xca4   : > { %12465 = vrsqrt.f32 %v10126_v16  ;;  %v10122_v54 = vmul.f32 0.0078125, %v10114_v8 }
 0xca6   : > { %v10127_v13 = vadd.f32 1e-05, %v10122_v54 }
 0xca7   : > { %v10116_v29 = vpop.xlane.xlu0 %10115 }
 0xca8   : > { %12467 = vrsqrt.f32 %v10127_v13  ;;  %v10123_v59 = vmul.f32 0.0078125, %v10116_v29 }
 0xcaa   : > { %v10128_v41 = vadd.f32 1e-05, %v10123_v59 }
 0xcab   : > { %v10118_v15 = vpop.xlane.xlu1 %10117 }
 0xcac   : > { %12469 = vrsqrt.f32 %v10128_v41  ;;  %v10124_v34 = vmul.f32 0.0078125, %v10118_v15 }
 0xcae   : > { %v12466_v43 = vpop.eup %12465  ;;  %v10129_v45 = vadd.f32 1e-05, %v10124_v34 }
 0xcaf   : > { %v10136_v4 = vmul.f32 %v12466_v43, %v10101_v33 }
 0xcb0   : > { %12471 = vrsqrt.f32 %v10129_v45  ;;  %v10120_v37 = vpop.xlane.xlu0 %10119 }
 0xcb1   : > { %v10147_v12 = vmul.f32 %v10808_v14, %v10136_v4  ;;  %v10125_v62 = vmul.f32 0.0078125, %v10120_v37 }
 0xcb2   : > { %v12468_v58 = vpop.eup %12467 }
 0xcb3   : > { %v10158_v56 = vadd.f32 %v10809_v26, %v10147_v12  ;;  %v10137_v25 = vmul.f32 %v12468_v58, %v10102_v55  ;;  %v10130_v1 = vadd.f32 1e-05, %v10125_v62 }
 0xcb5   : > { %10163 = vst [vmem:[#allocation2] sm:$0xff] %v10158_v56  ;;  %v10148_v21 = vmul.f32 %v10808_v14, %v10137_v25  ;;  %12473 = vrsqrt.f32 %v10130_v1  ;;  %10172 = vst [vmem:[%s13589_s5] sm:$0xff] (!%p10810_p8), %v10158_v56 }
 0xcb6   : > { %v12470_v47 = vpop.eup %12469 }
 0xcb7   : > { %v10159_v9 = vadd.f32 %v10809_v26, %v10148_v21  ;;  %v10138_v46 = vmul.f32 %v12470_v47, %v10103_v17 }
 0xcb9   : > { %10164 = vst [vmem:[#allocation2 + $0x8] sm:$0xff] %v10159_v9  ;;  %v10149_v51 = vmul.f32 %v10808_v14, %v10138_v46  ;;  %10173 = vst [vmem:[%s13589_s5 + $0x8] sm:$0xff] (!%p10810_p8), %v10159_v9 }
 0xcba   : > { %v12472_v44 = vpop.eup %12471 }
 0xcbb   : > { %v10160_v20 = vadd.f32 %v10809_v26, %v10149_v51  ;;  %v10139_v40 = vmul.f32 %v12472_v44, %v10104_v53 }
 0xcbd   : > { %10165 = vst [vmem:[#allocation2 + $0x10] sm:$0xff] %v10160_v20  ;;  %v10150_v10 = vmul.f32 %v10808_v14, %v10139_v40  ;;  %10174 = vst [vmem:[%s13589_s5 + $0x10] sm:$0xff] (!%p10810_p8), %v10160_v20 }
 0xcbf   : > { %v12474_v32 = vpop.eup %12473  ;;  %v10161_v2 = vadd.f32 %v10809_v26, %v10150_v10 }
 0xcc0   : > { %v10140_v57 = vmul.f32 %v12474_v32, %v10105_v7  ;;  %10171 = sbr.rel (%p10810_p8) target bundleno = 3271 (0xcc7), region = 124 }
 0xcc1   : > { %10166 = vst [vmem:[#allocation2 + $0x18] sm:$0xff] %v10161_v2  ;;  %10175 = vst [vmem:[%s13589_s5 + $0x18] sm:$0xff] (!%p10810_p8), %v10161_v2 }
 0xcc2   : > { %v10151_v61 = vmul.f32 %v10808_v14, %v10140_v57 }
 0xcc4   : > { %v10162_v28 = vadd.f32 %v10809_v26, %v10151_v61 }
 0xcc6   : > { %10167 = vst [vmem:[#allocation2 + $0x20] sm:$0xff] %v10162_v28  ;;  %10176 = vst [vmem:[%s13589_s5 + $0x20] sm:$0xff] (!%p10810_p8), %v10162_v28 }
 0xcc7 PF: > { %s17420_s16 = sld [smem:[#allocation33_spill]]  ;;  %s10191_s1 = sshll.u32 %s13589_s5, 4  ;;  %s17007_s1 = int_to_ptr.vmem [resolvable:$true] %s10191_s1 }
 0xcc8   : > { %s17421_s6 = sld [smem:[#allocation83_spill]]  ;;  %s10178_s4 = scalar_lea.sflag [#allocation5], %s13506_s13 }
 0xcc9   : > { %s12780_s7 = scalar_lea.vmem %s17007_s1, 640  ;;  %p17422_p4 = scmp.ne.s32.totalorder %s17224_s20, 0 }
 0xcca   : > { %p12781_p9 = scmp.ne.s32.totalorder %s17007_s1, %s12780_s7  ;;  %s12952_s14 = smov [#allocation20]  }
 0xccb   : > { %s12784_s19 = sshll.u32 %s12952_s14, 4  ;;  %s12785_s19 = int_to_ptr.vmem [resolvable:$false] %s12784_s19 }
 0xccc   : > { %p12782_p2 = pnand %p12781_p9, %p17422_p4  ;;  %s12786_s5 = scalar_lea.vmem %s12785_s19, 1280 }
 0xccd   : > { %s11981_s27 = smul.u32 640, %s17420_s16  ;;  %p12787_p11 = scmp.lt.s32.totalorder %s17007_s1, %s12785_s19 }
 0xcce   : > { %p12783_p10 = pneg %p12782_p2  ;;  %p12788_p7 = scmp.lt.s32.totalorder %s12786_s5, %s12780_s7 }
 0xccf   : > { %s17005_s0 = scalar_lea.hbm %s17421_s6, %s11981_s27 }
 0xcd0   : > { %p12789_p12 = por %p12788_p7, %p12787_p11 }
 0xcd2   : > { %p12790_p0 = pnand %p12789_p12, %p12783_p10 }
 0xcd4   : > { %12793 = shalt.err (!%p12790_p0)
}
 0xcd5   : > { %s12794_s26 = scalar_lea.hbm %s17005_s0, 640  ;;  %s12798_s29 = scalar_lea.hbm %s17421_s6, 1280 }
 0xcd6   : > { %p12795_p6 = scmp.ne.s32.totalorder %s17005_s0, %s12794_s26  ;;  %p12799_p1 = scmp.lt.u32.totalorder %s17005_s0, %s17421_s6 }
 0xcd7   : > { %p12800_p3 = scmp.lt.u32.totalorder %s12798_s29, %s12794_s26  ;;  %p12802_p9 = scmp.lt.u32.totalorder %s12794_s26, %s17005_s0 }
 0xcd8   : > { %p12796_p5 = pnand %p12795_p6, %p17422_p4 }
 0xcd9   : > { %p12801_p8 = por %p12800_p3, %p12799_p1 }
 0xcda   : > { %p12797_p13 = pneg %p12796_p5 }
 0xcdb   : > { %p12803_p2 = por %p12802_p9, %p12801_p8 }
 0xcdd   : > { %p12804_p10 = pnand %p12803_p2, %p12797_p13 }
 0xcdf   : > { %12807 = shalt.err (!%p12804_p10)
}
 0xce0   : > { %s12953_s18 = smov 128   ;;  %s12954_s3 = smov 8  }
 0xce1   : > { %12002 = dma.vmem_to_hbm [thread:$0]  (%p17422_p4), %s17007_s1, 640, %s17005_s0, %s10178_s4, %s12953_s18, %s12953_s18, %s12954_s3  }
 0xce2 PF: > { %s17423_s28 = sld [smem:[#allocation29_spill]]  ;;  %s17424_s8 = sld [smem:[#allocation42_spill]] }
 0xce3   : > { %p12040_p11 = scmp.ge.s32.totalorder %s12922_s23, 2 }
 0xce8   : > { %s10206_s24 = sand.u32 1, %s17423_s28   ;;  %p17425_p7 = scmp.ne.s32.totalorder %s17424_s8, 0 }
 0xce9   : > { %s10207_s17 = scalar_lea.sflag [#allocation5], %s10206_s24 }
 0xcea   : > { %p12036_p12 = pnand %p12040_p11, %p17425_p7 }
 0xcec   : > { %12877 = dma.done.wait (!%p12036_p12), %s10207_s17, 640  }
 0xced   : > { %12879 = vsyncadd (!%p12036_p12), %s10207_s17, 4294966656  ;;  %s45_s23 = sadd.s32 1, %s12922_s23   ;;  %s17426_s9 = sld [smem:[#allocation28_spill]] }
 0xcee   : > { %p42_p0 = scmp.ge.s32.totalorder %s45_s23, 14   ;;  %s17427_s15 = sld [smem:[#allocation39_spill]] }
 0xcef   : > { %s17428_s16 = sld [smem:[#allocation30_spill]]  ;;  %s17429_s17 = sld [smem:[#allocation31_spill]] }
 0xcf0   : > { %s17430_s18 = sld [smem:[#allocation40_spill]]  ;;  %s17431_s19 = sld [smem:[#allocation34_spill]] }
 0xcf1   : > { %s17432_s20 = sld [smem:[#allocation35_spill]]  ;;  %s17433_s21 = sld [smem:[#allocation37_spill]] }
 0xcf2   : > { %s17434_s22 = sld [smem:[#allocation38_spill]]  ;;  %s17435_s29 = smov %s12886_s30 }
 0xcf3   : > { %s17436_s30 = smov %s17426_s9  ;;  %44 = sbr.rel (!%p42_p0) target bundleno = 35 (0x23), region = 250 }
 0xcfa   :  { %10212 = vsyncpa [#allocation4], 1 }
 0xcfb   :  { %10214 = vsyncpa [#allocation4 + $0x1], 1 }
 0xcfc   :  { %10215 = vsyncpa [#allocation7], 1 }
 0xcfd   :  { %10217 = vsyncpa [#allocation7 + $0x1], 1 }
 0xcfe   :  { %10218 = vsyncpa [#allocation10], 1 }
 0xcff   :  { %10220 = vsyncpa [#allocation10 + $0x1], 1 }
 0xd00   :  { %10221 = vsyncpa [#allocation13], 1 }
 0xd01   :  { %10223 = vsyncpa [#allocation13 + $0x1], 1 }
 0xd02   :  { %10224 = vsyncpa [#allocation16], 1 }
 0xd03   :  { %10226 = vsyncpa [#allocation16 + $0x1], 1 }
 0xd04   :  { %10227 = vsyncpa [#allocation19], 1 }
 0xd05   :  { %10229 = vsyncpa [#allocation19 + $0x1], 1 }
 0xd06   :  { %10230 = vsyncpa [#allocation5], 1 }
 0xd07   :  { %10232 = vsyncpa [#allocation5 + $0x1], 1 }

</bundles_post_ra>
